<compile_context>
chip_gen: v7x
topology: tpu7x:2x2x1
jax: 0.10.0
libtpu: 0.0.40
codegen_flags: <defaults>
</compile_context>

<pallas_src>
import functools

import jax
import jax.numpy as jnp
from jax.experimental import pallas as pl
from jax.experimental.pallas import tpu as pltpu


VMEM_LIMIT = 48 * 1024 * 1024   # scoped-VMEM budget: ok on v5e/v6e (128 MiB) and v7x (64 MiB)

# Non-zero taps of the causal masks (kernel 7x7, h//2 == w//2 == 3).
#   ConvA: rows 0..2 full, row 3 cols 0..2   (24 taps, excludes center)
#   ConvB: rows 0..2 full, row 3 cols 0..3   (25 taps, includes center)
TAPS_A = tuple((di, dj) for di in range(3) for dj in range(7)) + tuple((3, dj) for dj in range(3))
TAPS_B = tuple((di, dj) for di in range(3) for dj in range(7)) + tuple((3, dj) for dj in range(4))


# ----------------------------- small helpers ------------------------------- #

def _round_up(x, m):
    return ((x + m - 1) // m) * m


def _pick_m_tile(m, pref=512):
    """M tile: <= pref, multiple of 8, and >= 2 blocks when possible (v7x megacore)."""
    if m <= 8:
        return m, m                       # single tiny block (full-extent exempt)
    half = _round_up((m + 1) // 2, 8)
    tm = min(pref, half)
    return tm, _round_up(m, tm)


# ----------------------------- Pallas kernels ------------------------------ #

def _mconv_kernel(x_ref, w_ref, b_ref, o_ref, acc_ref, *, taps, H, W, relu_out):
    """Masked 7x7 conv on ONE image.

    x_ref: (H+6, W+6, C) bf16 halo-padded image (DMA'd once per grid step).
    w_ref: (T, C, Cout) bf16 packed per-tap weights (causal mask == tap selection).
    Accumulates per-tap shifted-window matmuls into an f32 VMEM scratch; the
    bias/ReLU epilogue runs in f32 and the result is stored lane-dense in bf16.
    """
    C = x_ref.shape[-1]
    HW = H * W
    for t, (di, dj) in enumerate(taps):
        # Static-offset shifted window of the padded image (stays in VMEM).
        xs = x_ref[di:di + H, dj:dj + W, :].reshape(HW, C)
        p = jnp.dot(xs, w_ref[t], preferred_element_type=jnp.float32)
        if t == 0:
            acc_ref[...] = p
        else:
            acc_ref[...] += p
    out = acc_ref[...] + b_ref[...]
    if relu_out:
        out = jnp.maximum(out, 0.0)
    o_ref[...] = out.astype(o_ref.dtype)


def _gemm1x1_kernel(x_ref, w_ref, b_ref, o_ref, *, relu_in, relu_out):
    x = x_ref[...]
    if relu_in:
        x = jnp.maximum(x, 0)
    out = jnp.dot(x, w_ref[...], preferred_element_type=jnp.float32) + b_ref[...]
    if relu_out:
        out = jnp.maximum(out, 0.0)
    o_ref[...] = out.astype(o_ref.dtype)


def _gemm1x1_res_kernel(x_ref, w_ref, b_ref, r_ref, o_ref, *, relu_in, relu_out):
    x = x_ref[...]
    if relu_in:
        x = jnp.maximum(x, 0)
    out = jnp.dot(x, w_ref[...], preferred_element_type=jnp.float32) + b_ref[...]
    out = out + r_ref[...].astype(jnp.float32)
    if relu_out:
        out = jnp.maximum(out, 0.0)
    o_ref[...] = out.astype(o_ref.dtype)


def _head_kernel(x_ref, w1_ref, b1_ref, w2_ref, b2_ref, o_ref):
    # Fused head: ReLU -> 1x1 -> ReLU -> 1x1 (intermediate never touches HBM).
    x = jnp.maximum(x_ref[...], 0)                          # bf16 in
    y = jnp.dot(x, w1_ref[...], preferred_element_type=jnp.float32) + b1_ref[...]
    y = jnp.maximum(y, 0.0).astype(jnp.bfloat16)
    o_ref[...] = jnp.dot(y, w2_ref[...], preferred_element_type=jnp.float32) + b2_ref[...]


# ------------------------------ kernel wrappers ----------------------------- #

def masked_conv7x7(xpad, w, b, *, taps, H, W, relu_out):
    """xpad: (N, H+6, W+6, C) bf16 (spatially pre-padded, C multiple of 128).
    w: (T, C, Cout) bf16, b: (1, Cout) f32.  Returns (N, H*W, Cout) bf16."""
    N, Hp, Wp, C = xpad.shape
    T, Cw, Cout = w.shape
    assert Cw == C and T == len(taps)
    HW = H * W

    kernel = functools.partial(_mconv_kernel, taps=taps, H=H, W=W, relu_out=relu_out)
    return pl.pallas_call(
        kernel,
        out_shape=jax.ShapeDtypeStruct((N, HW, Cout), jnp.bfloat16),
        grid_spec=pltpu.PrefetchScalarGridSpec(
            num_scalar_prefetch=0,
            grid=(N,),
            in_specs=[pl.BlockSpec((None, Hp, Wp, C), lambda n: (n, 0, 0, 0)),
                      pl.BlockSpec((T, C, Cout), lambda n: (0, 0, 0)),   # resident weights
                      pl.BlockSpec((1, Cout), lambda n: (0, 0))],
            out_specs=pl.BlockSpec((None, HW, Cout), lambda n: (n, 0, 0)),
            scratch_shapes=[pltpu.VMEM((HW, Cout), jnp.float32)]),
        compiler_params=pltpu.CompilerParams(
            dimension_semantics=("parallel",),
            vmem_limit_bytes=VMEM_LIMIT),
    )(xpad, w, b)


def gemm1x1(x, w, b, *, relu_in=False, relu_out=False, residual=None, tm_pref=512):
    """(optional ReLU(x)) @ w + b (+ residual) (+ output ReLU), MXU-tiled over M only.

    x: (M, K) bf16, w: (K, Nc) bf16 (K, Nc multiples of 128), b: (1, Nc) f32,
    residual: (M, Nc) bf16 or None.  Returns (M, Nc) bf16 (f32 accumulation)."""
    M, K = x.shape
    Kw, Nc = w.shape
    assert K == Kw, (K, Kw)

    tm, Mp = _pick_m_tile(M, tm_pref)
    xp = x if Mp == M else jnp.pad(x, ((0, Mp - M), (0, 0)))

    in_specs = [pl.BlockSpec((tm, K), lambda i: (i, 0)),
                pl.BlockSpec((K, Nc), lambda i: (0, 0)),
                pl.BlockSpec((1, Nc), lambda i: (0, 0))]
    args = [xp, w, b]

    if residual is None:
        kernel = functools.partial(_gemm1x1_kernel, relu_in=relu_in, relu_out=relu_out)
    else:
        kernel = functools.partial(_gemm1x1_res_kernel, relu_in=relu_in, relu_out=relu_out)
        rp = residual if Mp == M else jnp.pad(residual, ((0, Mp - M), (0, 0)))
        in_specs.append(pl.BlockSpec((tm, Nc), lambda i: (i, 0)))
        args.append(rp)

    out = pl.pallas_call(
        kernel,
        out_shape=jax.ShapeDtypeStruct((Mp, Nc), jnp.bfloat16),
        grid_spec=pltpu.PrefetchScalarGridSpec(
            num_scalar_prefetch=0,
            grid=(Mp // tm,),
            in_specs=in_specs,
            out_specs=pl.BlockSpec((tm, Nc), lambda i: (i, 0))),
        compiler_params=pltpu.CompilerParams(
            dimension_semantics=("parallel",),
            vmem_limit_bytes=VMEM_LIMIT),
    )(*args)

    return out if Mp == M else out[:M]


def head_fused(x, w1, b1, w2, b2, *, tm_pref=512):
    """Fused head: ReLU -> 1x1(w1,b1) -> ReLU -> 1x1(w2,b2).  x: (M, Cin) bf16 -> (M, 128) f32."""
    M, cin = x.shape
    n1 = w1.shape[1]
    n2 = w2.shape[1]
    tm, Mp = _pick_m_tile(M, tm_pref)
    xp = x if Mp == M else jnp.pad(x, ((0, Mp - M), (0, 0)))

    out = pl.pallas_call(
        _head_kernel,
        out_shape=jax.ShapeDtypeStruct((Mp, n2), jnp.float32),
        grid_spec=pltpu.PrefetchScalarGridSpec(
            num_scalar_prefetch=0,
            grid=(Mp // tm,),
            in_specs=[pl.BlockSpec((tm, cin), lambda i: (i, 0)),
                      pl.BlockSpec((cin, n1), lambda i: (0, 0)),
                      pl.BlockSpec((1, n1), lambda i: (0, 0)),
                      pl.BlockSpec((n1, n2), lambda i: (0, 0)),
                      pl.BlockSpec((1, n2), lambda i: (0, 0))],
            out_specs=pl.BlockSpec((tm, n2), lambda i: (i, 0))),
        compiler_params=pltpu.CompilerParams(
            dimension_semantics=("parallel",),
            vmem_limit_bytes=VMEM_LIMIT),
    )(xp, w1, b1, w2, b2)

    return out if Mp == M else out[:M]


# --------------------- parameter init & packing (hoisted) ------------------- #

def init_conv(key, cout, cin, kh, kw):
    k_w, k_b = jax.random.split(key)
    fan_in = cin * kh * kw
    lim = 1.0 / jnp.sqrt(float(fan_in))
    w = jax.random.uniform(k_w, (cout, cin, kh, kw), jnp.float32, -lim, lim)
    b = jax.random.uniform(k_b, (cout,), jnp.float32, -lim, lim)
    return w, b


def init_params(key, dim, nf, res_blocks):
    keys = jax.random.split(key, 4 + 3 * res_blocks)
    it = iter(keys)
    params = {}
    params['emb'] = 0.02 * jax.random.normal(next(it), (128, dim), jnp.float32)
    params['conv_a'] = init_conv(next(it), nf, dim, 7, 7)                 # ConvA 7x7
    params['res'] = []
    for _ in range(res_blocks):
        c1 = init_conv(next(it), nf // 2, nf, 1, 1)                       # ConvB 1x1
        c2 = init_conv(next(it), nf // 2, nf // 2, 7, 7)                  # ConvB 7x7
        c3 = init_conv(next(it), nf, nf // 2, 1, 1)                       # ConvB 1x1
        params['res'].append((c1, c2, c3))
    params['head1'] = init_conv(next(it), nf, nf, 1, 1)
    params['head2'] = init_conv(next(it), 128, nf, 1, 1)
    return params


def _pack_conv1x1(w_oihw, b, cin_p, cout_p):
    cout, cin = w_oihw.shape[:2]
    wk = jnp.zeros((cin_p, cout_p), jnp.float32).at[:cin, :cout].set(w_oihw[:, :, 0, 0].T)
    bk = jnp.zeros((1, cout_p), jnp.float32).at[0, :cout].set(b)
    return wk.astype(jnp.bfloat16), bk


def _pack_conv7x7(w_oihw, b, taps, cin_p, cout_p):
    cout, cin, kh, kw = w_oihw.shape
    w = jnp.transpose(w_oihw, (2, 3, 1, 0))                  # (kh, kw, cin, cout)
    wt = jnp.stack([w[di, dj] for (di, dj) in taps], axis=0)  # mask == tap selection
    wk = jnp.zeros((len(taps), cin_p, cout_p), jnp.float32).at[:, :cin, :cout].set(wt)
    bk = jnp.zeros((1, cout_p), jnp.float32).at[0, :cout].set(b)
    return wk.astype(jnp.bfloat16), bk


def pack_params(params, *, dim, nf):
    """One-time weight packing: causal mask via tap selection, channel dims padded
    to multiples of 128 (lane-dense), weights transposed to (T, Cin, Cout) / (K, Cout),
    bf16 cast; embedding table padded + bf16 so the gather output is kernel-ready."""
    dim_p = _round_up(dim, 128)
    nf_p = _round_up(nf, 128)
    nh_p = _round_up(max(nf // 2, 1), 128)

    emb = params['emb']
    packed = {'emb': jnp.zeros((emb.shape[0], dim_p), jnp.float32)
                        .at[:, :dim].set(emb).astype(jnp.bfloat16)}
    packed['conv_a'] = _pack_conv7x7(*params['conv_a'], TAPS_A, cin_p=dim_p, cout_p=nf_p)
    packed['res'] = []
    for (c1, c2, c3) in params['res']:
        p1 = _pack_conv1x1(*c1, cin_p=nf_p, cout_p=nh_p)
        p2 = _pack_conv7x7(*c2, TAPS_B, cin_p=nh_p, cout_p=nh_p)
        p3 = _pack_conv1x1(*c3, cin_p=nh_p, cout_p=nf_p)
        packed['res'].append((p1, p2, p3))
    packed['head1'] = _pack_conv1x1(*params['head1'], cin_p=nf_p, cout_p=nf_p)
    packed['head2'] = _pack_conv1x1(*params['head2'], cin_p=nf_p, cout_p=128)
    return packed


# --------------------------------- forward ---------------------------------- #

def pixelcnn_forward(packed, x_codes, *, H, W):
    N = x_codes.shape[0]
    M = N * H * W
    pad3 = ((0, 0), (3, 3), (3, 3), (0, 0))

    # TODO(synk): embedding gather kept in XLA (no efficient generic Pallas gather here).
    inp = packed['emb'][x_codes]                                        # (N, H, W, dim_p) bf16

    # ConvA 7x7 (24 causal taps), no preceding ReLU.
    wA, bA = packed['conv_a']
    h = masked_conv7x7(jnp.pad(inp, pad3), wA, bA,
                       taps=TAPS_A, H=H, W=W, relu_out=False)           # (N, H*W, nf_p) bf16
    h = h.reshape(M, -1)                                                # residual stream (bf16)

    # Residual blocks: ReLU->1x1 -> ReLU->7x7(B) -> ReLU->1x1, then + input.
    # The ReLU feeding the 7x7 is the first 1x1's epilogue; the ReLU feeding the
    # closing 1x1 is the 7x7's epilogue (all applied to un-expanded activations).
    for (w1, b1), (w2, b2), (w3, b3) in packed['res']:
        x_in = h
        y = gemm1x1(x_in, w1, b1, relu_in=True, relu_out=True)          # (M, nh_p) bf16
        y = masked_conv7x7(jnp.pad(y.reshape(N, H, W, -1), pad3), w2, b2,
                           taps=TAPS_B, H=H, W=W, relu_out=True)        # (N, H*W, nh_p) bf16
        h = gemm1x1(y.reshape(M, -1), w3, b3, residual=x_in)            # (M, nf_p) bf16

    # Head: ReLU -> 1x1 -> ReLU -> 1x1  (single fused kernel, 128 logits/pixel).
    (wh1, bh1), (wh2, bh2) = packed['head1'], packed['head2']
    logits = head_fused(h, wh1, bh1, wh2, bh2)                          # (M, 128) f32

    out = logits.reshape(N, H, W, 128)
    return jnp.transpose(out, (0, 3, 1, 2))                             # NCHW (N,128,H,W)


# ----------------------------------- main ----------------------------------- #

if __name__ == "__main__":
    # Small shapes consistent with the module (dim, nf scaled down).
    N, H, W = 2, 8, 8
    dim, nf, res_blocks = 32, 16, 2

    key = jax.random.PRNGKey(0)
    k_params, k_x = jax.random.split(key)
    raw = init_params(k_params, dim, nf, res_blocks)
    packed = pack_params(raw, dim=dim, nf=nf)        # hoisted weight packing
    x = jax.random.randint(k_x, (N, H, W), 0, 128, dtype=jnp.int32)

    fwd = jax.jit(functools.partial(pixelcnn_forward, H=H, W=W))
    out = jax.block_until_ready(fwd(packed, x))

    assert out.shape == (N, 128, H, W) and out.dtype == jnp.float32
    assert bool(jnp.isfinite(out).all())
    print("KERNEL_OK")
</pallas_src>

<mosaic_0001>
module attributes {stable_mosaic.version = 11 : i64} {
  func.func @_gemm1x1_kernel(%arg0: i32, %arg1: memref<64x128xbf16, #tpu.memory_space<vmem>>, %arg2: memref<128x128xbf16, #tpu.memory_space<vmem>>, %arg3: memref<1x128xf32, #tpu.memory_space<vmem>>, %arg4: memref<64x128xbf16, #tpu.memory_space<vmem>>) attributes {dimension_semantics = [#tpu.dimension_semantics<parallel>], iteration_bounds = array<i64: 2>, scalar_prefetch = 0 : i64, scratch_operands = 0 : i64, tpu.core_type = #tpu.core_type<tc>, window_params = [{transform_indices = @transform_0, window_bounds = array<i64: 64, 128>}, {pipeline_mode = #tpu.pipeline_mode<synchronous>, transform_indices = @transform_1, window_bounds = array<i64: 128, 128>}, {pipeline_mode = #tpu.pipeline_mode<synchronous>, transform_indices = @transform_2, window_bounds = array<i64: 1, 128>}, {transform_indices = @transform_3, window_bounds = array<i64: 64, 128>}]} {
    %c0 = arith.constant 0 : index
    %c0_0 = arith.constant 0 : index
    %0 = vector.load %arg1[%c0, %c0_0] : memref<64x128xbf16, #tpu.memory_space<vmem>>, vector<64x128xbf16>
    %cst = arith.constant 0.000000e+00 : bf16
    %1 = vector.broadcast %cst : bf16 to vector<64x128xbf16>
    %2 = arith.maximumf %0, %1 : vector<64x128xbf16>
    %c0_1 = arith.constant 0 : index
    %c0_2 = arith.constant 0 : index
    %3 = vector.load %arg2[%c0_1, %c0_2] : memref<128x128xbf16, #tpu.memory_space<vmem>>, vector<128x128xbf16>
    %cst_3 = arith.constant dense<0.000000e+00> : vector<64x128xf32>
    %4 = tpu.matmul %2, %3, %cst_3 {dimension_numbers = #tpu.dot_dimension_numbers<[1], [0], [0], [1], [0, 0, 1, 1], [], []>} : vector<64x128xbf16>, vector<128x128xbf16>, vector<64x128xf32> -> vector<64x128xf32>
    %c0_4 = arith.constant 0 : index
    %c0_5 = arith.constant 0 : index
    %5 = vector.load %arg3[%c0_4, %c0_5] : memref<1x128xf32, #tpu.memory_space<vmem>>, vector<1x128xf32>
    %6 = vector.broadcast %5 : vector<1x128xf32> to vector<64x128xf32>
    %7 = arith.addf %4, %6 : vector<64x128xf32>
    %cst_6 = arith.constant 0.000000e+00 : f32
    %8 = vector.broadcast %cst_6 : f32 to vector<64x128xf32>
    %9 = arith.maximumf %7, %8 : vector<64x128xf32>
    %10 = arith.truncf %9 : vector<64x128xf32> to vector<64x128xbf16>
    %c0_7 = arith.constant 0 : index
    %c0_8 = arith.constant 0 : index
    %11 = vector.load %arg4[%c0_7, %c0_8] : memref<64x128xbf16, #tpu.memory_space<vmem>>, vector<64x128xbf16>
    tpu.vector_store %arg4[%c0_7, %c0_8], %10 {strides = array<i32>} : memref<64x128xbf16, #tpu.memory_space<vmem>>, vector<64x128xbf16>,
    return
  }
  func.func @transform_0(%arg0: i32) -> (i32, i32) {
    %c0_i32 = arith.constant 0 : i32
    %c0_i32_0 = arith.constant 0 : i32
    return %arg0, %c0_i32 : i32, i32
  }
  func.func @transform_1(%arg0: i32) -> (i32, i32) {
    %c0_i32 = arith.constant 0 : i32
    %c0_i32_0 = arith.constant 0 : i32
    %c0_i32_1 = arith.constant 0 : i32
    return %c0_i32, %c0_i32_0 : i32, i32
  }
  func.func @transform_2(%arg0: i32) -> (i32, i32) {
    %c0_i32 = arith.constant 0 : i32
    %c0_i32_0 = arith.constant 0 : i32
    %c0_i32_1 = arith.constant 0 : i32
    return %c0_i32, %c0_i32_0 : i32, i32
  }
  func.func @transform_3(%arg0: i32) -> (i32, i32) {
    %c0_i32 = arith.constant 0 : i32
    %c0_i32_0 = arith.constant 0 : i32
    return %arg0, %c0_i32 : i32, i32
  }
}

module attributes {stable_mosaic.version = 11 : i64} {
  func.func @_mconv_kernel(%arg0: i32, %arg1: memref<1x14x14x128xbf16, #tpu.memory_space<vmem>>, %arg2: memref<25x128x128xbf16, #tpu.memory_space<vmem>>, %arg3: memref<1x128xf32, #tpu.memory_space<vmem>>, %arg4: memref<1x64x128xbf16, #tpu.memory_space<vmem>>, %arg5: memref<64x128xf32, #tpu.memory_space<vmem>>) attributes {dimension_semantics = [#tpu.dimension_semantics<parallel>], iteration_bounds = array<i64: 2>, scalar_prefetch = 0 : i64, scratch_operands = 1 : i64, tpu.core_type = #tpu.core_type<tc>, window_params = [{transform_indices = @transform_0, window_bounds = array<i64: 1, 14, 14, 128>}, {pipeline_mode = #tpu.pipeline_mode<synchronous>, transform_indices = @transform_1, window_bounds = array<i64: 25, 128, 128>}, {pipeline_mode = #tpu.pipeline_mode<synchronous>, transform_indices = @transform_2, window_bounds = array<i64: 1, 128>}, {transform_indices = @transform_3, window_bounds = array<i64: 1, 64, 128>}]} {
    %c0 = arith.constant 0 : index
    %c0_0 = arith.constant 0 : index
    %c0_1 = arith.constant 0 : index
    %c0_2 = arith.constant 0 : index
    %0 = vector.load %arg1[%c0, %c0_0, %c0_1, %c0_2] : memref<1x14x14x128xbf16, #tpu.memory_space<vmem>>, vector<1x8x8x128xbf16>
    %1 = vector.shape_cast %0 : vector<1x8x8x128xbf16> to vector<8x8x128xbf16>
    %2 = vector.shape_cast %1 : vector<8x8x128xbf16> to vector<64x128xbf16>
    %c0_3 = arith.constant 0 : index
    %c0_4 = arith.constant 0 : index
    %c0_5 = arith.constant 0 : index
    %3 = vector.load %arg2[%c0_3, %c0_4, %c0_5] : memref<25x128x128xbf16, #tpu.memory_space<vmem>>, vector<1x128x128xbf16>
    %4 = vector.shape_cast %3 : vector<1x128x128xbf16> to vector<128x128xbf16>
    %cst = arith.constant dense<0.000000e+00> : vector<64x128xf32>
    %5 = tpu.matmul %2, %4, %cst {dimension_numbers = #tpu.dot_dimension_numbers<[1], [0], [0], [1], [0, 0, 1, 1], [], []>} : vector<64x128xbf16>, vector<128x128xbf16>, vector<64x128xf32> -> vector<64x128xf32>
    %c0_6 = arith.constant 0 : index
    %c0_7 = arith.constant 0 : index
    %6 = vector.load %arg5[%c0_6, %c0_7] : memref<64x128xf32, #tpu.memory_space<vmem>>, vector<64x128xf32>
    tpu.vector_store %arg5[%c0_6, %c0_7], %5 {strides = array<i32>} : memref<64x128xf32, #tpu.memory_space<vmem>>, vector<64x128xf32>,
    %c0_8 = arith.constant 0 : index
    %c0_9 = arith.constant 0 : index
    %c1 = arith.constant 1 : index
    %c0_10 = arith.constant 0 : index
    %7 = vector.load %arg1[%c0_8, %c0_9, %c1, %c0_10] : memref<1x14x14x128xbf16, #tpu.memory_space<vmem>>, vector<1x8x8x128xbf16>
    %8 = vector.shape_cast %7 : vector<1x8x8x128xbf16> to vector<8x8x128xbf16>
    %9 = vector.shape_cast %8 : vector<8x8x128xbf16> to vector<64x128xbf16>
    %c1_11 = arith.constant 1 : index
    %c0_12 = arith.constant 0 : index
    %c0_13 = arith.constant 0 : index
    %10 = vector.load %arg2[%c1_11, %c0_12, %c0_13] : memref<25x128x128xbf16, #tpu.memory_space<vmem>>, vector<1x128x128xbf16>
    %11 = vector.shape_cast %10 : vector<1x128x128xbf16> to vector<128x128xbf16>
    %cst_14 = arith.constant dense<0.000000e+00> : vector<64x128xf32>
    %12 = tpu.matmul %9, %11, %cst_14 {dimension_numbers = #tpu.dot_dimension_numbers<[1], [0], [0], [1], [0, 0, 1, 1], [], []>} : vector<64x128xbf16>, vector<128x128xbf16>, vector<64x128xf32> -> vector<64x128xf32>
    %c0_15 = arith.constant 0 : index
    %c0_16 = arith.constant 0 : index
    %13 = vector.load %arg5[%c0_15, %c0_16] : memref<64x128xf32, #tpu.memory_space<vmem>>, vector<64x128xf32>
    %14 = arith.addf %13, %12 : vector<64x128xf32>
    %c0_17 = arith.constant 0 : index
    %c0_18 = arith.constant 0 : index
    %15 = vector.load %arg5[%c0_17, %c0_18] : memref<64x128xf32, #tpu.memory_space<vmem>>, vector<64x128xf32>
    tpu.vector_store %arg5[%c0_17, %c0_18], %14 {strides = array<i32>} : memref<64x128xf32, #tpu.memory_space<vmem>>, vector<64x128xf32>,
    %c0_19 = arith.constant 0 : index
    %c0_20 = arith.constant 0 : index
    %c2 = arith.constant 2 : index
    %c0_21 = arith.constant 0 : index
    %16 = vector.load %arg1[%c0_19, %c0_20, %c2, %c0_21] : memref<1x14x14x128xbf16, #tpu.memory_space<vmem>>, vector<1x8x8x128xbf16>
    %17 = vector.shape_cast %16 : vector<1x8x8x128xbf16> to vector<8x8x128xbf16>
    %18 = vector.shape_cast %17 : vector<8x8x128xbf16> to vector<64x128xbf16>
    %c2_22 = arith.constant 2 : index
    %c0_23 = arith.constant 0 : index
    %c0_24 = arith.constant 0 : index
    %19 = vector.load %arg2[%c2_22, %c0_23, %c0_24] : memref<25x128x128xbf16, #tpu.memory_space<vmem>>, vector<1x128x128xbf16>
    %20 = vector.shape_cast %19 : vector<1x128x128xbf16> to vector<128x128xbf16>
    %cst_25 = arith.constant dense<0.000000e+00> : vector<64x128xf32>
    %21 = tpu.matmul %18, %20, %cst_25 {dimension_numbers = #tpu.dot_dimension_numbers<[1], [0], [0], [1], [0, 0, 1, 1], [], []>} : vector<64x128xbf16>, vector<128x128xbf16>, vector<64x128xf32> -> vector<64x128xf32>
    %c0_26 = arith.constant 0 : index
    %c0_27 = arith.constant 0 : index
    %22 = vector.load %arg5[%c0_26, %c0_27] : memref<64x128xf32, #tpu.memory_space<vmem>>, vector<64x128xf32>
    %23 = arith.addf %22, %21 : vector<64x128xf32>
    %c0_28 = arith.constant 0 : index
    %c0_29 = arith.constant 0 : index
    %24 = vector.load %arg5[%c0_28, %c0_29] : memref<64x128xf32, #tpu.memory_space<vmem>>, vector<64x128xf32>
    tpu.vector_store %arg5[%c0_28, %c0_29], %23 {strides = array<i32>} : memref<64x128xf32, #tpu.memory_space<vmem>>, vector<64x128xf32>,
    %c0_30 = arith.constant 0 : index
    %c0_31 = arith.constant 0 : index
    %c3 = arith.constant 3 : index
    %c0_32 = arith.constant 0 : index
    %25 = vector.load %arg1[%c0_30, %c0_31, %c3, %c0_32] : memref<1x14x14x128xbf16, #tpu.memory_space<vmem>>, vector<1x8x8x128xbf16>
    %26 = vector.shape_cast %25 : vector<1x8x8x128xbf16> to vector<8x8x128xbf16>
    %27 = vector.shape_cast %26 : vector<8x8x128xbf16> to vector<64x128xbf16>
    %c3_33 = arith.constant 3 : index
    %c0_34 = arith.constant 0 : index
    %c0_35 = arith.constant 0 : index
    %28 = vector.load %arg2[%c3_33, %c0_34, %c0_35] : memref<25x128x128xbf16, #tpu.memory_space<vmem>>, vector<1x128x128xbf16>
    %29 = vector.shape_cast %28 : vector<1x128x128xbf16> to vector<128x128xbf16>
    %cst_36 = arith.constant dense<0.000000e+00> : vector<64x128xf32>
    %30 = tpu.matmul %27, %29, %cst_36 {dimension_numbers = #tpu.dot_dimension_numbers<[1], [0], [0], [1], [0, 0, 1, 1], [], []>} : vector<64x128xbf16>, vector<128x128xbf16>, vector<64x128xf32> -> vector<64x128xf32>
    %c0_37 = arith.constant 0 : index
    %c0_38 = arith.constant 0 : index
    %31 = vector.load %arg5[%c0_37, %c0_38] : memref<64x128xf32, #tpu.memory_space<vmem>>, vector<64x128xf32>
    %32 = arith.addf %31, %30 : vector<64x128xf32>
    %c0_39 = arith.constant 0 : index
    %c0_40 = arith.constant 0 : index
    %33 = vector.load %arg5[%c0_39, %c0_40] : memref<64x128xf32, #tpu.memory_space<vmem>>, vector<64x128xf32>
    tpu.vector_store %arg5[%c0_39, %c0_40], %32 {strides = array<i32>} : memref<64x128xf32, #tpu.memory_space<vmem>>, vector<64x128xf32>,
    %c0_41 = arith.constant 0 : index
    %c0_42 = arith.constant 0 : index
    %c4 = arith.constant 4 : index
    %c0_43 = arith.constant 0 : index
    %34 = vector.load %arg1[%c0_41, %c0_42, %c4, %c0_43] : memref<1x14x14x128xbf16, #tpu.memory_space<vmem>>, vector<1x8x8x128xbf16>
    %35 = vector.shape_cast %34 : vector<1x8x8x128xbf16> to vector<8x8x128xbf16>
    %36 = vector.shape_cast %35 : vector<8x8x128xbf16> to vector<64x128xbf16>
    %c4_44 = arith.constant 4 : index
    %c0_45 = arith.constant 0 : index
    %c0_46 = arith.constant 0 : index
    %37 = vector.load %arg2[%c4_44, %c0_45, %c0_46] : memref<25x128x128xbf16, #tpu.memory_space<vmem>>, vector<1x128x128xbf16>
    %38 = vector.shape_cast %37 : vector<1x128x128xbf16> to vector<128x128xbf16>
    %cst_47 = arith.constant dense<0.000000e+00> : vector<64x128xf32>
    %39 = tpu.matmul %36, %38, %cst_47 {dimension_numbers = #tpu.dot_dimension_numbers<[1], [0], [0], [1], [0, 0, 1, 1], [], []>} : vector<64x128xbf16>, vector<128x128xbf16>, vector<64x128xf32> -> vector<64x128xf32>
    %c0_48 = arith.constant 0 : index
    %c0_49 = arith.constant 0 : index
    %40 = vector.load %arg5[%c0_48, %c0_49] : memref<64x128xf32, #tpu.memory_space<vmem>>, vector<64x128xf32>
    %41 = arith.addf %40, %39 : vector<64x128xf32>
    %c0_50 = arith.constant 0 : index
    %c0_51 = arith.constant 0 : index
    %42 = vector.load %arg5[%c0_50, %c0_51] : memref<64x128xf32, #tpu.memory_space<vmem>>, vector<64x128xf32>
    tpu.vector_store %arg5[%c0_50, %c0_51], %41 {strides = array<i32>} : memref<64x128xf32, #tpu.memory_space<vmem>>, vector<64x128xf32>,
    %c0_52 = arith.constant 0 : index
    %c0_53 = arith.constant 0 : index
    %c5 = arith.constant 5 : index
    %c0_54 = arith.constant 0 : index
    %43 = vector.load %arg1[%c0_52, %c0_53, %c5, %c0_54] : memref<1x14x14x128xbf16, #tpu.memory_space<vmem>>, vector<1x8x8x128xbf16>
    %44 = vector.shape_cast %43 : vector<1x8x8x128xbf16> to vector<8x8x128xbf16>
    %45 = vector.shape_cast %44 : vector<8x8x128xbf16> to vector<64x128xbf16>
    %c5_55 = arith.constant 5 : index
    %c0_56 = arith.constant 0 : index
    %c0_57 = arith.constant 0 : index
    %46 = vector.load %arg2[%c5_55, %c0_56, %c0_57] : memref<25x128x128xbf16, #tpu.memory_space<vmem>>, vector<1x128x128xbf16>
    %47 = vector.shape_cast %46 : vector<1x128x128xbf16> to vector<128x128xbf16>
    %cst_58 = arith.constant dense<0.000000e+00> : vector<64x128xf32>
    %48 = tpu.matmul %45, %47, %cst_58 {dimension_numbers = #tpu.dot_dimension_numbers<[1], [0], [0], [1], [0, 0, 1, 1], [], []>} : vector<64x128xbf16>, vector<128x128xbf16>, vector<64x128xf32> -> vector<64x128xf32>
    %c0_59 = arith.constant 0 : index
    %c0_60 = arith.constant 0 : index
    %49 = vector.load %arg5[%c0_59, %c0_60] : memref<64x128xf32, #tpu.memory_space<vmem>>, vector<64x128xf32>
    %50 = arith.addf %49, %48 : vector<64x128xf32>
    %c0_61 = arith.constant 0 : index
    %c0_62 = arith.constant 0 : index
    %51 = vector.load %arg5[%c0_61, %c0_62] : memref<64x128xf32, #tpu.memory_space<vmem>>, vector<64x128xf32>
    tpu.vector_store %arg5[%c0_61, %c0_62], %50 {strides = array<i32>} : memref<64x128xf32, #tpu.memory_space<vmem>>, vector<64x128xf32>,
    %c0_63 = arith.constant 0 : index
    %c0_64 = arith.constant 0 : index
    %c6 = arith.constant 6 : index
    %c0_65 = arith.constant 0 : index
    %52 = vector.load %arg1[%c0_63, %c0_64, %c6, %c0_65] : memref<1x14x14x128xbf16, #tpu.memory_space<vmem>>, vector<1x8x8x128xbf16>
    %53 = vector.shape_cast %52 : vector<1x8x8x128xbf16> to vector<8x8x128xbf16>
    %54 = vector.shape_cast %53 : vector<8x8x128xbf16> to vector<64x128xbf16>
    %c6_66 = arith.constant 6 : index
    %c0_67 = arith.constant 0 : index
    %c0_68 = arith.constant 0 : index
    %55 = vector.load %arg2[%c6_66, %c0_67, %c0_68] : memref<25x128x128xbf16, #tpu.memory_space<vmem>>, vector<1x128x128xbf16>
    %56 = vector.shape_cast %55 : vector<1x128x128xbf16> to vector<128x128xbf16>
    %cst_69 = arith.constant dense<0.000000e+00> : vector<64x128xf32>
    %57 = tpu.matmul %54, %56, %cst_69 {dimension_numbers = #tpu.dot_dimension_numbers<[1], [0], [0], [1], [0, 0, 1, 1], [], []>} : vector<64x128xbf16>, vector<128x128xbf16>, vector<64x128xf32> -> vector<64x128xf32>
    %c0_70 = arith.constant 0 : index
    %c0_71 = arith.constant 0 : index
    %58 = vector.load %arg5[%c0_70, %c0_71] : memref<64x128xf32, #tpu.memory_space<vmem>>, vector<64x128xf32>
    %59 = arith.addf %58, %57 : vector<64x128xf32>
    %c0_72 = arith.constant 0 : index
    %c0_73 = arith.constant 0 : index
    %60 = vector.load %arg5[%c0_72, %c0_73] : memref<64x128xf32, #tpu.memory_space<vmem>>, vector<64x128xf32>
    tpu.vector_store %arg5[%c0_72, %c0_73], %59 {strides = array<i32>} : memref<64x128xf32, #tpu.memory_space<vmem>>, vector<64x128xf32>,
    %c0_74 = arith.constant 0 : index
    %c1_75 = arith.constant 1 : index
    %c0_76 = arith.constant 0 : index
    %c0_77 = arith.constant 0 : index
    %61 = vector.load %arg1[%c0_74, %c1_75, %c0_76, %c0_77] : memref<1x14x14x128xbf16, #tpu.memory_space<vmem>>, vector<1x8x8x128xbf16>
    %62 = vector.shape_cast %61 : vector<1x8x8x128xbf16> to vector<8x8x128xbf16>
    %63 = vector.shape_cast %62 : vector<8x8x128xbf16> to vector<64x128xbf16>
    %c7 = arith.constant 7 : index
    %c0_78 = arith.constant 0 : index
    %c0_79 = arith.constant 0 : index
    %64 = vector.load %arg2[%c7, %c0_78, %c0_79] : memref<25x128x128xbf16, #tpu.memory_space<vmem>>, vector<1x128x128xbf16>
    %65 = vector.shape_cast %64 : vector<1x128x128xbf16> to vector<128x128xbf16>
    %cst_80 = arith.constant dense<0.000000e+00> : vector<64x128xf32>
    %66 = tpu.matmul %63, %65, %cst_80 {dimension_numbers = #tpu.dot_dimension_numbers<[1], [0], [0], [1], [0, 0, 1, 1], [], []>} : vector<64x128xbf16>, vector<128x128xbf16>, vector<64x128xf32> -> vector<64x128xf32>
    %c0_81 = arith.constant 0 : index
    %c0_82 = arith.constant 0 : index
    %67 = vector.load %arg5[%c0_81, %c0_82] : memref<64x128xf32, #tpu.memory_space<vmem>>, vector<64x128xf32>
    %68 = arith.addf %67, %66 : vector<64x128xf32>
    %c0_83 = arith.constant 0 : index
    %c0_84 = arith.constant 0 : index
    %69 = vector.load %arg5[%c0_83, %c0_84] : memref<64x128xf32, #tpu.memory_space<vmem>>, vector<64x128xf32>
    tpu.vector_store %arg5[%c0_83, %c0_84], %68 {strides = array<i32>} : memref<64x128xf32, #tpu.memory_space<vmem>>, vector<64x128xf32>,
    %c0_85 = arith.constant 0 : index
    %c1_86 = arith.constant 1 : index
    %c1_87 = arith.constant 1 : index
    %c0_88 = arith.constant 0 : index
    %70 = vector.load %arg1[%c0_85, %c1_86, %c1_87, %c0_88] : memref<1x14x14x128xbf16, #tpu.memory_space<vmem>>, vector<1x8x8x128xbf16>
    %71 = vector.shape_cast %70 : vector<1x8x8x128xbf16> to vector<8x8x128xbf16>
    %72 = vector.shape_cast %71 : vector<8x8x128xbf16> to vector<64x128xbf16>
    %c8 = arith.constant 8 : index
    %c0_89 = arith.constant 0 : index
    %c0_90 = arith.constant 0 : index
    %73 = vector.load %arg2[%c8, %c0_89, %c0_90] : memref<25x128x128xbf16, #tpu.memory_space<vmem>>, vector<1x128x128xbf16>
    %74 = vector.shape_cast %73 : vector<1x128x128xbf16> to vector<128x128xbf16>
    %cst_91 = arith.constant dense<0.000000e+00> : vector<64x128xf32>
    %75 = tpu.matmul %72, %74, %cst_91 {dimension_numbers = #tpu.dot_dimension_numbers<[1], [0], [0], [1], [0, 0, 1, 1], [], []>} : vector<64x128xbf16>, vector<128x128xbf16>, vector<64x128xf32> -> vector<64x128xf32>
    %c0_92 = arith.constant 0 : index
    %c0_93 = arith.constant 0 : index
    %76 = vector.load %arg5[%c0_92, %c0_93] : memref<64x128xf32, #tpu.memory_space<vmem>>, vector<64x128xf32>
    %77 = arith.addf %76, %75 : vector<64x128xf32>
    %c0_94 = arith.constant 0 : index
    %c0_95 = arith.constant 0 : index
    %78 = vector.load %arg5[%c0_94, %c0_95] : memref<64x128xf32, #tpu.memory_space<vmem>>, vector<64x128xf32>
    tpu.vector_store %arg5[%c0_94, %c0_95], %77 {strides = array<i32>} : memref<64x128xf32, #tpu.memory_space<vmem>>, vector<64x128xf32>,
    %c0_96 = arith.constant 0 : index
    %c1_97 = arith.constant 1 : index
    %c2_98 = arith.constant 2 : index
    %c0_99 = arith.constant 0 : index
    %79 = vector.load %arg1[%c0_96, %c1_97, %c2_98, %c0_99] : memref<1x14x14x128xbf16, #tpu.memory_space<vmem>>, vector<1x8x8x128xbf16>
    %80 = vector.shape_cast %79 : vector<1x8x8x128xbf16> to vector<8x8x128xbf16>
    %81 = vector.shape_cast %80 : vector<8x8x128xbf16> to vector<64x128xbf16>
    %c9 = arith.constant 9 : index
    %c0_100 = arith.constant 0 : index
    %c0_101 = arith.constant 0 : index
    %82 = vector.load %arg2[%c9, %c0_100, %c0_101] : memref<25x128x128xbf16, #tpu.memory_space<vmem>>, vector<1x128x128xbf16>
    %83 = vector.shape_cast %82 : vector<1x128x128xbf16> to vector<128x128xbf16>
    %cst_102 = arith.constant dense<0.000000e+00> : vector<64x128xf32>
    %84 = tpu.matmul %81, %83, %cst_102 {dimension_numbers = #tpu.dot_dimension_numbers<[1], [0], [0], [1], [0, 0, 1, 1], [], []>} : vector<64x128xbf16>, vector<128x128xbf16>, vector<64x128xf32> -> vector<64x128xf32>
    %c0_103 = arith.constant 0 : index
    %c0_104 = arith.constant 0 : index
    %85 = vector.load %arg5[%c0_103, %c0_104] : memref<64x128xf32, #tpu.memory_space<vmem>>, vector<64x128xf32>
    %86 = arith.addf %85, %84 : vector<64x128xf32>
    %c0_105 = arith.constant 0 : index
    %c0_106 = arith.constant 0 : index
    %87 = vector.load %arg5[%c0_105, %c0_106] : memref<64x128xf32, #tpu.memory_space<vmem>>, vector<64x128xf32>
    tpu.vector_store %arg5[%c0_105, %c0_106], %86 {strides = array<i32>} : memref<64x128xf32, #tpu.memory_space<vmem>>, vector<64x128xf32>,
    %c0_107 = arith.constant 0 : index
    %c1_108 = arith.constant 1 : index
    %c3_109 = arith.constant 3 : index
    %c0_110 = arith.constant 0 : index
    %88 = vector.load %arg1[%c0_107, %c1_108, %c3_109, %c0_110] : memref<1x14x14x128xbf16, #tpu.memory_space<vmem>>, vector<1x8x8x128xbf16>
    %89 = vector.shape_cast %88 : vector<1x8x8x128xbf16> to vector<8x8x128xbf16>
    %90 = vector.shape_cast %89 : vector<8x8x128xbf16> to vector<64x128xbf16>
    %c10 = arith.constant 10 : index
    %c0_111 = arith.constant 0 : index
    %c0_112 = arith.constant 0 : index
    %91 = vector.load %arg2[%c10, %c0_111, %c0_112] : memref<25x128x128xbf16, #tpu.memory_space<vmem>>, vector<1x128x128xbf16>
    %92 = vector.shape_cast %91 : vector<1x128x128xbf16> to vector<128x128xbf16>
    %cst_113 = arith.constant dense<0.000000e+00> : vector<64x128xf32>
    %93 = tpu.matmul %90, %92, %cst_113 {dimension_numbers = #tpu.dot_dimension_numbers<[1], [0], [0], [1], [0, 0, 1, 1], [], []>} : vector<64x128xbf16>, vector<128x128xbf16>, vector<64x128xf32> -> vector<64x128xf32>
    %c0_114 = arith.constant 0 : index
    %c0_115 = arith.constant 0 : index
    %94 = vector.load %arg5[%c0_114, %c0_115] : memref<64x128xf32, #tpu.memory_space<vmem>>, vector<64x128xf32>
    %95 = arith.addf %94, %93 : vector<64x128xf32>
    %c0_116 = arith.constant 0 : index
    %c0_117 = arith.constant 0 : index
    %96 = vector.load %arg5[%c0_116, %c0_117] : memref<64x128xf32, #tpu.memory_space<vmem>>, vector<64x128xf32>
    tpu.vector_store %arg5[%c0_116, %c0_117], %95 {strides = array<i32>} : memref<64x128xf32, #tpu.memory_space<vmem>>, vector<64x128xf32>,
    %c0_118 = arith.constant 0 : index
    %c1_119 = arith.constant 1 : index
    %c4_120 = arith.constant 4 : index
    %c0_121 = arith.constant 0 : index
    %97 = vector.load %arg1[%c0_118, %c1_119, %c4_120, %c0_121] : memref<1x14x14x128xbf16, #tpu.memory_space<vmem>>, vector<1x8x8x128xbf16>
    %98 = vector.shape_cast %97 : vector<1x8x8x128xbf16> to vector<8x8x128xbf16>
    %99 = vector.shape_cast %98 : vector<8x8x128xbf16> to vector<64x128xbf16>
    %c11 = arith.constant 11 : index
    %c0_122 = arith.constant 0 : index
    %c0_123 = arith.constant 0 : index
    %100 = vector.load %arg2[%c11, %c0_122, %c0_123] : memref<25x128x128xbf16, #tpu.memory_space<vmem>>, vector<1x128x128xbf16>
    %101 = vector.shape_cast %100 : vector<1x128x128xbf16> to vector<128x128xbf16>
    %cst_124 = arith.constant dense<0.000000e+00> : vector<64x128xf32>
    %102 = tpu.matmul %99, %101, %cst_124 {dimension_numbers = #tpu.dot_dimension_numbers<[1], [0], [0], [1], [0, 0, 1, 1], [], []>} : vector<64x128xbf16>, vector<128x128xbf16>, vector<64x128xf32> -> vector<64x128xf32>
    %c0_125 = arith.constant 0 : index
    %c0_126 = arith.constant 0 : index
    %103 = vector.load %arg5[%c0_125, %c0_126] : memref<64x128xf32, #tpu.memory_space<vmem>>, vector<64x128xf32>
    %104 = arith.addf %103, %102 : vector<64x128xf32>
    %c0_127 = arith.constant 0 : index
    %c0_128 = arith.constant 0 : index
    %105 = vector.load %arg5[%c0_127, %c0_128] : memref<64x128xf32, #tpu.memory_space<vmem>>, vector<64x128xf32>
    tpu.vector_store %arg5[%c0_127, %c0_128], %104 {strides = array<i32>} : memref<64x128xf32, #tpu.memory_space<vmem>>, vector<64x128xf32>,
    %c0_129 = arith.constant 0 : index
    %c1_130 = arith.constant 1 : index
    %c5_131 = arith.constant 5 : index
    %c0_132 = arith.constant 0 : index
    %106 = vector.load %arg1[%c0_129, %c1_130, %c5_131, %c0_132] : memref<1x14x14x128xbf16, #tpu.memory_space<vmem>>, vector<1x8x8x128xbf16>
    %107 = vector.shape_cast %106 : vector<1x8x8x128xbf16> to vector<8x8x128xbf16>
    %108 = vector.shape_cast %107 : vector<8x8x128xbf16> to vector<64x128xbf16>
    %c12 = arith.constant 12 : index
    %c0_133 = arith.constant 0 : index
    %c0_134 = arith.constant 0 : index
    %109 = vector.load %arg2[%c12, %c0_133, %c0_134] : memref<25x128x128xbf16, #tpu.memory_space<vmem>>, vector<1x128x128xbf16>
    %110 = vector.shape_cast %109 : vector<1x128x128xbf16> to vector<128x128xbf16>
    %cst_135 = arith.constant dense<0.000000e+00> : vector<64x128xf32>
    %111 = tpu.matmul %108, %110, %cst_135 {dimension_numbers = #tpu.dot_dimension_numbers<[1], [0], [0], [1], [0, 0, 1, 1], [], []>} : vector<64x128xbf16>, vector<128x128xbf16>, vector<64x128xf32> -> vector<64x128xf32>
    %c0_136 = arith.constant 0 : index
    %c0_137 = arith.constant 0 : index
    %112 = vector.load %arg5[%c0_136, %c0_137] : memref<64x128xf32, #tpu.memory_space<vmem>>, vector<64x128xf32>
    %113 = arith.addf %112, %111 : vector<64x128xf32>
    %c0_138 = arith.constant 0 : index
    %c0_139 = arith.constant 0 : index
    %114 = vector.load %arg5[%c0_138, %c0_139] : memref<64x128xf32, #tpu.memory_space<vmem>>, vector<64x128xf32>
    tpu.vector_store %arg5[%c0_138, %c0_139], %113 {strides = array<i32>} : memref<64x128xf32, #tpu.memory_space<vmem>>, vector<64x128xf32>,
    %c0_140 = arith.constant 0 : index
    %c1_141 = arith.constant 1 : index
    %c6_142 = arith.constant 6 : index
    %c0_143 = arith.constant 0 : index
    %115 = vector.load %arg1[%c0_140, %c1_141, %c6_142, %c0_143] : memref<1x14x14x128xbf16, #tpu.memory_space<vmem>>, vector<1x8x8x128xbf16>
    %116 = vector.shape_cast %115 : vector<1x8x8x128xbf16> to vector<8x8x128xbf16>
    %117 = vector.shape_cast %116 : vector<8x8x128xbf16> to vector<64x128xbf16>
    %c13 = arith.constant 13 : index
    %c0_144 = arith.constant 0 : index
    %c0_145 = arith.constant 0 : index
    %118 = vector.load %arg2[%c13, %c0_144, %c0_145] : memref<25x128x128xbf16, #tpu.memory_space<vmem>>, vector<1x128x128xbf16>
    %119 = vector.shape_cast %118 : vector<1x128x128xbf16> to vector<128x128xbf16>
    %cst_146 = arith.constant dense<0.000000e+00> : vector<64x128xf32>
    %120 = tpu.matmul %117, %119, %cst_146 {dimension_numbers = #tpu.dot_dimension_numbers<[1], [0], [0], [1], [0, 0, 1, 1], [], []>} : vector<64x128xbf16>, vector<128x128xbf16>, vector<64x128xf32> -> vector<64x128xf32>
    %c0_147 = arith.constant 0 : index
    %c0_148 = arith.constant 0 : index
    %121 = vector.load %arg5[%c0_147, %c0_148] : memref<64x128xf32, #tpu.memory_space<vmem>>, vector<64x128xf32>
    %122 = arith.addf %121, %120 : vector<64x128xf32>
    %c0_149 = arith.constant 0 : index
    %c0_150 = arith.constant 0 : index
    %123 = vector.load %arg5[%c0_149, %c0_150] : memref<64x128xf32, #tpu.memory_space<vmem>>, vector<64x128xf32>
    tpu.vector_store %arg5[%c0_149, %c0_150], %122 {strides = array<i32>} : memref<64x128xf32, #tpu.memory_space<vmem>>, vector<64x128xf32>,
    %c0_151 = arith.constant 0 : index
    %c2_152 = arith.constant 2 : index
    %c0_153 = arith.constant 0 : index
    %c0_154 = arith.constant 0 : index
    %124 = vector.load %arg1[%c0_151, %c2_152, %c0_153, %c0_154] : memref<1x14x14x128xbf16, #tpu.memory_space<vmem>>, vector<1x8x8x128xbf16>
    %125 = vector.shape_cast %124 : vector<1x8x8x128xbf16> to vector<8x8x128xbf16>
    %126 = vector.shape_cast %125 : vector<8x8x128xbf16> to vector<64x128xbf16>
    %c14 = arith.constant 14 : index
    %c0_155 = arith.constant 0 : index
    %c0_156 = arith.constant 0 : index
    %127 = vector.load %arg2[%c14, %c0_155, %c0_156] : memref<25x128x128xbf16, #tpu.memory_space<vmem>>, vector<1x128x128xbf16>
    %128 = vector.shape_cast %127 : vector<1x128x128xbf16> to vector<128x128xbf16>
    %cst_157 = arith.constant dense<0.000000e+00> : vector<64x128xf32>
    %129 = tpu.matmul %126, %128, %cst_157 {dimension_numbers = #tpu.dot_dimension_numbers<[1], [0], [0], [1], [0, 0, 1, 1], [], []>} : vector<64x128xbf16>, vector<128x128xbf16>, vector<64x128xf32> -> vector<64x128xf32>
    %c0_158 = arith.constant 0 : index
    %c0_159 = arith.constant 0 : index
    %130 = vector.load %arg5[%c0_158, %c0_159] : memref<64x128xf32, #tpu.memory_space<vmem>>, vector<64x128xf32>
    %131 = arith.addf %130, %129 : vector<64x128xf32>
    %c0_160 = arith.constant 0 : index
    %c0_161 = arith.constant 0 : index
    %132 = vector.load %arg5[%c0_160, %c0_161] : memref<64x128xf32, #tpu.memory_space<vmem>>, vector<64x128xf32>
    tpu.vector_store %arg5[%c0_160, %c0_161], %131 {strides = array<i32>} : memref<64x128xf32, #tpu.memory_space<vmem>>, vector<64x128xf32>,
    %c0_162 = arith.constant 0 : index
    %c2_163 = arith.constant 2 : index
    %c1_164 = arith.constant 1 : index
    %c0_165 = arith.constant 0 : index
    %133 = vector.load %arg1[%c0_162, %c2_163, %c1_164, %c0_165] : memref<1x14x14x128xbf16, #tpu.memory_space<vmem>>, vector<1x8x8x128xbf16>
    %134 = vector.shape_cast %133 : vector<1x8x8x128xbf16> to vector<8x8x128xbf16>
    %135 = vector.shape_cast %134 : vector<8x8x128xbf16> to vector<64x128xbf16>
    %c15 = arith.constant 15 : index
    %c0_166 = arith.constant 0 : index
    %c0_167 = arith.constant 0 : index
    %136 = vector.load %arg2[%c15, %c0_166, %c0_167] : memref<25x128x128xbf16, #tpu.memory_space<vmem>>, vector<1x128x128xbf16>
    %137 = vector.shape_cast %136 : vector<1x128x128xbf16> to vector<128x128xbf16>
    %cst_168 = arith.constant dense<0.000000e+00> : vector<64x128xf32>
    %138 = tpu.matmul %135, %137, %cst_168 {dimension_numbers = #tpu.dot_dimension_numbers<[1], [0], [0], [1], [0, 0, 1, 1], [], []>} : vector<64x128xbf16>, vector<128x128xbf16>, vector<64x128xf32> -> vector<64x128xf32>
    %c0_169 = arith.constant 0 : index
    %c0_170 = arith.constant 0 : index
    %139 = vector.load %arg5[%c0_169, %c0_170] : memref<64x128xf32, #tpu.memory_space<vmem>>, vector<64x128xf32>
    %140 = arith.addf %139, %138 : vector<64x128xf32>
    %c0_171 = arith.constant 0 : index
    %c0_172 = arith.constant 0 : index
    %141 = vector.load %arg5[%c0_171, %c0_172] : memref<64x128xf32, #tpu.memory_space<vmem>>, vector<64x128xf32>
    tpu.vector_store %arg5[%c0_171, %c0_172], %140 {strides = array<i32>} : memref<64x128xf32, #tpu.memory_space<vmem>>, vector<64x128xf32>,
    %c0_173 = arith.constant 0 : index
    %c2_174 = arith.constant 2 : index
    %c2_175 = arith.constant 2 : index
    %c0_176 = arith.constant 0 : index
    %142 = vector.load %arg1[%c0_173, %c2_174, %c2_175, %c0_176] : memref<1x14x14x128xbf16, #tpu.memory_space<vmem>>, vector<1x8x8x128xbf16>
    %143 = vector.shape_cast %142 : vector<1x8x8x128xbf16> to vector<8x8x128xbf16>
    %144 = vector.shape_cast %143 : vector<8x8x128xbf16> to vector<64x128xbf16>
    %c16 = arith.constant 16 : index
    %c0_177 = arith.constant 0 : index
    %c0_178 = arith.constant 0 : index
    %145 = vector.load %arg2[%c16, %c0_177, %c0_178] : memref<25x128x128xbf16, #tpu.memory_space<vmem>>, vector<1x128x128xbf16>
    %146 = vector.shape_cast %145 : vector<1x128x128xbf16> to vector<128x128xbf16>
    %cst_179 = arith.constant dense<0.000000e+00> : vector<64x128xf32>
    %147 = tpu.matmul %144, %146, %cst_179 {dimension_numbers = #tpu.dot_dimension_numbers<[1], [0], [0], [1], [0, 0, 1, 1], [], []>} : vector<64x128xbf16>, vector<128x128xbf16>, vector<64x128xf32> -> vector<64x128xf32>
    %c0_180 = arith.constant 0 : index
    %c0_181 = arith.constant 0 : index
    %148 = vector.load %arg5[%c0_180, %c0_181] : memref<64x128xf32, #tpu.memory_space<vmem>>, vector<64x128xf32>
    %149 = arith.addf %148, %147 : vector<64x128xf32>
    %c0_182 = arith.constant 0 : index
    %c0_183 = arith.constant 0 : index
    %150 = vector.load %arg5[%c0_182, %c0_183] : memref<64x128xf32, #tpu.memory_space<vmem>>, vector<64x128xf32>
    tpu.vector_store %arg5[%c0_182, %c0_183], %149 {strides = array<i32>} : memref<64x128xf32, #tpu.memory_space<vmem>>, vector<64x128xf32>,
    %c0_184 = arith.constant 0 : index
    %c2_185 = arith.constant 2 : index
    %c3_186 = arith.constant 3 : index
    %c0_187 = arith.constant 0 : index
    %151 = vector.load %arg1[%c0_184, %c2_185, %c3_186, %c0_187] : memref<1x14x14x128xbf16, #tpu.memory_space<vmem>>, vector<1x8x8x128xbf16>
    %152 = vector.shape_cast %151 : vector<1x8x8x128xbf16> to vector<8x8x128xbf16>
    %153 = vector.shape_cast %152 : vector<8x8x128xbf16> to vector<64x128xbf16>
    %c17 = arith.constant 17 : index
    %c0_188 = arith.constant 0 : index
    %c0_189 = arith.constant 0 : index
    %154 = vector.load %arg2[%c17, %c0_188, %c0_189] : memref<25x128x128xbf16, #tpu.memory_space<vmem>>, vector<1x128x128xbf16>
    %155 = vector.shape_cast %154 : vector<1x128x128xbf16> to vector<128x128xbf16>
    %cst_190 = arith.constant dense<0.000000e+00> : vector<64x128xf32>
    %156 = tpu.matmul %153, %155, %cst_190 {dimension_numbers = #tpu.dot_dimension_numbers<[1], [0], [0], [1], [0, 0, 1, 1], [], []>} : vector<64x128xbf16>, vector<128x128xbf16>, vector<64x128xf32> -> vector<64x128xf32>
    %c0_191 = arith.constant 0 : index
    %c0_192 = arith.constant 0 : index
    %157 = vector.load %arg5[%c0_191, %c0_192] : memref<64x128xf32, #tpu.memory_space<vmem>>, vector<64x128xf32>
    %158 = arith.addf %157, %156 : vector<64x128xf32>
    %c0_193 = arith.constant 0 : index
    %c0_194 = arith.constant 0 : index
    %159 = vector.load %arg5[%c0_193, %c0_194] : memref<64x128xf32, #tpu.memory_space<vmem>>, vector<64x128xf32>
    tpu.vector_store %arg5[%c0_193, %c0_194], %158 {strides = array<i32>} : memref<64x128xf32, #tpu.memory_space<vmem>>, vector<64x128xf32>,
    %c0_195 = arith.constant 0 : index
    %c2_196 = arith.constant 2 : index
    %c4_197 = arith.constant 4 : index
    %c0_198 = arith.constant 0 : index
    %160 = vector.load %arg1[%c0_195, %c2_196, %c4_197, %c0_198] : memref<1x14x14x128xbf16, #tpu.memory_space<vmem>>, vector<1x8x8x128xbf16>
    %161 = vector.shape_cast %160 : vector<1x8x8x128xbf16> to vector<8x8x128xbf16>
    %162 = vector.shape_cast %161 : vector<8x8x128xbf16> to vector<64x128xbf16>
    %c18 = arith.constant 18 : index
    %c0_199 = arith.constant 0 : index
    %c0_200 = arith.constant 0 : index
    %163 = vector.load %arg2[%c18, %c0_199, %c0_200] : memref<25x128x128xbf16, #tpu.memory_space<vmem>>, vector<1x128x128xbf16>
    %164 = vector.shape_cast %163 : vector<1x128x128xbf16> to vector<128x128xbf16>
    %cst_201 = arith.constant dense<0.000000e+00> : vector<64x128xf32>
    %165 = tpu.matmul %162, %164, %cst_201 {dimension_numbers = #tpu.dot_dimension_numbers<[1], [0], [0], [1], [0, 0, 1, 1], [], []>} : vector<64x128xbf16>, vector<128x128xbf16>, vector<64x128xf32> -> vector<64x128xf32>
    %c0_202 = arith.constant 0 : index
    %c0_203 = arith.constant 0 : index
    %166 = vector.load %arg5[%c0_202, %c0_203] : memref<64x128xf32, #tpu.memory_space<vmem>>, vector<64x128xf32>
    %167 = arith.addf %166, %165 : vector<64x128xf32>
    %c0_204 = arith.constant 0 : index
    %c0_205 = arith.constant 0 : index
    %168 = vector.load %arg5[%c0_204, %c0_205] : memref<64x128xf32, #tpu.memory_space<vmem>>, vector<64x128xf32>
    tpu.vector_store %arg5[%c0_204, %c0_205], %167 {strides = array<i32>} : memref<64x128xf32, #tpu.memory_space<vmem>>, vector<64x128xf32>,
    %c0_206 = arith.constant 0 : index
    %c2_207 = arith.constant 2 : index
    %c5_208 = arith.constant 5 : index
    %c0_209 = arith.constant 0 : index
    %169 = vector.load %arg1[%c0_206, %c2_207, %c5_208, %c0_209] : memref<1x14x14x128xbf16, #tpu.memory_space<vmem>>, vector<1x8x8x128xbf16>
    %170 = vector.shape_cast %169 : vector<1x8x8x128xbf16> to vector<8x8x128xbf16>
    %171 = vector.shape_cast %170 : vector<8x8x128xbf16> to vector<64x128xbf16>
    %c19 = arith.constant 19 : index
    %c0_210 = arith.constant 0 : index
    %c0_211 = arith.constant 0 : index
    %172 = vector.load %arg2[%c19, %c0_210, %c0_211] : memref<25x128x128xbf16, #tpu.memory_space<vmem>>, vector<1x128x128xbf16>
    %173 = vector.shape_cast %172 : vector<1x128x128xbf16> to vector<128x128xbf16>
    %cst_212 = arith.constant dense<0.000000e+00> : vector<64x128xf32>
    %174 = tpu.matmul %171, %173, %cst_212 {dimension_numbers = #tpu.dot_dimension_numbers<[1], [0], [0], [1], [0, 0, 1, 1], [], []>} : vector<64x128xbf16>, vector<128x128xbf16>, vector<64x128xf32> -> vector<64x128xf32>
    %c0_213 = arith.constant 0 : index
    %c0_214 = arith.constant 0 : index
    %175 = vector.load %arg5[%c0_213, %c0_214] : memref<64x128xf32, #tpu.memory_space<vmem>>, vector<64x128xf32>
    %176 = arith.addf %175, %174 : vector<64x128xf32>
    %c0_215 = arith.constant 0 : index
    %c0_216 = arith.constant 0 : index
    %177 = vector.load %arg5[%c0_215, %c0_216] : memref<64x128xf32, #tpu.memory_space<vmem>>, vector<64x128xf32>
    tpu.vector_store %arg5[%c0_215, %c0_216], %176 {strides = array<i32>} : memref<64x128xf32, #tpu.memory_space<vmem>>, vector<64x128xf32>,
    %c0_217 = arith.constant 0 : index
    %c2_218 = arith.constant 2 : index
    %c6_219 = arith.constant 6 : index
    %c0_220 = arith.constant 0 : index
    %178 = vector.load %arg1[%c0_217, %c2_218, %c6_219, %c0_220] : memref<1x14x14x128xbf16, #tpu.memory_space<vmem>>, vector<1x8x8x128xbf16>
    %179 = vector.shape_cast %178 : vector<1x8x8x128xbf16> to vector<8x8x128xbf16>
    %180 = vector.shape_cast %179 : vector<8x8x128xbf16> to vector<64x128xbf16>
    %c20 = arith.constant 20 : index
    %c0_221 = arith.constant 0 : index
    %c0_222 = arith.constant 0 : index
    %181 = vector.load %arg2[%c20, %c0_221, %c0_222] : memref<25x128x128xbf16, #tpu.memory_space<vmem>>, vector<1x128x128xbf16>
    %182 = vector.shape_cast %181 : vector<1x128x128xbf16> to vector<128x128xbf16>
    %cst_223 = arith.constant dense<0.000000e+00> : vector<64x128xf32>
    %183 = tpu.matmul %180, %182, %cst_223 {dimension_numbers = #tpu.dot_dimension_numbers<[1], [0], [0], [1], [0, 0, 1, 1], [], []>} : vector<64x128xbf16>, vector<128x128xbf16>, vector<64x128xf32> -> vector<64x128xf32>
    %c0_224 = arith.constant 0 : index
    %c0_225 = arith.constant 0 : index
    %184 = vector.load %arg5[%c0_224, %c0_225] : memref<64x128xf32, #tpu.memory_space<vmem>>, vector<64x128xf32>
    %185 = arith.addf %184, %183 : vector<64x128xf32>
    %c0_226 = arith.constant 0 : index
    %c0_227 = arith.constant 0 : index
    %186 = vector.load %arg5[%c0_226, %c0_227] : memref<64x128xf32, #tpu.memory_space<vmem>>, vector<64x128xf32>
    tpu.vector_store %arg5[%c0_226, %c0_227], %185 {strides = array<i32>} : memref<64x128xf32, #tpu.memory_space<vmem>>, vector<64x128xf32>,
    %c0_228 = arith.constant 0 : index
    %c3_229 = arith.constant 3 : index
    %c0_230 = arith.constant 0 : index
    %c0_231 = arith.constant 0 : index
    %187 = vector.load %arg1[%c0_228, %c3_229, %c0_230, %c0_231] : memref<1x14x14x128xbf16, #tpu.memory_space<vmem>>, vector<1x8x8x128xbf16>
    %188 = vector.shape_cast %187 : vector<1x8x8x128xbf16> to vector<8x8x128xbf16>
    %189 = vector.shape_cast %188 : vector<8x8x128xbf16> to vector<64x128xbf16>
    %c21 = arith.constant 21 : index
    %c0_232 = arith.constant 0 : index
    %c0_233 = arith.constant 0 : index
    %190 = vector.load %arg2[%c21, %c0_232, %c0_233] : memref<25x128x128xbf16, #tpu.memory_space<vmem>>, vector<1x128x128xbf16>
    %191 = vector.shape_cast %190 : vector<1x128x128xbf16> to vector<128x128xbf16>
    %cst_234 = arith.constant dense<0.000000e+00> : vector<64x128xf32>
    %192 = tpu.matmul %189, %191, %cst_234 {dimension_numbers = #tpu.dot_dimension_numbers<[1], [0], [0], [1], [0, 0, 1, 1], [], []>} : vector<64x128xbf16>, vector<128x128xbf16>, vector<64x128xf32> -> vector<64x128xf32>
    %c0_235 = arith.constant 0 : index
    %c0_236 = arith.constant 0 : index
    %193 = vector.load %arg5[%c0_235, %c0_236] : memref<64x128xf32, #tpu.memory_space<vmem>>, vector<64x128xf32>
    %194 = arith.addf %193, %192 : vector<64x128xf32>
    %c0_237 = arith.constant 0 : index
    %c0_238 = arith.constant 0 : index
    %195 = vector.load %arg5[%c0_237, %c0_238] : memref<64x128xf32, #tpu.memory_space<vmem>>, vector<64x128xf32>
    tpu.vector_store %arg5[%c0_237, %c0_238], %194 {strides = array<i32>} : memref<64x128xf32, #tpu.memory_space<vmem>>, vector<64x128xf32>,
    %c0_239 = arith.constant 0 : index
    %c3_240 = arith.constant 3 : index
    %c1_241 = arith.constant 1 : index
    %c0_242 = arith.constant 0 : index
    %196 = vector.load %arg1[%c0_239, %c3_240, %c1_241, %c0_242] : memref<1x14x14x128xbf16, #tpu.memory_space<vmem>>, vector<1x8x8x128xbf16>
    %197 = vector.shape_cast %196 : vector<1x8x8x128xbf16> to vector<8x8x128xbf16>
    %198 = vector.shape_cast %197 : vector<8x8x128xbf16> to vector<64x128xbf16>
    %c22 = arith.constant 22 : index
    %c0_243 = arith.constant 0 : index
    %c0_244 = arith.constant 0 : index
    %199 = vector.load %arg2[%c22, %c0_243, %c0_244] : memref<25x128x128xbf16, #tpu.memory_space<vmem>>, vector<1x128x128xbf16>
    %200 = vector.shape_cast %199 : vector<1x128x128xbf16> to vector<128x128xbf16>
    %cst_245 = arith.constant dense<0.000000e+00> : vector<64x128xf32>
    %201 = tpu.matmul %198, %200, %cst_245 {dimension_numbers = #tpu.dot_dimension_numbers<[1], [0], [0], [1], [0, 0, 1, 1], [], []>} : vector<64x128xbf16>, vector<128x128xbf16>, vector<64x128xf32> -> vector<64x128xf32>
    %c0_246 = arith.constant 0 : index
    %c0_247 = arith.constant 0 : index
    %202 = vector.load %arg5[%c0_246, %c0_247] : memref<64x128xf32, #tpu.memory_space<vmem>>, vector<64x128xf32>
    %203 = arith.addf %202, %201 : vector<64x128xf32>
    %c0_248 = arith.constant 0 : index
    %c0_249 = arith.constant 0 : index
    %204 = vector.load %arg5[%c0_248, %c0_249] : memref<64x128xf32, #tpu.memory_space<vmem>>, vector<64x128xf32>
    tpu.vector_store %arg5[%c0_248, %c0_249], %203 {strides = array<i32>} : memref<64x128xf32, #tpu.memory_space<vmem>>, vector<64x128xf32>,
    %c0_250 = arith.constant 0 : index
    %c3_251 = arith.constant 3 : index
    %c2_252 = arith.constant 2 : index
    %c0_253 = arith.constant 0 : index
    %205 = vector.load %arg1[%c0_250, %c3_251, %c2_252, %c0_253] : memref<1x14x14x128xbf16, #tpu.memory_space<vmem>>, vector<1x8x8x128xbf16>
    %206 = vector.shape_cast %205 : vector<1x8x8x128xbf16> to vector<8x8x128xbf16>
    %207 = vector.shape_cast %206 : vector<8x8x128xbf16> to vector<64x128xbf16>
    %c23 = arith.constant 23 : index
    %c0_254 = arith.constant 0 : index
    %c0_255 = arith.constant 0 : index
    %208 = vector.load %arg2[%c23, %c0_254, %c0_255] : memref<25x128x128xbf16, #tpu.memory_space<vmem>>, vector<1x128x128xbf16>
    %209 = vector.shape_cast %208 : vector<1x128x128xbf16> to vector<128x128xbf16>
    %cst_256 = arith.constant dense<0.000000e+00> : vector<64x128xf32>
    %210 = tpu.matmul %207, %209, %cst_256 {dimension_numbers = #tpu.dot_dimension_numbers<[1], [0], [0], [1], [0, 0, 1, 1], [], []>} : vector<64x128xbf16>, vector<128x128xbf16>, vector<64x128xf32> -> vector<64x128xf32>
    %c0_257 = arith.constant 0 : index
    %c0_258 = arith.constant 0 : index
    %211 = vector.load %arg5[%c0_257, %c0_258] : memref<64x128xf32, #tpu.memory_space<vmem>>, vector<64x128xf32>
    %212 = arith.addf %211, %210 : vector<64x128xf32>
    %c0_259 = arith.constant 0 : index
    %c0_260 = arith.constant 0 : index
    %213 = vector.load %arg5[%c0_259, %c0_260] : memref<64x128xf32, #tpu.memory_space<vmem>>, vector<64x128xf32>
    tpu.vector_store %arg5[%c0_259, %c0_260], %212 {strides = array<i32>} : memref<64x128xf32, #tpu.memory_space<vmem>>, vector<64x128xf32>,
    %c0_261 = arith.constant 0 : index
    %c3_262 = arith.constant 3 : index
    %c3_263 = arith.constant 3 : index
    %c0_264 = arith.constant 0 : index
    %214 = vector.load %arg1[%c0_261, %c3_262, %c3_263, %c0_264] : memref<1x14x14x128xbf16, #tpu.memory_space<vmem>>, vector<1x8x8x128xbf16>
    %215 = vector.shape_cast %214 : vector<1x8x8x128xbf16> to vector<8x8x128xbf16>
    %216 = vector.shape_cast %215 : vector<8x8x128xbf16> to vector<64x128xbf16>
    %c24 = arith.constant 24 : index
    %c0_265 = arith.constant 0 : index
    %c0_266 = arith.constant 0 : index
    %217 = vector.load %arg2[%c24, %c0_265, %c0_266] : memref<25x128x128xbf16, #tpu.memory_space<vmem>>, vector<1x128x128xbf16>
    %218 = vector.shape_cast %217 : vector<1x128x128xbf16> to vector<128x128xbf16>
    %cst_267 = arith.constant dense<0.000000e+00> : vector<64x128xf32>
    %219 = tpu.matmul %216, %218, %cst_267 {dimension_numbers = #tpu.dot_dimension_numbers<[1], [0], [0], [1], [0, 0, 1, 1], [], []>} : vector<64x128xbf16>, vector<128x128xbf16>, vector<64x128xf32> -> vector<64x128xf32>
    %c0_268 = arith.constant 0 : index
    %c0_269 = arith.constant 0 : index
    %220 = vector.load %arg5[%c0_268, %c0_269] : memref<64x128xf32, #tpu.memory_space<vmem>>, vector<64x128xf32>
    %221 = arith.addf %220, %219 : vector<64x128xf32>
    %c0_270 = arith.constant 0 : index
    %c0_271 = arith.constant 0 : index
    %222 = vector.load %arg5[%c0_270, %c0_271] : memref<64x128xf32, #tpu.memory_space<vmem>>, vector<64x128xf32>
    tpu.vector_store %arg5[%c0_270, %c0_271], %221 {strides = array<i32>} : memref<64x128xf32, #tpu.memory_space<vmem>>, vector<64x128xf32>,
    %c0_272 = arith.constant 0 : index
    %c0_273 = arith.constant 0 : index
    %223 = vector.load %arg5[%c0_272, %c0_273] : memref<64x128xf32, #tpu.memory_space<vmem>>, vector<64x128xf32>
    %c0_274 = arith.constant 0 : index
    %c0_275 = arith.constant 0 : index
    %224 = vector.load %arg3[%c0_274, %c0_275] : memref<1x128xf32, #tpu.memory_space<vmem>>, vector<1x128xf32>
    %225 = vector.broadcast %224 : vector<1x128xf32> to vector<64x128xf32>
    %226 = arith.addf %223, %225 : vector<64x128xf32>
    %cst_276 = arith.constant 0.000000e+00 : f32
    %227 = vector.broadcast %cst_276 : f32 to vector<64x128xf32>
    %228 = arith.maximumf %226, %227 : vector<64x128xf32>
    %229 = arith.truncf %228 : vector<64x128xf32> to vector<64x128xbf16>
    %c0_277 = arith.constant 0 : index
    %c0_278 = arith.constant 0 : index
    %c0_279 = arith.constant 0 : index
    %230 = vector.load %arg4[%c0_277, %c0_278, %c0_279] : memref<1x64x128xbf16, #tpu.memory_space<vmem>>, vector<1x64x128xbf16>
    %231 = vector.shape_cast %230 : vector<1x64x128xbf16> to vector<64x128xbf16>
    %232 = vector.shape_cast %229 : vector<64x128xbf16> to vector<1x64x128xbf16>
    tpu.vector_store %arg4[%c0_277, %c0_278, %c0_279], %232 {strides = array<i32>} : memref<1x64x128xbf16, #tpu.memory_space<vmem>>, vector<1x64x128xbf16>,
    return
  }
  func.func @transform_0(%arg0: i32) -> (i32, i32, i32, i32) {
    %c0_i32 = arith.constant 0 : i32
    %c0_i32_0 = arith.constant 0 : i32
    %c0_i32_1 = arith.constant 0 : i32
    %c0_i32_2 = arith.constant 0 : i32
    return %arg0, %c0_i32, %c0_i32_0, %c0_i32_1 : i32, i32, i32, i32
  }
  func.func @transform_1(%arg0: i32) -> (i32, i32, i32) {
    %c0_i32 = arith.constant 0 : i32
    %c0_i32_0 = arith.constant 0 : i32
    %c0_i32_1 = arith.constant 0 : i32
    %c0_i32_2 = arith.constant 0 : i32
    return %c0_i32, %c0_i32_0, %c0_i32_1 : i32, i32, i32
  }
  func.func @transform_2(%arg0: i32) -> (i32, i32) {
    %c0_i32 = arith.constant 0 : i32
    %c0_i32_0 = arith.constant 0 : i32
    %c0_i32_1 = arith.constant 0 : i32
    return %c0_i32, %c0_i32_0 : i32, i32
  }
  func.func @transform_3(%arg0: i32) -> (i32, i32, i32) {
    %c0_i32 = arith.constant 0 : i32
    %c0_i32_0 = arith.constant 0 : i32
    %c0_i32_1 = arith.constant 0 : i32
    return %arg0, %c0_i32, %c0_i32_0 : i32, i32, i32
  }
}

module attributes {stable_mosaic.version = 11 : i64} {
  func.func @_mconv_kernel(%arg0: i32, %arg1: memref<1x14x14x128xbf16, #tpu.memory_space<vmem>>, %arg2: memref<24x128x128xbf16, #tpu.memory_space<vmem>>, %arg3: memref<1x128xf32, #tpu.memory_space<vmem>>, %arg4: memref<1x64x128xbf16, #tpu.memory_space<vmem>>, %arg5: memref<64x128xf32, #tpu.memory_space<vmem>>) attributes {dimension_semantics = [#tpu.dimension_semantics<parallel>], iteration_bounds = array<i64: 2>, scalar_prefetch = 0 : i64, scratch_operands = 1 : i64, tpu.core_type = #tpu.core_type<tc>, window_params = [{transform_indices = @transform_0, window_bounds = array<i64: 1, 14, 14, 128>}, {pipeline_mode = #tpu.pipeline_mode<synchronous>, transform_indices = @transform_1, window_bounds = array<i64: 24, 128, 128>}, {pipeline_mode = #tpu.pipeline_mode<synchronous>, transform_indices = @transform_2, window_bounds = array<i64: 1, 128>}, {transform_indices = @transform_3, window_bounds = array<i64: 1, 64, 128>}]} {
    %c0 = arith.constant 0 : index
    %c0_0 = arith.constant 0 : index
    %c0_1 = arith.constant 0 : index
    %c0_2 = arith.constant 0 : index
    %0 = vector.load %arg1[%c0, %c0_0, %c0_1, %c0_2] : memref<1x14x14x128xbf16, #tpu.memory_space<vmem>>, vector<1x8x8x128xbf16>
    %1 = vector.shape_cast %0 : vector<1x8x8x128xbf16> to vector<8x8x128xbf16>
    %2 = vector.shape_cast %1 : vector<8x8x128xbf16> to vector<64x128xbf16>
    %c0_3 = arith.constant 0 : index
    %c0_4 = arith.constant 0 : index
    %c0_5 = arith.constant 0 : index
    %3 = vector.load %arg2[%c0_3, %c0_4, %c0_5] : memref<24x128x128xbf16, #tpu.memory_space<vmem>>, vector<1x128x128xbf16>
    %4 = vector.shape_cast %3 : vector<1x128x128xbf16> to vector<128x128xbf16>
    %cst = arith.constant dense<0.000000e+00> : vector<64x128xf32>
    %5 = tpu.matmul %2, %4, %cst {dimension_numbers = #tpu.dot_dimension_numbers<[1], [0], [0], [1], [0, 0, 1, 1], [], []>} : vector<64x128xbf16>, vector<128x128xbf16>, vector<64x128xf32> -> vector<64x128xf32>
    %c0_6 = arith.constant 0 : index
    %c0_7 = arith.constant 0 : index
    %6 = vector.load %arg5[%c0_6, %c0_7] : memref<64x128xf32, #tpu.memory_space<vmem>>, vector<64x128xf32>
    tpu.vector_store %arg5[%c0_6, %c0_7], %5 {strides = array<i32>} : memref<64x128xf32, #tpu.memory_space<vmem>>, vector<64x128xf32>,
    %c0_8 = arith.constant 0 : index
    %c0_9 = arith.constant 0 : index
    %c1 = arith.constant 1 : index
    %c0_10 = arith.constant 0 : index
    %7 = vector.load %arg1[%c0_8, %c0_9, %c1, %c0_10] : memref<1x14x14x128xbf16, #tpu.memory_space<vmem>>, vector<1x8x8x128xbf16>
    %8 = vector.shape_cast %7 : vector<1x8x8x128xbf16> to vector<8x8x128xbf16>
    %9 = vector.shape_cast %8 : vector<8x8x128xbf16> to vector<64x128xbf16>
    %c1_11 = arith.constant 1 : index
    %c0_12 = arith.constant 0 : index
    %c0_13 = arith.constant 0 : index
    %10 = vector.load %arg2[%c1_11, %c0_12, %c0_13] : memref<24x128x128xbf16, #tpu.memory_space<vmem>>, vector<1x128x128xbf16>
    %11 = vector.shape_cast %10 : vector<1x128x128xbf16> to vector<128x128xbf16>
    %cst_14 = arith.constant dense<0.000000e+00> : vector<64x128xf32>
    %12 = tpu.matmul %9, %11, %cst_14 {dimension_numbers = #tpu.dot_dimension_numbers<[1], [0], [0], [1], [0, 0, 1, 1], [], []>} : vector<64x128xbf16>, vector<128x128xbf16>, vector<64x128xf32> -> vector<64x128xf32>
    %c0_15 = arith.constant 0 : index
    %c0_16 = arith.constant 0 : index
    %13 = vector.load %arg5[%c0_15, %c0_16] : memref<64x128xf32, #tpu.memory_space<vmem>>, vector<64x128xf32>
    %14 = arith.addf %13, %12 : vector<64x128xf32>
    %c0_17 = arith.constant 0 : index
    %c0_18 = arith.constant 0 : index
    %15 = vector.load %arg5[%c0_17, %c0_18] : memref<64x128xf32, #tpu.memory_space<vmem>>, vector<64x128xf32>
    tpu.vector_store %arg5[%c0_17, %c0_18], %14 {strides = array<i32>} : memref<64x128xf32, #tpu.memory_space<vmem>>, vector<64x128xf32>,
    %c0_19 = arith.constant 0 : index
    %c0_20 = arith.constant 0 : index
    %c2 = arith.constant 2 : index
    %c0_21 = arith.constant 0 : index
    %16 = vector.load %arg1[%c0_19, %c0_20, %c2, %c0_21] : memref<1x14x14x128xbf16, #tpu.memory_space<vmem>>, vector<1x8x8x128xbf16>
    %17 = vector.shape_cast %16 : vector<1x8x8x128xbf16> to vector<8x8x128xbf16>
    %18 = vector.shape_cast %17 : vector<8x8x128xbf16> to vector<64x128xbf16>
    %c2_22 = arith.constant 2 : index
    %c0_23 = arith.constant 0 : index
    %c0_24 = arith.constant 0 : index
    %19 = vector.load %arg2[%c2_22, %c0_23, %c0_24] : memref<24x128x128xbf16, #tpu.memory_space<vmem>>, vector<1x128x128xbf16>
    %20 = vector.shape_cast %19 : vector<1x128x128xbf16> to vector<128x128xbf16>
    %cst_25 = arith.constant dense<0.000000e+00> : vector<64x128xf32>
    %21 = tpu.matmul %18, %20, %cst_25 {dimension_numbers = #tpu.dot_dimension_numbers<[1], [0], [0], [1], [0, 0, 1, 1], [], []>} : vector<64x128xbf16>, vector<128x128xbf16>, vector<64x128xf32> -> vector<64x128xf32>
    %c0_26 = arith.constant 0 : index
    %c0_27 = arith.constant 0 : index
    %22 = vector.load %arg5[%c0_26, %c0_27] : memref<64x128xf32, #tpu.memory_space<vmem>>, vector<64x128xf32>
    %23 = arith.addf %22, %21 : vector<64x128xf32>
    %c0_28 = arith.constant 0 : index
    %c0_29 = arith.constant 0 : index
    %24 = vector.load %arg5[%c0_28, %c0_29] : memref<64x128xf32, #tpu.memory_space<vmem>>, vector<64x128xf32>
    tpu.vector_store %arg5[%c0_28, %c0_29], %23 {strides = array<i32>} : memref<64x128xf32, #tpu.memory_space<vmem>>, vector<64x128xf32>,
    %c0_30 = arith.constant 0 : index
    %c0_31 = arith.constant 0 : index
    %c3 = arith.constant 3 : index
    %c0_32 = arith.constant 0 : index
    %25 = vector.load %arg1[%c0_30, %c0_31, %c3, %c0_32] : memref<1x14x14x128xbf16, #tpu.memory_space<vmem>>, vector<1x8x8x128xbf16>
    %26 = vector.shape_cast %25 : vector<1x8x8x128xbf16> to vector<8x8x128xbf16>
    %27 = vector.shape_cast %26 : vector<8x8x128xbf16> to vector<64x128xbf16>
    %c3_33 = arith.constant 3 : index
    %c0_34 = arith.constant 0 : index
    %c0_35 = arith.constant 0 : index
    %28 = vector.load %arg2[%c3_33, %c0_34, %c0_35] : memref<24x128x128xbf16, #tpu.memory_space<vmem>>, vector<1x128x128xbf16>
    %29 = vector.shape_cast %28 : vector<1x128x128xbf16> to vector<128x128xbf16>
    %cst_36 = arith.constant dense<0.000000e+00> : vector<64x128xf32>
    %30 = tpu.matmul %27, %29, %cst_36 {dimension_numbers = #tpu.dot_dimension_numbers<[1], [0], [0], [1], [0, 0, 1, 1], [], []>} : vector<64x128xbf16>, vector<128x128xbf16>, vector<64x128xf32> -> vector<64x128xf32>
    %c0_37 = arith.constant 0 : index
    %c0_38 = arith.constant 0 : index
    %31 = vector.load %arg5[%c0_37, %c0_38] : memref<64x128xf32, #tpu.memory_space<vmem>>, vector<64x128xf32>
    %32 = arith.addf %31, %30 : vector<64x128xf32>
    %c0_39 = arith.constant 0 : index
    %c0_40 = arith.constant 0 : index
    %33 = vector.load %arg5[%c0_39, %c0_40] : memref<64x128xf32, #tpu.memory_space<vmem>>, vector<64x128xf32>
    tpu.vector_store %arg5[%c0_39, %c0_40], %32 {strides = array<i32>} : memref<64x128xf32, #tpu.memory_space<vmem>>, vector<64x128xf32>,
    %c0_41 = arith.constant 0 : index
    %c0_42 = arith.constant 0 : index
    %c4 = arith.constant 4 : index
    %c0_43 = arith.constant 0 : index
    %34 = vector.load %arg1[%c0_41, %c0_42, %c4, %c0_43] : memref<1x14x14x128xbf16, #tpu.memory_space<vmem>>, vector<1x8x8x128xbf16>
    %35 = vector.shape_cast %34 : vector<1x8x8x128xbf16> to vector<8x8x128xbf16>
    %36 = vector.shape_cast %35 : vector<8x8x128xbf16> to vector<64x128xbf16>
    %c4_44 = arith.constant 4 : index
    %c0_45 = arith.constant 0 : index
    %c0_46 = arith.constant 0 : index
    %37 = vector.load %arg2[%c4_44, %c0_45, %c0_46] : memref<24x128x128xbf16, #tpu.memory_space<vmem>>, vector<1x128x128xbf16>
    %38 = vector.shape_cast %37 : vector<1x128x128xbf16> to vector<128x128xbf16>
    %cst_47 = arith.constant dense<0.000000e+00> : vector<64x128xf32>
    %39 = tpu.matmul %36, %38, %cst_47 {dimension_numbers = #tpu.dot_dimension_numbers<[1], [0], [0], [1], [0, 0, 1, 1], [], []>} : vector<64x128xbf16>, vector<128x128xbf16>, vector<64x128xf32> -> vector<64x128xf32>
    %c0_48 = arith.constant 0 : index
    %c0_49 = arith.constant 0 : index
    %40 = vector.load %arg5[%c0_48, %c0_49] : memref<64x128xf32, #tpu.memory_space<vmem>>, vector<64x128xf32>
    %41 = arith.addf %40, %39 : vector<64x128xf32>
    %c0_50 = arith.constant 0 : index
    %c0_51 = arith.constant 0 : index
    %42 = vector.load %arg5[%c0_50, %c0_51] : memref<64x128xf32, #tpu.memory_space<vmem>>, vector<64x128xf32>
    tpu.vector_store %arg5[%c0_50, %c0_51], %41 {strides = array<i32>} : memref<64x128xf32, #tpu.memory_space<vmem>>, vector<64x128xf32>,
    %c0_52 = arith.constant 0 : index
    %c0_53 = arith.constant 0 : index
    %c5 = arith.constant 5 : index
    %c0_54 = arith.constant 0 : index
    %43 = vector.load %arg1[%c0_52, %c0_53, %c5, %c0_54] : memref<1x14x14x128xbf16, #tpu.memory_space<vmem>>, vector<1x8x8x128xbf16>
    %44 = vector.shape_cast %43 : vector<1x8x8x128xbf16> to vector<8x8x128xbf16>
    %45 = vector.shape_cast %44 : vector<8x8x128xbf16> to vector<64x128xbf16>
    %c5_55 = arith.constant 5 : index
    %c0_56 = arith.constant 0 : index
    %c0_57 = arith.constant 0 : index
    %46 = vector.load %arg2[%c5_55, %c0_56, %c0_57] : memref<24x128x128xbf16, #tpu.memory_space<vmem>>, vector<1x128x128xbf16>
    %47 = vector.shape_cast %46 : vector<1x128x128xbf16> to vector<128x128xbf16>
    %cst_58 = arith.constant dense<0.000000e+00> : vector<64x128xf32>
    %48 = tpu.matmul %45, %47, %cst_58 {dimension_numbers = #tpu.dot_dimension_numbers<[1], [0], [0], [1], [0, 0, 1, 1], [], []>} : vector<64x128xbf16>, vector<128x128xbf16>, vector<64x128xf32> -> vector<64x128xf32>
    %c0_59 = arith.constant 0 : index
    %c0_60 = arith.constant 0 : index
    %49 = vector.load %arg5[%c0_59, %c0_60] : memref<64x128xf32, #tpu.memory_space<vmem>>, vector<64x128xf32>
    %50 = arith.addf %49, %48 : vector<64x128xf32>
    %c0_61 = arith.constant 0 : index
    %c0_62 = arith.constant 0 : index
    %51 = vector.load %arg5[%c0_61, %c0_62] : memref<64x128xf32, #tpu.memory_space<vmem>>, vector<64x128xf32>
    tpu.vector_store %arg5[%c0_61, %c0_62], %50 {strides = array<i32>} : memref<64x128xf32, #tpu.memory_space<vmem>>, vector<64x128xf32>,
    %c0_63 = arith.constant 0 : index
    %c0_64 = arith.constant 0 : index
    %c6 = arith.constant 6 : index
    %c0_65 = arith.constant 0 : index
    %52 = vector.load %arg1[%c0_63, %c0_64, %c6, %c0_65] : memref<1x14x14x128xbf16, #tpu.memory_space<vmem>>, vector<1x8x8x128xbf16>
    %53 = vector.shape_cast %52 : vector<1x8x8x128xbf16> to vector<8x8x128xbf16>
    %54 = vector.shape_cast %53 : vector<8x8x128xbf16> to vector<64x128xbf16>
    %c6_66 = arith.constant 6 : index
    %c0_67 = arith.constant 0 : index
    %c0_68 = arith.constant 0 : index
    %55 = vector.load %arg2[%c6_66, %c0_67, %c0_68] : memref<24x128x128xbf16, #tpu.memory_space<vmem>>, vector<1x128x128xbf16>
    %56 = vector.shape_cast %55 : vector<1x128x128xbf16> to vector<128x128xbf16>
    %cst_69 = arith.constant dense<0.000000e+00> : vector<64x128xf32>
    %57 = tpu.matmul %54, %56, %cst_69 {dimension_numbers = #tpu.dot_dimension_numbers<[1], [0], [0], [1], [0, 0, 1, 1], [], []>} : vector<64x128xbf16>, vector<128x128xbf16>, vector<64x128xf32> -> vector<64x128xf32>
    %c0_70 = arith.constant 0 : index
    %c0_71 = arith.constant 0 : index
    %58 = vector.load %arg5[%c0_70, %c0_71] : memref<64x128xf32, #tpu.memory_space<vmem>>, vector<64x128xf32>
    %59 = arith.addf %58, %57 : vector<64x128xf32>
    %c0_72 = arith.constant 0 : index
    %c0_73 = arith.constant 0 : index
    %60 = vector.load %arg5[%c0_72, %c0_73] : memref<64x128xf32, #tpu.memory_space<vmem>>, vector<64x128xf32>
    tpu.vector_store %arg5[%c0_72, %c0_73], %59 {strides = array<i32>} : memref<64x128xf32, #tpu.memory_space<vmem>>, vector<64x128xf32>,
    %c0_74 = arith.constant 0 : index
    %c1_75 = arith.constant 1 : index
    %c0_76 = arith.constant 0 : index
    %c0_77 = arith.constant 0 : index
    %61 = vector.load %arg1[%c0_74, %c1_75, %c0_76, %c0_77] : memref<1x14x14x128xbf16, #tpu.memory_space<vmem>>, vector<1x8x8x128xbf16>
    %62 = vector.shape_cast %61 : vector<1x8x8x128xbf16> to vector<8x8x128xbf16>
    %63 = vector.shape_cast %62 : vector<8x8x128xbf16> to vector<64x128xbf16>
    %c7 = arith.constant 7 : index
    %c0_78 = arith.constant 0 : index
    %c0_79 = arith.constant 0 : index
    %64 = vector.load %arg2[%c7, %c0_78, %c0_79] : memref<24x128x128xbf16, #tpu.memory_space<vmem>>, vector<1x128x128xbf16>
    %65 = vector.shape_cast %64 : vector<1x128x128xbf16> to vector<128x128xbf16>
    %cst_80 = arith.constant dense<0.000000e+00> : vector<64x128xf32>
    %66 = tpu.matmul %63, %65, %cst_80 {dimension_numbers = #tpu.dot_dimension_numbers<[1], [0], [0], [1], [0, 0, 1, 1], [], []>} : vector<64x128xbf16>, vector<128x128xbf16>, vector<64x128xf32> -> vector<64x128xf32>
    %c0_81 = arith.constant 0 : index
    %c0_82 = arith.constant 0 : index
    %67 = vector.load %arg5[%c0_81, %c0_82] : memref<64x128xf32, #tpu.memory_space<vmem>>, vector<64x128xf32>
    %68 = arith.addf %67, %66 : vector<64x128xf32>
    %c0_83 = arith.constant 0 : index
    %c0_84 = arith.constant 0 : index
    %69 = vector.load %arg5[%c0_83, %c0_84] : memref<64x128xf32, #tpu.memory_space<vmem>>, vector<64x128xf32>
    tpu.vector_store %arg5[%c0_83, %c0_84], %68 {strides = array<i32>} : memref<64x128xf32, #tpu.memory_space<vmem>>, vector<64x128xf32>,
    %c0_85 = arith.constant 0 : index
    %c1_86 = arith.constant 1 : index
    %c1_87 = arith.constant 1 : index
    %c0_88 = arith.constant 0 : index
    %70 = vector.load %arg1[%c0_85, %c1_86, %c1_87, %c0_88] : memref<1x14x14x128xbf16, #tpu.memory_space<vmem>>, vector<1x8x8x128xbf16>
    %71 = vector.shape_cast %70 : vector<1x8x8x128xbf16> to vector<8x8x128xbf16>
    %72 = vector.shape_cast %71 : vector<8x8x128xbf16> to vector<64x128xbf16>
    %c8 = arith.constant 8 : index
    %c0_89 = arith.constant 0 : index
    %c0_90 = arith.constant 0 : index
    %73 = vector.load %arg2[%c8, %c0_89, %c0_90] : memref<24x128x128xbf16, #tpu.memory_space<vmem>>, vector<1x128x128xbf16>
    %74 = vector.shape_cast %73 : vector<1x128x128xbf16> to vector<128x128xbf16>
    %cst_91 = arith.constant dense<0.000000e+00> : vector<64x128xf32>
    %75 = tpu.matmul %72, %74, %cst_91 {dimension_numbers = #tpu.dot_dimension_numbers<[1], [0], [0], [1], [0, 0, 1, 1], [], []>} : vector<64x128xbf16>, vector<128x128xbf16>, vector<64x128xf32> -> vector<64x128xf32>
    %c0_92 = arith.constant 0 : index
    %c0_93 = arith.constant 0 : index
    %76 = vector.load %arg5[%c0_92, %c0_93] : memref<64x128xf32, #tpu.memory_space<vmem>>, vector<64x128xf32>
    %77 = arith.addf %76, %75 : vector<64x128xf32>
    %c0_94 = arith.constant 0 : index
    %c0_95 = arith.constant 0 : index
    %78 = vector.load %arg5[%c0_94, %c0_95] : memref<64x128xf32, #tpu.memory_space<vmem>>, vector<64x128xf32>
    tpu.vector_store %arg5[%c0_94, %c0_95], %77 {strides = array<i32>} : memref<64x128xf32, #tpu.memory_space<vmem>>, vector<64x128xf32>,
    %c0_96 = arith.constant 0 : index
    %c1_97 = arith.constant 1 : index
    %c2_98 = arith.constant 2 : index
    %c0_99 = arith.constant 0 : index
    %79 = vector.load %arg1[%c0_96, %c1_97, %c2_98, %c0_99] : memref<1x14x14x128xbf16, #tpu.memory_space<vmem>>, vector<1x8x8x128xbf16>
    %80 = vector.shape_cast %79 : vector<1x8x8x128xbf16> to vector<8x8x128xbf16>
    %81 = vector.shape_cast %80 : vector<8x8x128xbf16> to vector<64x128xbf16>
    %c9 = arith.constant 9 : index
    %c0_100 = arith.constant 0 : index
    %c0_101 = arith.constant 0 : index
    %82 = vector.load %arg2[%c9, %c0_100, %c0_101] : memref<24x128x128xbf16, #tpu.memory_space<vmem>>, vector<1x128x128xbf16>
    %83 = vector.shape_cast %82 : vector<1x128x128xbf16> to vector<128x128xbf16>
    %cst_102 = arith.constant dense<0.000000e+00> : vector<64x128xf32>
    %84 = tpu.matmul %81, %83, %cst_102 {dimension_numbers = #tpu.dot_dimension_numbers<[1], [0], [0], [1], [0, 0, 1, 1], [], []>} : vector<64x128xbf16>, vector<128x128xbf16>, vector<64x128xf32> -> vector<64x128xf32>
    %c0_103 = arith.constant 0 : index
    %c0_104 = arith.constant 0 : index
    %85 = vector.load %arg5[%c0_103, %c0_104] : memref<64x128xf32, #tpu.memory_space<vmem>>, vector<64x128xf32>
    %86 = arith.addf %85, %84 : vector<64x128xf32>
    %c0_105 = arith.constant 0 : index
    %c0_106 = arith.constant 0 : index
    %87 = vector.load %arg5[%c0_105, %c0_106] : memref<64x128xf32, #tpu.memory_space<vmem>>, vector<64x128xf32>
    tpu.vector_store %arg5[%c0_105, %c0_106], %86 {strides = array<i32>} : memref<64x128xf32, #tpu.memory_space<vmem>>, vector<64x128xf32>,
    %c0_107 = arith.constant 0 : index
    %c1_108 = arith.constant 1 : index
    %c3_109 = arith.constant 3 : index
    %c0_110 = arith.constant 0 : index
    %88 = vector.load %arg1[%c0_107, %c1_108, %c3_109, %c0_110] : memref<1x14x14x128xbf16, #tpu.memory_space<vmem>>, vector<1x8x8x128xbf16>
    %89 = vector.shape_cast %88 : vector<1x8x8x128xbf16> to vector<8x8x128xbf16>
    %90 = vector.shape_cast %89 : vector<8x8x128xbf16> to vector<64x128xbf16>
    %c10 = arith.constant 10 : index
    %c0_111 = arith.constant 0 : index
    %c0_112 = arith.constant 0 : index
    %91 = vector.load %arg2[%c10, %c0_111, %c0_112] : memref<24x128x128xbf16, #tpu.memory_space<vmem>>, vector<1x128x128xbf16>
    %92 = vector.shape_cast %91 : vector<1x128x128xbf16> to vector<128x128xbf16>
    %cst_113 = arith.constant dense<0.000000e+00> : vector<64x128xf32>
    %93 = tpu.matmul %90, %92, %cst_113 {dimension_numbers = #tpu.dot_dimension_numbers<[1], [0], [0], [1], [0, 0, 1, 1], [], []>} : vector<64x128xbf16>, vector<128x128xbf16>, vector<64x128xf32> -> vector<64x128xf32>
    %c0_114 = arith.constant 0 : index
    %c0_115 = arith.constant 0 : index
    %94 = vector.load %arg5[%c0_114, %c0_115] : memref<64x128xf32, #tpu.memory_space<vmem>>, vector<64x128xf32>
    %95 = arith.addf %94, %93 : vector<64x128xf32>
    %c0_116 = arith.constant 0 : index
    %c0_117 = arith.constant 0 : index
    %96 = vector.load %arg5[%c0_116, %c0_117] : memref<64x128xf32, #tpu.memory_space<vmem>>, vector<64x128xf32>
    tpu.vector_store %arg5[%c0_116, %c0_117], %95 {strides = array<i32>} : memref<64x128xf32, #tpu.memory_space<vmem>>, vector<64x128xf32>,
    %c0_118 = arith.constant 0 : index
    %c1_119 = arith.constant 1 : index
    %c4_120 = arith.constant 4 : index
    %c0_121 = arith.constant 0 : index
    %97 = vector.load %arg1[%c0_118, %c1_119, %c4_120, %c0_121] : memref<1x14x14x128xbf16, #tpu.memory_space<vmem>>, vector<1x8x8x128xbf16>
    %98 = vector.shape_cast %97 : vector<1x8x8x128xbf16> to vector<8x8x128xbf16>
    %99 = vector.shape_cast %98 : vector<8x8x128xbf16> to vector<64x128xbf16>
    %c11 = arith.constant 11 : index
    %c0_122 = arith.constant 0 : index
    %c0_123 = arith.constant 0 : index
    %100 = vector.load %arg2[%c11, %c0_122, %c0_123] : memref<24x128x128xbf16, #tpu.memory_space<vmem>>, vector<1x128x128xbf16>
    %101 = vector.shape_cast %100 : vector<1x128x128xbf16> to vector<128x128xbf16>
    %cst_124 = arith.constant dense<0.000000e+00> : vector<64x128xf32>
    %102 = tpu.matmul %99, %101, %cst_124 {dimension_numbers = #tpu.dot_dimension_numbers<[1], [0], [0], [1], [0, 0, 1, 1], [], []>} : vector<64x128xbf16>, vector<128x128xbf16>, vector<64x128xf32> -> vector<64x128xf32>
    %c0_125 = arith.constant 0 : index
    %c0_126 = arith.constant 0 : index
    %103 = vector.load %arg5[%c0_125, %c0_126] : memref<64x128xf32, #tpu.memory_space<vmem>>, vector<64x128xf32>
    %104 = arith.addf %103, %102 : vector<64x128xf32>
    %c0_127 = arith.constant 0 : index
    %c0_128 = arith.constant 0 : index
    %105 = vector.load %arg5[%c0_127, %c0_128] : memref<64x128xf32, #tpu.memory_space<vmem>>, vector<64x128xf32>
    tpu.vector_store %arg5[%c0_127, %c0_128], %104 {strides = array<i32>} : memref<64x128xf32, #tpu.memory_space<vmem>>, vector<64x128xf32>,
    %c0_129 = arith.constant 0 : index
    %c1_130 = arith.constant 1 : index
    %c5_131 = arith.constant 5 : index
    %c0_132 = arith.constant 0 : index
    %106 = vector.load %arg1[%c0_129, %c1_130, %c5_131, %c0_132] : memref<1x14x14x128xbf16, #tpu.memory_space<vmem>>, vector<1x8x8x128xbf16>
    %107 = vector.shape_cast %106 : vector<1x8x8x128xbf16> to vector<8x8x128xbf16>
    %108 = vector.shape_cast %107 : vector<8x8x128xbf16> to vector<64x128xbf16>
    %c12 = arith.constant 12 : index
    %c0_133 = arith.constant 0 : index
    %c0_134 = arith.constant 0 : index
    %109 = vector.load %arg2[%c12, %c0_133, %c0_134] : memref<24x128x128xbf16, #tpu.memory_space<vmem>>, vector<1x128x128xbf16>
    %110 = vector.shape_cast %109 : vector<1x128x128xbf16> to vector<128x128xbf16>
    %cst_135 = arith.constant dense<0.000000e+00> : vector<64x128xf32>
    %111 = tpu.matmul %108, %110, %cst_135 {dimension_numbers = #tpu.dot_dimension_numbers<[1], [0], [0], [1], [0, 0, 1, 1], [], []>} : vector<64x128xbf16>, vector<128x128xbf16>, vector<64x128xf32> -> vector<64x128xf32>
    %c0_136 = arith.constant 0 : index
    %c0_137 = arith.constant 0 : index
    %112 = vector.load %arg5[%c0_136, %c0_137] : memref<64x128xf32, #tpu.memory_space<vmem>>, vector<64x128xf32>
    %113 = arith.addf %112, %111 : vector<64x128xf32>
    %c0_138 = arith.constant 0 : index
    %c0_139 = arith.constant 0 : index
    %114 = vector.load %arg5[%c0_138, %c0_139] : memref<64x128xf32, #tpu.memory_space<vmem>>, vector<64x128xf32>
    tpu.vector_store %arg5[%c0_138, %c0_139], %113 {strides = array<i32>} : memref<64x128xf32, #tpu.memory_space<vmem>>, vector<64x128xf32>,
    %c0_140 = arith.constant 0 : index
    %c1_141 = arith.constant 1 : index
    %c6_142 = arith.constant 6 : index
    %c0_143 = arith.constant 0 : index
    %115 = vector.load %arg1[%c0_140, %c1_141, %c6_142, %c0_143] : memref<1x14x14x128xbf16, #tpu.memory_space<vmem>>, vector<1x8x8x128xbf16>
    %116 = vector.shape_cast %115 : vector<1x8x8x128xbf16> to vector<8x8x128xbf16>
    %117 = vector.shape_cast %116 : vector<8x8x128xbf16> to vector<64x128xbf16>
    %c13 = arith.constant 13 : index
    %c0_144 = arith.constant 0 : index
    %c0_145 = arith.constant 0 : index
    %118 = vector.load %arg2[%c13, %c0_144, %c0_145] : memref<24x128x128xbf16, #tpu.memory_space<vmem>>, vector<1x128x128xbf16>
    %119 = vector.shape_cast %118 : vector<1x128x128xbf16> to vector<128x128xbf16>
    %cst_146 = arith.constant dense<0.000000e+00> : vector<64x128xf32>
    %120 = tpu.matmul %117, %119, %cst_146 {dimension_numbers = #tpu.dot_dimension_numbers<[1], [0], [0], [1], [0, 0, 1, 1], [], []>} : vector<64x128xbf16>, vector<128x128xbf16>, vector<64x128xf32> -> vector<64x128xf32>
    %c0_147 = arith.constant 0 : index
    %c0_148 = arith.constant 0 : index
    %121 = vector.load %arg5[%c0_147, %c0_148] : memref<64x128xf32, #tpu.memory_space<vmem>>, vector<64x128xf32>
    %122 = arith.addf %121, %120 : vector<64x128xf32>
    %c0_149 = arith.constant 0 : index
    %c0_150 = arith.constant 0 : index
    %123 = vector.load %arg5[%c0_149, %c0_150] : memref<64x128xf32, #tpu.memory_space<vmem>>, vector<64x128xf32>
    tpu.vector_store %arg5[%c0_149, %c0_150], %122 {strides = array<i32>} : memref<64x128xf32, #tpu.memory_space<vmem>>, vector<64x128xf32>,
    %c0_151 = arith.constant 0 : index
    %c2_152 = arith.constant 2 : index
    %c0_153 = arith.constant 0 : index
    %c0_154 = arith.constant 0 : index
    %124 = vector.load %arg1[%c0_151, %c2_152, %c0_153, %c0_154] : memref<1x14x14x128xbf16, #tpu.memory_space<vmem>>, vector<1x8x8x128xbf16>
    %125 = vector.shape_cast %124 : vector<1x8x8x128xbf16> to vector<8x8x128xbf16>
    %126 = vector.shape_cast %125 : vector<8x8x128xbf16> to vector<64x128xbf16>
    %c14 = arith.constant 14 : index
    %c0_155 = arith.constant 0 : index
    %c0_156 = arith.constant 0 : index
    %127 = vector.load %arg2[%c14, %c0_155, %c0_156] : memref<24x128x128xbf16, #tpu.memory_space<vmem>>, vector<1x128x128xbf16>
    %128 = vector.shape_cast %127 : vector<1x128x128xbf16> to vector<128x128xbf16>
    %cst_157 = arith.constant dense<0.000000e+00> : vector<64x128xf32>
    %129 = tpu.matmul %126, %128, %cst_157 {dimension_numbers = #tpu.dot_dimension_numbers<[1], [0], [0], [1], [0, 0, 1, 1], [], []>} : vector<64x128xbf16>, vector<128x128xbf16>, vector<64x128xf32> -> vector<64x128xf32>
    %c0_158 = arith.constant 0 : index
    %c0_159 = arith.constant 0 : index
    %130 = vector.load %arg5[%c0_158, %c0_159] : memref<64x128xf32, #tpu.memory_space<vmem>>, vector<64x128xf32>
    %131 = arith.addf %130, %129 : vector<64x128xf32>
    %c0_160 = arith.constant 0 : index
    %c0_161 = arith.constant 0 : index
    %132 = vector.load %arg5[%c0_160, %c0_161] : memref<64x128xf32, #tpu.memory_space<vmem>>, vector<64x128xf32>
    tpu.vector_store %arg5[%c0_160, %c0_161], %131 {strides = array<i32>} : memref<64x128xf32, #tpu.memory_space<vmem>>, vector<64x128xf32>,
    %c0_162 = arith.constant 0 : index
    %c2_163 = arith.constant 2 : index
    %c1_164 = arith.constant 1 : index
    %c0_165 = arith.constant 0 : index
    %133 = vector.load %arg1[%c0_162, %c2_163, %c1_164, %c0_165] : memref<1x14x14x128xbf16, #tpu.memory_space<vmem>>, vector<1x8x8x128xbf16>
    %134 = vector.shape_cast %133 : vector<1x8x8x128xbf16> to vector<8x8x128xbf16>
    %135 = vector.shape_cast %134 : vector<8x8x128xbf16> to vector<64x128xbf16>
    %c15 = arith.constant 15 : index
    %c0_166 = arith.constant 0 : index
    %c0_167 = arith.constant 0 : index
    %136 = vector.load %arg2[%c15, %c0_166, %c0_167] : memref<24x128x128xbf16, #tpu.memory_space<vmem>>, vector<1x128x128xbf16>
    %137 = vector.shape_cast %136 : vector<1x128x128xbf16> to vector<128x128xbf16>
    %cst_168 = arith.constant dense<0.000000e+00> : vector<64x128xf32>
    %138 = tpu.matmul %135, %137, %cst_168 {dimension_numbers = #tpu.dot_dimension_numbers<[1], [0], [0], [1], [0, 0, 1, 1], [], []>} : vector<64x128xbf16>, vector<128x128xbf16>, vector<64x128xf32> -> vector<64x128xf32>
    %c0_169 = arith.constant 0 : index
    %c0_170 = arith.constant 0 : index
    %139 = vector.load %arg5[%c0_169, %c0_170] : memref<64x128xf32, #tpu.memory_space<vmem>>, vector<64x128xf32>
    %140 = arith.addf %139, %138 : vector<64x128xf32>
    %c0_171 = arith.constant 0 : index
    %c0_172 = arith.constant 0 : index
    %141 = vector.load %arg5[%c0_171, %c0_172] : memref<64x128xf32, #tpu.memory_space<vmem>>, vector<64x128xf32>
    tpu.vector_store %arg5[%c0_171, %c0_172], %140 {strides = array<i32>} : memref<64x128xf32, #tpu.memory_space<vmem>>, vector<64x128xf32>,
    %c0_173 = arith.constant 0 : index
    %c2_174 = arith.constant 2 : index
    %c2_175 = arith.constant 2 : index
    %c0_176 = arith.constant 0 : index
    %142 = vector.load %arg1[%c0_173, %c2_174, %c2_175, %c0_176] : memref<1x14x14x128xbf16, #tpu.memory_space<vmem>>, vector<1x8x8x128xbf16>
    %143 = vector.shape_cast %142 : vector<1x8x8x128xbf16> to vector<8x8x128xbf16>
    %144 = vector.shape_cast %143 : vector<8x8x128xbf16> to vector<64x128xbf16>
    %c16 = arith.constant 16 : index
    %c0_177 = arith.constant 0 : index
    %c0_178 = arith.constant 0 : index
    %145 = vector.load %arg2[%c16, %c0_177, %c0_178] : memref<24x128x128xbf16, #tpu.memory_space<vmem>>, vector<1x128x128xbf16>
    %146 = vector.shape_cast %145 : vector<1x128x128xbf16> to vector<128x128xbf16>
    %cst_179 = arith.constant dense<0.000000e+00> : vector<64x128xf32>
    %147 = tpu.matmul %144, %146, %cst_179 {dimension_numbers = #tpu.dot_dimension_numbers<[1], [0], [0], [1], [0, 0, 1, 1], [], []>} : vector<64x128xbf16>, vector<128x128xbf16>, vector<64x128xf32> -> vector<64x128xf32>
    %c0_180 = arith.constant 0 : index
    %c0_181 = arith.constant 0 : index
    %148 = vector.load %arg5[%c0_180, %c0_181] : memref<64x128xf32, #tpu.memory_space<vmem>>, vector<64x128xf32>
    %149 = arith.addf %148, %147 : vector<64x128xf32>
    %c0_182 = arith.constant 0 : index
    %c0_183 = arith.constant 0 : index
    %150 = vector.load %arg5[%c0_182, %c0_183] : memref<64x128xf32, #tpu.memory_space<vmem>>, vector<64x128xf32>
    tpu.vector_store %arg5[%c0_182, %c0_183], %149 {strides = array<i32>} : memref<64x128xf32, #tpu.memory_space<vmem>>, vector<64x128xf32>,
    %c0_184 = arith.constant 0 : index
    %c2_185 = arith.constant 2 : index
    %c3_186 = arith.constant 3 : index
    %c0_187 = arith.constant 0 : index
    %151 = vector.load %arg1[%c0_184, %c2_185, %c3_186, %c0_187] : memref<1x14x14x128xbf16, #tpu.memory_space<vmem>>, vector<1x8x8x128xbf16>
    %152 = vector.shape_cast %151 : vector<1x8x8x128xbf16> to vector<8x8x128xbf16>
    %153 = vector.shape_cast %152 : vector<8x8x128xbf16> to vector<64x128xbf16>
    %c17 = arith.constant 17 : index
    %c0_188 = arith.constant 0 : index
    %c0_189 = arith.constant 0 : index
    %154 = vector.load %arg2[%c17, %c0_188, %c0_189] : memref<24x128x128xbf16, #tpu.memory_space<vmem>>, vector<1x128x128xbf16>
    %155 = vector.shape_cast %154 : vector<1x128x128xbf16> to vector<128x128xbf16>
    %cst_190 = arith.constant dense<0.000000e+00> : vector<64x128xf32>
    %156 = tpu.matmul %153, %155, %cst_190 {dimension_numbers = #tpu.dot_dimension_numbers<[1], [0], [0], [1], [0, 0, 1, 1], [], []>} : vector<64x128xbf16>, vector<128x128xbf16>, vector<64x128xf32> -> vector<64x128xf32>
    %c0_191 = arith.constant 0 : index
    %c0_192 = arith.constant 0 : index
    %157 = vector.load %arg5[%c0_191, %c0_192] : memref<64x128xf32, #tpu.memory_space<vmem>>, vector<64x128xf32>
    %158 = arith.addf %157, %156 : vector<64x128xf32>
    %c0_193 = arith.constant 0 : index
    %c0_194 = arith.constant 0 : index
    %159 = vector.load %arg5[%c0_193, %c0_194] : memref<64x128xf32, #tpu.memory_space<vmem>>, vector<64x128xf32>
    tpu.vector_store %arg5[%c0_193, %c0_194], %158 {strides = array<i32>} : memref<64x128xf32, #tpu.memory_space<vmem>>, vector<64x128xf32>,
    %c0_195 = arith.constant 0 : index
    %c2_196 = arith.constant 2 : index
    %c4_197 = arith.constant 4 : index
    %c0_198 = arith.constant 0 : index
    %160 = vector.load %arg1[%c0_195, %c2_196, %c4_197, %c0_198] : memref<1x14x14x128xbf16, #tpu.memory_space<vmem>>, vector<1x8x8x128xbf16>
    %161 = vector.shape_cast %160 : vector<1x8x8x128xbf16> to vector<8x8x128xbf16>
    %162 = vector.shape_cast %161 : vector<8x8x128xbf16> to vector<64x128xbf16>
    %c18 = arith.constant 18 : index
    %c0_199 = arith.constant 0 : index
    %c0_200 = arith.constant 0 : index
    %163 = vector.load %arg2[%c18, %c0_199, %c0_200] : memref<24x128x128xbf16, #tpu.memory_space<vmem>>, vector<1x128x128xbf16>
    %164 = vector.shape_cast %163 : vector<1x128x128xbf16> to vector<128x128xbf16>
    %cst_201 = arith.constant dense<0.000000e+00> : vector<64x128xf32>
    %165 = tpu.matmul %162, %164, %cst_201 {dimension_numbers = #tpu.dot_dimension_numbers<[1], [0], [0], [1], [0, 0, 1, 1], [], []>} : vector<64x128xbf16>, vector<128x128xbf16>, vector<64x128xf32> -> vector<64x128xf32>
    %c0_202 = arith.constant 0 : index
    %c0_203 = arith.constant 0 : index
    %166 = vector.load %arg5[%c0_202, %c0_203] : memref<64x128xf32, #tpu.memory_space<vmem>>, vector<64x128xf32>
    %167 = arith.addf %166, %165 : vector<64x128xf32>
    %c0_204 = arith.constant 0 : index
    %c0_205 = arith.constant 0 : index
    %168 = vector.load %arg5[%c0_204, %c0_205] : memref<64x128xf32, #tpu.memory_space<vmem>>, vector<64x128xf32>
    tpu.vector_store %arg5[%c0_204, %c0_205], %167 {strides = array<i32>} : memref<64x128xf32, #tpu.memory_space<vmem>>, vector<64x128xf32>,
    %c0_206 = arith.constant 0 : index
    %c2_207 = arith.constant 2 : index
    %c5_208 = arith.constant 5 : index
    %c0_209 = arith.constant 0 : index
    %169 = vector.load %arg1[%c0_206, %c2_207, %c5_208, %c0_209] : memref<1x14x14x128xbf16, #tpu.memory_space<vmem>>, vector<1x8x8x128xbf16>
    %170 = vector.shape_cast %169 : vector<1x8x8x128xbf16> to vector<8x8x128xbf16>
    %171 = vector.shape_cast %170 : vector<8x8x128xbf16> to vector<64x128xbf16>
    %c19 = arith.constant 19 : index
    %c0_210 = arith.constant 0 : index
    %c0_211 = arith.constant 0 : index
    %172 = vector.load %arg2[%c19, %c0_210, %c0_211] : memref<24x128x128xbf16, #tpu.memory_space<vmem>>, vector<1x128x128xbf16>
    %173 = vector.shape_cast %172 : vector<1x128x128xbf16> to vector<128x128xbf16>
    %cst_212 = arith.constant dense<0.000000e+00> : vector<64x128xf32>
    %174 = tpu.matmul %171, %173, %cst_212 {dimension_numbers = #tpu.dot_dimension_numbers<[1], [0], [0], [1], [0, 0, 1, 1], [], []>} : vector<64x128xbf16>, vector<128x128xbf16>, vector<64x128xf32> -> vector<64x128xf32>
    %c0_213 = arith.constant 0 : index
    %c0_214 = arith.constant 0 : index
    %175 = vector.load %arg5[%c0_213, %c0_214] : memref<64x128xf32, #tpu.memory_space<vmem>>, vector<64x128xf32>
    %176 = arith.addf %175, %174 : vector<64x128xf32>
    %c0_215 = arith.constant 0 : index
    %c0_216 = arith.constant 0 : index
    %177 = vector.load %arg5[%c0_215, %c0_216] : memref<64x128xf32, #tpu.memory_space<vmem>>, vector<64x128xf32>
    tpu.vector_store %arg5[%c0_215, %c0_216], %176 {strides = array<i32>} : memref<64x128xf32, #tpu.memory_space<vmem>>, vector<64x128xf32>,
    %c0_217 = arith.constant 0 : index
    %c2_218 = arith.constant 2 : index
    %c6_219 = arith.constant 6 : index
    %c0_220 = arith.constant 0 : index
    %178 = vector.load %arg1[%c0_217, %c2_218, %c6_219, %c0_220] : memref<1x14x14x128xbf16, #tpu.memory_space<vmem>>, vector<1x8x8x128xbf16>
    %179 = vector.shape_cast %178 : vector<1x8x8x128xbf16> to vector<8x8x128xbf16>
    %180 = vector.shape_cast %179 : vector<8x8x128xbf16> to vector<64x128xbf16>
    %c20 = arith.constant 20 : index
    %c0_221 = arith.constant 0 : index
    %c0_222 = arith.constant 0 : index
    %181 = vector.load %arg2[%c20, %c0_221, %c0_222] : memref<24x128x128xbf16, #tpu.memory_space<vmem>>, vector<1x128x128xbf16>
    %182 = vector.shape_cast %181 : vector<1x128x128xbf16> to vector<128x128xbf16>
    %cst_223 = arith.constant dense<0.000000e+00> : vector<64x128xf32>
    %183 = tpu.matmul %180, %182, %cst_223 {dimension_numbers = #tpu.dot_dimension_numbers<[1], [0], [0], [1], [0, 0, 1, 1], [], []>} : vector<64x128xbf16>, vector<128x128xbf16>, vector<64x128xf32> -> vector<64x128xf32>
    %c0_224 = arith.constant 0 : index
    %c0_225 = arith.constant 0 : index
    %184 = vector.load %arg5[%c0_224, %c0_225] : memref<64x128xf32, #tpu.memory_space<vmem>>, vector<64x128xf32>
    %185 = arith.addf %184, %183 : vector<64x128xf32>
    %c0_226 = arith.constant 0 : index
    %c0_227 = arith.constant 0 : index
    %186 = vector.load %arg5[%c0_226, %c0_227] : memref<64x128xf32, #tpu.memory_space<vmem>>, vector<64x128xf32>
    tpu.vector_store %arg5[%c0_226, %c0_227], %185 {strides = array<i32>} : memref<64x128xf32, #tpu.memory_space<vmem>>, vector<64x128xf32>,
    %c0_228 = arith.constant 0 : index
    %c3_229 = arith.constant 3 : index
    %c0_230 = arith.constant 0 : index
    %c0_231 = arith.constant 0 : index
    %187 = vector.load %arg1[%c0_228, %c3_229, %c0_230, %c0_231] : memref<1x14x14x128xbf16, #tpu.memory_space<vmem>>, vector<1x8x8x128xbf16>
    %188 = vector.shape_cast %187 : vector<1x8x8x128xbf16> to vector<8x8x128xbf16>
    %189 = vector.shape_cast %188 : vector<8x8x128xbf16> to vector<64x128xbf16>
    %c21 = arith.constant 21 : index
    %c0_232 = arith.constant 0 : index
    %c0_233 = arith.constant 0 : index
    %190 = vector.load %arg2[%c21, %c0_232, %c0_233] : memref<24x128x128xbf16, #tpu.memory_space<vmem>>, vector<1x128x128xbf16>
    %191 = vector.shape_cast %190 : vector<1x128x128xbf16> to vector<128x128xbf16>
    %cst_234 = arith.constant dense<0.000000e+00> : vector<64x128xf32>
    %192 = tpu.matmul %189, %191, %cst_234 {dimension_numbers = #tpu.dot_dimension_numbers<[1], [0], [0], [1], [0, 0, 1, 1], [], []>} : vector<64x128xbf16>, vector<128x128xbf16>, vector<64x128xf32> -> vector<64x128xf32>
    %c0_235 = arith.constant 0 : index
    %c0_236 = arith.constant 0 : index
    %193 = vector.load %arg5[%c0_235, %c0_236] : memref<64x128xf32, #tpu.memory_space<vmem>>, vector<64x128xf32>
    %194 = arith.addf %193, %192 : vector<64x128xf32>
    %c0_237 = arith.constant 0 : index
    %c0_238 = arith.constant 0 : index
    %195 = vector.load %arg5[%c0_237, %c0_238] : memref<64x128xf32, #tpu.memory_space<vmem>>, vector<64x128xf32>
    tpu.vector_store %arg5[%c0_237, %c0_238], %194 {strides = array<i32>} : memref<64x128xf32, #tpu.memory_space<vmem>>, vector<64x128xf32>,
    %c0_239 = arith.constant 0 : index
    %c3_240 = arith.constant 3 : index
    %c1_241 = arith.constant 1 : index
    %c0_242 = arith.constant 0 : index
    %196 = vector.load %arg1[%c0_239, %c3_240, %c1_241, %c0_242] : memref<1x14x14x128xbf16, #tpu.memory_space<vmem>>, vector<1x8x8x128xbf16>
    %197 = vector.shape_cast %196 : vector<1x8x8x128xbf16> to vector<8x8x128xbf16>
    %198 = vector.shape_cast %197 : vector<8x8x128xbf16> to vector<64x128xbf16>
    %c22 = arith.constant 22 : index
    %c0_243 = arith.constant 0 : index
    %c0_244 = arith.constant 0 : index
    %199 = vector.load %arg2[%c22, %c0_243, %c0_244] : memref<24x128x128xbf16, #tpu.memory_space<vmem>>, vector<1x128x128xbf16>
    %200 = vector.shape_cast %199 : vector<1x128x128xbf16> to vector<128x128xbf16>
    %cst_245 = arith.constant dense<0.000000e+00> : vector<64x128xf32>
    %201 = tpu.matmul %198, %200, %cst_245 {dimension_numbers = #tpu.dot_dimension_numbers<[1], [0], [0], [1], [0, 0, 1, 1], [], []>} : vector<64x128xbf16>, vector<128x128xbf16>, vector<64x128xf32> -> vector<64x128xf32>
    %c0_246 = arith.constant 0 : index
    %c0_247 = arith.constant 0 : index
    %202 = vector.load %arg5[%c0_246, %c0_247] : memref<64x128xf32, #tpu.memory_space<vmem>>, vector<64x128xf32>
    %203 = arith.addf %202, %201 : vector<64x128xf32>
    %c0_248 = arith.constant 0 : index
    %c0_249 = arith.constant 0 : index
    %204 = vector.load %arg5[%c0_248, %c0_249] : memref<64x128xf32, #tpu.memory_space<vmem>>, vector<64x128xf32>
    tpu.vector_store %arg5[%c0_248, %c0_249], %203 {strides = array<i32>} : memref<64x128xf32, #tpu.memory_space<vmem>>, vector<64x128xf32>,
    %c0_250 = arith.constant 0 : index
    %c3_251 = arith.constant 3 : index
    %c2_252 = arith.constant 2 : index
    %c0_253 = arith.constant 0 : index
    %205 = vector.load %arg1[%c0_250, %c3_251, %c2_252, %c0_253] : memref<1x14x14x128xbf16, #tpu.memory_space<vmem>>, vector<1x8x8x128xbf16>
    %206 = vector.shape_cast %205 : vector<1x8x8x128xbf16> to vector<8x8x128xbf16>
    %207 = vector.shape_cast %206 : vector<8x8x128xbf16> to vector<64x128xbf16>
    %c23 = arith.constant 23 : index
    %c0_254 = arith.constant 0 : index
    %c0_255 = arith.constant 0 : index
    %208 = vector.load %arg2[%c23, %c0_254, %c0_255] : memref<24x128x128xbf16, #tpu.memory_space<vmem>>, vector<1x128x128xbf16>
    %209 = vector.shape_cast %208 : vector<1x128x128xbf16> to vector<128x128xbf16>
    %cst_256 = arith.constant dense<0.000000e+00> : vector<64x128xf32>
    %210 = tpu.matmul %207, %209, %cst_256 {dimension_numbers = #tpu.dot_dimension_numbers<[1], [0], [0], [1], [0, 0, 1, 1], [], []>} : vector<64x128xbf16>, vector<128x128xbf16>, vector<64x128xf32> -> vector<64x128xf32>
    %c0_257 = arith.constant 0 : index
    %c0_258 = arith.constant 0 : index
    %211 = vector.load %arg5[%c0_257, %c0_258] : memref<64x128xf32, #tpu.memory_space<vmem>>, vector<64x128xf32>
    %212 = arith.addf %211, %210 : vector<64x128xf32>
    %c0_259 = arith.constant 0 : index
    %c0_260 = arith.constant 0 : index
    %213 = vector.load %arg5[%c0_259, %c0_260] : memref<64x128xf32, #tpu.memory_space<vmem>>, vector<64x128xf32>
    tpu.vector_store %arg5[%c0_259, %c0_260], %212 {strides = array<i32>} : memref<64x128xf32, #tpu.memory_space<vmem>>, vector<64x128xf32>,
    %c0_261 = arith.constant 0 : index
    %c0_262 = arith.constant 0 : index
    %214 = vector.load %arg5[%c0_261, %c0_262] : memref<64x128xf32, #tpu.memory_space<vmem>>, vector<64x128xf32>
    %c0_263 = arith.constant 0 : index
    %c0_264 = arith.constant 0 : index
    %215 = vector.load %arg3[%c0_263, %c0_264] : memref<1x128xf32, #tpu.memory_space<vmem>>, vector<1x128xf32>
    %216 = vector.broadcast %215 : vector<1x128xf32> to vector<64x128xf32>
    %217 = arith.addf %214, %216 : vector<64x128xf32>
    %218 = arith.truncf %217 : vector<64x128xf32> to vector<64x128xbf16>
    %c0_265 = arith.constant 0 : index
    %c0_266 = arith.constant 0 : index
    %c0_267 = arith.constant 0 : index
    %219 = vector.load %arg4[%c0_265, %c0_266, %c0_267] : memref<1x64x128xbf16, #tpu.memory_space<vmem>>, vector<1x64x128xbf16>
    %220 = vector.shape_cast %219 : vector<1x64x128xbf16> to vector<64x128xbf16>
    %221 = vector.shape_cast %218 : vector<64x128xbf16> to vector<1x64x128xbf16>
    tpu.vector_store %arg4[%c0_265, %c0_266, %c0_267], %221 {strides = array<i32>} : memref<1x64x128xbf16, #tpu.memory_space<vmem>>, vector<1x64x128xbf16>,
    return
  }
  func.func @transform_0(%arg0: i32) -> (i32, i32, i32, i32) {
    %c0_i32 = arith.constant 0 : i32
    %c0_i32_0 = arith.constant 0 : i32
    %c0_i32_1 = arith.constant 0 : i32
    %c0_i32_2 = arith.constant 0 : i32
    return %arg0, %c0_i32, %c0_i32_0, %c0_i32_1 : i32, i32, i32, i32
  }
  func.func @transform_1(%arg0: i32) -> (i32, i32, i32) {
    %c0_i32 = arith.constant 0 : i32
    %c0_i32_0 = arith.constant 0 : i32
    %c0_i32_1 = arith.constant 0 : i32
    %c0_i32_2 = arith.constant 0 : i32
    return %c0_i32, %c0_i32_0, %c0_i32_1 : i32, i32, i32
  }
  func.func @transform_2(%arg0: i32) -> (i32, i32) {
    %c0_i32 = arith.constant 0 : i32
    %c0_i32_0 = arith.constant 0 : i32
    %c0_i32_1 = arith.constant 0 : i32
    return %c0_i32, %c0_i32_0 : i32, i32
  }
  func.func @transform_3(%arg0: i32) -> (i32, i32, i32) {
    %c0_i32 = arith.constant 0 : i32
    %c0_i32_0 = arith.constant 0 : i32
    %c0_i32_1 = arith.constant 0 : i32
    return %arg0, %c0_i32, %c0_i32_0 : i32, i32, i32
  }
}

module attributes {stable_mosaic.version = 11 : i64} {
  func.func @_gemm1x1_res_kernel(%arg0: i32, %arg1: memref<64x128xbf16, #tpu.memory_space<vmem>>, %arg2: memref<128x128xbf16, #tpu.memory_space<vmem>>, %arg3: memref<1x128xf32, #tpu.memory_space<vmem>>, %arg4: memref<64x128xbf16, #tpu.memory_space<vmem>>, %arg5: memref<64x128xbf16, #tpu.memory_space<vmem>>) attributes {dimension_semantics = [#tpu.dimension_semantics<parallel>], iteration_bounds = array<i64: 2>, scalar_prefetch = 0 : i64, scratch_operands = 0 : i64, tpu.core_type = #tpu.core_type<tc>, window_params = [{transform_indices = @transform_0, window_bounds = array<i64: 64, 128>}, {pipeline_mode = #tpu.pipeline_mode<synchronous>, transform_indices = @transform_1, window_bounds = array<i64: 128, 128>}, {pipeline_mode = #tpu.pipeline_mode<synchronous>, transform_indices = @transform_2, window_bounds = array<i64: 1, 128>}, {transform_indices = @transform_3, window_bounds = array<i64: 64, 128>}, {transform_indices = @transform_4, window_bounds = array<i64: 64, 128>}]} {
    %c0 = arith.constant 0 : index
    %c0_0 = arith.constant 0 : index
    %0 = vector.load %arg1[%c0, %c0_0] : memref<64x128xbf16, #tpu.memory_space<vmem>>, vector<64x128xbf16>
    %c0_1 = arith.constant 0 : index
    %c0_2 = arith.constant 0 : index
    %1 = vector.load %arg2[%c0_1, %c0_2] : memref<128x128xbf16, #tpu.memory_space<vmem>>, vector<128x128xbf16>
    %cst = arith.constant dense<0.000000e+00> : vector<64x128xf32>
    %2 = tpu.matmul %0, %1, %cst {dimension_numbers = #tpu.dot_dimension_numbers<[1], [0], [0], [1], [0, 0, 1, 1], [], []>} : vector<64x128xbf16>, vector<128x128xbf16>, vector<64x128xf32> -> vector<64x128xf32>
    %c0_3 = arith.constant 0 : index
    %c0_4 = arith.constant 0 : index
    %3 = vector.load %arg3[%c0_3, %c0_4] : memref<1x128xf32, #tpu.memory_space<vmem>>, vector<1x128xf32>
    %4 = vector.broadcast %3 : vector<1x128xf32> to vector<64x128xf32>
    %5 = arith.addf %2, %4 : vector<64x128xf32>
    %c0_5 = arith.constant 0 : index
    %c0_6 = arith.constant 0 : index
    %6 = vector.load %arg4[%c0_5, %c0_6] : memref<64x128xbf16, #tpu.memory_space<vmem>>, vector<64x128xbf16>
    %7 = arith.extf %6 : vector<64x128xbf16> to vector<64x128xf32>
    %8 = arith.addf %5, %7 : vector<64x128xf32>
    %9 = arith.truncf %8 : vector<64x128xf32> to vector<64x128xbf16>
    %c0_7 = arith.constant 0 : index
    %c0_8 = arith.constant 0 : index
    %10 = vector.load %arg5[%c0_7, %c0_8] : memref<64x128xbf16, #tpu.memory_space<vmem>>, vector<64x128xbf16>
    tpu.vector_store %arg5[%c0_7, %c0_8], %9 {strides = array<i32>} : memref<64x128xbf16, #tpu.memory_space<vmem>>, vector<64x128xbf16>,
    return
  }
  func.func @transform_0(%arg0: i32) -> (i32, i32) {
    %c0_i32 = arith.constant 0 : i32
    %c0_i32_0 = arith.constant 0 : i32
    return %arg0, %c0_i32 : i32, i32
  }
  func.func @transform_1(%arg0: i32) -> (i32, i32) {
    %c0_i32 = arith.constant 0 : i32
    %c0_i32_0 = arith.constant 0 : i32
    %c0_i32_1 = arith.constant 0 : i32
    return %c0_i32, %c0_i32_0 : i32, i32
  }
  func.func @transform_2(%arg0: i32) -> (i32, i32) {
    %c0_i32 = arith.constant 0 : i32
    %c0_i32_0 = arith.constant 0 : i32
    %c0_i32_1 = arith.constant 0 : i32
    return %c0_i32, %c0_i32_0 : i32, i32
  }
  func.func @transform_3(%arg0: i32) -> (i32, i32) {
    %c0_i32 = arith.constant 0 : i32
    %c0_i32_0 = arith.constant 0 : i32
    return %arg0, %c0_i32 : i32, i32
  }
  func.func @transform_4(%arg0: i32) -> (i32, i32) {
    %c0_i32 = arith.constant 0 : i32
    %c0_i32_0 = arith.constant 0 : i32
    return %arg0, %c0_i32 : i32, i32
  }
}

module attributes {stable_mosaic.version = 11 : i64} {
  func.func @_head_kernel(%arg0: i32, %arg1: memref<64x128xbf16, #tpu.memory_space<vmem>>, %arg2: memref<128x128xbf16, #tpu.memory_space<vmem>>, %arg3: memref<1x128xf32, #tpu.memory_space<vmem>>, %arg4: memref<128x128xbf16, #tpu.memory_space<vmem>>, %arg5: memref<1x128xf32, #tpu.memory_space<vmem>>, %arg6: memref<64x128xf32, #tpu.memory_space<vmem>>) attributes {dimension_semantics = [#tpu.dimension_semantics<parallel>], iteration_bounds = array<i64: 2>, scalar_prefetch = 0 : i64, scratch_operands = 0 : i64, tpu.core_type = #tpu.core_type<tc>, window_params = [{transform_indices = @transform_0, window_bounds = array<i64: 64, 128>}, {pipeline_mode = #tpu.pipeline_mode<synchronous>, transform_indices = @transform_1, window_bounds = array<i64: 128, 128>}, {pipeline_mode = #tpu.pipeline_mode<synchronous>, transform_indices = @transform_2, window_bounds = array<i64: 1, 128>}, {pipeline_mode = #tpu.pipeline_mode<synchronous>, transform_indices = @transform_3, window_bounds = array<i64: 128, 128>}, {pipeline_mode = #tpu.pipeline_mode<synchronous>, transform_indices = @transform_4, window_bounds = array<i64: 1, 128>}, {transform_indices = @transform_5, window_bounds = array<i64: 64, 128>}]} {
    %c0 = arith.constant 0 : index
    %c0_0 = arith.constant 0 : index
    %0 = vector.load %arg1[%c0, %c0_0] : memref<64x128xbf16, #tpu.memory_space<vmem>>, vector<64x128xbf16>
    %cst = arith.constant 0.000000e+00 : bf16
    %1 = vector.broadcast %cst : bf16 to vector<64x128xbf16>
    %2 = arith.maximumf %0, %1 : vector<64x128xbf16>
    %c0_1 = arith.constant 0 : index
    %c0_2 = arith.constant 0 : index
    %3 = vector.load %arg2[%c0_1, %c0_2] : memref<128x128xbf16, #tpu.memory_space<vmem>>, vector<128x128xbf16>
    %cst_3 = arith.constant dense<0.000000e+00> : vector<64x128xf32>
    %4 = tpu.matmul %2, %3, %cst_3 {dimension_numbers = #tpu.dot_dimension_numbers<[1], [0], [0], [1], [0, 0, 1, 1], [], []>} : vector<64x128xbf16>, vector<128x128xbf16>, vector<64x128xf32> -> vector<64x128xf32>
    %c0_4 = arith.constant 0 : index
    %c0_5 = arith.constant 0 : index
    %5 = vector.load %arg3[%c0_4, %c0_5] : memref<1x128xf32, #tpu.memory_space<vmem>>, vector<1x128xf32>
    %6 = vector.broadcast %5 : vector<1x128xf32> to vector<64x128xf32>
    %7 = arith.addf %4, %6 : vector<64x128xf32>
    %cst_6 = arith.constant 0.000000e+00 : f32
    %8 = vector.broadcast %cst_6 : f32 to vector<64x128xf32>
    %9 = arith.maximumf %7, %8 : vector<64x128xf32>
    %10 = arith.truncf %9 : vector<64x128xf32> to vector<64x128xbf16>
    %c0_7 = arith.constant 0 : index
    %c0_8 = arith.constant 0 : index
    %11 = vector.load %arg4[%c0_7, %c0_8] : memref<128x128xbf16, #tpu.memory_space<vmem>>, vector<128x128xbf16>
    %cst_9 = arith.constant dense<0.000000e+00> : vector<64x128xf32>
    %12 = tpu.matmul %10, %11, %cst_9 {dimension_numbers = #tpu.dot_dimension_numbers<[1], [0], [0], [1], [0, 0, 1, 1], [], []>} : vector<64x128xbf16>, vector<128x128xbf16>, vector<64x128xf32> -> vector<64x128xf32>
    %c0_10 = arith.constant 0 : index
    %c0_11 = arith.constant 0 : index
    %13 = vector.load %arg5[%c0_10, %c0_11] : memref<1x128xf32, #tpu.memory_space<vmem>>, vector<1x128xf32>
    %14 = vector.broadcast %13 : vector<1x128xf32> to vector<64x128xf32>
    %15 = arith.addf %12, %14 : vector<64x128xf32>
    %c0_12 = arith.constant 0 : index
    %c0_13 = arith.constant 0 : index
    %16 = vector.load %arg6[%c0_12, %c0_13] : memref<64x128xf32, #tpu.memory_space<vmem>>, vector<64x128xf32>
    tpu.vector_store %arg6[%c0_12, %c0_13], %15 {strides = array<i32>} : memref<64x128xf32, #tpu.memory_space<vmem>>, vector<64x128xf32>,
    return
  }
  func.func @transform_0(%arg0: i32) -> (i32, i32) {
    %c0_i32 = arith.constant 0 : i32
    %c0_i32_0 = arith.constant 0 : i32
    return %arg0, %c0_i32 : i32, i32
  }
  func.func @transform_1(%arg0: i32) -> (i32, i32) {
    %c0_i32 = arith.constant 0 : i32
    %c0_i32_0 = arith.constant 0 : i32
    %c0_i32_1 = arith.constant 0 : i32
    return %c0_i32, %c0_i32_0 : i32, i32
  }
  func.func @transform_2(%arg0: i32) -> (i32, i32) {
    %c0_i32 = arith.constant 0 : i32
    %c0_i32_0 = arith.constant 0 : i32
    %c0_i32_1 = arith.constant 0 : i32
    return %c0_i32, %c0_i32_0 : i32, i32
  }
  func.func @transform_3(%arg0: i32) -> (i32, i32) {
    %c0_i32 = arith.constant 0 : i32
    %c0_i32_0 = arith.constant 0 : i32
    %c0_i32_1 = arith.constant 0 : i32
    return %c0_i32, %c0_i32_0 : i32, i32
  }
  func.func @transform_4(%arg0: i32) -> (i32, i32) {
    %c0_i32 = arith.constant 0 : i32
    %c0_i32_0 = arith.constant 0 : i32
    %c0_i32_1 = arith.constant 0 : i32
    return %c0_i32, %c0_i32_0 : i32, i32
  }
  func.func @transform_5(%arg0: i32) -> (i32, i32) {
    %c0_i32 = arith.constant 0 : i32
    %c0_i32_0 = arith.constant 0 : i32
    return %arg0, %c0_i32 : i32, i32
  }
}

</mosaic_0001>

<bundles_post_ra>
// kernel: pixelcnn_forward.9
= control target key start
LH: loop header
LB: loop body
LE: loop exit
PB: predicated region body
PF: predicated region fallthrough
CT: control target
= control target key end

     0   :  { %s616_s12 = smov 0   ;;  %s677_s0 = inlined_call_operand.vmem [shape: bf16[128,128], index: 0, kind: input, shape index: {}]   ;;  %s678_s1 = inlined_call_operand.vmem [shape: bf16[128,128], index: 1, kind: input, shape index: {}]   ;;  %s679_s2 = inlined_call_operand.vmem [shape: f32[1,128], index: 2, kind: input, shape index: {}]   ;;  %s680_s3 = inlined_call_operand.vmem [shape: bf16[128,128], index: 3, kind: output, shape index: {}]  }
   0x1 LB: > { %s455_s13 = sadd.s32 4294967295, %s593_s12   ;;  %p459_p0 = scmp.ge.s32.totalorder %s593_s12, 1  ;;  %s593_s12 = sphi %s616_s12, %s13_s12  }
   0x2   : > { %p138_p1 = scmp.lt.s32.totalorder %s593_s12, 3 }
   0x4   : > { %p139_p2 = pnand %p459_p0, %p138_p1 }
   0x5   : > { %v579_v0 = vld [vmem:[%s678_s1] sm:$0xff] (!%p139_p2)   ;;  %s460_s16 = sshll.u32 (!%p139_p2), %s455_s13, 3  ;;  %v580_v1 = vld [vmem:[%s678_s1 + $0x8] sm:$0xff] (!%p139_p2)   ;;  %v581_v2 = vld [vmem:[%s678_s1 + $0x10] sm:$0xff] (!%p139_p2)   ;;  %v595_v7 = vmov (!%p139_p2), 0  }
   0x6   : > { %142 = sbr.rel (%p139_p2) target bundleno = 260 (0x104), region = 32  ;;  %p163_p3 = scmp.lt.s32.totalorder (!%p139_p2), %s460_s16, 15  ;;  %530 = vmatprep.subr.bf16.mxu0 (!%p139_p2), %v579_v0  ;;  %554 = vmatprep.subr.bf16.mxu1 (!%p139_p2), %v579_v0  ;;  %v582_v3 = vld [vmem:[%s678_s1 + $0x18] sm:$0xff] (!%p139_p2)   ;;  %v583_v14 = vld [vmem:[%s678_s1 + $0x20] sm:$0xff] (!%p139_p2)   ;;  %v584_v16 = vld [vmem:[%s678_s1 + $0x28] sm:$0xff] (!%p139_p2)  }
   0x7   : > { %531 = vmatpush3.bf16.msra.mxu0 (!%p139_p2), %v579_v0  ;;  %562 = vmatpush3.bf16.msra.mxu1 (!%p139_p2), %v579_v0  ;;  %v585_v17 = vld [vmem:[%s678_s1 + $0x30] sm:$0xff] (!%p139_p2)   ;;  %v586_v22 = vld [vmem:[%s678_s1 + $0x38] sm:$0xff] (!%p139_p2)   ;;  %v464_v29 = vld [vmem:[%s679_s2] ss:$0 sm:$0xff] (!%p139_p2) }
   0x8   : > { %532 = vmatprep.subr.bf16.mxu0 (!%p139_p2), %v580_v1  ;;  %555 = vmatprep.subr.bf16.mxu1 (!%p139_p2), %v580_v1 }
   0xb   : > { %533 = vmatpush3.bf16.msra.mxu0 (!%p139_p2), %v580_v1  ;;  %563 = vmatpush3.bf16.msra.mxu1 (!%p139_p2), %v580_v1 }
   0xc   : > { %534 = vmatprep.subr.bf16.mxu0 (!%p139_p2), %v581_v2  ;;  %556 = vmatprep.subr.bf16.mxu1 (!%p139_p2), %v581_v2 }
   0xd   : > { %s682_s16 = smov (!%p163_p3, %s460_s16), 15 }
   0xe   : > { %s461_s21 = sshll.u32 %s682_s16, 2 }
   0xf   : > { %s641_s24 = scalar_lea.vmem %s677_s0, %s461_s21  ;;  %535 = vmatpush3.bf16.msra.mxu0 %v581_v2  ;;  %564 = vmatpush3.bf16.msra.mxu1 %v581_v2  ;;  %s172_s13 = scalar_lea.vmem %s680_s3, %s461_s21 }
  0x10   : > { %v175_v4 = vld [vmem:[%s641_s24] sm:$0xf]  ;;  %v176_v5 = vld [vmem:[%s641_s24 + $0x4] sm:$0xf]  ;;  %v179_v6 = vld [vmem:[%s641_s24 + $0x10] sm:$0xf]  ;;  %536 = vmatprep.subr.bf16.mxu0 %v582_v3  ;;  %557 = vmatprep.subr.bf16.mxu1 %v582_v3 }
  0x11   : > { %v183_v8 = vmax.bf16 %v595_v7, %v175_v4  ;;  %v184_v9 = vmax.bf16 %v595_v7, %v176_v5  ;;  %v180_v10 = vld [vmem:[%s641_s24 + $0x14] sm:$0xf]  ;;  %v187_v11 = vmax.bf16 %v595_v7, %v179_v6  ;;  %v177_v18 = vld [vmem:[%s641_s24 + $0x8] sm:$0xf]  ;;  %v178_v19 = vld [vmem:[%s641_s24 + $0xc] sm:$0xf] }
  0x12   : > { %v188_v12 = vmax.bf16 %v595_v7, %v180_v10  ;;  %v181_v20 = vld [vmem:[%s641_s24 + $0x18] sm:$0xf]  ;;  %v182_v21 = vld [vmem:[%s641_s24 + $0x1c] sm:$0xf]  ;;  %v185_v23 = vmax.bf16 %v595_v7, %v177_v18  ;;  %v186_v24 = vmax.bf16 %v595_v7, %v178_v19 }
  0x13   : > { %v465_v13 = vcombine.low %v183_v8, %v184_v9  ;;  %537 = vmatpush3.bf16.msra.mxu0 %v582_v3  ;;  %565 = vmatpush3.bf16.msra.mxu1 %v582_v3  ;;  %v189_v25 = vmax.bf16 %v595_v7, %v181_v20  ;;  %v190_v26 = vmax.bf16 %v595_v7, %v182_v21 }
  0x14   : > { %v467_v15 = vcombine.low %v187_v11, %v188_v12  ;;  %538 = vmatprep.subr.bf16.mxu0 %v583_v14  ;;  %558 = vmatprep.subr.bf16.mxu1 %v583_v14  ;;  %v466_v27 = vcombine.low %v185_v23, %v186_v24 }
  0x15   : > { %546 = vmatprep.mubr.bf16.mxu0 %v465_v13  ;;  %v468_v28 = vcombine.low %v189_v25, %v190_v26 }
  0x16   : > { %550 = vmatprep.mubr.bf16.mxu1 %v467_v15 }
  0x17   : > { %539 = vmatpush3.bf16.msra.mxu0 %v583_v14  ;;  %566 = vmatpush3.bf16.msra.mxu1 %v583_v14 }
  0x18   : > { %540 = vmatprep.subr.bf16.mxu0 %v584_v16  ;;  %559 = vmatprep.subr.bf16.mxu1 %v584_v16 }
  0x1b   : > { %541 = vmatpush3.bf16.msra.mxu0 %v584_v16  ;;  %567 = vmatpush3.bf16.msra.mxu1 %v584_v16 }
  0x1c   : > { %542 = vmatprep.subr.bf16.mxu0 %v585_v17  ;;  %560 = vmatprep.subr.bf16.mxu1 %v585_v17 }
  0x1f   : > { %543 = vmatpush3.bf16.msra.mxu0 %v585_v17  ;;  %568 = vmatpush3.bf16.msra.mxu1 %v585_v17 }
  0x20   : > { %544 = vmatprep.subr.bf16.mxu0 %v586_v22  ;;  %561 = vmatprep.subr.bf16.mxu1 %v586_v22 }
  0x23   : > { %545 = vmatpush3.bf16.msra.mxu0 %v586_v22  ;;  %569 = vmatpush3.bf16.msra.mxu1 %v586_v22 }
  0x26   : > { %547 = vmatmul.mubr.bf16.vlgmr.msra.gmra.mrb[0].mxu0 %v466_v27  ;;  %551 = vmatmul.mubr.bf16.vlgmr.msra.gmra.mrb[0].mxu1 %v468_v28 }
  0xf9   : > { %v548_v30 = vpop.f32.mrb[0].mxu0  ;;  %v552_v31 = vpop.f32.mrb[0].mxu1 }
  0xfa   : > { %v329_v32 = vadd.f32 %v548_v30, %v464_v29  ;;  %v345_v33 = vadd.f32 %v552_v31, %v464_v29  ;;  %v320_v34 = vpop.f32.mrb[1].mxu0  ;;  %v336_v35 = vpop.f32.mrb[1].mxu1 }
  0xfb   : > { %v321_v36 = vadd.f32 %v464_v29, %v320_v34  ;;  %v337_v37 = vadd.f32 %v464_v29, %v336_v35  ;;  %v549_v38 = vpop.f32.mrb[2].mxu0  ;;  %v553_v39 = vpop.f32.mrb[2].mxu1 }
  0xfc   : > { %v332_v40 = vadd.f32 %v549_v38, %v464_v29  ;;  %v348_v41 = vadd.f32 %v553_v39, %v464_v29  ;;  %v323_v42 = vpop.f32.mrb[3].mxu0  ;;  %v339_v43 = vpop.f32.mrb[3].mxu1  ;;  %v353_v46 = vmax.f32 %v329_v32, 0.0  ;;  %v357_v47 = vmax.f32 %v345_v33, 0.0 }
  0xfd   : > { %v324_v44 = vadd.f32 %v464_v29, %v323_v42  ;;  %v340_v45 = vadd.f32 %v464_v29, %v339_v43  ;;  %v351_v50 = vmax.f32 %v321_v36, 0.0  ;;  %v355_v51 = vmax.f32 %v337_v37, 0.0 }
  0xfe   : > { %v354_v48 = vmax.f32 %v332_v40, 0.0  ;;  %v358_v49 = vmax.f32 %v348_v41, 0.0 }
  0xff   : > { %v352_v52 = vmax.f32 %v324_v44, 0.0  ;;  %v356_v53 = vmax.f32 %v340_v45, 0.0 }
 0x100   : > { %v503_v54 = vpack.c.bf16 %v354_v48, %v353_v46  ;;  %v513_v55 = vpack.c.bf16 %v358_v49, %v357_v47 }
 0x101   : > { %v498_v56 = vpack.c.bf16 %v352_v52, %v351_v50  ;;  %v508_v57 = vpack.c.bf16 %v356_v53, %v355_v51 }
 0x102   : > { %515 = vst [vmem:[%s172_s13 + $0x8] sm:$0xff] %v503_v54   ;;  %517 = vst [vmem:[%s172_s13 + $0x18] sm:$0xff] %v513_v55  }
 0x103   : > { %499 = vst [vmem:[%s172_s13] sm:$0xff] %v498_v56   ;;  %516 = vst [vmem:[%s172_s13 + $0x10] sm:$0xff] %v508_v57  }
 0x104 PF: > { %s13_s12 = sadd.s32 1, %s593_s12  }
 0x105   : > { %p10_p4 = scmp.ge.s32.totalorder %s13_s12, 4  }
 0x107   :  { %12 = sbr.rel (!%p10_p4) target bundleno = 1 (0x1), region = 62 }

// kernel: pixelcnn_forward.11
= control target key start
LH: loop header
LB: loop body
LE: loop exit
PB: predicated region body
PF: predicated region fallthrough
CT: control target
= control target key end

     0   :  { %s713_s15 = smov 0   ;;  %s771_s0 = inlined_call_operand.vmem [shape: bf16[128,128], index: 0, kind: input, shape index: {}]   ;;  %s772_s1 = inlined_call_operand.vmem [shape: bf16[128,128], index: 1, kind: input, shape index: {}]   ;;  %s773_s2 = inlined_call_operand.vmem [shape: f32[1,128], index: 2, kind: input, shape index: {}]   ;;  %s774_s3 = inlined_call_operand.vmem [shape: bf16[128,128], index: 3, kind: input, shape index: {}]   ;;  %s775_s4 = inlined_call_operand.vmem [shape: bf16[128,128], index: 4, kind: output, shape index: {}]  }
   0x1 LB: > { %s524_s16 = sadd.s32 4294967295, %s686_s15   ;;  %p528_p0 = scmp.ge.s32.totalorder %s686_s15, 1  ;;  %s686_s15 = sphi %s713_s15, %s14_s15  }
   0x2   : > { %p174_p1 = scmp.lt.s32.totalorder %s686_s15, 3 }
   0x4   : > { %p175_p2 = pnand %p528_p0, %p174_p1 }
   0x5   : > { %v668_v0 = vld [vmem:[%s772_s1] sm:$0xff] (!%p175_p2)   ;;  %s529_s19 = sshll.u32 (!%p175_p2), %s524_s16, 3  ;;  %v669_v1 = vld [vmem:[%s772_s1 + $0x8] sm:$0xff] (!%p175_p2)   ;;  %v670_v2 = vld [vmem:[%s772_s1 + $0x10] sm:$0xff] (!%p175_p2)  }
   0x6   : > { %178 = sbr.rel (%p175_p2) target bundleno = 260 (0x104), region = 36  ;;  %p206_p3 = scmp.lt.s32.totalorder (!%p175_p2), %s529_s19, 15  ;;  %620 = vmatprep.subr.bf16.mxu0 (!%p175_p2), %v668_v0  ;;  %644 = vmatprep.subr.bf16.mxu1 (!%p175_p2), %v668_v0  ;;  %v671_v3 = vld [vmem:[%s772_s1 + $0x18] sm:$0xff] (!%p175_p2)   ;;  %v672_v6 = vld [vmem:[%s772_s1 + $0x20] sm:$0xff] (!%p175_p2)   ;;  %v673_v7 = vld [vmem:[%s772_s1 + $0x28] sm:$0xff] (!%p175_p2)  }
   0x7   : > { %621 = vmatpush3.bf16.msra.mxu0 (!%p175_p2), %v668_v0  ;;  %652 = vmatpush3.bf16.msra.mxu1 (!%p175_p2), %v668_v0  ;;  %v674_v8 = vld [vmem:[%s772_s1 + $0x30] sm:$0xff] (!%p175_p2)   ;;  %v675_v9 = vld [vmem:[%s772_s1 + $0x38] sm:$0xff] (!%p175_p2)   ;;  %v535_v16 = vld [vmem:[%s773_s2] ss:$0 sm:$0xff] (!%p175_p2) }
   0x8   : > { %622 = vmatprep.subr.bf16.mxu0 (!%p175_p2), %v669_v1  ;;  %645 = vmatprep.subr.bf16.mxu1 (!%p175_p2), %v669_v1 }
   0xb   : > { %623 = vmatpush3.bf16.msra.mxu0 (!%p175_p2), %v669_v1  ;;  %653 = vmatpush3.bf16.msra.mxu1 (!%p175_p2), %v669_v1 }
   0xc   : > { %624 = vmatprep.subr.bf16.mxu0 (!%p175_p2), %v670_v2  ;;  %646 = vmatprep.subr.bf16.mxu1 (!%p175_p2), %v670_v2 }
   0xd   : > { %s777_s19 = smov (!%p206_p3, %s529_s19), 15 }
   0xe   : > { %s730_s24 = sshll.u32 %s777_s19, 2 }
   0xf   : > { %s736_s27 = scalar_lea.vmem %s771_s0, %s730_s24  ;;  %625 = vmatpush3.bf16.msra.mxu0 %v670_v2  ;;  %654 = vmatpush3.bf16.msra.mxu1 %v670_v2  ;;  %s215_s14 = scalar_lea.vmem %s774_s3, %s730_s24 }
  0x10   : > { %v676_v4 = vld [vmem:[%s736_s27] sm:$0xff]   ;;  %v677_v5 = vld [vmem:[%s736_s27 + $0x10] sm:$0xff]   ;;  %626 = vmatprep.subr.bf16.mxu0 %v671_v3  ;;  %647 = vmatprep.subr.bf16.mxu1 %v671_v3  ;;  %v678_v10 = vld [vmem:[%s736_s27 + $0x8] sm:$0xff]   ;;  %s221_s20 = scalar_lea.vmem %s775_s4, %s730_s24 }
  0x11   : > { %636 = vmatprep.mubr.bf16.mxu0 %v676_v4  ;;  %640 = vmatprep.mubr.bf16.mxu1 %v677_v5  ;;  %v679_v11 = vld [vmem:[%s736_s27 + $0x18] sm:$0xff]   ;;  %v602_v12 = vld [vmem:[%s215_s14 + $0x8] sm:$0xff]   ;;  %v567_v14 = vld [vmem:[%s215_s14] sm:$0xff]  }
  0x12   : > { %v604_v13 = vld [vmem:[%s215_s14 + $0x18] sm:$0xff]   ;;  %v603_v15 = vld [vmem:[%s215_s14 + $0x10] sm:$0xff]   ;;  %v572_v18 = vunpack.c.l.bf16 %v602_v12  ;;  %v568_v21 = vunpack.c.l.bf16 %v567_v14  ;;  %v573_v27 = vunpack.c.h.bf16 %v602_v12  ;;  %v569_v33 = vunpack.c.h.bf16 %v567_v14 }
  0x13   : > { %627 = vmatpush3.bf16.msra.mxu0 %v671_v3  ;;  %655 = vmatpush3.bf16.msra.mxu1 %v671_v3  ;;  %v580_v20 = vunpack.c.l.bf16 %v604_v13  ;;  %v576_v22 = vunpack.c.l.bf16 %v603_v15  ;;  %v581_v28 = vunpack.c.h.bf16 %v604_v13  ;;  %v577_v34 = vunpack.c.h.bf16 %v603_v15 }
  0x14   : > { %628 = vmatprep.subr.bf16.mxu0 %v672_v6  ;;  %648 = vmatprep.subr.bf16.mxu1 %v672_v6 }
  0x17   : > { %629 = vmatpush3.bf16.msra.mxu0 %v672_v6  ;;  %656 = vmatpush3.bf16.msra.mxu1 %v672_v6 }
  0x18   : > { %630 = vmatprep.subr.bf16.mxu0 %v673_v7  ;;  %649 = vmatprep.subr.bf16.mxu1 %v673_v7 }
  0x1b   : > { %631 = vmatpush3.bf16.msra.mxu0 %v673_v7  ;;  %657 = vmatpush3.bf16.msra.mxu1 %v673_v7 }
  0x1c   : > { %632 = vmatprep.subr.bf16.mxu0 %v674_v8  ;;  %650 = vmatprep.subr.bf16.mxu1 %v674_v8 }
  0x1f   : > { %633 = vmatpush3.bf16.msra.mxu0 %v674_v8  ;;  %658 = vmatpush3.bf16.msra.mxu1 %v674_v8 }
  0x20   : > { %634 = vmatprep.subr.bf16.mxu0 %v675_v9  ;;  %651 = vmatprep.subr.bf16.mxu1 %v675_v9 }
  0x23   : > { %635 = vmatpush3.bf16.msra.mxu0 %v675_v9  ;;  %659 = vmatpush3.bf16.msra.mxu1 %v675_v9 }
  0x26   : > { %637 = vmatmul.mubr.bf16.vlgmr.msra.gmra.mrb[0].mxu0 %v678_v10  ;;  %641 = vmatmul.mubr.bf16.vlgmr.msra.gmra.mrb[0].mxu1 %v679_v11 }
  0xf9   : > { %v638_v17 = vpop.f32.mrb[0].mxu0  ;;  %v642_v19 = vpop.f32.mrb[0].mxu1 }
  0xfa   : > { %v370_v23 = vadd.f32 %v638_v17, %v535_v16  ;;  %v386_v24 = vadd.f32 %v642_v19, %v535_v16  ;;  %v361_v25 = vpop.f32.mrb[1].mxu0  ;;  %v377_v26 = vpop.f32.mrb[1].mxu1 }
  0xfb   : > { %v362_v29 = vadd.f32 %v535_v16, %v361_v25  ;;  %v378_v30 = vadd.f32 %v535_v16, %v377_v26  ;;  %v639_v31 = vpop.f32.mrb[2].mxu0  ;;  %v643_v32 = vpop.f32.mrb[2].mxu1 }
  0xfc   : > { %v373_v35 = vadd.f32 %v639_v31, %v535_v16  ;;  %v389_v36 = vadd.f32 %v643_v32, %v535_v16  ;;  %v364_v37 = vpop.f32.mrb[3].mxu0  ;;  %v380_v38 = vpop.f32.mrb[3].mxu1  ;;  %v410_v41 = vadd.f32 %v572_v18, %v370_v23  ;;  %v414_v42 = vadd.f32 %v580_v20, %v386_v24 }
  0xfd   : > { %v365_v39 = vadd.f32 %v535_v16, %v364_v37  ;;  %v381_v40 = vadd.f32 %v535_v16, %v380_v38  ;;  %v408_v45 = vadd.f32 %v568_v21, %v362_v29  ;;  %v412_v46 = vadd.f32 %v576_v22, %v378_v30 }
  0xfe   : > { %v411_v43 = vadd.f32 %v573_v27, %v373_v35  ;;  %v415_v44 = vadd.f32 %v581_v28, %v389_v36 }
  0xff   : > { %v409_v47 = vadd.f32 %v569_v33, %v365_v39  ;;  %v413_v48 = vadd.f32 %v577_v34, %v381_v40 }
 0x100   : > { %v590_v49 = vpack.c.bf16 %v411_v43, %v410_v41  ;;  %v600_v50 = vpack.c.bf16 %v415_v44, %v414_v42 }
 0x101   : > { %v585_v51 = vpack.c.bf16 %v409_v47, %v408_v45  ;;  %v595_v52 = vpack.c.bf16 %v413_v48, %v412_v46 }
 0x102   : > { %605 = vst [vmem:[%s221_s20 + $0x8] sm:$0xff] %v590_v49   ;;  %607 = vst [vmem:[%s221_s20 + $0x18] sm:$0xff] %v600_v50  }
 0x103   : > { %586 = vst [vmem:[%s221_s20] sm:$0xff] %v585_v51   ;;  %606 = vst [vmem:[%s221_s20 + $0x10] sm:$0xff] %v595_v52  }
 0x104 PF: > { %s14_s15 = sadd.s32 1, %s686_s15  }
 0x105   : > { %p11_p4 = scmp.ge.s32.totalorder %s14_s15, 4  }
 0x107   :  { %13 = sbr.rel (!%p11_p4) target bundleno = 1 (0x1), region = 69 }

// kernel: pixelcnn_forward.15
= control target key start
LH: loop header
LB: loop body
LE: loop exit
PB: predicated region body
PF: predicated region fallthrough
CT: control target
= control target key end

     0   :  { %10 = vsyncpa [#allocation3], 0  ;;  %s1068_s0 = inlined_call_operand.vmem [shape: bf16[128,128], index: 0, kind: input, shape index: {}]   ;;  %s1069_s1 = inlined_call_operand.vmem [shape: bf16[128,128], index: 1, kind: input, shape index: {}]   ;;  %s1070_s2 = inlined_call_operand.vmem [shape: f32[1,128], index: 2, kind: input, shape index: {}]   ;;  %s1071_s3 = inlined_call_operand.vmem [shape: bf16[128,128], index: 3, kind: input, shape index: {}]   ;;  %s1072_s4 = inlined_call_operand.vmem [shape: f32[1,128], index: 4, kind: input, shape index: {}]   ;;  %s1073_s5 = inlined_call_operand.hbm [shape: f32[128,128], index: 5, kind: output, shape index: {}]  }
   0x1   :  { %12 = vsyncpa [#allocation3 + $0x1], 0  ;;  %s898_s18 = smov 0   ;;  %s900_s19 = smov 0  }
   0x2   :  { %s902_s20 = smov 0   ;;  %s904_s21 = smov 0  }
   0x3 LB: > { %s919_s22 = sadd.s32 4294967295, %s862_s21   ;;  %s635_s23 = sadd.s32 4294967294, %s862_s21   ;;  %s862_s21 = sphi %s904_s21, %s1079_s21   ;;  %s858_s20 = sphi %s902_s20, %s1078_s20   ;;  %s854_s19 = sphi %s900_s19, %s1077_s19   ;;  %s850_s18 = sphi %s898_s18, %s1076_s18  }
   0x4   : > { %s923_s24 = sadd.s32 1, %s862_s21   ;;  %s135_s25 = sadd.s32 1, %s858_s20 }
   0x5   : > { %s132_s26 = ssub.s32 %s862_s21, %s923_s24  ;;  %p145_p0 = scmp.ne.s32.totalorder %s858_s20, %s854_s19 }
   0x6   : > { %p133_p1 = scmp.eq.s32.totalorder %s132_s26, 0  ;;  %p146_p2 = scmp.eq.s32.totalorder %s919_s22, 1 }
   0x7   : > { %p151_p3 = scmp.ne.s32.totalorder %s854_s19, %s850_s18  ;;  %p152_p4 = scmp.eq.s32.totalorder %s635_s23, 1 }
   0x8   : > { %s934_s27 = scalar_select %p133_p1, %s858_s20, %s135_s25  }
   0x9   : > { %p936_p5 = por %p146_p2, %p145_p0  ;;  %p940_p6 = por %p152_p4, %p151_p3 }
   0xa   : > { %p638_p7 = scmp.ge.s32.totalorder %s862_s21, 1  ;;  %p191_p8 = scmp.lt.s32.totalorder %s862_s21, 3 }
   0xc   : > { %p192_p9 = pnand %p638_p7, %p191_p8 }
   0xd   : > { %v784_v0 = vld [vmem:[%s1069_s1] sm:$0xff] (!%p192_p9)   ;;  %s640_s7 = sshll.u32 (!%p192_p9), %s919_s22, 3  ;;  %v785_v1 = vld [vmem:[%s1069_s1 + $0x8] sm:$0xff] (!%p192_p9)   ;;  %v786_v2 = vld [vmem:[%s1069_s1 + $0x10] sm:$0xff] (!%p192_p9)   ;;  %v864_v6 = vmov (!%p192_p9), 0   ;;  %s669_s23 = sshll.u32 (!%p192_p9), %s919_s22, 10 }
   0xe   : > { %195 = sbr.rel (%p192_p9) target bundleno = 508 (0x1fc), region = 40  ;;  %p220_p10 = scmp.lt.s32.totalorder (!%p192_p9), %s640_s7, 15  ;;  %694 = vmatprep.subr.bf16.mxu0 (!%p192_p9), %v784_v0  ;;  %v787_v3 = vld [vmem:[%s1069_s1 + $0x18] sm:$0xff] (!%p192_p9)   ;;  %v788_v9 = vld [vmem:[%s1069_s1 + $0x20] sm:$0xff] (!%p192_p9)   ;;  %v793_v12 = vld [vmem:[%s1071_s3 + $0x8] sm:$0xff] (!%p192_p9)  }
   0xf   : > { %695 = vmatpush3.bf16.msra.mxu0 (!%p192_p9), %v784_v0  ;;  %v792_v11 = vld [vmem:[%s1071_s3] sm:$0xff] (!%p192_p9)   ;;  %v794_v13 = vld [vmem:[%s1071_s3 + $0x10] sm:$0xff] (!%p192_p9)   ;;  %v789_v14 = vld [vmem:[%s1069_s1 + $0x28] sm:$0xff] (!%p192_p9)   ;;  %s1021_s6 = scalar_lea.hbm (!%p192_p9), %s1073_s5, %s669_s23  ;;  %s865_s8 = smov (!%p192_p9), [#allocation2]  }
  0x10   : > { %696 = vmatprep.subr.bf16.mxu0 (!%p192_p9), %v785_v1  ;;  %718 = vmatprep.subr.bf16.mxu1 (!%p192_p9), %v792_v11  ;;  %v795_v15 = vld [vmem:[%s1071_s3 + $0x18] sm:$0xff] (!%p192_p9)   ;;  %v790_v16 = vld [vmem:[%s1069_s1 + $0x30] sm:$0xff] (!%p192_p9)   ;;  %v796_v19 = vld [vmem:[%s1071_s3 + $0x20] sm:$0xff] (!%p192_p9)   ;;  %s804_s9 = sshll.u32 (!%p192_p9), %s865_s8, 4  ;;  %s805_s9 = int_to_ptr.vmem [resolvable:$false] %s804_s9 }
  0x11   : > { %719 = vmatpush3.bf16.msra.mxu1 (!%p192_p9), %v792_v11  ;;  %v791_v20 = vld [vmem:[%s1069_s1 + $0x38] sm:$0xff] (!%p192_p9)   ;;  %v797_v27 = vld [vmem:[%s1071_s3 + $0x28] sm:$0xff] (!%p192_p9)   ;;  %v798_v35 = vld [vmem:[%s1071_s3 + $0x30] sm:$0xff] (!%p192_p9)   ;;  %s806_s10 = scalar_lea.vmem (!%p192_p9), %s805_s9, 2048 }
  0x12   : > { %720 = vmatprep.subr.bf16.mxu1 (!%p192_p9), %v793_v12  ;;  %v799_v36 = vld [vmem:[%s1071_s3 + $0x38] sm:$0xff] (!%p192_p9)   ;;  %v642_v37 = vld [vmem:[%s1070_s2] ss:$0 sm:$0xff] (!%p192_p9) }
  0x13   : > { %697 = vmatpush3.bf16.msra.mxu0 (!%p192_p9), %v785_v1 }
  0x14   : > { %698 = vmatprep.subr.bf16.mxu0 (!%p192_p9), %v786_v2 }
  0x15   : > { %s1081_s7 = smov (!%p220_p10, %s640_s7), 15  ;;  %721 = vmatpush3.bf16.msra.mxu1 %v793_v12 }
  0x16   : > { %s641_s12 = sshll.u32 %s1081_s7, 2  ;;  %722 = vmatprep.subr.bf16.mxu1 %v794_v13 }
  0x17   : > { %s959_s15 = scalar_lea.vmem %s1068_s0, %s641_s12  ;;  %699 = vmatpush3.bf16.msra.mxu0 %v786_v2  ;;  %s216_s12 = sand.u32 1, %s854_s19   ;;  %v655_v2 = vld [vmem:[%s1072_s4] ss:$0 sm:$0xff] }
  0x18   : > { %v227_v4 = vld [vmem:[%s959_s15] sm:$0xf]  ;;  %v228_v5 = vld [vmem:[%s959_s15 + $0x4] sm:$0xf]  ;;  %700 = vmatprep.subr.bf16.mxu0 %v787_v3  ;;  %v229_v17 = vld [vmem:[%s959_s15 + $0x8] sm:$0xf] }
  0x19   : > { %v235_v7 = vmax.bf16 %v864_v6, %v227_v4  ;;  %v236_v8 = vmax.bf16 %v864_v6, %v228_v5  ;;  %723 = vmatpush3.bf16.msra.mxu1 %v794_v13  ;;  %v230_v18 = vld [vmem:[%s959_s15 + $0xc] sm:$0xf]  ;;  %v231_v21 = vld [vmem:[%s959_s15 + $0x10] sm:$0xf]  ;;  %v232_v22 = vld [vmem:[%s959_s15 + $0x14] sm:$0xf]  ;;  %v237_v23 = vmax.bf16 %v864_v6, %v229_v17 }
  0x1a   : > { %724 = vmatprep.subr.bf16.mxu1 %v795_v15  ;;  %v238_v24 = vmax.bf16 %v864_v6, %v230_v18  ;;  %v239_v25 = vmax.bf16 %v864_v6, %v231_v21  ;;  %v240_v26 = vmax.bf16 %v864_v6, %v232_v22  ;;  %v233_v30 = vld [vmem:[%s959_s15 + $0x18] sm:$0xf]  ;;  %v234_v31 = vld [vmem:[%s959_s15 + $0x1c] sm:$0xf]  ;;  %s639_s13 = sshll.u32 %s216_s12, 6  ;;  %s1027_s22 = scalar_lea.sflag [#allocation3], %s216_s12 }
  0x1b   : > { %v643_v10 = vcombine.low %v235_v7, %v236_v8  ;;  %701 = vmatpush3.bf16.msra.mxu0 %v787_v3  ;;  %v241_v32 = vmax.bf16 %v864_v6, %v233_v30  ;;  %v242_v33 = vmax.bf16 %v864_v6, %v234_v31  ;;  %s218_s17 = scalar_lea.vmem [#allocation2], %s639_s13 }
  0x1c   : > { %702 = vmatprep.subr.bf16.mxu0 %v788_v9  ;;  %v644_v28 = vcombine.low %v237_v23, %v238_v24  ;;  %v645_v29 = vcombine.low %v239_v25, %v240_v26  ;;  %s573_s25 = sshll.u32 %s218_s17, 4  ;;  %s1023_s25 = int_to_ptr.vmem [resolvable:$true] %s573_s25 }
  0x1d   : > { %710 = vmatprep.mubr.bf16.mxu0 %v643_v10  ;;  %725 = vmatpush3.bf16.msra.mxu1 %v795_v15  ;;  %v646_v34 = vcombine.low %v241_v32, %v242_v33  ;;  %s800_s7 = scalar_lea.vmem %s1023_s25, 1024  ;;  %p807_p0 = scmp.lt.s32.totalorder %s1023_s25, %s805_s9 }
  0x1e   : > { %726 = vmatprep.subr.bf16.mxu1 %v796_v19  ;;  %p801_p11 = scmp.ne.s32.totalorder %s1023_s25, %s800_s7  ;;  %p808_p1 = scmp.lt.s32.totalorder %s806_s10, %s800_s7 }
  0x1f   : > { %703 = vmatpush3.bf16.msra.mxu0 %v788_v9 }
  0x20   : > { %704 = vmatprep.subr.bf16.mxu0 %v789_v14  ;;  %p802_p12 = pnand %p801_p11, %p936_p5  ;;  %p809_p2 = por %p808_p1, %p807_p0 }
  0x21   : > { %727 = vmatpush3.bf16.msra.mxu1 %v796_v19 }
  0x22   : > { %728 = vmatprep.subr.bf16.mxu1 %v797_v27  ;;  %p803_p13 = pneg %p802_p12 }
  0x23   : > { %705 = vmatpush3.bf16.msra.mxu0 %v789_v14 }
  0x24   : > { %706 = vmatprep.subr.bf16.mxu0 %v790_v16  ;;  %p810_p3 = pnand %p809_p2, %p803_p13 }
  0x25   : > { %729 = vmatpush3.bf16.msra.mxu1 %v797_v27 }
  0x26   : > { %730 = vmatprep.subr.bf16.mxu1 %v798_v35 }
  0x27   : > { %707 = vmatpush3.bf16.msra.mxu0 %v790_v16 }
  0x28   : > { %708 = vmatprep.subr.bf16.mxu0 %v791_v20 }
  0x29   : > { %731 = vmatpush3.bf16.msra.mxu1 %v798_v35 }
  0x2a   : > { %732 = vmatprep.subr.bf16.mxu1 %v799_v36 }
  0x2b   : > { %709 = vmatpush3.bf16.msra.mxu0 %v791_v20 }
  0x2d   : > { %733 = vmatpush3.bf16.msra.mxu1 %v799_v36 }
  0x2e   : > { %711 = vmatmul.mubr.bf16.vlgmr.msra.gmra.mrb[0].mxu0 %v644_v28 }
  0x2f   : > { %714 = vmatprep.mubr.bf16.mxu0 %v645_v29 }
  0x36   : > { %715 = vmatmul.mubr.bf16.gmra.mrb[4].mxu0 %v646_v34 }
 0x101   : > { %v712_v38 = vpop.f32.mrb[0].mxu0 }
 0x102   : > { %v381_v39 = vadd.f32 %v712_v38, %v642_v37  ;;  %v372_v40 = vpop.f32.mrb[1].mxu0 }
 0x103   : > { %v373_v41 = vadd.f32 %v642_v37, %v372_v40  ;;  %v713_v42 = vpop.f32.mrb[2].mxu0 }
 0x104   : > { %v384_v43 = vadd.f32 %v713_v42, %v642_v37  ;;  %v375_v44 = vpop.f32.mrb[3].mxu0  ;;  %v405_v46 = vmax.f32 %v381_v39, 0.0 }
 0x105   : > { %v376_v45 = vadd.f32 %v642_v37, %v375_v44  ;;  %v403_v48 = vmax.f32 %v373_v41, 0.0 }
 0x106   : > { %v406_v47 = vmax.f32 %v384_v43, 0.0 }
 0x107   : > { %v404_v49 = vmax.f32 %v376_v45, 0.0 }
 0x108   : > { %v412_v50 = vpack.c.bf16 %v406_v47, %v405_v46 }
 0x109   : > { %v716_v51 = vpop.f32.mrb[4].mxu0  ;;  %v411_v52 = vpack.c.bf16 %v404_v49, %v403_v48 }
 0x10a   : > { %v397_v53 = vadd.f32 %v716_v51, %v642_v37  ;;  %v388_v54 = vpop.f32.mrb[5].mxu0 }
 0x10b   : > { %v389_v55 = vadd.f32 %v642_v37, %v388_v54  ;;  %v717_v56 = vpop.f32.mrb[6].mxu0  ;;  %734 = vmatprep.mubr.bf16.mxu1 %v411_v52 }
 0x10c   : > { %v400_v57 = vadd.f32 %v717_v56, %v642_v37  ;;  %v391_v58 = vpop.f32.mrb[7].mxu0  ;;  %735 = vmatmul.mubr.bf16.vlgmr.msra.gmra.mrb[0].mxu1 %v412_v50  ;;  %v409_v60 = vmax.f32 %v397_v53, 0.0 }
 0x10d   : > { %v392_v59 = vadd.f32 %v642_v37, %v391_v58  ;;  %v407_v62 = vmax.f32 %v389_v55, 0.0 }
 0x10e   : > { %v410_v61 = vmax.f32 %v400_v57, 0.0 }
 0x10f   : > { %v408_v63 = vmax.f32 %v392_v59, 0.0 }
 0x110   : > { %v414_v0 = vpack.c.bf16 %v410_v61, %v409_v60 }
 0x111   : > { %v413_v1 = vpack.c.bf16 %v408_v63, %v407_v62 }
 0x113   : > { %738 = vmatprep.mubr.bf16.mxu1 %v413_v1 }
 0x114   : > { %739 = vmatmul.mubr.bf16.gmra.mrb[4].mxu1 %v414_v0 }
 0x1df   : > { %v736_v3 = vpop.f32.mrb[0].mxu1 }
 0x1e0   : > { %v529_v4 = vadd.f32 %v736_v3, %v655_v2  ;;  %v520_v5 = vpop.f32.mrb[1].mxu1 }
 0x1e1   : > { %v521_v6 = vadd.f32 %v655_v2, %v520_v5  ;;  %v737_v7 = vpop.f32.mrb[2].mxu1 }
 0x1e2   : > { %553 = vst [vmem:[%s218_s17 + $0x10] sm:$0xff] %v529_v4  ;;  %v532_v8 = vadd.f32 %v737_v7, %v655_v2  ;;  %v523_v9 = vpop.f32.mrb[3].mxu1 }
 0x1e3   : > { %551 = vst [vmem:[%s218_s17] sm:$0xff] %v521_v6  ;;  %v524_v10 = vadd.f32 %v655_v2, %v523_v9 }
 0x1e4   : > { %554 = vst [vmem:[%s218_s17 + $0x18] sm:$0xff] %v532_v8 }
 0x1e5   : > { %552 = vst [vmem:[%s218_s17 + $0x8] sm:$0xff] %v524_v10 }
 0x1e7   : > { %v740_v11 = vpop.f32.mrb[4].mxu1 }
 0x1e8   : > { %v545_v12 = vadd.f32 %v740_v11, %v655_v2  ;;  %v536_v13 = vpop.f32.mrb[5].mxu1 }
 0x1e9   : > { %v537_v14 = vadd.f32 %v655_v2, %v536_v13  ;;  %v741_v15 = vpop.f32.mrb[6].mxu1 }
 0x1ea   : > { %557 = vst [vmem:[%s218_s17 + $0x30] sm:$0xff] %v545_v12  ;;  %v548_v16 = vadd.f32 %v741_v15, %v655_v2  ;;  %v539_v17 = vpop.f32.mrb[7].mxu1 }
 0x1eb   : > { %555 = vst [vmem:[%s218_s17 + $0x20] sm:$0xff] %v537_v14  ;;  %v540_v18 = vadd.f32 %v655_v2, %v539_v17 }
 0x1ec   : > { %558 = vst [vmem:[%s218_s17 + $0x38] sm:$0xff] %v548_v16 }
 0x1ed   : > { %556 = vst [vmem:[%s218_s17 + $0x28] sm:$0xff] %v540_v18 }
 0x1ee   : > { %813 = shalt.err (!%p810_p3)
}
 0x1ef   : > { %s814_s15 = scalar_lea.hbm %s1021_s6, 1024  ;;  %s818_s13 = scalar_lea.hbm %s1073_s5, 2048 }
 0x1f0   : > { %p815_p4 = scmp.ne.s32.totalorder %s1021_s6, %s814_s15  ;;  %p819_p9 = scmp.lt.u32.totalorder %s1021_s6, %s1073_s5 }
 0x1f1   : > { %p820_p10 = scmp.lt.u32.totalorder %s818_s13, %s814_s15  ;;  %p822_p12 = scmp.lt.u32.totalorder %s814_s15, %s1021_s6 }
 0x1f2   : > { %p816_p7 = pnand %p815_p4, %p936_p5 }
 0x1f3   : > { %p821_p11 = por %p820_p10, %p819_p9 }
 0x1f4   : > { %p817_p8 = pneg %p816_p7 }
 0x1f5   : > { %p823_p13 = por %p822_p12, %p821_p11 }
 0x1f7   : > { %p824_p0 = pnand %p823_p13, %p817_p8 }
 0x1f9   : > { %827 = shalt.err (!%p824_p0)
}
 0x1fa   : > { %s866_s17 = smov 128   ;;  %s867_s23 = smov 8  }
 0x1fb   : > { %742 = dma.vmem_to_hbm [thread:$0]  (%p936_p5), %s1023_s25, 1024, %s1021_s6, %s1027_s22, %s866_s17, %s866_s17, %s867_s23  }
 0x1fc PF: > { %p748_p1 = scmp.ge.s32.totalorder %s862_s21, 2  ;;  %s588_s26 = sand.u32 1, %s850_s18  }
 0x1fd   : > { %s589_s30 = scalar_lea.sflag [#allocation3], %s588_s26 }
 0x1fe   : > { %p745_p2 = pnand %p748_p1, %p940_p6 }
 0x200   : > { %845 = dma.done.wait (!%p745_p2), %s589_s30, 1024  }
 0x201   : > { %847 = vsyncadd (!%p745_p2), %s589_s30, 4294966272  ;;  %p15_p3 = scmp.ge.s32.totalorder %s923_s24, 4   ;;  %s1076_s18 = smov %s854_s19 }
 0x202   : > { %s1077_s19 = smov %s858_s20  ;;  %s1078_s20 = smov %s934_s27 }
 0x203   : > { %s1079_s21 = smov %s923_s24  ;;  %17 = sbr.rel (!%p15_p3) target bundleno = 3 (0x3), region = 75 }
 0x20a   :  { %594 = vsyncpa [#allocation3], 1 }
 0x20b   :  { %596 = vsyncpa [#allocation3 + $0x1], 1 }

// kernel: pixelcnn_forward.8
= control target key start
LH: loop header
LB: loop body
LE: loop exit
PB: predicated region body
PF: predicated region fallthrough
CT: control target
= control target key end

     0   :  { %8 = vsyncpa [#allocation4], 0  ;;  %s8587_s12 = smov 0   ;;  %s9376_s0 = inlined_call_operand.vmem [shape: bf16[2,14,14,128], index: 0, kind: input, shape index: {}]   ;;  %s9377_s1 = inlined_call_operand.hbm [shape: bf16[24,128,128], index: 1, kind: input, shape index: {}]   ;;  %s9378_s2 = inlined_call_operand.vmem [shape: f32[1,128], index: 2, kind: input, shape index: {}]   ;;  %s9379_s3 = inlined_call_operand.vmem [shape: bf16[2,64,128], index: 3, kind: output, shape index: {}]  }
   0x1 LB: > { %s8593_s13 = sadd.s32 4294967295, %s8562_s12   ;;  %p6579_p0 = scmp.ge.s32.totalorder %s8562_s12, 1  ;;  %s8562_s12 = sphi %s8587_s12, %s14_s12  }
   0x2   : > { %p113_p1 = scmp.lt.s32.totalorder %s8562_s12, 3  ;;  %s8564_s14 = smov [#allocation3]  }
   0x3   : > { %s125_s15 = sshll.u32 %s8564_s14, 4  ;;  %p9380_p3 = scmp.eq.s32.totalorder %s8593_s13, 0  ;;  %s126_s15 = int_to_ptr.vmem [resolvable:$true] %s125_s15 }
   0x4   : > { %p8597_p2 = pnand %p6579_p0, %p113_p1  ;;  %s8524_s20 = scalar_lea.hbm %s9377_s1, 24576 }
   0x5   : > { %p8525_p6 = scmp.ne.s32.totalorder %s9377_s1, %s8524_s20  ;;  %p8531_p10 = scmp.lt.u32.totalorder %s8524_s20, %s9377_s1 }
   0x6   : > { %s9382_s16 = scalar_select %p8597_p2, 1, 0 }
   0x7   : > { %p8299_p4 = pneg %p8597_p2 }
   0x9   : > { %p8606_p5 = pnand %p9380_p3, %p8299_p4 }
   0xb   : > { %p8526_p7 = pneg %p8606_p5 }
   0xd   : > { %p8527_p8 = pnand %p8526_p7, %p8525_p6 }
   0xf   : > { %p8528_p9 = pneg %p8527_p8 }
  0x11   : > { %p8533_p11 = pnand %p8531_p10, %p8528_p9 }
  0x13   : > { %8536 = shalt.err (!%p8533_p11)
}
  0x14   : > { %s8537_s25 = scalar_lea.vmem %s126_s15, 24576  ;;  %p8545_p1 = scmp.lt.s32.totalorder %s126_s15, %s126_s15 }
  0x15   : > { %p8538_p12 = scmp.ne.s32.totalorder %s126_s15, %s8537_s25  ;;  %p8546_p4 = scmp.lt.s32.totalorder %s8537_s25, %s8537_s25 }
  0x17   : > { %p8540_p13 = pnand %p8538_p12, %p8526_p7  ;;  %p8547_p3 = por %p8546_p4, %p8545_p1 }
  0x19   : > { %p8541_p0 = pneg %p8540_p13 }
  0x1b   : > { %p8548_p2 = pnand %p8547_p3, %p8541_p0 }
  0x1d   : > { %8551 = shalt.err (!%p8548_p2)
}
  0x1e   : > { %s8565_s26 = smov 64   ;;  %s8566_s27 = smov 4  }
  0x1f   : > { %8302 = dma.hbm_to_vmem [thread:$0]  (!%p8606_p5), %s9377_s1, 24576, %s126_s15, [#allocation4], %s8565_s26, %s8565_s26, %s8566_s27  }
  0x20   : > { %p9384_p6 = scmp.ne.s32.totalorder %s9382_s16, 0 }
  0x21   : > { %p9385_p8 = scmp.eq.s32.totalorder (!%p9384_p6), %s8593_s13, 0 }
  0x22   : > { %152 = sbr.rel (%p9384_p6) target bundleno = 677 (0x2a5), region = 32 }
  0x29   : > { %8557 = dma.done.wait (%p9385_p8), [#allocation4], 24576   ;;  %p9386_p7 = pmov %p9385_p8 }
  0x2a   : > { %v8316_v0 = vld [vmem:[#allocation3] sm:$0xff]   ;;  %v8318_v2 = vld [vmem:[#allocation3 + $0x8] sm:$0xff]   ;;  %p176_p2 = scmp.lt.s32.totalorder %s8593_s13, 1  ;;  %v8320_v4 = vld [vmem:[#allocation3 + $0x10] sm:$0xff]   ;;  %vm1480_vm0 = vsmask.f32 1280 }
  0x2b   : > { %8559 = vsyncadd (%p9386_p7), [#allocation4], 4294942720  ;;  %v8317_v1 = vld [vmem:[#allocation3 + $0x300] sm:$0xff]   ;;  %7534 = vmatprep.subr.bf16.mxu1 %v8316_v0  ;;  %v8319_v3 = vld [vmem:[#allocation3 + $0x308] sm:$0xff]   ;;  %vm1481_vm1 = vsmask.f32 5392 }
  0x2c   : > { %7822 = vmatprep.subr.bf16.mxu0 %v8317_v1  ;;  %7535 = vmatpush3.bf16.msra.mxu1 %v8316_v0  ;;  %v8321_v5 = vld [vmem:[#allocation3 + $0x310] sm:$0xff]   ;;  %s9400_s13 = smov (!%p176_p2, %s8593_s13), 1  ;;  %v8322_v6 = vld [vmem:[#allocation3 + $0x18] sm:$0xff]   ;;  %v8324_v8 = vld [vmem:[#allocation3 + $0x20] sm:$0xff]   ;;  %vm1829_vm3 = vcmask 1040384   ;;  %vm1830_vm4 = vcmask 1044484  }
  0x2d   : > { %7823 = vmatpush3.bf16.msra.mxu0 %v8317_v1  ;;  %7536 = vmatprep.subr.bf16.mxu1 %v8318_v2  ;;  %v8323_v7 = vld [vmem:[#allocation3 + $0x318] sm:$0xff]   ;;  %s8294_s30 = smul.u32 112, %s9400_s13  ;;  %v8325_v9 = vld [vmem:[#allocation3 + $0x320] sm:$0xff]   ;;  %v8326_v10 = vld [vmem:[#allocation3 + $0x28] sm:$0xff]   ;;  %vm372_vm5 = vsmask.f32 3328 }
  0x2e   : > { %7824 = vmatprep.subr.bf16.mxu0 %v8319_v3  ;;  %v8327_v12 = vld [vmem:[#allocation3 + $0x328] sm:$0xff]   ;;  %v8328_v13 = vld [vmem:[#allocation3 + $0x30] sm:$0xff]   ;;  %v8330_v31 = vld [vmem:[#allocation3 + $0x38] sm:$0xff]   ;;  %vm373_vm6 = vsmask.f32 7440  ;;  %vm689_vm9 = vcmask 1042432  }
  0x2f   : > { %s8640_s6 = scalar_lea.vmem %s9376_s0, %s8294_s30  ;;  %v8329_v17 = vld [vmem:[#allocation3 + $0x330] sm:$0xff]   ;;  %vm8649_vm2 = vmor %vm1480_vm0, %vm1481_vm1  ;;  %v8331_v37 = vld [vmem:[#allocation3 + $0x338] sm:$0xff]   ;;  %vm690_vm10 = vcmask 1046532   ;;  %vm910_vm12 = vsmask.f32 2304  ;;  %vm1259_vm15 = vcmask 1041408  }
  0x30   : > { %7537 = vmatpush3.bf16.msra.mxu1 %v8318_v2  ;;  %v8332_v11 = vld [vmem:[%s8640_s6] ss:$8 sps:$4 sm:$0xff]   ;;  %v6844_v15 = vld [vmem:[%s8640_s6 + $0xc] sm:$0x7]  ;;  %v6845_v16 = vld [vmem:[%s8640_s6 + $0x10] sm:$0xc] }
  0x31   : > { %7825 = vmatpush3.bf16.msra.mxu0 %v8319_v3  ;;  %7538 = vmatprep.subr.bf16.mxu1 %v8320_v4  ;;  %v6843_v14 = vld [vmem:[%s8640_s6 + $0x8] sm:$0xc]  ;;  %v6846_v18 = vld [vmem:[%s8640_s6 + $0x14] sm:$0x7]  ;;  %v3343_v21 = vshrl.u32 %v6844_v15, 16  ;;  %v3346_v22 = vshll.u32 %v6844_v15, 16  ;;  %vm8690_vm7 = vmor %vm1829_vm3, %vm1830_vm4 }
  0x32   : > { %7826 = vmatprep.subr.bf16.mxu0 %v8321_v5  ;;  %7550 = vmatprep.mubr.bf16.mxu1 %v8332_v11  ;;  %v3334_v19 = vshrl.u32 %v6843_v14, 16  ;;  %v3337_v20 = vshll.u32 %v6843_v14, 16  ;;  %v3352_v23 = vshrl.u32 %v6845_v16, 16  ;;  %v3355_v24 = vshll.u32 %v6845_v16, 16  ;;  %v6847_v42 = vld [vmem:[%s8640_s6 + $0x18] sm:$0xc]  ;;  %vm8700_vm8 = vmor %vm372_vm5, %vm373_vm6 }
  0x33   : > { %v3361_v25 = vshrl.u32 %v6846_v18, 16  ;;  %v3364_v26 = vshll.u32 %v6846_v18, 16  ;;  %v3345_v29 = vrot.slane %v3343_v21, 6  ;;  %v3348_v30 = vrot.slane %v3346_v22, 7  ;;  %v6848_v43 = vld [vmem:[%s8640_s6 + $0x1c] sm:$0x7]  ;;  %vm8765_vm11 = vmor %vm689_vm9, %vm690_vm10 }
  0x34   : > { %7539 = vmatpush3.bf16.msra.mxu1 %v8320_v4  ;;  %v3336_v27 = vrot.slane %v3334_v19, 6  ;;  %v3339_v28 = vrot.slane %v3337_v20, 7  ;;  %v3354_v33 = vrot.slane %v3352_v23, 6  ;;  %v3357_v34 = vrot.slane %v3355_v24, 7  ;;  %v6849_v44 = vld [vmem:[%s8640_s6 + $0x20] sm:$0xc] }
  0x35   : > { %7827 = vmatpush3.bf16.msra.mxu0 %v8321_v5  ;;  %7540 = vmatprep.subr.bf16.mxu1 %v8322_v6  ;;  %v3363_v35 = vrot.slane %v3361_v25, 6  ;;  %v3366_v36 = vrot.slane %v3364_v26, 7  ;;  %v3349_v39 = vor.u32 %v3348_v30, %v3345_v29  ;;  %v6850_v46 = vld [vmem:[%s8640_s6 + $0x24] sm:$0x7]  ;;  %v3370_v47 = vshrl.u32 %v6847_v42, 16  ;;  %v8336_v11 = vld [vmem:[#allocation3 + $0x48] sm:$0xff]  }
  0x36   : > { %7828 = vmatprep.subr.bf16.mxu0 %v8323_v7  ;;  %v3340_v38 = vor.u32 %v3339_v28, %v3336_v27  ;;  %v3358_v40 = vor.u32 %v3357_v34, %v3354_v33  ;;  %v3373_v48 = vshll.u32 %v6847_v42, 16  ;;  %v3379_v49 = vshrl.u32 %v6848_v43, 16  ;;  %v8333_v54 = vld [vmem:[#allocation3 + $0x40] sm:$0xff]   ;;  %v8335_v61 = vld [vmem:[%s8640_s6 + $0x10] ss:$8 sps:$4 sm:$0xff]   ;;  %v8337_v15 = vld [vmem:[#allocation3 + $0x348] sm:$0xff]  }
  0x37   : > { %v3367_v41 = vor.u32 %v3366_v36, %v3363_v35  ;;  %v3382_v51 = vshll.u32 %v6848_v43, 16  ;;  %v3388_v52 = vshrl.u32 %v6849_v44, 16  ;;  %v3391_v53 = vshll.u32 %v6849_v44, 16  ;;  %v8334_v60 = vld [vmem:[#allocation3 + $0x340] sm:$0xff]   ;;  %v8339_v18 = vld [vmem:[#allocation3 + $0x350] sm:$0xff]   ;;  %v8340_v20 = vld [vmem:[#allocation3 + $0x58] sm:$0xff]  }
  0x38   : > { %7541 = vmatpush3.bf16.msra.mxu1 %v8322_v6  ;;  %v3341_v45 = vrot.slane %v3340_v38, 4  ;;  %v3359_v50 = vrot.slane %v3358_v40, 4  ;;  %v3372_v56 = vrot.slane %v3370_v47, 6  ;;  %v3375_v57 = vrot.slane %v3373_v48, 7  ;;  %v8346_v19 = vld [vmem:[%s8640_s6 + $0x20] ss:$8 sps:$4 sm:$0xff]  }
  0x39   : > { %7829 = vmatpush3.bf16.msra.mxu0 %v8323_v7  ;;  %7542 = vmatprep.subr.bf16.mxu1 %v8324_v8  ;;  %v3381_v58 = vrot.slane %v3379_v49, 6  ;;  %v3384_v62 = vrot.slane %v3382_v51, 7  ;;  %v3390_v63 = vrot.slane %v3388_v52, 6  ;;  %v3393_v0 = vrot.slane %v3391_v53, 7  ;;  %v6851_v21 = vld [vmem:[%s8640_s6 + $0x28] sm:$0xc] }
  0x3a   : > { %7830 = vmatprep.subr.bf16.mxu0 %v8325_v9  ;;  %v3350_v55 = vsel %vm8649_vm2, %v3341_v45, %v3349_v39  ;;  %v3368_v59 = vsel %vm8649_vm2, %v3359_v50, %v3367_v41  ;;  %v3376_v2 = vor.u32 %v3375_v57, %v3372_v56  ;;  %v3397_v3 = vshrl.u32 %v6850_v46, 16  ;;  %v6852_v22 = vld [vmem:[%s8640_s6 + $0x2c] sm:$0x7]  ;;  %v6853_v23 = vld [vmem:[%s8640_s6 + $0x30] sm:$0xc]  ;;  %v8341_v34 = vld [vmem:[#allocation3 + $0x358] sm:$0xff]  }
  0x3b   : > { %v6859_v1 = vcombine.low %v3350_v55, %v3368_v59  ;;  %v3400_v4 = vshll.u32 %v6850_v46, 16  ;;  %v3385_v5 = vor.u32 %v3384_v62, %v3381_v58  ;;  %v3394_v6 = vor.u32 %v3393_v0, %v3390_v63  ;;  %v6854_v24 = vld [vmem:[%s8640_s6 + $0x34] sm:$0x7]  ;;  %v8342_v35 = vld [vmem:[#allocation3 + $0x60] sm:$0xff]   ;;  %v8349_v46 = vld [vmem:[%s8640_s6 + $0x30] ss:$8 sps:$4 sm:$0xff]  }
  0x3c   : > { %7543 = vmatpush3.bf16.msra.mxu1 %v8324_v8  ;;  %v3377_v7 = vrot.slane %v3376_v2, 4  ;;  %v3399_v8 = vrot.slane %v3397_v3, 6  ;;  %v3406_v25 = vshrl.u32 %v6851_v21, 16  ;;  %v3409_v26 = vshll.u32 %v6851_v21, 16  ;;  %v6855_v47 = vld [vmem:[%s8640_s6 + $0x38] sm:$0xc] }
  0x3d   : > { %7831 = vmatpush3.bf16.msra.mxu0 %v8325_v9  ;;  %7544 = vmatprep.subr.bf16.mxu1 %v8326_v10  ;;  %v3402_v9 = vrot.slane %v3400_v4, 7  ;;  %v3415_v27 = vshrl.u32 %v6852_v22, 16  ;;  %v3418_v28 = vshll.u32 %v6852_v22, 16  ;;  %v3424_v29 = vshrl.u32 %v6853_v23, 16  ;;  %v8343_v48 = vld [vmem:[#allocation3 + $0x360] sm:$0xff]   ;;  %v8344_v49 = vld [vmem:[#allocation3 + $0x68] sm:$0xff]  }
  0x3e   : > { %7832 = vmatprep.subr.bf16.mxu0 %v8327_v12  ;;  %7838 = vmatprep.mubr.bf16.mxu0 %v6859_v1  ;;  %v3427_v30 = vshll.u32 %v6853_v23, 16  ;;  %v3436_v33 = vshll.u32 %v6854_v24, 16  ;;  %v3408_v36 = vrot.slane %v3406_v25, 6  ;;  %v6856_v52 = vld [vmem:[%s8640_s6 + $0x3c] sm:$0x7]  ;;  %v3442_v56 = vshrl.u32 %v6855_v47, 16 }
  0x3f   : > { %v3417_v38 = vrot.slane %v3415_v27, 6  ;;  %v3420_v39 = vrot.slane %v3418_v28, 7  ;;  %v3426_v40 = vrot.slane %v3424_v29, 6  ;;  %v6857_v53 = vld [vmem:[%s8640_s6 + $0x40] sm:$0xc]  ;;  %v3445_v57 = vshll.u32 %v6855_v47, 16 }
  0x40   : > { %7545 = vmatpush3.bf16.msra.mxu1 %v8326_v10  ;;  %v3395_v10 = vrot.slane %v3394_v6, 4  ;;  %v3429_v41 = vrot.slane %v3427_v30, 7  ;;  %v3438_v43 = vrot.slane %v3436_v33, 7  ;;  %v3451_v58 = vshrl.u32 %v6856_v52, 16  ;;  %v8345_v3 = vld [vmem:[#allocation3 + $0x368] sm:$0xff]   ;;  %v8347_v4 = vld [vmem:[#allocation3 + $0x70] sm:$0xff]  }
  0x41   : > { %7833 = vmatpush3.bf16.msra.mxu0 %v8327_v12  ;;  %7546 = vmatprep.subr.bf16.mxu1 %v8328_v13  ;;  %v3386_v12 = vsel %vm8649_vm2, %v3377_v7, %v3385_v5  ;;  %v3421_v45 = vor.u32 %v3420_v39, %v3417_v38  ;;  %v3463_v62 = vshll.u32 %v6857_v53, 16  ;;  %v3444_v0 = vrot.slane %v3442_v56, 6  ;;  %v8348_v25 = vld [vmem:[#allocation3 + $0x370] sm:$0xff]   ;;  %s7214_s9 = sshll.u32 %s9400_s13, 5 }
  0x42   : > { %7834 = vmatprep.subr.bf16.mxu0 %v8329_v17  ;;  %v3430_v50 = vor.u32 %v3429_v41, %v3426_v40  ;;  %v3447_v1 = vrot.slane %v3445_v57, 7  ;;  %v3453_v2 = vrot.slane %v3451_v58, 6  ;;  %v6873_v41 = vld [vmem:[%s8640_s6 + $0x10] sm:$0x8]  ;;  %vm911_vm13 = vsmask.f32 6416  ;;  %s185_s14 = scalar_lea.vmem %s9379_s3, %s7214_s9 }
  0x43   : > { %v360_v58 = vld [vmem:[%s8640_s6 + $0x10] sm:$0xf]  ;;  %vm8815_vm14 = vmor %vm910_vm12, %vm911_vm13  ;;  %vm1260_vm0 = vcmask 1045508  }
  0x44   : > { %7547 = vmatpush3.bf16.msra.mxu1 %v8328_v13  ;;  %v3403_v13 = vor.u32 %v3402_v9, %v3399_v8  ;;  %v3431_v59 = vrot.slane %v3430_v50, 4  ;;  %v3465_v8 = vrot.slane %v3463_v62, 7  ;;  %v8351_v50 = vld [vmem:[#allocation3 + $0x378] sm:$0xff]   ;;  %vm8880_vm1 = vmor %vm1259_vm15, %vm1260_vm0 }
  0x45   : > { %7835 = vmatpush3.bf16.msra.mxu0 %v8329_v17  ;;  %7548 = vmatprep.subr.bf16.mxu1 %v8330_v31  ;;  %v8338_v17 = vld [vmem:[#allocation3 + $0x50] sm:$0xff]   ;;  %v363_v62 = vld [vmem:[%s8640_s6 + $0x1c] sm:$0x1] }
  0x46   : > { %7836 = vmatprep.subr.bf16.mxu0 %v8331_v37  ;;  %v3404_v14 = vsel %vm8649_vm2, %v3395_v10, %v3403_v13  ;;  %v3448_v10 = vor.u32 %v3447_v1, %v3444_v0  ;;  %v356_v13 = vld [vmem:[%s8640_s6] sm:$0xf]  ;;  %v407_v0 = vshll.u32 %v360_v58, 16 }
  0x47   : > { %v6860_v16 = vcombine.low %v3386_v12, %v3404_v14  ;;  %v357_v14 = vld [vmem:[%s8640_s6 + $0x4] sm:$0x1] }
  0x48   : > { %7549 = vmatpush3.bf16.msra.mxu1 %v8330_v31  ;;  %v3433_v31 = vshrl.u32 %v6854_v24, 16  ;;  %v3449_v21 = vrot.slane %v3448_v10, 4  ;;  %v385_v24 = vshll.u32 %v357_v14, 16  ;;  %v6876_v10 = vld [vmem:[%s8640_s6 + $0x1c] sm:$0x7] }
  0x49   : > { %7837 = vmatpush3.bf16.msra.mxu0 %v8331_v37  ;;  %7558 = vmatprep.subr.bf16.mxu1 %v8333_v54  ;;  %v3411_v37 = vrot.slane %v3409_v26, 7 }
  0x4a   : > { %7846 = vmatprep.subr.bf16.mxu0 %v8334_v60  ;;  %v3435_v42 = vrot.slane %v3433_v31, 6  ;;  %v387_v33 = vrot.slane %v385_v24, 5 }
  0x4b   : > { %7551 = vmatmul.mubr.bf16.vlgmr.msra.gmra.mrb[0].mxu1 %v8335_v61  ;;  %v3412_v44 = vor.u32 %v3411_v37, %v3408_v36  ;;  %v3460_v61 = vshrl.u32 %v6857_v53, 16  ;;  %v6872_v36 = vld [vmem:[%s8640_s6 + $0xc] sm:$0x7]  ;;  %v6888_v53 = vrot.slane %v6873_v41, 11  ;;  %v364_v41 = vld [vmem:[%s8640_s6 + $0x20] sm:$0xf] }
  0x4c   : > { %7559 = vmatpush3.bf16.msra.mxu1 %v8333_v54  ;;  %7839 = vmatmul.mubr.bf16.vlgmr.msra.gmra.mrb[0].mxu0 %v6860_v16  ;;  %v3439_v51 = vor.u32 %v3438_v43, %v3435_v42  ;;  %v6858_v54 = vld [vmem:[%s8640_s6 + $0x44] sm:$0x7]  ;;  %v6874_v42 = vld [vmem:[%s8640_s6 + $0x14] sm:$0x7] }
  0x4d   : > { %7560 = vmatprep.subr.bf16.mxu1 %v8336_v11  ;;  %7847 = vmatpush3.bf16.msra.mxu0 %v8334_v60  ;;  %v3413_v55 = vrot.slane %v3412_v44, 4  ;;  %v3454_v60 = vshll.u32 %v6856_v52, 16  ;;  %v3462_v7 = vrot.slane %v3460_v61, 6  ;;  %v3472_v12 = vshll.u32 %v6858_v54, 16  ;;  %v8350_v44 = vld [vmem:[#allocation3 + $0x78] sm:$0xff]   ;;  %v8704_v52 = vld [vmem:[#allocation3 + $0x80] sm:$0xff]  }
  0x4e   : > { %7848 = vmatprep.subr.bf16.mxu0 %v8337_v15  ;;  %7554 = vmatprep.mubr.bf16.mxu1 %v8346_v19  ;;  %v3440_v5 = vsel %vm8649_vm2, %v3431_v59, %v3439_v51  ;;  %v376_v19 = vshrl.u32 %v356_v13, 16  ;;  %v3685_v57 = vrot.slane %v6874_v42, 7  ;;  %v361_v59 = vld [vmem:[%s8640_s6 + $0x14] sm:$0x1]  ;;  %v362_v61 = vld [vmem:[%s8640_s6 + $0x18] sm:$0xf] }
  0x4f   : > { %v3422_v63 = vsel %vm8649_vm2, %v3413_v55, %v3421_v45  ;;  %v3456_v6 = vrot.slane %v3454_v60, 7  ;;  %v3466_v16 = vor.u32 %v3465_v8, %v3462_v7  ;;  %v3474_v23 = vrot.slane %v3472_v12, 7  ;;  %v8353_v12 = vld [vmem:[#allocation3 + $0x380] sm:$0xff]   ;;  %v7173_v45 = vld [vmem:[%s8640_s6 + $0x30] sm:$0xe] }
  0x50   : > { %7561 = vmatpush3.bf16.msra.mxu1 %v8336_v11  ;;  %v6861_v9 = vcombine.low %v3422_v63, %v3440_v5  ;;  %v3469_v11 = vshrl.u32 %v6858_v54, 16  ;;  %v378_v27 = vrot.slane %v376_v19, 4  ;;  %v404_v63 = vshrl.u32 %v360_v58, 16  ;;  %v6875_v5 = vld [vmem:[%s8640_s6 + $0x18] sm:$0x8] }
  0x51   : > { %7562 = vmatprep.subr.bf16.mxu1 %v8338_v17  ;;  %7849 = vmatpush3.bf16.msra.mxu0 %v8337_v15  ;;  %v3457_v15 = vor.u32 %v3456_v6, %v3453_v2  ;;  %v3467_v26 = vrot.slane %v3466_v16, 4  ;;  %v3686_v2 = vsel %vm8690_vm7, %v6888_v53, %v3685_v57  ;;  %v409_v8 = vrot.slane %v407_v0, 5  ;;  %v6877_v16 = vld [vmem:[%s8640_s6 + $0x20] sm:$0x8]  ;;  %v365_v42 = vld [vmem:[%s8640_s6 + $0x24] sm:$0x1] }
  0x52   : > { %7850 = vmatprep.subr.bf16.mxu0 %v8339_v18  ;;  %7842 = vmatprep.mubr.bf16.mxu0 %v6861_v9  ;;  %v3471_v22 = vrot.slane %v3469_v11, 6  ;;  %v406_v7 = vrot.slane %v404_v63, 4  ;;  %v421_v9 = vshll.u32 %v362_v61, 16  ;;  %v6879_v57 = vld [vmem:[%s8640_s6 + $0x28] sm:$0x8] }
  0x53   : > { %7555 = vmatmul.mubr.bf16.gmra.mrb[4].mxu1 %v8349_v46  ;;  %v3458_v30 = vsel %vm8649_vm2, %v3449_v21, %v3457_v15  ;;  %v427_v15 = vshll.u32 %v363_v62, 16  ;;  %v6889_v21 = vrot.slane %v6875_v5, 11  ;;  %v8361_v62 = vld [vmem:[#allocation3 + $0x3a0] sm:$0xff]   ;;  %v6882_v0 = vld [vmem:[%s8640_s6 + $0x34] sm:$0x7] }
  0x54   : > { %7563 = vmatpush3.bf16.msra.mxu1 %v8338_v17  ;;  %v358_v17 = vld [vmem:[%s8640_s6 + $0x8] sm:$0xf]  ;;  %v3475_v31 = vor.u32 %v3474_v23, %v3471_v22  ;;  %v423_v19 = vrot.slane %v421_v9, 5  ;;  %v3689_v22 = vrot.slane %v6876_v10, 7  ;;  %v6890_v23 = vrot.slane %v6877_v16, 11 }
  0x55   : > { %7564 = vmatprep.subr.bf16.mxu1 %v8340_v20  ;;  %7851 = vmatpush3.bf16.msra.mxu0 %v8339_v18  ;;  %v359_v18 = vld [vmem:[%s8640_s6 + $0xc] sm:$0x1]  ;;  %v390_v29 = vshrl.u32 %v358_v17, 16  ;;  %v368_v10 = vld [vmem:[%s8640_s6 + $0x30] sm:$0xf] }
  0x56   : > { %7852 = vmatprep.subr.bf16.mxu0 %v8341_v34  ;;  %v399_v39 = vshll.u32 %v359_v18, 16  ;;  %v3476_v43 = vsel %vm8649_vm2, %v3467_v26, %v3475_v31  ;;  %v410_v18 = vor.u32 %v409_v8, %v406_v7  ;;  %v8360_v7 = vld [vmem:[#allocation3 + $0xa0] sm:$0xff]   ;;  %v460_v16 = vshrl.u32 %v368_v10, 16 }
  0x57   : > { %v392_v38 = vrot.slane %v390_v29, 4 }
  0x58   : > { %7565 = vmatpush3.bf16.msra.mxu1 %v8340_v20  ;;  %v379_v20 = vshll.u32 %v356_v13, 16  ;;  %v401_v55 = vrot.slane %v399_v39, 5  ;;  %v8356_v39 = vld [vmem:[#allocation3 + $0x90] sm:$0xff]  }
  0x59   : > { %7566 = vmatprep.subr.bf16.mxu1 %v8342_v35  ;;  %7853 = vmatpush3.bf16.msra.mxu0 %v8341_v34  ;;  %v393_v34 = vshll.u32 %v358_v17, 16 }
  0x5a   : > { %7854 = vmatprep.subr.bf16.mxu0 %v8343_v48  ;;  %v381_v28 = vrot.slane %v379_v20, 5  ;;  %v6878_v20 = vld [vmem:[%s8640_s6 + $0x24] sm:$0x7] }
  0x5b   : > { %v395_v46 = vrot.slane %v393_v34, 5  ;;  %v3693_v24 = vrot.slane %v6878_v20, 7  ;;  %v8355_v34 = vld [vmem:[#allocation3 + $0x388] sm:$0xff]  }
  0x5c   : > { %7567 = vmatpush3.bf16.msra.mxu1 %v8342_v35  ;;  %v6871_v35 = vld [vmem:[%s8640_s6 + $0x8] sm:$0x8]  ;;  %v382_v37 = vor.u32 %v381_v28, %v378_v27  ;;  %v429_v27 = vrot.slane %v427_v15, 5  ;;  %v3690_v28 = vsel %vm8690_vm7, %v6889_v21, %v3689_v22  ;;  %v371_v15 = vld [vmem:[%s8640_s6 + $0x3c] sm:$0x1] }
  0x5d   : > { %7568 = vmatprep.subr.bf16.mxu1 %v8344_v49  ;;  %7855 = vmatpush3.bf16.msra.mxu0 %v8343_v48  ;;  %v6887_v47 = vrot.slane %v6871_v35, 11  ;;  %v3681_v48 = vrot.slane %v6872_v36, 7  ;;  %v396_v54 = vor.u32 %v395_v46, %v392_v38  ;;  %v3694_v29 = vsel %vm8690_vm7, %v6890_v23, %v3693_v24  ;;  %v8357_v38 = vld [vmem:[#allocation3 + $0x390] sm:$0xff]   ;;  %v6883_v21 = vld [vmem:[%s8640_s6 + $0x38] sm:$0x8]  ;;  %v8363_v23 = vld [vmem:[#allocation3 + $0x3a8] sm:$0xff]  }
  0x5e   : > { %7856 = vmatprep.subr.bf16.mxu0 %v8345_v3  ;;  %v383_v51 = vrot.slane %v382_v37, 4  ;;  %v8354_v37 = vld [vmem:[#allocation3 + $0x88] sm:$0xff]   ;;  %v432_v46 = vshrl.u32 %v364_v41, 16  ;;  %v6884_v22 = vld [vmem:[%s8640_s6 + $0x3c] sm:$0x7] }
  0x5f   : > { %v3682_v56 = vsel %vm8690_vm7, %v6887_v47, %v3681_v48  ;;  %v397_v1 = vrot.slane %v396_v54, 4  ;;  %v435_v47 = vshll.u32 %v364_v41, 16  ;;  %v441_v48 = vshll.u32 %v365_v42, 16  ;;  %v8358_v54 = vld [vmem:[#allocation3 + $0x98] sm:$0xff]   ;;  %v8365_v41 = vld [vmem:[#allocation3 + $0x3b0] sm:$0xff]  }
  0x60   : > { %7569 = vmatpush3.bf16.msra.mxu1 %v8344_v49  ;;  %v6862_v49 = vcombine.low %v3458_v30, %v3476_v43  ;;  %v388_v60 = vsel %vm8700_vm8, %v383_v51, %v387_v33  ;;  %v6895_v6 = vcombine.low %v3682_v56, %v3686_v2  ;;  %v6896_v33 = vcombine.low %v3690_v28, %v3694_v29  ;;  %v366_v43 = vld [vmem:[%s8640_s6 + $0x28] sm:$0xf]  ;;  %v6885_v28 = vld [vmem:[%s8640_s6 + $0x40] sm:$0x8] }
  0x61   : > { %7570 = vmatprep.subr.bf16.mxu1 %v8347_v4  ;;  %7857 = vmatpush3.bf16.msra.mxu0 %v8345_v3  ;;  %v413_v3 = vshll.u32 %v361_v59, 16  ;;  %v402_v11 = vsel %vm8700_vm8, %v397_v1, %v401_v55  ;;  %v449_v51 = vshll.u32 %v366_v43, 16  ;;  %v434_v55 = vrot.slane %v432_v46, 4  ;;  %v8362_v29 = vld [vmem:[#allocation3 + $0xa8] sm:$0xff]  }
  0x62   : > { %7858 = vmatprep.subr.bf16.mxu0 %v8348_v25  ;;  %7843 = vmatmul.mubr.bf16.gmra.mrb[4].mxu0 %v6862_v49  ;;  %v6599_v17 = vcombine.low %v388_v60, %v402_v11  ;;  %v446_v49 = vshrl.u32 %v366_v43, 16  ;;  %v443_v58 = vrot.slane %v441_v48, 5  ;;  %v6880_v60 = vld [vmem:[%s8640_s6 + $0x2c] sm:$0x7]  ;;  %v6891_v1 = vrot.slane %v6879_v57, 11 }
  0x63   : > { %v415_v13 = vrot.slane %v413_v3, 5  ;;  %7862 = vmatprep.mubr.bf16.mxu0 %v6895_v6  ;;  %v451_v59 = vrot.slane %v449_v51, 5  ;;  %v3697_v2 = vrot.slane %v6880_v60, 7  ;;  %v3701_v6 = vrot.slane %v6882_v0, 7  ;;  %v369_v11 = vld [vmem:[%s8640_s6 + $0x34] sm:$0x1] }
  0x64   : > { %7571 = vmatpush3.bf16.msra.mxu1 %v8347_v4  ;;  %v418_v4 = vshrl.u32 %v362_v61, 16  ;;  %7574 = vmatprep.mubr.bf16.mxu1 %v6599_v17  ;;  %v448_v56 = vrot.slane %v446_v49, 4  ;;  %v6881_v61 = vld [vmem:[%s8640_s6 + $0x30] sm:$0x8]  ;;  %v469_v20 = vshll.u32 %v369_v11, 16 }
  0x65   : > { %7572 = vmatprep.subr.bf16.mxu1 %v8350_v44  ;;  %7859 = vmatpush3.bf16.msra.mxu0 %v8348_v25  ;;  %v411_v25 = vrot.slane %v410_v18, 4  ;;  %v6892_v3 = vrot.slane %v6881_v61, 11  ;;  %v3698_v9 = vsel %vm8690_vm7, %v6891_v1, %v3697_v2  ;;  %v657_v49 = vld [vmem:[%s8640_s6] sm:$0xe]  ;;  %v664_v11 = vld [vmem:[%s8640_s6 + $0x1c] sm:$0x1] }
  0x66   : > { %v420_v14 = vrot.slane %v418_v4, 4  ;;  %7860 = vmatprep.subr.bf16.mxu0 %v8351_v50  ;;  %v452_v4 = vor.u32 %v451_v59, %v448_v56  ;;  %v8364_v56 = vld [vmem:[#allocation3 + $0xb0] sm:$0xff]   ;;  %v660_v59 = vld [vmem:[%s8640_s6 + $0xc] sm:$0x1] }
  0x67   : > { %v416_v30 = vsel %vm8700_vm8, %v411_v25, %v415_v13  ;;  %v3702_v13 = vsel %vm8690_vm7, %v6892_v3, %v3701_v6  ;;  %v462_v25 = vrot.slane %v460_v16, 4  ;;  %v698_v0 = vrot.slane %v660_v59, 5  ;;  %v8369_v3 = vld [vmem:[%s8640_s6 + $0x10] ss:$8 sps:$4 sm:$0xff]   ;;  %v8370_v16 = vld [vmem:[#allocation3 + $0x3c0] sm:$0xff]  }
  0x68   : > { %7573 = vmatpush3.bf16.msra.mxu1 %v8350_v44  ;;  %v424_v26 = vor.u32 %v423_v19, %v420_v14  ;;  %v367_v44 = vld [vmem:[%s8640_s6 + $0x2c] sm:$0x1]  ;;  %v370_v14 = vld [vmem:[%s8640_s6 + $0x38] sm:$0xf]  ;;  %v6897_v18 = vcombine.low %v3698_v9, %v3702_v13  ;;  %v463_v19 = vshll.u32 %v368_v10, 16 }
  0x69   : > { %7582 = vmatprep.subr.bf16.mxu1 %v8704_v52  ;;  %7861 = vmatpush3.bf16.msra.mxu0 %v8351_v50  ;;  %v8359_v50 = vld [vmem:[#allocation3 + $0x398] sm:$0xff]   ;;  %v455_v53 = vshll.u32 %v367_v44, 16  ;;  %v6894_v44 = vrot.slane %v6885_v28, 11  ;;  %v662_v9 = vld [vmem:[%s8640_s6 + $0x14] sm:$0x1] }
  0x6a   : > { %7870 = vmatprep.subr.bf16.mxu0 %v8353_v12  ;;  %v425_v31 = vrot.slane %v424_v26, 4  ;;  %v474_v26 = vshrl.u32 %v370_v14, 16  ;;  %v663_v10 = vld [vmem:[%s8640_s6 + $0x18] sm:$0xe]  ;;  %v702_v13 = vrot.slane %v662_v9, 5 }
  0x6b   : > { %v457_v5 = vrot.slane %v455_v53, 5  ;;  %v658_v53 = vld [vmem:[%s8640_s6 + $0x4] sm:$0x1]  ;;  %v667_v28 = vld [vmem:[%s8640_s6 + $0x28] sm:$0xe] }
  0x6c   : > { %v430_v35 = vsel %vm8700_vm8, %v425_v31, %v429_v27  ;;  %7863 = vmatmul.mubr.bf16.vlgmr.msra.gmra.mrb[0].mxu0 %v6896_v33  ;;  %v477_v27 = vshll.u32 %v370_v14, 16  ;;  %v465_v31 = vrot.slane %v463_v19, 5  ;;  %v471_v33 = vrot.slane %v469_v20, 5  ;;  %v895_v59 = vld [vmem:[%s8640_s6 + $0x4] sm:$0x3] }
  0x6d   : > { %v6600_v36 = vcombine.low %v416_v30, %v430_v35  ;;  %7871 = vmatpush3.bf16.msra.mxu0 %v8353_v12  ;;  %v453_v12 = vrot.slane %v452_v4, 4  ;;  %7866 = vmatprep.mubr.bf16.mxu0 %v6897_v18  ;;  %v6886_v35 = vld [vmem:[%s8640_s6 + $0x44] sm:$0x7]  ;;  %v694_v60 = vrot.slane %v658_v53, 5  ;;  %v6614_v14 = vrot.slane %v663_v10, 9 }
  0x6e   : > { %7872 = vmatprep.subr.bf16.mxu0 %v8355_v34  ;;  %v466_v42 = vor.u32 %v465_v31, %v462_v25  ;;  %v3709_v46 = vrot.slane %v6886_v35, 7  ;;  %v8371_v18 = vld [vmem:[%s8640_s6 + $0x20] ss:$8 sps:$4 sm:$0xff]   ;;  %v8375_v25 = vld [vmem:[#allocation3 + $0x3d0] sm:$0xff]   ;;  %v8377_v35 = vld [vmem:[#allocation3 + $0x3d8] sm:$0xff]  }
  0x6f   : > { %7575 = vmatmul.mubr.bf16.vlgmr.msra.gmra.mrb[0].mxu1 %v6600_v36  ;;  %v458_v24 = vsel %vm8700_vm8, %v453_v12, %v457_v5  ;;  %v476_v36 = vrot.slane %v474_v26, 4  ;;  %v8366_v5 = vld [vmem:[#allocation3 + $0xb8] sm:$0xff]   ;;  %v665_v26 = vld [vmem:[%s8640_s6 + $0x20] sm:$0xe] }
  0x70   : > { %7583 = vmatpush3.bf16.msra.mxu1 %v8704_v52  ;;  %v437_v52 = vrot.slane %v435_v47, 5  ;;  %v3710_v51 = vsel %vm8690_vm7, %v6894_v44, %v3709_v46  ;;  %v8379_v44 = vld [vmem:[#allocation3 + $0x3e0] sm:$0xff]   ;;  %v671_v46 = vld [vmem:[%s8640_s6 + $0x38] sm:$0xe] }
  0x71   : > { %7584 = vmatprep.subr.bf16.mxu1 %v8354_v37  ;;  %7873 = vmatpush3.bf16.msra.mxu0 %v8355_v34  ;;  %v483_v34 = vshll.u32 %v371_v15, 16  ;;  %v706_v15 = vrot.slane %v664_v11, 5 }
  0x72   : > { %7874 = vmatprep.subr.bf16.mxu0 %v8357_v38  ;;  %v438_v63 = vor.u32 %v437_v52, %v434_v55  ;;  %v6611_v52 = vrot.slane %v657_v49, 9 }
  0x73   : > { %v485_v43 = vrot.slane %v483_v34, 5  ;;  %v707_v20 = vsel %vm8765_vm11, %v6614_v14, %v706_v15 }
  0x74   : > { %7585 = vmatpush3.bf16.msra.mxu1 %v8354_v37  ;;  %v439_v8 = vrot.slane %v438_v63, 4  ;;  %v479_v37 = vrot.slane %v477_v27, 5  ;;  %v8367_v63 = vld [vmem:[#allocation3 + $0x3b8] sm:$0xff]   ;;  %v695_v2 = vsel %vm8765_vm11, %v6611_v52, %v694_v60  ;;  %v666_v27 = vld [vmem:[%s8640_s6 + $0x24] sm:$0x1] }
  0x75   : > { %7586 = vmatprep.subr.bf16.mxu1 %v8356_v39  ;;  %7875 = vmatpush3.bf16.msra.mxu0 %v8357_v38  ;;  %v6893_v38 = vrot.slane %v6883_v21, 11  ;;  %v710_v31 = vrot.slane %v666_v27, 5  ;;  %v896_v60 = vld [vmem:[%s8640_s6 + $0x8] sm:$0xe] }
  0x76   : > { %7876 = vmatprep.subr.bf16.mxu0 %v8359_v50  ;;  %v444_v17 = vsel %vm8700_vm8, %v439_v8, %v443_v58  ;;  %v480_v47 = vor.u32 %v479_v37, %v476_v36 }
  0x77   : > { %v6601_v30 = vcombine.low %v444_v17, %v458_v24  ;;  %v8368_v17 = vld [vmem:[#allocation3 + $0xc0] sm:$0xff]   ;;  %v8374_v24 = vld [vmem:[#allocation3 + $0xd0] sm:$0xff]  }
  0x78   : > { %7587 = vmatpush3.bf16.msra.mxu1 %v8356_v39  ;;  %v3705_v39 = vrot.slane %v6884_v22, 7  ;;  %v481_v57 = vrot.slane %v480_v47, 4  ;;  %v8373_v22 = vld [vmem:[#allocation3 + $0x3c8] sm:$0xff]   ;;  %v672_v47 = vld [vmem:[%s8640_s6 + $0x3c] sm:$0x1] }
  0x79   : > { %7588 = vmatprep.subr.bf16.mxu1 %v8358_v54  ;;  %7877 = vmatpush3.bf16.msra.mxu0 %v8359_v50  ;;  %v467_v50 = vrot.slane %v466_v42, 4  ;;  %v669_v42 = vld [vmem:[%s8640_s6 + $0x30] sm:$0xe] }
  0x7a   : > { %7878 = vmatprep.subr.bf16.mxu0 %v8361_v62  ;;  %7578 = vmatprep.mubr.bf16.mxu1 %v6601_v30  ;;  %v3706_v48 = vsel %vm8690_vm7, %v6893_v38, %v3705_v39  ;;  %v486_v1 = vsel %vm8700_vm8, %v481_v57, %v485_v43  ;;  %v6615_v30 = vrot.slane %v665_v26, 9  ;;  %v8383_v38 = vld [vmem:[%s8640_s6 + $0x30] ss:$8 sps:$4 sm:$0xff]   ;;  %v670_v43 = vld [vmem:[%s8640_s6 + $0x34] sm:$0x1] }
  0x7b   : > { %v6898_v58 = vcombine.low %v3706_v48, %v3710_v51  ;;  %v8376_v39 = vld [vmem:[#allocation3 + $0xd8] sm:$0xff]   ;;  %v6617_v48 = vrot.slane %v669_v42, 9  ;;  %v718_v49 = vrot.slane %v670_v43, 5  ;;  %v722_v51 = vrot.slane %v672_v47, 5 }
  0x7c   : > { %7589 = vmatpush3.bf16.msra.mxu1 %v8358_v54  ;;  %v659_v54 = vld [vmem:[%s8640_s6 + $0x8] sm:$0xe]  ;;  %v711_v36 = vsel %vm8765_vm11, %v6615_v30, %v710_v31 }
  0x7d   : > { %7590 = vmatprep.subr.bf16.mxu1 %v8360_v7  ;;  %7879 = vmatpush3.bf16.msra.mxu0 %v8361_v62  ;;  %v6612_v61 = vrot.slane %v659_v54, 9  ;;  %v472_v62 = vsel %vm8700_vm8, %v467_v50, %v471_v33  ;;  %v6616_v33 = vrot.slane %v667_v28, 9  ;;  %v6618_v50 = vrot.slane %v671_v46, 9  ;;  %v8385_v54 = vld [vmem:[%s8640_s6 + $0x40] ss:$8 sps:$4 sm:$0xff]   ;;  %v8382_v28 = vld [vmem:[#allocation3 + $0xf0] sm:$0xff]  }
  0x7e   : > { %7880 = vmatprep.subr.bf16.mxu0 %v8363_v23  ;;  %7867 = vmatmul.mubr.bf16.gmra.mrb[4].mxu0 %v6898_v58  ;;  %v6602_v4 = vcombine.low %v472_v62, %v486_v1  ;;  %v719_v53 = vsel %vm8765_vm11, %v6617_v48, %v718_v49  ;;  %v894_v58 = vld [vmem:[%s8640_s6] sm:$0xe]  ;;  %v8380_v62 = vld [vmem:[#allocation3 + $0xe8] sm:$0xff]   ;;  %v900_v49 = vld [vmem:[%s8640_s6 + $0x18] sm:$0xe] }
  0x7f   : > { %v699_v6 = vsel %vm8765_vm11, %v6612_v61, %v698_v0  ;;  %7886 = vmatprep.mubr.bf16.mxu0 %v8369_v3  ;;  %v723_v52 = vsel %vm8765_vm11, %v6618_v50, %v722_v51  ;;  %v897_v61 = vld [vmem:[%s8640_s6 + $0xc] sm:$0x3]  ;;  %v914_v0 = vshrl.u32 %v894_v58, 16  ;;  %v917_v1 = vshll.u32 %v894_v58, 16  ;;  %v8386_v51 = vld [vmem:[#allocation3 + $0xf8] sm:$0xff]  }
  0x80   : > { %7591 = vmatpush3.bf16.msra.mxu1 %v8360_v7  ;;  %v661_v7 = vld [vmem:[%s8640_s6 + $0x10] sm:$0xe]  ;;  %v6619_v8 = vcombine.low %v695_v2, %v699_v6  ;;  %v6622_v57 = vcombine.low %v719_v53, %v723_v52  ;;  %v923_v2 = vshrl.u32 %v895_v59, 16  ;;  %v926_v3 = vshll.u32 %v895_v59, 16  ;;  %v901_v52 = vld [vmem:[%s8640_s6 + $0x1c] sm:$0x3] }
  0x81   : > { %7592 = vmatprep.subr.bf16.mxu1 %v8362_v29  ;;  %7881 = vmatpush3.bf16.msra.mxu0 %v8363_v23  ;;  %v6613_v12 = vrot.slane %v661_v7, 9  ;;  %v8372_v23 = vld [vmem:[#allocation3 + $0xc8] sm:$0xff]   ;;  %v941_v6 = vshrl.u32 %v897_v61, 16  ;;  %v8384_v7 = vld [vmem:[#allocation3 + $0x3f0] sm:$0xff]   ;;  %v919_v9 = vrot.slane %v917_v1, 6  ;;  %v944_v11 = vshll.u32 %v897_v61, 16 }
  0x82   : > { %7882 = vmatprep.subr.bf16.mxu0 %v8365_v41  ;;  %7579 = vmatmul.mubr.bf16.gmra.mrb[4].mxu1 %v6602_v4  ;;  %v932_v4 = vshrl.u32 %v896_v60, 16  ;;  %v925_v10 = vrot.slane %v923_v2, 5  ;;  %v968_v2 = vshrl.u32 %v900_v49, 16 }
  0x83   : > { %7598 = vmatprep.mubr.bf16.mxu1 %v6619_v8  ;;  %v703_v19 = vsel %vm8765_vm11, %v6613_v12, %v702_v13  ;;  %v916_v8 = vrot.slane %v914_v0, 5  ;;  %v928_v12 = vrot.slane %v926_v3, 6  ;;  %v943_v15 = vrot.slane %v941_v6, 5 }
  0x84   : > { %7593 = vmatpush3.bf16.msra.mxu1 %v8362_v29  ;;  %v6620_v21 = vcombine.low %v703_v19, %v707_v20  ;;  %v668_v29 = vld [vmem:[%s8640_s6 + $0x2c] sm:$0x1]  ;;  %v934_v13 = vrot.slane %v932_v4, 5  ;;  %v6928_v19 = vld [vmem:[%s8640_s6 + $0x14] sm:$0x1]  ;;  %v971_v3 = vshll.u32 %v900_v49, 16 }
  0x85   : > { %7594 = vmatprep.subr.bf16.mxu1 %v8364_v56  ;;  %7883 = vmatpush3.bf16.msra.mxu0 %v8365_v41  ;;  %v714_v34 = vrot.slane %v668_v29, 5  ;;  %v6929_v20 = vld [vmem:[%s8640_s6 + $0x18] sm:$0xf]  ;;  %v4094_v27 = vshll.u32 %v6928_v19, 16  ;;  %v6932_v4 = vld [vmem:[%s8640_s6 + $0x24] sm:$0x1] }
  0x86   : > { %7884 = vmatprep.subr.bf16.mxu0 %v8367_v63 }
  0x87   : > { %v715_v37 = vsel %vm8765_vm11, %v6616_v33, %v714_v34  ;;  %v4099_v33 = vshrl.u32 %v6929_v20, 16 }
  0x88   : > { %7595 = vmatpush3.bf16.msra.mxu1 %v8364_v56  ;;  %v6621_v41 = vcombine.low %v711_v36, %v715_v37  ;;  %v8378_v56 = vld [vmem:[#allocation3 + $0xe0] sm:$0xff]   ;;  %v4102_v36 = vshll.u32 %v6929_v20, 16  ;;  %v898_v37 = vld [vmem:[%s8640_s6 + $0x10] sm:$0xe] }
  0x89   : > { %7596 = vmatprep.subr.bf16.mxu1 %v8366_v5  ;;  %7885 = vmatpush3.bf16.msra.mxu0 %v8367_v63  ;;  %v8381_v63 = vld [vmem:[#allocation3 + $0x3e8] sm:$0xff]   ;;  %v4101_v42 = vrot.slane %v4099_v33, 4  ;;  %v950_v50 = vshrl.u32 %v898_v37, 16 }
  0x8a   : > { %7894 = vmatprep.subr.bf16.mxu0 %v8370_v16  ;;  %v4104_v48 = vrot.slane %v4102_v36, 5 }
  0x8b   : > { %v952_v61 = vrot.slane %v950_v50, 5  ;;  %v8391_v50 = vld [vmem:[#allocation3 + $0x408] sm:$0xff]  }
  0x8c   : > { %7597 = vmatpush3.bf16.msra.mxu1 %v8366_v5  ;;  %7887 = vmatmul.mubr.bf16.vlgmr.msra.gmra.mrb[0].mxu0 %v8371_v18  ;;  %v935_v5 = vshll.u32 %v896_v60, 16  ;;  %v946_v18 = vrot.slane %v944_v11, 6  ;;  %v4105_v59 = vor.u32 %v4104_v48, %v4101_v42  ;;  %v8828_v60 = vld [vmem:[#allocation3 + $0x400] sm:$0xff]  }
  0x8d   : > { %7606 = vmatprep.subr.bf16.mxu1 %v8368_v17  ;;  %7895 = vmatpush3.bf16.msra.mxu0 %v8370_v16  ;;  %v6927_v16 = vld [vmem:[%s8640_s6 + $0x10] sm:$0xf] }
  0x8e   : > { %7896 = vmatprep.subr.bf16.mxu0 %v8373_v22  ;;  %7890 = vmatprep.mubr.bf16.mxu0 %v8383_v38  ;;  %v937_v14 = vrot.slane %v935_v5, 6  ;;  %v4088_v26 = vshll.u32 %v6927_v16, 16  ;;  %v947_v30 = vor.u32 %v946_v18, %v943_v15  ;;  %v8387_v38 = vld [vmem:[#allocation3 + $0x3f8] sm:$0xff]   ;;  %v6933_v5 = vld [vmem:[%s8640_s6 + $0x28] sm:$0xf] }
  0x8f   : > { %7599 = vmatmul.mubr.bf16.vlgmr.msra.gmra.mrb[0].mxu1 %v6620_v21  ;;  %v4085_v21 = vshrl.u32 %v6927_v16, 16  ;;  %v6934_v15 = vld [vmem:[%s8640_s6 + $0x2c] sm:$0x1]  ;;  %v4130_v33 = vshll.u32 %v6933_v5, 16 }
  0x90   : > { %7607 = vmatpush3.bf16.msra.mxu1 %v8368_v17  ;;  %7602 = vmatprep.mubr.bf16.mxu1 %v6621_v41  ;;  %v920_v17 = vor.u32 %v919_v9, %v916_v8  ;;  %v4096_v41 = vrot.slane %v4094_v27, 5  ;;  %v977_v9 = vshrl.u32 %v901_v52, 16  ;;  %v4122_v27 = vshll.u32 %v6932_v4, 16 }
  0x91   : > { %7608 = vmatprep.subr.bf16.mxu1 %v8372_v23  ;;  %7897 = vmatpush3.bf16.msra.mxu0 %v8373_v22  ;;  %v4087_v31 = vrot.slane %v4085_v21, 4  ;;  %v4136_v36 = vshll.u32 %v6934_v15, 16  ;;  %v6937_v15 = vld [vmem:[%s8640_s6 + $0x38] sm:$0xf] }
  0x92   : > { %7898 = vmatprep.subr.bf16.mxu0 %v8375_v25  ;;  %v921_v29 = vrot.slane %v920_v17, 4  ;;  %v979_v18 = vrot.slane %v977_v9, 5  ;;  %v4124_v42 = vrot.slane %v4122_v27, 5 }
  0x94   : > { %7609 = vmatpush3.bf16.msra.mxu1 %v8372_v23  ;;  %7891 = vmatmul.mubr.bf16.gmra.mrb[4].mxu0 %v8385_v54  ;;  %v929_v23 = vor.u32 %v928_v12, %v925_v10  ;;  %v8388_v10 = vld [vmem:[#allocation3 + $0x100] sm:$0xff]   ;;  %v970_v12 = vrot.slane %v968_v2, 5 }
  0x95   : > { %7610 = vmatprep.subr.bf16.mxu1 %v8374_v24  ;;  %7899 = vmatpush3.bf16.msra.mxu0 %v8375_v25  ;;  %v6930_v25 = vld [vmem:[%s8640_s6 + $0x1c] sm:$0x1] }
  0x96   : > { %7900 = vmatprep.subr.bf16.mxu0 %v8377_v35  ;;  %v4108_v43 = vshll.u32 %v6930_v25, 16 }
  0x97   : > { %7603 = vmatmul.mubr.bf16.gmra.mrb[4].mxu1 %v6622_v57 }
  0x98   : > { %7611 = vmatpush3.bf16.msra.mxu1 %v8374_v24  ;;  %v938_v24 = vor.u32 %v937_v14, %v934_v13  ;;  %v4110_v54 = vrot.slane %v4108_v43, 5  ;;  %v973_v13 = vrot.slane %v971_v3, 6  ;;  %v980_v14 = vshll.u32 %v901_v52, 16  ;;  %v8390_v43 = vld [vmem:[#allocation3 + $0x108] sm:$0xff]  }
  0x99   : > { %7612 = vmatprep.subr.bf16.mxu1 %v8376_v39  ;;  %7901 = vmatpush3.bf16.msra.mxu0 %v8377_v35  ;;  %v4090_v35 = vrot.slane %v4088_v26, 5 }
  0x9a   : > { %7902 = vmatprep.subr.bf16.mxu0 %v8379_v44  ;;  %v939_v34 = vrot.slane %v938_v24, 4  ;;  %v982_v24 = vrot.slane %v980_v14, 6  ;;  %v6936_v14 = vld [vmem:[%s8640_s6 + $0x34] sm:$0x1] }
  0x9b   : > { %v4091_v47 = vor.u32 %v4090_v35, %v4087_v31 }
  0x9c   : > { %7613 = vmatpush3.bf16.msra.mxu1 %v8376_v39  ;;  %v930_v39 = vsel %vm8815_vm14, %v921_v29, %v929_v23  ;;  %v948_v46 = vsel %vm8815_vm14, %v939_v34, %v947_v30  ;;  %v974_v23 = vor.u32 %v973_v13, %v970_v12  ;;  %v983_v31 = vor.u32 %v982_v24, %v979_v18 }
  0x9d   : > { %7614 = vmatprep.subr.bf16.mxu1 %v8378_v56  ;;  %7903 = vmatpush3.bf16.msra.mxu0 %v8379_v44  ;;  %v899_v44 = vld [vmem:[%s8640_s6 + $0x14] sm:$0x3]  ;;  %v6631_v53 = vcombine.low %v930_v39, %v948_v46  ;;  %v4092_v58 = vrot.slane %v4091_v47, 4  ;;  %v4138_v46 = vrot.slane %v4136_v36, 5  ;;  %v8395_v36 = vld [vmem:[#allocation3 + $0x418] sm:$0xff]  }
  0x9e   : > { %7904 = vmatprep.subr.bf16.mxu0 %v8381_v63  ;;  %v959_v57 = vshrl.u32 %v899_v44, 16  ;;  %v975_v30 = vrot.slane %v974_v23, 4 }
  0x9f   : > { %7622 = vmatprep.mubr.bf16.mxu1 %v6631_v53  ;;  %v4097_v6 = vsel %vm8700_vm8, %v4092_v58, %v4096_v41  ;;  %v902_v53 = vld [vmem:[%s8640_s6 + $0x20] sm:$0xe] }
  0xa0   : > { %7615 = vmatpush3.bf16.msra.mxu1 %v8378_v56  ;;  %v953_v56 = vshll.u32 %v898_v37, 16  ;;  %v961_v1 = vrot.slane %v959_v57, 5  ;;  %v984_v37 = vsel %vm8815_vm14, %v975_v30, %v983_v31  ;;  %v905_v57 = vld [vmem:[%s8640_s6 + $0x2c] sm:$0x3]  ;;  %v986_v58 = vshrl.u32 %v902_v53, 16 }
  0xa1   : > { %7616 = vmatprep.subr.bf16.mxu1 %v8380_v62  ;;  %7905 = vmatpush3.bf16.msra.mxu0 %v8381_v63  ;;  %v6931_v63 = vld [vmem:[%s8640_s6 + $0x20] sm:$0xf]  ;;  %v1016_v9 = vshll.u32 %v905_v57, 16  ;;  %v4158_v30 = vshll.u32 %v6937_v15, 16 }
  0xa2   : > { %7906 = vmatprep.subr.bf16.mxu0 %v8384_v7  ;;  %v955_v0 = vrot.slane %v953_v56, 6  ;;  %v4113_v19 = vshrl.u32 %v6931_v63, 16  ;;  %v4116_v26 = vshll.u32 %v6931_v63, 16  ;;  %v904_v56 = vld [vmem:[%s8640_s6 + $0x28] sm:$0xe]  ;;  %v988_v2 = vrot.slane %v986_v58, 5 }
  0xa3   : > { %v1007_v4 = vshll.u32 %v904_v56, 16  ;;  %v1018_v18 = vrot.slane %v1016_v9, 6  ;;  %v6942_v9 = vld [vmem:[%s8640_s6 + $0x4c] sm:$0x1] }
  0xa4   : > { %7617 = vmatpush3.bf16.msra.mxu1 %v8380_v62  ;;  %v962_v62 = vshll.u32 %v899_v44, 16  ;;  %v956_v11 = vor.u32 %v955_v0, %v952_v61  ;;  %v4115_v25 = vrot.slane %v4113_v19, 4  ;;  %v4118_v34 = vrot.slane %v4116_v26, 5  ;;  %v6938_v19 = vld [vmem:[%s8640_s6 + $0x3c] sm:$0x1] }
  0xa5   : > { %7618 = vmatprep.subr.bf16.mxu1 %v8382_v28  ;;  %7907 = vmatpush3.bf16.msra.mxu0 %v8384_v7  ;;  %v4106_v7 = vrot.slane %v4105_v59, 4  ;;  %v989_v59 = vshll.u32 %v902_v53, 16  ;;  %v1009_v12 = vrot.slane %v1007_v4, 6  ;;  %v4155_v26 = vshrl.u32 %v6937_v15, 16  ;;  %v6941_v4 = vld [vmem:[%s8640_s6 + $0x48] sm:$0xf] }
  0xa6   : > { %7908 = vmatprep.subr.bf16.mxu0 %v8387_v38  ;;  %v964_v8 = vrot.slane %v962_v62, 6  ;;  %v957_v21 = vrot.slane %v956_v11, 4  ;;  %v4119_v41 = vor.u32 %v4118_v34, %v4115_v25  ;;  %v8394_v62 = vld [vmem:[#allocation3 + $0x118] sm:$0xff]   ;;  %v4150_v25 = vshll.u32 %v6936_v14, 16 }
  0xa7   : > { %v4111_v16 = vsel %vm8700_vm8, %v4106_v7, %v4110_v54  ;;  %v903_v54 = vld [vmem:[%s8640_s6 + $0x24] sm:$0x3]  ;;  %v991_v3 = vrot.slane %v989_v59, 6  ;;  %v4157_v34 = vrot.slane %v4155_v26, 4 }
  0xa8   : > { %7619 = vmatpush3.bf16.msra.mxu1 %v8382_v28  ;;  %v965_v17 = vor.u32 %v964_v8, %v961_v1  ;;  %v6943_v20 = vcombine.low %v4097_v6, %v4111_v16  ;;  %v4127_v28 = vshrl.u32 %v6933_v5, 16  ;;  %v4120_v47 = vrot.slane %v4119_v41, 4  ;;  %v8393_v16 = vld [vmem:[#allocation3 + $0x410] sm:$0xff]  }
  0xa9   : > { %7620 = vmatprep.subr.bf16.mxu1 %v8386_v51  ;;  %7909 = vmatpush3.bf16.msra.mxu0 %v8387_v38  ;;  %v4132_v38 = vrot.slane %v4130_v33, 5  ;;  %v995_v63 = vshrl.u32 %v903_v54, 16  ;;  %v998_v0 = vshll.u32 %v903_v54, 16  ;;  %v1004_v1 = vshrl.u32 %v904_v56, 16 }
  0xaa   : > { %7918 = vmatprep.subr.bf16.mxu0 %v8828_v60  ;;  %7910 = vmatprep.mubr.bf16.mxu0 %v6943_v20  ;;  %v966_v29 = vsel %vm8815_vm14, %v957_v21, %v965_v17  ;;  %v4129_v35 = vrot.slane %v4127_v28, 4  ;;  %v4125_v49 = vsel %vm8700_vm8, %v4120_v47, %v4124_v42  ;;  %v1013_v5 = vshrl.u32 %v905_v57, 16  ;;  %v907_v42 = vld [vmem:[%s8640_s6 + $0x34] sm:$0x3] }
  0xab   : > { %v6632_v39 = vcombine.low %v966_v29, %v984_v37  ;;  %v997_v6 = vrot.slane %v995_v63, 5  ;;  %v1000_v7 = vrot.slane %v998_v0, 6  ;;  %v1006_v8 = vrot.slane %v1004_v1, 5 }
  0xac   : > { %7621 = vmatpush3.bf16.msra.mxu1 %v8386_v51  ;;  %v4133_v44 = vor.u32 %v4132_v38, %v4129_v35  ;;  %v8392_v51 = vld [vmem:[#allocation3 + $0x110] sm:$0xff]   ;;  %v992_v11 = vor.u32 %v991_v3, %v988_v2  ;;  %v1015_v13 = vrot.slane %v1013_v5, 5  ;;  %v4152_v38 = vrot.slane %v4150_v25, 5  ;;  %v6940_v3 = vld [vmem:[%s8640_s6 + $0x44] sm:$0x1] }
  0xad   : > { %7630 = vmatprep.subr.bf16.mxu1 %v8388_v10  ;;  %v1001_v17 = vor.u32 %v1000_v7, %v997_v6  ;;  %v1010_v24 = vor.u32 %v1009_v12, %v1006_v8  ;;  %v906_v35 = vld [vmem:[%s8640_s6 + $0x30] sm:$0xe]  ;;  %v4164_v41 = vshll.u32 %v6938_v19, 16  ;;  %v1034_v59 = vshll.u32 %v907_v42, 16  ;;  %v8399_v19 = vld [vmem:[#allocation3 + $0x428] sm:$0xff]  }
  0xae   : > { %v4134_v48 = vrot.slane %v4133_v44, 4  ;;  %v993_v23 = vrot.slane %v992_v11, 4  ;;  %v1019_v27 = vor.u32 %v1018_v18, %v1015_v13  ;;  %v908_v44 = vld [vmem:[%s8640_s6 + $0x38] sm:$0xe]  ;;  %v1025_v47 = vshll.u32 %v906_v35, 16 }
  0xaf   : > { %7623 = vmatmul.mubr.bf16.vlgmr.msra.gmra.mrb[0].mxu1 %v6632_v39  ;;  %v1011_v33 = vrot.slane %v1010_v24, 4  ;;  %v4160_v39 = vrot.slane %v4158_v30, 5  ;;  %v4166_v54 = vrot.slane %v4164_v41, 5  ;;  %v1040_v1 = vshrl.u32 %v908_v44, 16  ;;  %v1227_v25 = vld [vmem:[%s8640_s6] sm:$0xc] }
  0xb0   : > { %7631 = vmatpush3.bf16.msra.mxu1 %v8388_v10  ;;  %v4139_v52 = vsel %vm8700_vm8, %v4134_v48, %v4138_v46  ;;  %v6935_v10 = vld [vmem:[%s8640_s6 + $0x30] sm:$0xf]  ;;  %v1002_v31 = vsel %vm8815_vm14, %v993_v23, %v1001_v17  ;;  %v1022_v46 = vshrl.u32 %v906_v35, 16  ;;  %v1031_v48 = vshrl.u32 %v907_v42, 16  ;;  %v1230_v42 = vld [vmem:[%s8640_s6 + $0xc] sm:$0x3] }
  0xb1   : > { %7632 = vmatprep.subr.bf16.mxu1 %v8390_v43  ;;  %v6944_v61 = vcombine.low %v4125_v49, %v4139_v52  ;;  %v4141_v20 = vshrl.u32 %v6935_v10, 16  ;;  %v4144_v21 = vshll.u32 %v6935_v10, 16  ;;  %v8398_v49 = vld [vmem:[#allocation3 + $0x128] sm:$0xff]   ;;  %v4161_v53 = vor.u32 %v4160_v39, %v4157_v34  ;;  %v909_v52 = vld [vmem:[%s8640_s6 + $0x3c] sm:$0x3]  ;;  %v8400_v10 = vld [vmem:[#allocation3 + $0x130] sm:$0xff]  }
  0xb2   : > { %v1024_v56 = vrot.slane %v1022_v46, 5  ;;  %v1027_v57 = vrot.slane %v1025_v47, 6  ;;  %v1033_v58 = vrot.slane %v1031_v48, 5  ;;  %v1043_v2 = vshll.u32 %v908_v44, 16  ;;  %v8401_v30 = vld [vmem:[#allocation3 + $0x430] sm:$0xff]  }
  0xb3   : > { %7911 = vmatmul.mubr.bf16.vlgmr.msra.gmra.mrb[0].mxu0 %v6944_v61  ;;  %v4143_v28 = vrot.slane %v4141_v20, 4  ;;  %v4146_v29 = vrot.slane %v4144_v21, 5  ;;  %v6939_v61 = vld [vmem:[%s8640_s6 + $0x40] sm:$0xf]  ;;  %v4162_v0 = vrot.slane %v4161_v53, 4  ;;  %v1036_v6 = vrot.slane %v1034_v59, 6 }
  0xb4   : > { %7633 = vmatpush3.bf16.msra.mxu1 %v8390_v43  ;;  %7919 = vmatpush3.bf16.msra.mxu0 %v8828_v60  ;;  %v8396_v60 = vld [vmem:[#allocation3 + $0x120] sm:$0xff]   ;;  %v1020_v43 = vsel %vm8815_vm14, %v1011_v33, %v1019_v27  ;;  %v1028_v5 = vor.u32 %v1027_v57, %v1024_v56  ;;  %v1049_v7 = vshrl.u32 %v909_v52, 16  ;;  %v1052_v8 = vshll.u32 %v909_v52, 16  ;;  %v6955_v56 = vld [vmem:[%s8640_s6 + $0x10] sm:$0xe] }
  0xb5   : > { %7634 = vmatprep.subr.bf16.mxu1 %v8392_v51  ;;  %7920 = vmatprep.subr.bf16.mxu0 %v8391_v50  ;;  %v4147_v37 = vor.u32 %v4146_v29, %v4143_v28  ;;  %v4167_v11 = vsel %vm8700_vm8, %v4162_v0, %v4166_v54  ;;  %v1042_v12 = vrot.slane %v1040_v1, 5  ;;  %v1045_v13 = vrot.slane %v1043_v2, 6  ;;  %v1228_v29 = vld [vmem:[%s8640_s6 + $0x4] sm:$0x3]  ;;  %v6956_v57 = vld [vmem:[%s8640_s6 + $0x14] sm:$0x1] }
  0xb6   : > { %v4169_v14 = vshrl.u32 %v6939_v61, 16  ;;  %v1037_v17 = vor.u32 %v1036_v6, %v1033_v58  ;;  %v1051_v18 = vrot.slane %v1049_v7, 5  ;;  %v1054_v21 = vrot.slane %v1052_v8, 6  ;;  %v1231_v8 = vld [vmem:[%s8640_s6 + $0x10] sm:$0xc] }
  0xb7   : > { %v1046_v20 = vor.u32 %v1045_v13, %v1042_v12  ;;  %v4172_v24 = vshll.u32 %v6939_v61, 16  ;;  %v4183_v27 = vshrl.u32 %v6941_v4, 16  ;;  %v4186_v28 = vshll.u32 %v6941_v4, 16  ;;  %v6957_v61 = vld [vmem:[%s8640_s6 + $0x18] sm:$0xe] }
  0xb8   : > { %7635 = vmatpush3.bf16.msra.mxu1 %v8392_v51  ;;  %7921 = vmatpush3.bf16.msra.mxu0 %v8391_v50  ;;  %v6633_v50 = vcombine.low %v1002_v31, %v1020_v43  ;;  %v4148_v51 = vrot.slane %v4147_v37, 4  ;;  %v4171_v23 = vrot.slane %v4169_v14, 4  ;;  %v1055_v33 = vor.u32 %v1054_v21, %v1051_v18  ;;  %v1229_v37 = vld [vmem:[%s8640_s6 + $0x8] sm:$0xc]  ;;  %v1233_v12 = vld [vmem:[%s8640_s6 + $0x18] sm:$0xc] }
  0xb9   : > { %7636 = vmatprep.subr.bf16.mxu1 %v8394_v62  ;;  %7922 = vmatprep.subr.bf16.mxu0 %v8393_v16  ;;  %v1047_v31 = vrot.slane %v1046_v20, 4  ;;  %v4174_v34 = vrot.slane %v4172_v24, 5  ;;  %v4192_v35 = vshll.u32 %v6942_v9, 16  ;;  %v4185_v39 = vrot.slane %v4183_v27, 4  ;;  %v1234_v13 = vld [vmem:[%s8640_s6 + $0x1c] sm:$0x3] }
  0xba   : > { %7626 = vmatprep.mubr.bf16.mxu1 %v6633_v50  ;;  %v4153_v63 = vsel %vm8700_vm8, %v4148_v51, %v4152_v38  ;;  %v4188_v41 = vrot.slane %v4186_v28, 5  ;;  %v6643_v44 = vrot.slane %v1227_v25, 10  ;;  %v8886_v50 = vld [vmem:[#allocation3 + $0x140] sm:$0xff]   ;;  %v6644_v54 = vrot.slane %v1229_v37, 10  ;;  %v6961_v24 = vld [vmem:[%s8640_s6 + $0x28] sm:$0xe] }
  0xbb   : > { %v6945_v15 = vcombine.low %v4153_v63, %v4167_v11  ;;  %v1056_v46 = vsel %vm8815_vm14, %v1047_v31, %v1055_v33  ;;  %v4175_v47 = vor.u32 %v4174_v34, %v4171_v23  ;;  %v4194_v48 = vrot.slane %v4192_v35, 5  ;;  %v1232_v11 = vld [vmem:[%s8640_s6 + $0x14] sm:$0x3]  ;;  %v6959_v18 = vld [vmem:[%s8640_s6 + $0x20] sm:$0xe]  ;;  %v8406_v33 = vld [vmem:[#allocation3 + $0x148] sm:$0xff]  }
  0xbc   : > { %7637 = vmatpush3.bf16.msra.mxu1 %v8394_v62  ;;  %7923 = vmatpush3.bf16.msra.mxu0 %v8393_v16  ;;  %v8397_v62 = vld [vmem:[#allocation3 + $0x420] sm:$0xff]   ;;  %v1029_v16 = vrot.slane %v1028_v5, 4  ;;  %v4189_v53 = vor.u32 %v4188_v41, %v4185_v39  ;;  %v1268_v52 = vrot.slane %v1230_v42, 6  ;;  %v6971_v63 = vrot.slane %v6955_v56, 9  ;;  %v8403_v5 = vld [vmem:[#allocation3 + $0x438] sm:$0xff]   ;;  %v8408_v39 = vld [vmem:[#allocation3 + $0x150] sm:$0xff]  }
  0xbd   : > { %7638 = vmatprep.subr.bf16.mxu1 %v8396_v60  ;;  %7924 = vmatprep.subr.bf16.mxu0 %v8395_v36  ;;  %v4176_v58 = vrot.slane %v4175_v47, 4  ;;  %v4400_v2 = vrot.slane %v6956_v57, 5  ;;  %v6646_v21 = vrot.slane %v1233_v12, 10  ;;  %v1276_v23 = vrot.slane %v1234_v13, 6  ;;  %v6962_v25 = vld [vmem:[%s8640_s6 + $0x2c] sm:$0x1] }
  0xbe   : > { %7914 = vmatprep.mubr.bf16.mxu0 %v6945_v15  ;;  %v1038_v26 = vsel %vm8815_vm14, %v1029_v16, %v1037_v17  ;;  %v4190_v0 = vrot.slane %v4189_v53, 4  ;;  %v1269_v1 = vsel %vm8880_vm1, %v6644_v54, %v1268_v52  ;;  %v6645_v16 = vrot.slane %v1231_v8, 10  ;;  %v1235_v41 = vld [vmem:[%s8640_s6 + $0x20] sm:$0xc]  ;;  %v8409_v42 = vld [vmem:[#allocation3 + $0x450] sm:$0xff]  }
  0xbf   : > { %v6634_v51 = vcombine.low %v1038_v26, %v1056_v46  ;;  %v1272_v17 = vrot.slane %v1232_v11, 6  ;;  %v8405_v26 = vld [vmem:[#allocation3 + $0x440] sm:$0xff]   ;;  %v6973_v27 = vrot.slane %v6959_v18, 9  ;;  %v1277_v31 = vsel %vm8880_vm1, %v6646_v21, %v1276_v23  ;;  %v1237_v46 = vld [vmem:[%s8640_s6 + $0x28] sm:$0xc] }
  0xc0   : > { %7639 = vmatpush3.bf16.msra.mxu1 %v8396_v60  ;;  %7925 = vmatpush3.bf16.msra.mxu0 %v8395_v36  ;;  %v4178_v60 = vshll.u32 %v6940_v3, 16  ;;  %v8402_v36 = vld [vmem:[#allocation3 + $0x138] sm:$0xff]   ;;  %v6972_v3 = vrot.slane %v6957_v61, 9  ;;  %v4195_v9 = vsel %vm8700_vm8, %v4190_v0, %v4194_v48  ;;  %v1238_v47 = vld [vmem:[%s8640_s6 + $0x2c] sm:$0x3]  ;;  %v6647_v48 = vrot.slane %v1235_v41, 10 }
  0xc1   : > { %7640 = vmatprep.subr.bf16.mxu1 %v8398_v49  ;;  %7926 = vmatprep.subr.bf16.mxu0 %v8397_v62  ;;  %v1284_v53 = vrot.slane %v1238_v47, 6  ;;  %v6963_v54 = vld [vmem:[%s8640_s6 + $0x30] sm:$0xe]  ;;  %v6964_v57 = vld [vmem:[%s8640_s6 + $0x34] sm:$0x1]  ;;  %v8411_v61 = vld [vmem:[#allocation3 + $0x458] sm:$0xff]  }
  0xc2   : > { %v4180_v38 = vrot.slane %v4178_v60, 5  ;;  %7627 = vmatmul.mubr.bf16.gmra.mrb[4].mxu1 %v6634_v51  ;;  %v1273_v60 = vsel %vm8880_vm1, %v6645_v16, %v1272_v17  ;;  %v6648_v51 = vrot.slane %v1237_v46, 10  ;;  %v4416_v0 = vrot.slane %v6964_v57, 5  ;;  %v1242_v8 = vld [vmem:[%s8640_s6 + $0x3c] sm:$0x3] }
  0xc3   : > { %v6652_v34 = vcombine.low %v1273_v60, %v1277_v31  ;;  %v6967_v13 = vld [vmem:[%s8640_s6 + $0x40] sm:$0xe]  ;;  %v1292_v16 = vrot.slane %v1242_v8, 6  ;;  %v6968_v17 = vld [vmem:[%s8640_s6 + $0x44] sm:$0x1] }
  0xc4   : > { %7641 = vmatpush3.bf16.msra.mxu1 %v8398_v49  ;;  %7927 = vmatpush3.bf16.msra.mxu0 %v8397_v62  ;;  %v1264_v49 = vrot.slane %v1228_v29, 6  ;;  %v6958_v62 = vld [vmem:[%s8640_s6 + $0x1c] sm:$0x1]  ;;  %v4181_v4 = vsel %vm8700_vm8, %v4176_v58, %v4180_v38  ;;  %v6974_v29 = vrot.slane %v6961_v24, 9  ;;  %v8407_v38 = vld [vmem:[#allocation3 + $0x448] sm:$0xff]   ;;  %v1285_v56 = vsel %vm8880_vm1, %v6648_v51, %v1284_v53 }
  0xc5   : > { %7642 = vmatprep.subr.bf16.mxu1 %v8400_v10  ;;  %7928 = vmatprep.subr.bf16.mxu0 %v8399_v19  ;;  %v4404_v7 = vrot.slane %v6958_v62, 5  ;;  %v6946_v14 = vcombine.low %v4181_v4, %v4195_v9  ;;  %v6965_v58 = vld [vmem:[%s8640_s6 + $0x38] sm:$0xe]  ;;  %v1239_v4 = vld [vmem:[%s8640_s6 + $0x30] sm:$0xc]  ;;  %v4424_v23 = vrot.slane %v6968_v17, 5 }
  0xc6   : > { %v1265_v59 = vsel %vm8880_vm1, %v6643_v44, %v1264_v49  ;;  %v1236_v44 = vld [vmem:[%s8640_s6 + $0x24] sm:$0x3]  ;;  %v6969_v18 = vld [vmem:[%s8640_s6 + $0x48] sm:$0xe]  ;;  %v6970_v21 = vld [vmem:[%s8640_s6 + $0x4c] sm:$0x1] }
  0xc7   : > { %v6651_v6 = vcombine.low %v1265_v59, %v1269_v1  ;;  %v4405_v15 = vsel %vm8765_vm11, %v6972_v3, %v4404_v7  ;;  %7915 = vmatmul.mubr.bf16.gmra.mrb[4].mxu0 %v6946_v14  ;;  %v1280_v49 = vrot.slane %v1236_v44, 6  ;;  %v6966_v59 = vld [vmem:[%s8640_s6 + $0x3c] sm:$0x1]  ;;  %v6976_v1 = vrot.slane %v6965_v58, 9  ;;  %v1241_v7 = vld [vmem:[%s8640_s6 + $0x38] sm:$0xc] }
  0xc8   : > { %7643 = vmatpush3.bf16.msra.mxu1 %v8400_v10  ;;  %7929 = vmatpush3.bf16.msra.mxu0 %v8399_v19  ;;  %v4401_v10 = vsel %vm8765_vm11, %v6971_v63, %v4400_v2  ;;  %v6960_v19 = vld [vmem:[%s8640_s6 + $0x24] sm:$0x1]  ;;  %v6975_v63 = vrot.slane %v6963_v54, 9  ;;  %v4420_v3 = vrot.slane %v6966_v59, 5  ;;  %v6650_v12 = vrot.slane %v1241_v7, 10 }
  0xc9   : > { %7644 = vmatprep.subr.bf16.mxu1 %v8402_v36  ;;  %7930 = vmatprep.subr.bf16.mxu0 %v8401_v30  ;;  %v6979_v20 = vcombine.low %v4401_v10, %v4405_v15  ;;  %v4408_v28 = vrot.slane %v6960_v19, 5  ;;  %v1281_v52 = vsel %vm8880_vm1, %v6647_v48, %v1280_v49  ;;  %v8412_v2 = vld [vmem:[#allocation3 + $0x160] sm:$0xff]   ;;  %v6649_v10 = vrot.slane %v1239_v4, 10  ;;  %v6992_v59 = vld [vmem:[%s8640_s6 + $0x14] sm:$0x3]  ;;  %v8418_v4 = vld [vmem:[#allocation3 + $0x178] sm:$0xff]  }
  0xca   : > { %7646 = vmatprep.mubr.bf16.mxu1 %v6651_v6  ;;  %v6653_v62 = vcombine.low %v1281_v52, %v1285_v56  ;;  %v1240_v6 = vld [vmem:[%s8640_s6 + $0x34] sm:$0x3]  ;;  %v4421_v9 = vsel %vm8765_vm11, %v6976_v1, %v4420_v3  ;;  %v8413_v14 = vld [vmem:[#allocation3 + $0x460] sm:$0xff]   ;;  %v6977_v19 = vrot.slane %v6967_v13, 9  ;;  %v6978_v24 = vrot.slane %v6969_v18, 9 }
  0xcb   : > { %7934 = vmatprep.mubr.bf16.mxu0 %v6979_v20  ;;  %v4409_v35 = vsel %vm8765_vm11, %v6973_v27, %v4408_v28  ;;  %v1288_v11 = vrot.slane %v1240_v6, 6  ;;  %v4428_v60 = vrot.slane %v6970_v21, 5  ;;  %v1465_v31 = vld [vmem:[%s8640_s6 + $0x4] sm:$0x7]  ;;  %v6991_v52 = vld [vmem:[%s8640_s6 + $0x10] sm:$0xe] }
  0xcc   : > { %7645 = vmatpush3.bf16.msra.mxu1 %v8402_v36  ;;  %7931 = vmatpush3.bf16.msra.mxu0 %v8401_v30  ;;  %v4412_v30 = vrot.slane %v6962_v25, 5  ;;  %v8414_v25 = vld [vmem:[#allocation3 + $0x168] sm:$0xff]   ;;  %v4425_v28 = vsel %vm8765_vm11, %v6977_v19, %v4424_v23  ;;  %v1493_v41 = vshrl.u32 %v1465_v31, 16  ;;  %v6994_v1 = vld [vmem:[%s8640_s6 + $0x1c] sm:$0x3]  ;;  %v4620_v3 = vshll.u32 %v6991_v52, 16 }
  0xcd   : > { %7654 = vmatprep.subr.bf16.mxu1 %v8886_v50  ;;  %7932 = vmatprep.subr.bf16.mxu0 %v8403_v5  ;;  %v1289_v20 = vsel %vm8880_vm1, %v6649_v10, %v1288_v11  ;;  %v4626_v7 = vshrl.u32 %v6992_v59, 16  ;;  %v4629_v8 = vshll.u32 %v6992_v59, 16  ;;  %v1468_v17 = vld [vmem:[%s8640_s6 + $0x10] sm:$0xc]  ;;  %v4644_v21 = vshrl.u32 %v6994_v1, 16 }
  0xce   : > { %v4413_v36 = vsel %vm8765_vm11, %v6974_v29, %v4412_v30  ;;  %v1464_v29 = vld [vmem:[%s8640_s6] sm:$0xc]  ;;  %v8415_v30 = vld [vmem:[#allocation3 + $0x468] sm:$0xff]   ;;  %v1495_v51 = vrot.slane %v1493_v41, 6  ;;  %v4622_v11 = vrot.slane %v4620_v3, 6 }
  0xcf   : > { %7647 = vmatmul.mubr.bf16.vlgmr.msra.gmra.mrb[0].mxu1 %v6652_v34  ;;  %v6980_v37 = vcombine.low %v4409_v35, %v4413_v36  ;;  %v1466_v34 = vld [vmem:[%s8640_s6 + $0x8] sm:$0xc]  ;;  %v1467_v35 = vld [vmem:[%s8640_s6 + $0xc] sm:$0x7]  ;;  %v1484_v36 = vshrl.u32 %v1464_v29, 16 }
  0xd0   : > { %7933 = vmatpush3.bf16.msra.mxu0 %v8403_v5  ;;  %7655 = vmatpush3.bf16.msra.mxu1 %v8886_v50  ;;  %v8410_v50 = vld [vmem:[#allocation3 + $0x158] sm:$0xff]   ;;  %v4417_v5 = vsel %vm8765_vm11, %v6975_v63, %v4416_v0  ;;  %v1502_v44 = vshrl.u32 %v1466_v34, 16  ;;  %v1505_v48 = vshll.u32 %v1466_v34, 16  ;;  %v1511_v49 = vshrl.u32 %v1467_v35, 16  ;;  %v1469_v23 = vld [vmem:[%s8640_s6 + $0x14] sm:$0x7] }
  0xd1   : > { %7942 = vmatprep.subr.bf16.mxu0 %v8405_v26  ;;  %7656 = vmatprep.subr.bf16.mxu1 %v8406_v33  ;;  %v6981_v15 = vcombine.low %v4417_v5, %v4421_v9  ;;  %v1486_v46 = vrot.slane %v1484_v36, 6  ;;  %v1514_v54 = vshll.u32 %v1467_v35, 16  ;;  %v4646_v34 = vrot.slane %v4644_v21, 5  ;;  %v1471_v36 = vld [vmem:[%s8640_s6 + $0x1c] sm:$0x7] }
  0xd2   : > { %7650 = vmatprep.mubr.bf16.mxu1 %v6653_v62  ;;  %v1507_v57 = vrot.slane %v1505_v48, 7  ;;  %v1513_v58 = vrot.slane %v1511_v49, 6  ;;  %v8417_v62 = vld [vmem:[#allocation3 + $0x470] sm:$0xff]   ;;  %v8975_v49 = vld [vmem:[#allocation3 + $0x480] sm:$0xff]   ;;  %v6997_v59 = vld [vmem:[%s8640_s6 + $0x28] sm:$0xe] }
  0xd3   : > { %7935 = vmatmul.mubr.bf16.vlgmr.msra.gmra.mrb[0].mxu0 %v6980_v37  ;;  %v1487_v37 = vshll.u32 %v1464_v29, 16  ;;  %v1516_v0 = vrot.slane %v1514_v54, 7  ;;  %v6996_v54 = vld [vmem:[%s8640_s6 + $0x24] sm:$0x3]  ;;  %v4674_v21 = vshll.u32 %v6997_v59, 16 }
  0xd4   : > { %7943 = vmatpush3.bf16.msra.mxu0 %v8405_v26  ;;  %7657 = vmatpush3.bf16.msra.mxu1 %v8406_v33  ;;  %v1293_v26 = vsel %vm8880_vm1, %v6650_v12, %v1292_v16  ;;  %v4429_v33 = vsel %vm8765_vm11, %v6978_v24, %v4428_v60  ;;  %v4631_v16 = vrot.slane %v4629_v8, 6  ;;  %v8419_v24 = vld [vmem:[#allocation3 + $0x478] sm:$0xff]   ;;  %v4647_v60 = vshll.u32 %v6994_v1, 16 }
  0xd5   : > { %7944 = vmatprep.subr.bf16.mxu0 %v8407_v38  ;;  %7658 = vmatprep.subr.bf16.mxu1 %v8408_v39  ;;  %v6654_v27 = vcombine.low %v1289_v20, %v1293_v26  ;;  %v1489_v47 = vrot.slane %v1487_v37, 7  ;;  %v1517_v9 = vor.u32 %v1516_v0, %v1513_v58  ;;  %v1547_v58 = vshrl.u32 %v1471_v36, 16 }
  0xd6   : > { %7938 = vmatprep.mubr.bf16.mxu0 %v6981_v15  ;;  %v4628_v15 = vrot.slane %v4626_v7, 5  ;;  %v4649_v35 = vrot.slane %v4647_v60, 6  ;;  %v8422_v60 = vld [vmem:[#allocation3 + $0x188] sm:$0xff]  }
  0xd7   : > { %7651 = vmatmul.mubr.bf16.gmra.mrb[4].mxu1 %v6654_v27  ;;  %v1490_v56 = vor.u32 %v1489_v47, %v1486_v46  ;;  %v1470_v27 = vld [vmem:[%s8640_s6 + $0x18] sm:$0xc]  ;;  %v6995_v47 = vld [vmem:[%s8640_s6 + $0x20] sm:$0xe]  ;;  %v1549_v3 = vrot.slane %v1547_v58, 6 }
  0xd8   : > { %7945 = vmatpush3.bf16.msra.mxu0 %v8407_v38  ;;  %7659 = vmatpush3.bf16.msra.mxu1 %v8408_v39  ;;  %v8416_v38 = vld [vmem:[#allocation3 + $0x170] sm:$0xff]   ;;  %v6982_v39 = vcombine.low %v4425_v28, %v4429_v33  ;;  %v4632_v26 = vor.u32 %v4631_v16, %v4628_v15  ;;  %v1520_v28 = vshrl.u32 %v1468_v17, 16  ;;  %v1538_v46 = vshrl.u32 %v1470_v27, 16 }
  0xd9   : > { %7946 = vmatprep.subr.bf16.mxu0 %v8409_v42  ;;  %7660 = vmatprep.subr.bf16.mxu1 %v8410_v50  ;;  %v1491_v5 = vrot.slane %v1490_v56, 4  ;;  %v4650_v48 = vor.u32 %v4649_v35, %v4646_v34  ;;  %v4653_v0 = vshrl.u32 %v6995_v47, 16 }
  0xda   : > { %v1522_v37 = vrot.slane %v1520_v28, 6 }
  0xdb   : > { %7939 = vmatmul.mubr.bf16.gmra.mrb[4].mxu0 %v6982_v39  ;;  %v1529_v39 = vshrl.u32 %v1469_v23, 16 }
  0xdc   : > { %7947 = vmatpush3.bf16.msra.mxu0 %v8409_v42  ;;  %7661 = vmatpush3.bf16.msra.mxu1 %v8410_v50  ;;  %v1496_v42 = vshll.u32 %v1465_v31, 16  ;;  %v1504_v50 = vrot.slane %v1502_v44, 6  ;;  %v8969_v31 = vld [vmem:[#allocation3 + $0x180] sm:$0xff]   ;;  %v1532_v44 = vshll.u32 %v1469_v23, 16 }
  0xdd   : > { %7948 = vmatprep.subr.bf16.mxu0 %v8411_v61  ;;  %7662 = vmatprep.subr.bf16.mxu1 %v8412_v2 }
  0xde   : > { %v1498_v53 = vrot.slane %v1496_v42, 7  ;;  %v1508_v6 = vor.u32 %v1507_v57, %v1504_v50  ;;  %v1541_v50 = vshll.u32 %v1470_v27, 16  ;;  %v1534_v56 = vrot.slane %v1532_v44, 7  ;;  %v1474_v44 = vld [vmem:[%s8640_s6 + $0x28] sm:$0xc] }
  0xdf   : > { %v1540_v57 = vrot.slane %v1538_v46, 6  ;;  %v1475_v46 = vld [vmem:[%s8640_s6 + $0x2c] sm:$0x7] }
  0xe0   : > { %7949 = vmatpush3.bf16.msra.mxu0 %v8411_v61  ;;  %7663 = vmatpush3.bf16.msra.mxu1 %v8412_v2  ;;  %v6993_v61 = vld [vmem:[%s8640_s6 + $0x18] sm:$0xe]  ;;  %v1499_v63 = vor.u32 %v1498_v53, %v1495_v51  ;;  %v4617_v2 = vshrl.u32 %v6991_v52, 16  ;;  %v1531_v53 = vrot.slane %v1529_v39, 6  ;;  %v1473_v39 = vld [vmem:[%s8640_s6 + $0x24] sm:$0x7] }
  0xe1   : > { %7950 = vmatprep.subr.bf16.mxu0 %v8413_v14  ;;  %7664 = vmatprep.subr.bf16.mxu1 %v8414_v25  ;;  %v4635_v12 = vshrl.u32 %v6993_v61, 16  ;;  %v4638_v20 = vshll.u32 %v6993_v61, 16 }
  0xe2   : > { %v4619_v10 = vrot.slane %v4617_v2, 5  ;;  %v1500_v13 = vsel %vm8649_vm2, %v1491_v5, %v1499_v63  ;;  %v1550_v63 = vshll.u32 %v1471_v36, 16  ;;  %v1535_v2 = vor.u32 %v1534_v56, %v1531_v53  ;;  %v8424_v36 = vld [vmem:[#allocation3 + $0x190] sm:$0xff]  }
  0xe3   : > { %v4637_v19 = vrot.slane %v4635_v12, 5  ;;  %v4640_v33 = vrot.slane %v4638_v20, 6  ;;  %v4656_v5 = vshll.u32 %v6995_v47, 16  ;;  %v4662_v12 = vshrl.u32 %v6996_v54, 16 }
  0xe4   : > { %7951 = vmatpush3.bf16.msra.mxu0 %v8413_v14  ;;  %7665 = vmatpush3.bf16.msra.mxu1 %v8414_v25  ;;  %v1509_v14 = vrot.slane %v1508_v6, 4  ;;  %v4623_v18 = vor.u32 %v4622_v11, %v4619_v10  ;;  %v4655_v10 = vrot.slane %v4653_v0, 5  ;;  %v1568_v53 = vshll.u32 %v1473_v39, 16  ;;  %v6999_v0 = vld [vmem:[%s8640_s6 + $0x30] sm:$0xe] }
  0xe5   : > { %7952 = vmatprep.subr.bf16.mxu0 %v8415_v30  ;;  %7666 = vmatprep.subr.bf16.mxu1 %v8416_v38  ;;  %v4641_v42 = vor.u32 %v4640_v33, %v4637_v19  ;;  %v4658_v11 = vrot.slane %v4656_v5, 6  ;;  %v4664_v19 = vrot.slane %v4662_v12, 5  ;;  %v1577_v56 = vshll.u32 %v1474_v44, 16  ;;  %v7000_v5 = vld [vmem:[%s8640_s6 + $0x34] sm:$0x3] }
  0xe6   : > { %v1518_v25 = vsel %vm8649_vm2, %v1509_v14, %v1517_v9  ;;  %v1552_v9 = vrot.slane %v1550_v63, 7  ;;  %v1570_v63 = vrot.slane %v1568_v53, 7  ;;  %v8425_v12 = vld [vmem:[#allocation3 + $0x490] sm:$0xff]  }
  0xe7   : > { %v6663_v29 = vcombine.low %v1500_v13, %v1518_v25  ;;  %v4642_v52 = vrot.slane %v4641_v42, 4  ;;  %v4665_v13 = vshll.u32 %v6996_v54, 16 }
  0xe8   : > { %7953 = vmatpush3.bf16.msra.mxu0 %v8415_v30  ;;  %7667 = vmatpush3.bf16.msra.mxu1 %v8416_v38  ;;  %v4624_v30 = vrot.slane %v4623_v18, 4  ;;  %v1523_v38 = vshll.u32 %v1468_v17, 16  ;;  %v1553_v16 = vor.u32 %v1552_v9, %v1549_v3  ;;  %v4671_v17 = vshrl.u32 %v6997_v59, 16  ;;  %v8426_v59 = vld [vmem:[#allocation3 + $0x198] sm:$0xff]  }
  0xe9   : > { %7954 = vmatprep.subr.bf16.mxu0 %v8417_v62  ;;  %7668 = vmatprep.subr.bf16.mxu1 %v8418_v4  ;;  %v4651_v1 = vsel %vm8815_vm14, %v4642_v52, %v4650_v48  ;;  %v4659_v18 = vor.u32 %v4658_v11, %v4655_v10  ;;  %v4667_v20 = vrot.slane %v4665_v13, 6  ;;  %v7002_v9 = vld [vmem:[%s8640_s6 + $0x3c] sm:$0x3]  ;;  %v4689_v10 = vshrl.u32 %v6999_v0, 16 }
  0xea   : > { %v4633_v41 = vsel %vm8815_vm14, %v4624_v30, %v4632_v26  ;;  %7670 = vmatprep.mubr.bf16.mxu1 %v6663_v29  ;;  %v1525_v51 = vrot.slane %v1523_v38, 7  ;;  %v4676_v30 = vrot.slane %v4674_v21, 6  ;;  %v1472_v38 = vld [vmem:[%s8640_s6 + $0x20] sm:$0xc]  ;;  %v4692_v11 = vshll.u32 %v6999_v0, 16 }
  0xeb   : > { %v7007_v6 = vcombine.low %v4633_v41, %v4651_v1  ;;  %v4660_v28 = vrot.slane %v4659_v18, 4  ;;  %v4668_v29 = vor.u32 %v4667_v20, %v4664_v19  ;;  %v1556_v47 = vshrl.u32 %v1472_v38, 16  ;;  %v8428_v21 = vld [vmem:[#allocation3 + $0x1a0] sm:$0xff]  }
  0xec   : > { %7955 = vmatpush3.bf16.msra.mxu0 %v8417_v62  ;;  %7669 = vmatpush3.bf16.msra.mxu1 %v8418_v4  ;;  %v1526_v61 = vor.u32 %v1525_v51, %v1522_v37  ;;  %v1543_v62 = vrot.slane %v1541_v50, 7  ;;  %v6998_v4 = vld [vmem:[%s8640_s6 + $0x2c] sm:$0x3]  ;;  %v1559_v48 = vshll.u32 %v1472_v38, 16  ;;  %v1565_v51 = vshrl.u32 %v1473_v39, 16 }
  0xed   : > { %7956 = vmatprep.subr.bf16.mxu0 %v8419_v24  ;;  %7678 = vmatprep.subr.bf16.mxu1 %v8969_v31  ;;  %v4680_v25 = vshrl.u32 %v6998_v4, 16  ;;  %v4683_v26 = vshll.u32 %v6998_v4, 16  ;;  %v4669_v41 = vsel %vm8815_vm14, %v4660_v28, %v4668_v29  ;;  %v1574_v50 = vshrl.u32 %v1474_v44, 16  ;;  %v8430_v38 = vld [vmem:[#allocation3 + $0x1a8] sm:$0xff]   ;;  %v1478_v44 = vld [vmem:[%s8640_s6 + $0x38] sm:$0xc] }
  0xee   : > { %v1527_v7 = vrot.slane %v1526_v61, 4  ;;  %v1544_v8 = vor.u32 %v1543_v62, %v1540_v57  ;;  %7958 = vmatprep.mubr.bf16.mxu0 %v7007_v6  ;;  %v1558_v52 = vrot.slane %v1556_v47, 6  ;;  %v1583_v57 = vshrl.u32 %v1475_v46, 16  ;;  %v7004_v0 = vld [vmem:[%s8640_s6 + $0x44] sm:$0x3] }
  0xef   : > { %v4682_v33 = vrot.slane %v4680_v25, 5  ;;  %v4685_v34 = vrot.slane %v4683_v26, 6  ;;  %v1561_v61 = vrot.slane %v1559_v48, 7  ;;  %v1567_v62 = vrot.slane %v1565_v51, 6  ;;  %v1479_v51 = vld [vmem:[%s8640_s6 + $0x3c] sm:$0x7] }
  0xf0   : > { %7957 = vmatpush3.bf16.msra.mxu0 %v8419_v24  ;;  %v1536_v14 = vsel %vm8649_vm2, %v1527_v7, %v1535_v2  ;;  %v1545_v15 = vrot.slane %v1544_v8, 4  ;;  %v4673_v24 = vrot.slane %v4671_v17, 5  ;;  %v1576_v1 = vrot.slane %v1574_v50, 6  ;;  %v7001_v8 = vld [vmem:[%s8640_s6 + $0x38] sm:$0xe] }
  0xf1   : > { %7966 = vmatprep.subr.bf16.mxu0 %v8975_v49  ;;  %v4686_v37 = vor.u32 %v4685_v34, %v4682_v33  ;;  %v1579_v2 = vrot.slane %v1577_v56, 7  ;;  %v1585_v3 = vrot.slane %v1583_v57, 6  ;;  %v1586_v4 = vshll.u32 %v1475_v46, 16  ;;  %v8427_v33 = vld [vmem:[#allocation3 + $0x498] sm:$0xff]   ;;  %v7003_v57 = vld [vmem:[%s8640_s6 + $0x40] sm:$0xe] }
  0xf2   : > { %v1554_v23 = vsel %vm8649_vm2, %v1545_v15, %v1553_v16  ;;  %v4677_v35 = vor.u32 %v4676_v30, %v4673_v24  ;;  %v1562_v6 = vor.u32 %v1561_v61, %v1558_v52  ;;  %v1571_v7 = vor.u32 %v1570_v63, %v1567_v62  ;;  %v1477_v30 = vld [vmem:[%s8640_s6 + $0x34] sm:$0x7] }
  0xf3   : > { %v6664_v27 = vcombine.low %v1536_v14, %v1554_v23  ;;  %v1580_v13 = vor.u32 %v1579_v2, %v1576_v1  ;;  %v1588_v14 = vrot.slane %v1586_v4, 7  ;;  %v4698_v15 = vshrl.u32 %v7000_v5, 16 }
  0xf4   : > { %v4678_v42 = vrot.slane %v4677_v35, 4  ;;  %v4701_v16 = vshll.u32 %v7000_v5, 16  ;;  %v1563_v17 = vrot.slane %v1562_v6, 4  ;;  %v4691_v18 = vrot.slane %v4689_v10, 5  ;;  %v8432_v5 = vld [vmem:[#allocation3 + $0x1b0] sm:$0xff]  }
  0xf5   : > { %7671 = vmatmul.mubr.bf16.vlgmr.msra.gmra.mrb[0].mxu1 %v6664_v27  ;;  %v4694_v19 = vrot.slane %v4692_v11, 6  ;;  %v4707_v20 = vshrl.u32 %v7001_v8, 16  ;;  %v1581_v23 = vrot.slane %v1580_v13, 4  ;;  %v1589_v24 = vor.u32 %v1588_v14, %v1585_v3  ;;  %v7005_v14 = vld [vmem:[%s8640_s6 + $0x48] sm:$0xe] }
  0xf6   : > { %7679 = vmatpush3.bf16.msra.mxu1 %v8969_v31  ;;  %v4687_v54 = vsel %vm8815_vm14, %v4678_v42, %v4686_v37  ;;  %v8423_v31 = vld [vmem:[#allocation3 + $0x488] sm:$0xff]   ;;  %v4700_v25 = vrot.slane %v4698_v15, 5  ;;  %v4703_v26 = vrot.slane %v4701_v16, 6  ;;  %v4710_v29 = vshll.u32 %v7001_v8, 16 }
  0xf7   : > { %7680 = vmatprep.subr.bf16.mxu1 %v8422_v60  ;;  %v7008_v58 = vcombine.low %v4669_v41, %v4687_v54  ;;  %v4695_v27 = vor.u32 %v4694_v19, %v4691_v18  ;;  %v4709_v28 = vrot.slane %v4707_v20, 5  ;;  %v1590_v34 = vsel %vm8649_vm2, %v1581_v23, %v1589_v24  ;;  %v8431_v15 = vld [vmem:[#allocation3 + $0x4a8] sm:$0xff]  }
  0xf8   : > { %v4704_v35 = vor.u32 %v4703_v26, %v4700_v25  ;;  %v4719_v37 = vshll.u32 %v7002_v9, 16  ;;  %v4712_v42 = vrot.slane %v4710_v29, 6  ;;  %v1601_v50 = vshrl.u32 %v1477_v30, 16  ;;  %v7006_v19 = vld [vmem:[%s8640_s6 + $0x4c] sm:$0x3]  ;;  %v8434_v26 = vld [vmem:[#allocation3 + $0x1b8] sm:$0xff]  }
  0xf9   : > { %7959 = vmatmul.mubr.bf16.vlgmr.msra.gmra.mrb[0].mxu0 %v7008_v58  ;;  %v4696_v41 = vrot.slane %v4695_v27, 4  ;;  %v1604_v56 = vshll.u32 %v1477_v30, 16  ;;  %v8429_v58 = vld [vmem:[#allocation3 + $0x4a0] sm:$0xff]   ;;  %v1610_v63 = vshrl.u32 %v1478_v44, 16  ;;  %v1613_v3 = vshll.u32 %v1478_v44, 16 }
  0xfa   : > { %7681 = vmatpush3.bf16.msra.mxu1 %v8422_v60  ;;  %7967 = vmatpush3.bf16.msra.mxu0 %v8975_v49  ;;  %v1476_v49 = vld [vmem:[%s8640_s6 + $0x30] sm:$0xc]  ;;  %v1572_v60 = vsel %vm8649_vm2, %v1563_v17, %v1571_v7  ;;  %v4721_v48 = vrot.slane %v4719_v37, 6  ;;  %v1603_v62 = vrot.slane %v1601_v50, 6  ;;  %v1619_v4 = vshrl.u32 %v1479_v51, 16 }
  0xfb   : > { %7682 = vmatprep.subr.bf16.mxu1 %v8424_v36  ;;  %7968 = vmatprep.subr.bf16.mxu0 %v8423_v31  ;;  %v6665_v39 = vcombine.low %v1572_v60, %v1590_v34  ;;  %v1592_v46 = vshrl.u32 %v1476_v49, 16  ;;  %v1595_v53 = vshll.u32 %v1476_v49, 16  ;;  %v4705_v54 = vsel %vm8815_vm14, %v4696_v41, %v4704_v35  ;;  %v1797_v49 = vld [vmem:[%s8640_s6] sm:$0x8]  ;;  %v1798_v30 = vld [vmem:[%s8640_s6 + $0x4] sm:$0x7] }
  0xfc   : > { %v1606_v2 = vrot.slane %v1604_v56, 7  ;;  %v1612_v7 = vrot.slane %v1610_v63, 6  ;;  %v1622_v8 = vshll.u32 %v1479_v51, 16  ;;  %v1621_v13 = vrot.slane %v1619_v4, 6  ;;  %v1800_v34 = vld [vmem:[%s8640_s6 + $0xc] sm:$0x7] }
  0xfd   : > { %7674 = vmatprep.mubr.bf16.mxu1 %v6665_v39  ;;  %v1594_v52 = vrot.slane %v1592_v46, 6  ;;  %v1597_v61 = vrot.slane %v1595_v53, 7  ;;  %v4728_v23 = vshll.u32 %v7003_v57, 16  ;;  %v4734_v24 = vshrl.u32 %v7004_v0, 16  ;;  %v8433_v35 = vld [vmem:[#allocation3 + $0x4b0] sm:$0xff]  }
  0xfe   : > { %7683 = vmatpush3.bf16.msra.mxu1 %v8424_v36  ;;  %7969 = vmatpush3.bf16.msra.mxu0 %v8423_v31  ;;  %v4716_v36 = vshrl.u32 %v7002_v9, 16  ;;  %v4713_v31 = vor.u32 %v4712_v42, %v4709_v28  ;;  %v4725_v9 = vshrl.u32 %v7003_v57, 16  ;;  %v1607_v11 = vor.u32 %v1606_v2, %v1603_v62  ;;  %v7019_v41 = vld [vmem:[%s8640_s6 + $0x10] sm:$0xc]  ;;  %v7022_v56 = vld [vmem:[%s8640_s6 + $0x1c] sm:$0x3] }
  0xff   : > { %7684 = vmatprep.subr.bf16.mxu1 %v8426_v59  ;;  %7970 = vmatprep.subr.bf16.mxu0 %v8425_v12  ;;  %v1598_v6 = vor.u32 %v1597_v61, %v1594_v52  ;;  %v1624_v18 = vrot.slane %v1622_v8, 7  ;;  %v4737_v25 = vshll.u32 %v7004_v0, 16  ;;  %v4743_v28 = vshrl.u32 %v7005_v14, 16  ;;  %v7021_v52 = vld [vmem:[%s8640_s6 + $0x18] sm:$0xc] }
 0x100   : > { %v4718_v47 = vrot.slane %v4716_v36, 5  ;;  %v4714_v1 = vrot.slane %v4713_v31, 4  ;;  %v4727_v20 = vrot.slane %v4725_v9, 5  ;;  %v4746_v29 = vshll.u32 %v7005_v14, 16  ;;  %v9028_v31 = vld [vmem:[#allocation3 + $0x1c0] sm:$0xff]   ;;  %v8435_v9 = vld [vmem:[#allocation3 + $0x4b8] sm:$0xff]  }
 0x101   : > { %v1599_v17 = vrot.slane %v1598_v6, 4  ;;  %v1625_v27 = vor.u32 %v1624_v18, %v1621_v13  ;;  %v4730_v37 = vrot.slane %v4728_v23, 6  ;;  %v4739_v39 = vrot.slane %v4737_v25, 6  ;;  %v1801_v2 = vld [vmem:[%s8640_s6 + $0x10] sm:$0x8] }
 0x102   : > { %7685 = vmatpush3.bf16.msra.mxu1 %v8426_v59  ;;  %7971 = vmatpush3.bf16.msra.mxu0 %v8425_v12  ;;  %v4722_v59 = vor.u32 %v4721_v48, %v4718_v47  ;;  %v1615_v12 = vrot.slane %v1613_v3, 7  ;;  %v4745_v42 = vrot.slane %v4743_v28, 5  ;;  %v4748_v44 = vrot.slane %v4746_v29, 6  ;;  %v7020_v48 = vld [vmem:[%s8640_s6 + $0x14] sm:$0x3] }
 0x103   : > { %7686 = vmatprep.subr.bf16.mxu1 %v8428_v21  ;;  %7972 = vmatprep.subr.bf16.mxu0 %v8427_v33  ;;  %v1608_v60 = vsel %vm8649_vm2, %v1599_v17, %v1607_v11  ;;  %v4752_v46 = vshrl.u32 %v7006_v19, 16  ;;  %v4755_v47 = vshll.u32 %v7006_v19, 16  ;;  %v4731_v53 = vor.u32 %v4730_v37, %v4727_v20  ;;  %v1803_v13 = vld [vmem:[%s8640_s6 + $0x18] sm:$0x8]  ;;  %v1804_v14 = vld [vmem:[%s8640_s6 + $0x1c] sm:$0x7] }
 0x104   : > { %v4723_v10 = vsel %vm8815_vm14, %v4714_v1, %v4722_v59  ;;  %v1834_v63 = vrot.slane %v1798_v30, 7  ;;  %v1838_v1 = vrot.slane %v1800_v34, 7  ;;  %v4964_v6 = vrot.slane %v7020_v48, 6  ;;  %v7023_v19 = vld [vmem:[%s8640_s6 + $0x20] sm:$0xc] }
 0x105   : > { %v7009_v16 = vcombine.low %v4705_v54, %v4723_v10  ;;  %v6675_v54 = vrot.slane %v1797_v49, 11  ;;  %v4754_v59 = vrot.slane %v4752_v46, 5  ;;  %v4757_v61 = vrot.slane %v4755_v47, 6  ;;  %v7024_v20 = vld [vmem:[%s8640_s6 + $0x24] sm:$0x3]  ;;  %v8439_v46 = vld [vmem:[#allocation3 + $0x4c8] sm:$0xff]  }
 0x106   : > { %7687 = vmatpush3.bf16.msra.mxu1 %v8428_v21  ;;  %7973 = vmatpush3.bf16.msra.mxu0 %v8427_v33  ;;  %v1616_v21 = vor.u32 %v1615_v12, %v1612_v7  ;;  %v1799_v33 = vld [vmem:[%s8640_s6 + $0x8] sm:$0x8]  ;;  %v4732_v62 = vrot.slane %v4731_v53, 4  ;;  %v1802_v7 = vld [vmem:[%s8640_s6 + $0x14] sm:$0x7]  ;;  %v7036_v12 = vrot.slane %v7021_v52, 10 }
 0x107   : > { %7688 = vmatprep.subr.bf16.mxu1 %v8430_v38  ;;  %7974 = vmatprep.subr.bf16.mxu0 %v8429_v58  ;;  %v6676_v0 = vrot.slane %v1799_v33, 11  ;;  %v4758_v4 = vor.u32 %v4757_v61, %v4754_v59  ;;  %v1835_v10 = vsel %vm8690_vm7, %v6675_v54, %v1834_v63  ;;  %v4968_v18 = vrot.slane %v7022_v56, 6  ;;  %v7026_v28 = vld [vmem:[%s8640_s6 + $0x2c] sm:$0x3]  ;;  %v8440_v47 = vld [vmem:[#allocation3 + $0x1d0] sm:$0xff]  }
 0x108   : > { %7962 = vmatprep.mubr.bf16.mxu0 %v7009_v16  ;;  %v1617_v36 = vrot.slane %v1616_v21, 4  ;;  %v6677_v23 = vrot.slane %v1801_v2, 11  ;;  %v6678_v25 = vrot.slane %v1803_v13, 11  ;;  %v7037_v29 = vrot.slane %v7023_v19, 10  ;;  %v1805_v48 = vld [vmem:[%s8640_s6 + $0x20] sm:$0x8] }
 0x109   : > { %v1839_v11 = vsel %vm8690_vm7, %v6676_v0, %v1838_v1  ;;  %v4969_v49 = vsel %vm8880_vm1, %v7036_v12, %v4968_v18  ;;  %v4972_v30 = vrot.slane %v7024_v20, 6  ;;  %v4976_v37 = vrot.slane %v7026_v28, 6  ;;  %v8441_v53 = vld [vmem:[#allocation3 + $0x4d0] sm:$0xff]   ;;  %v1808_v54 = vld [vmem:[%s8640_s6 + $0x2c] sm:$0x7] }
 0x10a   : > { %7689 = vmatpush3.bf16.msra.mxu1 %v8430_v38  ;;  %v4736_v38 = vrot.slane %v4734_v24, 5  ;;  %7975 = vmatpush3.bf16.msra.mxu0 %v8429_v58  ;;  %v1626_v51 = vsel %vm8649_vm2, %v1617_v36, %v1625_v27  ;;  %v4749_v58 = vor.u32 %v4748_v44, %v4745_v42  ;;  %v6683_v16 = vcombine.low %v1835_v10, %v1839_v11  ;;  %v7027_v61 = vld [vmem:[%s8640_s6 + $0x30] sm:$0xc]  ;;  %v7029_v0 = vld [vmem:[%s8640_s6 + $0x38] sm:$0xc] }
 0x10b   : > { %7690 = vmatprep.subr.bf16.mxu1 %v8432_v5  ;;  %7976 = vmatprep.subr.bf16.mxu0 %v8431_v15  ;;  %v6666_v57 = vcombine.low %v1608_v60, %v1626_v51  ;;  %v1842_v24 = vrot.slane %v1802_v7, 7  ;;  %v8437_v60 = vld [vmem:[#allocation3 + $0x4c0] sm:$0xff]   ;;  %v1846_v27 = vrot.slane %v1804_v14, 7  ;;  %v6679_v52 = vrot.slane %v1805_v48, 11  ;;  %v7030_v1 = vld [vmem:[%s8640_s6 + $0x3c] sm:$0x3] }
 0x10c   : > { %v4740_v50 = vor.u32 %v4739_v39, %v4736_v38  ;;  %v4750_v3 = vrot.slane %v4749_v58, 4  ;;  %v4973_v39 = vsel %vm8880_vm1, %v7037_v29, %v4972_v30  ;;  %v1806_v51 = vld [vmem:[%s8640_s6 + $0x24] sm:$0x7]  ;;  %v1854_v58 = vrot.slane %v1808_v54, 7  ;;  %v1809_v10 = vld [vmem:[%s8640_s6 + $0x30] sm:$0x8] }
 0x10d   : > { %7675 = vmatmul.mubr.bf16.gmra.mrb[4].mxu1 %v6666_v57  ;;  %v1843_v34 = vsel %vm8690_vm7, %v6677_v23, %v1842_v24  ;;  %v1847_v38 = vsel %vm8690_vm7, %v6678_v25, %v1846_v27  ;;  %v1850_v56 = vrot.slane %v1806_v51, 7  ;;  %v7039_v2 = vrot.slane %v7027_v61, 10  ;;  %v1810_v11 = vld [vmem:[%s8640_s6 + $0x34] sm:$0x7]  ;;  %v1811_v13 = vld [vmem:[%s8640_s6 + $0x38] sm:$0x8] }
 0x10e   : > { %7691 = vmatpush3.bf16.msra.mxu1 %v8432_v5  ;;  %7977 = vmatpush3.bf16.msra.mxu0 %v8431_v15  ;;  %v7035_v5 = vrot.slane %v7019_v41, 10  ;;  %v4741_v8 = vsel %vm8815_vm14, %v4732_v62, %v4740_v50  ;;  %v4759_v15 = vsel %vm8815_vm14, %v4750_v3, %v4758_v4  ;;  %v6684_v41 = vcombine.low %v1843_v34, %v1847_v38  ;;  %v1807_v50 = vld [vmem:[%s8640_s6 + $0x28] sm:$0x8]  ;;  %v7028_v62 = vld [vmem:[%s8640_s6 + $0x34] sm:$0x3]  ;;  %v8443_v4 = vld [vmem:[#allocation3 + $0x4d8] sm:$0xff]  }
 0x10f   : > { %7692 = vmatprep.subr.bf16.mxu1 %v8434_v26  ;;  %7978 = vmatprep.subr.bf16.mxu0 %v8433_v35  ;;  %v7010_v21 = vcombine.low %v4741_v8, %v4759_v15  ;;  %v6680_v57 = vrot.slane %v1807_v50, 11  ;;  %v1851_v59 = vsel %vm8690_vm7, %v6679_v52, %v1850_v56  ;;  %v4980_v3 = vrot.slane %v7028_v62, 6  ;;  %v8444_v8 = vld [vmem:[#allocation3 + $0x1e0] sm:$0xff]   ;;  %v1812_v14 = vld [vmem:[%s8640_s6 + $0x3c] sm:$0x7]  ;;  %v8446_v30 = vld [vmem:[#allocation3 + $0x1e8] sm:$0xff]  }
 0x110   : > { %v4965_v17 = vsel %vm8880_vm1, %v7035_v5, %v4964_v6  ;;  %7694 = vmatprep.mubr.bf16.mxu1 %v6683_v16  ;;  %v7040_v6 = vrot.slane %v7029_v0, 10  ;;  %v4984_v7 = vrot.slane %v7030_v1, 6  ;;  %v6681_v15 = vrot.slane %v1809_v10, 11  ;;  %v7031_v20 = vld [vmem:[%s8640_s6 + $0x40] sm:$0xc] }
 0x111   : > { %7963 = vmatmul.mubr.bf16.gmra.mrb[4].mxu0 %v7010_v21  ;;  %v7043_v33 = vcombine.low %v4965_v17, %v4969_v49  ;;  %v1855_v63 = vsel %vm8690_vm7, %v6680_v57, %v1854_v58  ;;  %v1858_v16 = vrot.slane %v1810_v11, 7  ;;  %v6682_v18 = vrot.slane %v1811_v13, 11  ;;  %v7032_v21 = vld [vmem:[%s8640_s6 + $0x44] sm:$0x3]  ;;  %v7033_v25 = vld [vmem:[%s8640_s6 + $0x48] sm:$0xc] }
 0x112   : > { %7693 = vmatpush3.bf16.msra.mxu1 %v8434_v26  ;;  %v7025_v26 = vld [vmem:[%s8640_s6 + $0x28] sm:$0xc]  ;;  %7979 = vmatpush3.bf16.msra.mxu0 %v8433_v35  ;;  %v6685_v5 = vcombine.low %v1851_v59, %v1855_v63  ;;  %v4985_v12 = vsel %vm8880_vm1, %v7040_v6, %v4984_v7  ;;  %v1862_v19 = vrot.slane %v1812_v14, 7  ;;  %v8445_v23 = vld [vmem:[#allocation3 + $0x4e0] sm:$0xff]   ;;  %v7041_v49 = vrot.slane %v7031_v20, 10  ;;  %v8450_v59 = vld [vmem:[#allocation3 + $0x1f8] sm:$0xff]  }
 0x113   : > { %7702 = vmatprep.subr.bf16.mxu1 %v9028_v31  ;;  %7980 = vmatprep.subr.bf16.mxu0 %v8435_v9  ;;  %v7038_v36 = vrot.slane %v7025_v26, 10  ;;  %v8438_v35 = vld [vmem:[#allocation3 + $0x1c8] sm:$0xff]   ;;  %v1859_v24 = vsel %vm8690_vm7, %v6681_v15, %v1858_v16  ;;  %v7042_v28 = vrot.slane %v7033_v25, 10  ;;  %v7059_v6 = vld [vmem:[%s8640_s6 + $0x20] sm:$0xc] }
 0x114   : > { %7982 = vmatprep.mubr.bf16.mxu0 %v7043_v33  ;;  %v7034_v26 = vld [vmem:[%s8640_s6 + $0x4c] sm:$0x3]  ;;  %v1863_v27 = vsel %vm8690_vm7, %v6682_v18, %v1862_v19  ;;  %v8452_v38 = vld [vmem:[%s8640_s6 + $0x8] ss:$8 sps:$4 sm:$0xff]   ;;  %v7060_v7 = vld [vmem:[%s8640_s6 + $0x24] sm:$0x7] }
 0x115   : > { %v4977_v42 = vsel %vm8880_vm1, %v7038_v36, %v4976_v37  ;;  %7695 = vmatmul.mubr.bf16.vlgmr.msra.gmra.mrb[0].mxu1 %v6684_v41  ;;  %v4992_v29 = vrot.slane %v7034_v26, 6  ;;  %v6686_v33 = vcombine.low %v1859_v24, %v1863_v27  ;;  %v8447_v37 = vld [vmem:[#allocation3 + $0x4e8] sm:$0xff]   ;;  %v7055_v41 = vld [vmem:[%s8640_s6 + $0x10] sm:$0xc]  ;;  %v5217_v13 = vshrl.u32 %v7059_v6, 16  ;;  %v8453_v18 = vld [vmem:[#allocation3 + $0x200] sm:$0xff]  }
 0x116   : > { %7981 = vmatpush3.bf16.msra.mxu0 %v8435_v9  ;;  %v7044_v44 = vcombine.low %v4973_v39, %v4977_v42  ;;  %7703 = vmatpush3.bf16.msra.mxu1 %v9028_v31  ;;  %v8442_v31 = vld [vmem:[#allocation3 + $0x1d8] sm:$0xff]   ;;  %v4981_v9 = vsel %vm8880_vm1, %v7039_v2, %v4980_v3  ;;  %v8448_v39 = vld [vmem:[#allocation3 + $0x1f0] sm:$0xff]   ;;  %v5184_v48 = vshll.u32 %v7055_v41, 16  ;;  %v7061_v11 = vld [vmem:[%s8640_s6 + $0x28] sm:$0xc]  ;;  %v5220_v15 = vshll.u32 %v7059_v6, 16 }
 0x117   : > { %7990 = vmatprep.subr.bf16.mxu0 %v8437_v60  ;;  %7704 = vmatprep.subr.bf16.mxu1 %v8438_v35  ;;  %v7045_v17 = vcombine.low %v4981_v9, %v4985_v12  ;;  %v4993_v36 = vsel %vm8880_vm1, %v7042_v28, %v4992_v29  ;;  %v7056_v42 = vld [vmem:[%s8640_s6 + $0x14] sm:$0x7]  ;;  %v7062_v12 = vld [vmem:[%s8640_s6 + $0x2c] sm:$0x7]  ;;  %v5226_v16 = vshrl.u32 %v7060_v7, 16  ;;  %v5238_v24 = vshll.u32 %v7061_v11, 16 }
 0x118   : > { %7698 = vmatprep.mubr.bf16.mxu1 %v6685_v5  ;;  %v5190_v51 = vshrl.u32 %v7056_v42, 16  ;;  %v5186_v56 = vrot.slane %v5184_v48, 7  ;;  %v8455_v20 = vld [vmem:[%s8640_s6 + $0x18] ss:$8 sps:$4 sm:$0xff]   ;;  %v5222_v26 = vrot.slane %v5220_v15, 7  ;;  %v8458_v48 = vld [vmem:[#allocation3 + $0x210] sm:$0xff]  }
 0x119   : > { %7983 = vmatmul.mubr.bf16.vlgmr.msra.gmra.mrb[0].mxu0 %v7044_v44  ;;  %v7057_v44 = vld [vmem:[%s8640_s6 + $0x18] sm:$0xc]  ;;  %v5240_v29 = vrot.slane %v5238_v24, 7  ;;  %v8462_v6 = vld [vmem:[#allocation3 + $0x220] sm:$0xff]   ;;  %v8464_v15 = vld [vmem:[#allocation3 + $0x228] sm:$0xff]  }
 0x11a   : > { %7991 = vmatpush3.bf16.msra.mxu0 %v8437_v60  ;;  %7705 = vmatpush3.bf16.msra.mxu1 %v8438_v35  ;;  %v4988_v60 = vrot.slane %v7032_v21, 6  ;;  %v5199_v50 = vshrl.u32 %v7057_v44, 16  ;;  %v5202_v54 = vshll.u32 %v7057_v44, 16  ;;  %v5192_v61 = vrot.slane %v5190_v51, 6  ;;  %v7069_v24 = vld [vmem:[%s8640_s6 + $0x48] sm:$0xc] }
 0x11b   : > { %7992 = vmatprep.subr.bf16.mxu0 %v8439_v46  ;;  %7706 = vmatprep.subr.bf16.mxu1 %v8440_v47  ;;  %v5219_v21 = vrot.slane %v5217_v13, 6 }
 0x11c   : > { %v4989_v34 = vsel %vm8880_vm1, %v7041_v49, %v4988_v60  ;;  %7986 = vmatprep.mubr.bf16.mxu0 %v7045_v17  ;;  %v5201_v63 = vrot.slane %v5199_v50, 6  ;;  %v5204_v0 = vrot.slane %v5202_v54, 7  ;;  %v5229_v17 = vshll.u32 %v7060_v7, 16  ;;  %v8457_v50 = vld [vmem:[#allocation3 + $0x508] sm:$0xff]  }
 0x11d   : > { %7699 = vmatmul.mubr.bf16.gmra.mrb[4].mxu1 %v6686_v33  ;;  %v7046_v35 = vcombine.low %v4989_v34, %v4993_v36  ;;  %v5228_v49 = vrot.slane %v5226_v16, 6  ;;  %v8454_v33 = vld [vmem:[#allocation3 + $0x500] sm:$0xff]   ;;  %v5223_v34 = vor.u32 %v5222_v26, %v5219_v21  ;;  %v8466_v54 = vld [vmem:[%s8640_s6 + $0x28] ss:$8 sps:$4 sm:$0xff]  }
 0x11e   : > { %7993 = vmatpush3.bf16.msra.mxu0 %v8439_v46  ;;  %7707 = vmatpush3.bf16.msra.mxu1 %v8440_v47  ;;  %v7058_v46 = vld [vmem:[%s8640_s6 + $0x1c] sm:$0x7]  ;;  %v5181_v47 = vshrl.u32 %v7055_v41, 16  ;;  %v5205_v5 = vor.u32 %v5204_v0, %v5201_v63  ;;  %v5231_v60 = vrot.slane %v5229_v17, 7 }
 0x11f   : > { %7994 = vmatprep.subr.bf16.mxu0 %v8441_v53  ;;  %7708 = vmatprep.subr.bf16.mxu1 %v8442_v31  ;;  %v5208_v57 = vshrl.u32 %v7058_v46, 16  ;;  %v5211_v58 = vshll.u32 %v7058_v46, 16  ;;  %v5224_v41 = vrot.slane %v5223_v34, 4  ;;  %v8463_v34 = vld [vmem:[#allocation3 + $0x520] sm:$0xff]  }
 0x120   : > { %7718 = vmatprep.mubr.bf16.mxu1 %v8452_v38  ;;  %v5183_v52 = vrot.slane %v5181_v47, 6  ;;  %v5206_v14 = vrot.slane %v5205_v5, 4  ;;  %v5232_v36 = vor.u32 %v5231_v60, %v5228_v49  ;;  %v8461_v5 = vld [vmem:[#allocation3 + $0x518] sm:$0xff]  }
 0x121   : > { %7987 = vmatmul.mubr.bf16.gmra.mrb[4].mxu0 %v7046_v35  ;;  %v5210_v2 = vrot.slane %v5208_v57, 6  ;;  %v5213_v3 = vrot.slane %v5211_v58, 7  ;;  %v7063_v57 = vld [vmem:[%s8640_s6 + $0x30] sm:$0xc]  ;;  %v7064_v58 = vld [vmem:[%s8640_s6 + $0x34] sm:$0x7] }
 0x122   : > { %7995 = vmatpush3.bf16.msra.mxu0 %v8441_v53  ;;  %7709 = vmatpush3.bf16.msra.mxu1 %v8442_v31  ;;  %v5193_v53 = vshll.u32 %v7056_v42, 16  ;;  %v8449_v31 = vld [vmem:[#allocation3 + $0x4f0] sm:$0xff]   ;;  %v5187_v1 = vor.u32 %v5186_v56, %v5183_v52  ;;  %v5233_v46 = vsel %vm8649_vm2, %v5224_v41, %v5232_v36  ;;  %v8460_v56 = vld [vmem:[#allocation3 + $0x218] sm:$0xff]   ;;  %v5262_v63 = vshrl.u32 %v7064_v58, 16 }
 0x123   : > { %7996 = vmatprep.subr.bf16.mxu0 %v8443_v4  ;;  %7710 = vmatprep.subr.bf16.mxu1 %v8444_v8  ;;  %v5214_v10 = vor.u32 %v5213_v3, %v5210_v2  ;;  %v8459_v52 = vld [vmem:[#allocation3 + $0x510] sm:$0xff]   ;;  %v5265_v0 = vshll.u32 %v7064_v58, 16 }
 0x124   : > { %v5195_v62 = vrot.slane %v5193_v53, 7  ;;  %v5188_v9 = vrot.slane %v5187_v1, 4  ;;  %v6717_v58 = vld [vmem:[%s8640_s6 + $0x10] sm:$0xf] }
 0x125   : > { %v5215_v25 = vsel %vm8649_vm2, %v5206_v14, %v5214_v10  ;;  %v5267_v10 = vrot.slane %v5265_v0, 7 }
 0x126   : > { %7997 = vmatpush3.bf16.msra.mxu0 %v8443_v4  ;;  %7711 = vmatpush3.bf16.msra.mxu1 %v8444_v8  ;;  %v5196_v4 = vor.u32 %v5195_v62, %v5192_v61  ;;  %v8451_v8 = vld [vmem:[#allocation3 + $0x4f8] sm:$0xff]   ;;  %v5253_v61 = vshrl.u32 %v7063_v57, 16  ;;  %v5256_v62 = vshll.u32 %v7063_v57, 16 }
 0x127   : > { %7998 = vmatprep.subr.bf16.mxu0 %v8445_v23  ;;  %7712 = vmatprep.subr.bf16.mxu1 %v8446_v30 }
 0x128   : > { %v5197_v19 = vsel %vm8649_vm2, %v5188_v9, %v5196_v4  ;;  %v5255_v7 = vrot.slane %v5253_v61, 6  ;;  %v5264_v9 = vrot.slane %v5262_v63, 6 }
 0x129   : > { %v7071_v27 = vcombine.low %v5197_v19, %v5215_v25  ;;  %v7067_v19 = vld [vmem:[%s8640_s6 + $0x40] sm:$0xc]  ;;  %v7070_v25 = vld [vmem:[%s8640_s6 + $0x4c] sm:$0x7] }
 0x12a   : > { %7999 = vmatpush3.bf16.msra.mxu0 %v8445_v23  ;;  %7713 = vmatpush3.bf16.msra.mxu1 %v8446_v30  ;;  %v5235_v23 = vshrl.u32 %v7061_v11, 16  ;;  %v5244_v30 = vshrl.u32 %v7062_v12, 16  ;;  %v5268_v17 = vor.u32 %v5267_v10, %v5264_v9  ;;  %v5289_v49 = vshrl.u32 %v7067_v19, 16 }
 0x12b   : > { %8000 = vmatprep.subr.bf16.mxu0 %v8447_v37  ;;  %7714 = vmatprep.subr.bf16.mxu1 %v8448_v39  ;;  %v5292_v60 = vshll.u32 %v7067_v19, 16  ;;  %v2255_v10 = vshll.u32 %v6717_v58, 16 }
 0x12c   : > { %v5237_v28 = vrot.slane %v5235_v23, 6  ;;  %v5246_v38 = vrot.slane %v5244_v30, 6  ;;  %8006 = vmatprep.mubr.bf16.mxu0 %v7071_v27  ;;  %v7068_v23 = vld [vmem:[%s8640_s6 + $0x44] sm:$0x7]  ;;  %v5307_v30 = vshrl.u32 %v7069_v24, 16 }
 0x12d   : > { %v5298_v27 = vshrl.u32 %v7068_v23, 16 }
 0x12e   : > { %8001 = vmatpush3.bf16.msra.mxu0 %v8447_v37  ;;  %7715 = vmatpush3.bf16.msra.mxu1 %v8448_v39  ;;  %v5247_v37 = vshll.u32 %v7062_v12, 16  ;;  %v5241_v35 = vor.u32 %v5240_v29, %v5237_v28  ;;  %v8456_v39 = vld [vmem:[#allocation3 + $0x208] sm:$0xff]   ;;  %v5301_v29 = vshll.u32 %v7068_v23, 16 }
 0x12f   : > { %8002 = vmatprep.subr.bf16.mxu0 %v8449_v31  ;;  %7716 = vmatprep.subr.bf16.mxu1 %v8450_v59 }
 0x130   : > { %v5249_v42 = vrot.slane %v5247_v37, 7  ;;  %v5242_v44 = vrot.slane %v5241_v35, 4  ;;  %v5291_v37 = vrot.slane %v5289_v49, 6  ;;  %v5294_v35 = vrot.slane %v5292_v60, 7 }
 0x132   : > { %8003 = vmatpush3.bf16.msra.mxu0 %v8449_v31  ;;  %7717 = vmatpush3.bf16.msra.mxu1 %v8450_v59  ;;  %v5250_v47 = vor.u32 %v5249_v42, %v5246_v38  ;;  %v7065_v31 = vld [vmem:[%s8640_s6 + $0x38] sm:$0xc]  ;;  %v7066_v59 = vld [vmem:[%s8640_s6 + $0x3c] sm:$0x7]  ;;  %v5300_v38 = vrot.slane %v5298_v27, 6  ;;  %v5303_v42 = vrot.slane %v5301_v29, 7 }
 0x133   : > { %8004 = vmatprep.subr.bf16.mxu0 %v8451_v8  ;;  %7726 = vmatprep.subr.bf16.mxu1 %v8453_v18  ;;  %v5271_v1 = vshrl.u32 %v7065_v31, 16  ;;  %v5274_v2 = vshll.u32 %v7065_v31, 16  ;;  %v5280_v3 = vshrl.u32 %v7066_v59, 16  ;;  %v5283_v4 = vshll.u32 %v7066_v59, 16  ;;  %v6718_v31 = vld [vmem:[%s8640_s6 + $0x14] sm:$0x1] }
 0x134   : > { %v5251_v51 = vsel %vm8649_vm2, %v5242_v44, %v5250_v47  ;;  %v5309_v44 = vrot.slane %v5307_v30, 6  ;;  %v8465_v47 = vld [vmem:[#allocation3 + $0x528] sm:$0xff]   ;;  %v6719_v29 = vld [vmem:[%s8640_s6 + $0x18] sm:$0xf]  ;;  %v6720_v30 = vld [vmem:[%s8640_s6 + $0x1c] sm:$0x1] }
 0x135   : > { %7719 = vmatmul.mubr.bf16.vlgmr.msra.gmra.mrb[0].mxu1 %v8455_v20  ;;  %v7072_v53 = vcombine.low %v5233_v46, %v5251_v51  ;;  %v5273_v11 = vrot.slane %v5271_v1, 6  ;;  %v5276_v12 = vrot.slane %v5274_v2, 7  ;;  %v5282_v13 = vrot.slane %v5280_v3, 6  ;;  %v8470_v1 = vld [vmem:[#allocation3 + $0x238] sm:$0xff]  }
 0x136   : > { %8005 = vmatpush3.bf16.msra.mxu0 %v8451_v8  ;;  %7727 = vmatpush3.bf16.msra.mxu1 %v8453_v18  ;;  %v5258_v8 = vrot.slane %v5256_v62, 7  ;;  %v5285_v14 = vrot.slane %v5283_v4, 7  ;;  %v8469_v18 = vld [vmem:[%s8640_s6 + $0x38] ss:$8 sps:$4 sm:$0xff]   ;;  %v5295_v51 = vor.u32 %v5294_v35, %v5291_v37  ;;  %v2266_v37 = vshrl.u32 %v6719_v29, 16 }
 0x137   : > { %8014 = vmatprep.subr.bf16.mxu0 %v8454_v33  ;;  %7728 = vmatprep.subr.bf16.mxu1 %v8456_v39  ;;  %v5277_v20 = vor.u32 %v5276_v12, %v5273_v11  ;;  %v7083_v11 = vld [vmem:[%s8640_s6 + $0x10] sm:$0x8]  ;;  %v7084_v12 = vld [vmem:[%s8640_s6 + $0x14] sm:$0x7]  ;;  %v2269_v35 = vshll.u32 %v6719_v29, 16 }
 0x138   : > { %7722 = vmatprep.mubr.bf16.mxu1 %v8466_v54  ;;  %v5259_v16 = vor.u32 %v5258_v8, %v5255_v7  ;;  %v5286_v21 = vor.u32 %v5285_v14, %v5282_v13  ;;  %v6715_v54 = vld [vmem:[%s8640_s6 + $0x8] sm:$0xf]  ;;  %v5296_v62 = vrot.slane %v5295_v51, 4  ;;  %v5528_v23 = vrot.slane %v7084_v12, 7 }
 0x139   : > { %8007 = vmatmul.mubr.bf16.vlgmr.msra.gmra.mrb[0].mxu0 %v7072_v53  ;;  %v5278_v28 = vrot.slane %v5277_v20, 4  ;;  %v5316_v53 = vshrl.u32 %v7070_v25, 16  ;;  %v2238_v59 = vshrl.u32 %v6715_v54, 16  ;;  %v2241_v61 = vshll.u32 %v6715_v54, 16  ;;  %v8475_v12 = vld [vmem:[#allocation3 + $0x548] sm:$0xff]  }
 0x13a   : > { %7729 = vmatpush3.bf16.msra.mxu1 %v8456_v39  ;;  %8015 = vmatpush3.bf16.msra.mxu0 %v8454_v33  ;;  %v5260_v26 = vrot.slane %v5259_v16, 4  ;;  %v5310_v33 = vshll.u32 %v7069_v24, 16  ;;  %v8467_v39 = vld [vmem:[#allocation3 + $0x230] sm:$0xff]   ;;  %v2261_v16 = vshll.u32 %v6718_v31, 16  ;;  %v2257_v20 = vrot.slane %v2255_v10, 5 }
 0x13b   : > { %7730 = vmatprep.subr.bf16.mxu1 %v8458_v48  ;;  %8016 = vmatprep.subr.bf16.mxu0 %v8457_v50  ;;  %v5287_v41 = vsel %vm8649_vm2, %v5278_v28, %v5286_v21  ;;  %v5318_v63 = vrot.slane %v5316_v53, 6  ;;  %v2240_v4 = vrot.slane %v2238_v59, 4  ;;  %v7099_v21 = vrot.slane %v7083_v11, 11 }
 0x13c   : > { %v5269_v36 = vsel %vm8649_vm2, %v5260_v26, %v5268_v17  ;;  %v5312_v46 = vrot.slane %v5310_v33, 7  ;;  %v7086_v17 = vld [vmem:[%s8640_s6 + $0x1c] sm:$0x7]  ;;  %v9138_v26 = vld [vmem:[#allocation3 + $0x240] sm:$0xff]   ;;  %v2263_v27 = vrot.slane %v2261_v16, 5  ;;  %v2271_v51 = vrot.slane %v2269_v35, 5 }
 0x13d   : > { %7723 = vmatmul.mubr.bf16.gmra.mrb[4].mxu1 %v8469_v18  ;;  %v8468_v18 = vld [vmem:[#allocation3 + $0x530] sm:$0xff]   ;;  %v5529_v28 = vsel %vm8690_vm7, %v7099_v21, %v5528_v23  ;;  %v5532_v32 = vrot.slane %v7086_v17, 7  ;;  %v8474_v16 = vld [vmem:[#allocation3 + $0x248] sm:$0xff]   ;;  %v8478_v35 = vld [vmem:[#allocation3 + $0x258] sm:$0xff]  }
 0x13e   : > { %7731 = vmatpush3.bf16.msra.mxu1 %v8458_v48  ;;  %8017 = vmatpush3.bf16.msra.mxu0 %v8457_v50  ;;  %v7073_v48 = vcombine.low %v5269_v36, %v5287_v41  ;;  %v5319_v50 = vshll.u32 %v7070_v25, 16  ;;  %v5313_v57 = vor.u32 %v5312_v46, %v5309_v44  ;;  %v6722_v36 = vld [vmem:[%s8640_s6 + $0x24] sm:$0x1]  ;;  %v7087_v46 = vld [vmem:[%s8640_s6 + $0x20] sm:$0x8]  ;;  %v8477_v17 = vld [vmem:[#allocation3 + $0x550] sm:$0xff]  }
 0x13f   : > { %7732 = vmatprep.subr.bf16.mxu1 %v8460_v56  ;;  %8018 = vmatprep.subr.bf16.mxu0 %v8459_v52  ;;  %v6726_v21 = vld [vmem:[%s8640_s6 + $0x34] sm:$0x1] }
 0x140   : > { %8010 = vmatprep.mubr.bf16.mxu0 %v7073_v48  ;;  %v5321_v0 = vrot.slane %v5319_v50, 7  ;;  %v5314_v3 = vrot.slane %v5313_v57, 4  ;;  %v2268_v48 = vrot.slane %v2266_v37, 4  ;;  %v7088_v50 = vld [vmem:[%s8640_s6 + $0x24] sm:$0x7]  ;;  %v2289_v57 = vshll.u32 %v6722_v36, 16 }
 0x141   : > { %v7092_v36 = vld [vmem:[%s8640_s6 + $0x34] sm:$0x7]  ;;  %v7093_v37 = vld [vmem:[%s8640_s6 + $0x38] sm:$0x8] }
 0x142   : > { %7733 = vmatpush3.bf16.msra.mxu1 %v8460_v56  ;;  %8019 = vmatpush3.bf16.msra.mxu0 %v8459_v52  ;;  %v6716_v52 = vld [vmem:[%s8640_s6 + $0xc] sm:$0x1]  ;;  %v5304_v56 = vor.u32 %v5303_v42, %v5300_v38  ;;  %v5322_v8 = vor.u32 %v5321_v0, %v5318_v63  ;;  %v8471_v38 = vld [vmem:[#allocation3 + $0x538] sm:$0xff]   ;;  %v2275_v42 = vshll.u32 %v6720_v30, 16  ;;  %v2272_v59 = vor.u32 %v2271_v51, %v2268_v48  ;;  %v8473_v0 = vld [vmem:[#allocation3 + $0x540] sm:$0xff]  }
 0x143   : > { %7734 = vmatprep.subr.bf16.mxu1 %v8462_v6  ;;  %8020 = vmatprep.subr.bf16.mxu0 %v8461_v5  ;;  %v2247_v2 = vshll.u32 %v6716_v52, 16  ;;  %v7101_v63 = vrot.slane %v7087_v46, 11  ;;  %v7091_v30 = vld [vmem:[%s8640_s6 + $0x30] sm:$0x8]  ;;  %v8480_v51 = vld [vmem:[#allocation3 + $0x260] sm:$0xff]  }
 0x144   : > { %v5305_v7 = vsel %vm8649_vm2, %v5296_v62, %v5304_v56  ;;  %v5323_v19 = vsel %vm8649_vm2, %v5314_v3, %v5322_v8  ;;  %v2277_v52 = vrot.slane %v2275_v42, 5  ;;  %v7090_v62 = vld [vmem:[%s8640_s6 + $0x2c] sm:$0x7]  ;;  %v5544_v42 = vrot.slane %v7092_v36, 7 }
 0x145   : > { %v2249_v9 = vrot.slane %v2247_v2, 5  ;;  %v7074_v24 = vcombine.low %v5305_v7, %v5323_v19  ;;  %v5540_v3 = vrot.slane %v7090_v62, 7  ;;  %v6724_v19 = vld [vmem:[%s8640_s6 + $0x2c] sm:$0x1] }
 0x146   : > { %7735 = vmatpush3.bf16.msra.mxu1 %v8462_v6  ;;  %8021 = vmatpush3.bf16.msra.mxu0 %v8461_v5  ;;  %v2243_v5 = vrot.slane %v2241_v61, 5  ;;  %v2252_v6 = vshrl.u32 %v6717_v58, 16  ;;  %v7089_v58 = vld [vmem:[%s8640_s6 + $0x28] sm:$0x8] }
 0x147   : > { %7736 = vmatprep.subr.bf16.mxu1 %v8464_v15  ;;  %8022 = vmatprep.subr.bf16.mxu0 %v8463_v34  ;;  %v7102_v2 = vrot.slane %v7089_v58, 11 }
 0x148   : > { %v2244_v13 = vor.u32 %v2243_v5, %v2240_v4  ;;  %v2254_v14 = vrot.slane %v2252_v6, 4  ;;  %8011 = vmatmul.mubr.bf16.gmra.mrb[4].mxu0 %v7074_v24  ;;  %v2273_v4 = vrot.slane %v2272_v59, 4  ;;  %v2291_v6 = vrot.slane %v2289_v57, 5  ;;  %v6730_v59 = vld [vmem:[%s8640_s6 + $0x44] sm:$0x1] }
 0x149   : > { %v5541_v8 = vsel %vm8690_vm7, %v7102_v2, %v5540_v3  ;;  %v7095_v2 = vld [vmem:[%s8640_s6 + $0x40] sm:$0x8]  ;;  %v7096_v3 = vld [vmem:[%s8640_s6 + $0x44] sm:$0x7] }
 0x14a   : > { %7737 = vmatpush3.bf16.msra.mxu1 %v8464_v15  ;;  %8023 = vmatpush3.bf16.msra.mxu0 %v8463_v34  ;;  %v7085_v15 = vld [vmem:[%s8640_s6 + $0x18] sm:$0x8]  ;;  %v2245_v25 = vrot.slane %v2244_v13, 4  ;;  %v2258_v60 = vor.u32 %v2257_v20, %v2254_v14  ;;  %v6721_v34 = vld [vmem:[%s8640_s6 + $0x20] sm:$0xf] }
 0x14b   : > { %7738 = vmatprep.subr.bf16.mxu1 %v8467_v39  ;;  %8024 = vmatprep.subr.bf16.mxu0 %v8465_v47  ;;  %v7100_v49 = vrot.slane %v7085_v15, 11  ;;  %v2280_v44 = vshrl.u32 %v6721_v34, 16  ;;  %v2283_v53 = vshll.u32 %v6721_v34, 16  ;;  %v8476_v15 = vld [vmem:[#allocation3 + $0x250] sm:$0xff]  }
 0x14c   : > { %v2250_v33 = vsel %vm8700_vm8, %v2245_v25, %v2249_v9  ;;  %v2278_v9 = vsel %vm8700_vm8, %v2273_v4, %v2277_v52  ;;  %v6725_v20 = vld [vmem:[%s8640_s6 + $0x30] sm:$0xf]  ;;  %v2303_v25 = vshll.u32 %v6724_v19, 16  ;;  %v6727_v52 = vld [vmem:[%s8640_s6 + $0x38] sm:$0xf]  ;;  %v5552_v19 = vrot.slane %v7096_v3, 7 }
 0x14d   : > { %v5533_v41 = vsel %vm8690_vm7, %v7100_v49, %v5532_v32  ;;  %v2282_v56 = vrot.slane %v2280_v44, 4  ;;  %v2285_v61 = vrot.slane %v2283_v53, 5  ;;  %v2308_v49 = vshrl.u32 %v6725_v20, 16  ;;  %v8481_v53 = vld [vmem:[#allocation3 + $0x560] sm:$0xff]   ;;  %v8493_v3 = vld [vmem:[#allocation3 + $0x588] sm:$0xff]  }
 0x14e   : > { %7739 = vmatpush3.bf16.msra.mxu1 %v8467_v39  ;;  %8025 = vmatpush3.bf16.msra.mxu0 %v8465_v47  ;;  %v2259_v39 = vrot.slane %v2258_v60, 4  ;;  %v7107_v47 = vcombine.low %v5529_v28, %v5533_v41  ;;  %v2311_v60 = vshll.u32 %v6725_v20, 16  ;;  %v8479_v28 = vld [vmem:[#allocation3 + $0x558] sm:$0xff]   ;;  %v7103_v41 = vrot.slane %v7091_v30, 11  ;;  %v8485_v20 = vld [vmem:[#allocation3 + $0x570] sm:$0xff]  }
 0x14f   : > { %7740 = vmatprep.subr.bf16.mxu1 %v8470_v1  ;;  %8026 = vmatprep.subr.bf16.mxu0 %v8468_v18  ;;  %v2286_v5 = vor.u32 %v2285_v61, %v2282_v56  ;;  %v7104_v44 = vrot.slane %v7093_v37, 11  ;;  %v6728_v56 = vld [vmem:[%s8640_s6 + $0x3c] sm:$0x1]  ;;  %v2322_v61 = vshrl.u32 %v6727_v52, 16  ;;  %v6746_v37 = vld [vmem:[%s8640_s6 + $0x14] sm:$0x1] }
 0x150   : > { %v2264_v54 = vsel %vm8700_vm8, %v2259_v39, %v2263_v27  ;;  %8030 = vmatprep.mubr.bf16.mxu0 %v7107_v47  ;;  %v2317_v27 = vshll.u32 %v6726_v21, 16  ;;  %v2313_v34 = vrot.slane %v2311_v60, 5  ;;  %v7094_v39 = vld [vmem:[%s8640_s6 + $0x3c] sm:$0x7]  ;;  %v2557_v40 = vrot.slane %v6746_v37, 5 }
 0x151   : > { %v6731_v31 = vcombine.low %v2250_v33, %v2264_v54  ;;  %v2287_v10 = vrot.slane %v2286_v5, 4  ;;  %v2305_v33 = vrot.slane %v2303_v25, 5  ;;  %v5548_v48 = vrot.slane %v7094_v39, 7  ;;  %v6779_v37 = vld [vmem:[%s8640_s6 + $0x8] sm:$0xe] }
 0x152   : > { %7741 = vmatpush3.bf16.msra.mxu1 %v8470_v1  ;;  %8027 = vmatpush3.bf16.msra.mxu0 %v8468_v18  ;;  %v5536_v1 = vrot.slane %v7088_v50, 7  ;;  %v6723_v18 = vld [vmem:[%s8640_s6 + $0x28] sm:$0xf]  ;;  %v2319_v47 = vrot.slane %v2317_v27, 5  ;;  %v5545_v54 = vsel %vm8690_vm7, %v7103_v41, %v5544_v42  ;;  %v2324_v5 = vrot.slane %v2322_v61, 4  ;;  %v8487_v41 = vld [vmem:[#allocation3 + $0x578] sm:$0xff]  }
 0x153   : > { %7750 = vmatprep.subr.bf16.mxu1 %v9138_v26  ;;  %8028 = vmatprep.subr.bf16.mxu0 %v8471_v38  ;;  %v2292_v13 = vsel %vm8700_vm8, %v2287_v10, %v2291_v6  ;;  %v2294_v23 = vshrl.u32 %v6723_v18, 16  ;;  %v2297_v24 = vshll.u32 %v6723_v18, 16  ;;  %v5549_v58 = vsel %vm8690_vm7, %v7104_v44, %v5548_v48  ;;  %v8483_v10 = vld [vmem:[#allocation3 + $0x568] sm:$0xff]   ;;  %v8486_v48 = vld [vmem:[#allocation3 + $0x278] sm:$0xff]   ;;  %v8490_v61 = vld [vmem:[#allocation3 + $0x580] sm:$0xff]  }
 0x154   : > { %7742 = vmatprep.mubr.bf16.mxu1 %v6731_v31  ;;  %v5537_v7 = vsel %vm8690_vm7, %v7101_v63, %v5536_v1  ;;  %v6732_v14 = vcombine.low %v2278_v9, %v2292_v13  ;;  %v6729_v31 = vld [vmem:[%s8640_s6 + $0x40] sm:$0xf]  ;;  %v7109_v63 = vcombine.low %v5545_v54, %v5549_v58  ;;  %v2331_v1 = vshll.u32 %v6728_v56, 16  ;;  %v8482_v9 = vld [vmem:[#allocation3 + $0x268] sm:$0xff]   ;;  %v6748_v54 = vld [vmem:[%s8640_s6 + $0x1c] sm:$0x1] }
 0x155   : > { %v7108_v11 = vcombine.low %v5537_v7, %v5541_v8  ;;  %v2296_v32 = vrot.slane %v2294_v23, 4  ;;  %v2299_v29 = vrot.slane %v2297_v24, 5  ;;  %v2336_v6 = vshrl.u32 %v6729_v31, 16  ;;  %v7097_v8 = vld [vmem:[%s8640_s6 + $0x48] sm:$0x8] }
 0x156   : > { %8029 = vmatpush3.bf16.msra.mxu0 %v8471_v38  ;;  %7743 = vmatmul.mubr.bf16.vlgmr.msra.gmra.mrb[0].mxu1 %v6732_v14  ;;  %v2339_v7 = vshll.u32 %v6729_v31, 16  ;;  %v2333_v13 = vrot.slane %v2331_v1, 5  ;;  %v2345_v14 = vshll.u32 %v6730_v59, 16  ;;  %v7105_v18 = vrot.slane %v7095_v2, 11  ;;  %v6743_v27 = vld [vmem:[%s8640_s6 + $0x8] sm:$0xe] }
 0x157   : > { %8038 = vmatprep.subr.bf16.mxu0 %v8473_v0  ;;  %7751 = vmatpush3.bf16.msra.mxu1 %v9138_v26  ;;  %v2310_v26 = vrot.slane %v2308_v49, 4  ;;  %v2300_v38 = vor.u32 %v2299_v29, %v2296_v32  ;;  %v7106_v24 = vrot.slane %v7097_v8, 11  ;;  %v6744_v29 = vld [vmem:[%s8640_s6 + $0xc] sm:$0x1]  ;;  %v6759_v30 = vrot.slane %v6743_v27, 9 }
 0x158   : > { %7752 = vmatprep.subr.bf16.mxu1 %v8474_v16  ;;  %v2347_v23 = vrot.slane %v2345_v14, 5  ;;  %v5553_v60 = vsel %vm8690_vm7, %v7105_v18, %v5552_v19  ;;  %v6750_v56 = vld [vmem:[%s8640_s6 + $0x24] sm:$0x1]  ;;  %v2561_v58 = vrot.slane %v6748_v54, 5  ;;  %v6752_v8 = vld [vmem:[%s8640_s6 + $0x2c] sm:$0x1] }
 0x159   : > { %8031 = vmatmul.mubr.bf16.vlgmr.msra.gmra.mrb[0].mxu0 %v7108_v11  ;;  %v2314_v46 = vor.u32 %v2313_v34, %v2310_v26  ;;  %v2301_v50 = vrot.slane %v2300_v38, 4  ;;  %v6745_v26 = vld [vmem:[%s8640_s6 + $0x10] sm:$0xe]  ;;  %v2565_v59 = vrot.slane %v6750_v56, 5  ;;  %v8503_v18 = vld [vmem:[%s8640_s6 + $0x38] ss:$8 sps:$4 sm:$0xff]  }
 0x15a   : > { %8039 = vmatpush3.bf16.msra.mxu0 %v8473_v0  ;;  %v2325_v0 = vshll.u32 %v6727_v52, 16  ;;  %8034 = vmatprep.mubr.bf16.mxu0 %v7109_v63  ;;  %v6760_v38 = vrot.slane %v6745_v26, 9  ;;  %v6749_v52 = vld [vmem:[%s8640_s6 + $0x20] sm:$0xe]  ;;  %v8491_v63 = vld [vmem:[%s8640_s6 + $0x28] ss:$8 sps:$4 sm:$0xff]  }
 0x15b   : > { %8040 = vmatprep.subr.bf16.mxu0 %v8475_v12  ;;  %7753 = vmatpush3.bf16.msra.mxu1 %v8474_v16  ;;  %v2315_v57 = vrot.slane %v2314_v46, 4  ;;  %v2306_v62 = vsel %vm8700_vm8, %v2301_v50, %v2305_v33  ;;  %v7098_v16 = vld [vmem:[%s8640_s6 + $0x4c] sm:$0x7]  ;;  %v8484_v33 = vld [vmem:[#allocation3 + $0x270] sm:$0xff]   ;;  %v8489_v46 = vld [vmem:[%s8640_s6 + $0x18] ss:$8 sps:$4 sm:$0xff]  }
 0x15c   : > { %7754 = vmatprep.subr.bf16.mxu1 %v8476_v15  ;;  %v5556_v25 = vrot.slane %v7098_v16, 7  ;;  %v6762_v31 = vrot.slane %v6749_v52, 9  ;;  %v8497_v16 = vld [vmem:[#allocation3 + $0x598] sm:$0xff]   ;;  %v8505_v26 = vld [vmem:[%s8640_s6 + $0x48] ss:$8 sps:$4 sm:$0xff]  }
 0x15d   : > { %v2320_v4 = vsel %vm8700_vm8, %v2315_v57, %v2319_v47  ;;  %v8496_v19 = vld [vmem:[#allocation3 + $0x298] sm:$0xff]   ;;  %v8500_v54 = vld [vmem:[#allocation3 + $0x2a8] sm:$0xff]   ;;  %v8504_v52 = vld [vmem:[#allocation3 + $0x5b0] sm:$0xff]  }
 0x15e   : > { %8041 = vmatpush3.bf16.msra.mxu0 %v8475_v12  ;;  %v6733_v11 = vcombine.low %v2306_v62, %v2320_v4  ;;  %v2327_v12 = vrot.slane %v2325_v0, 5  ;;  %v5557_v32 = vsel %vm8690_vm7, %v7106_v24, %v5556_v25  ;;  %v8488_v62 = vld [vmem:[#allocation3 + $0x280] sm:$0xff]   ;;  %v2566_v1 = vsel %vm8765_vm11, %v6762_v31, %v2565_v59  ;;  %v8492_v4 = vld [vmem:[#allocation3 + $0x288] sm:$0xff]  }
 0x15f   : > { %8042 = vmatprep.subr.bf16.mxu0 %v8477_v17  ;;  %7755 = vmatpush3.bf16.msra.mxu1 %v8476_v15  ;;  %v2338_v15 = vrot.slane %v2336_v6, 4  ;;  %v7110_v36 = vcombine.low %v5553_v60, %v5557_v32  ;;  %v8495_v6 = vld [vmem:[#allocation3 + $0x590] sm:$0xff]   ;;  %v8499_v24 = vld [vmem:[#allocation3 + $0x5a0] sm:$0xff]  }
 0x160   : > { %7756 = vmatprep.subr.bf16.mxu1 %v8478_v35  ;;  %7746 = vmatprep.mubr.bf16.mxu1 %v6733_v11  ;;  %v2328_v21 = vor.u32 %v2327_v12, %v2324_v5  ;;  %v8494_v5 = vld [vmem:[#allocation3 + $0x290] sm:$0xff]   ;;  %v2569_v12 = vrot.slane %v6752_v8, 5  ;;  %v6757_v25 = vld [vmem:[%s8640_s6 + $0x40] sm:$0xe] }
 0x161   : > { %8035 = vmatmul.mubr.bf16.gmra.mrb[4].mxu0 %v7110_v36 }
 0x162   : > { %8043 = vmatpush3.bf16.msra.mxu0 %v8477_v17  ;;  %v2341_v17 = vrot.slane %v2339_v7, 5  ;;  %8054 = vmatprep.mubr.bf16.mxu0 %v8489_v46  ;;  %v6751_v7 = vld [vmem:[%s8640_s6 + $0x28] sm:$0xe] }
 0x163   : > { %8044 = vmatprep.subr.bf16.mxu0 %v8479_v28  ;;  %7757 = vmatpush3.bf16.msra.mxu1 %v8478_v35  ;;  %v2553_v35 = vrot.slane %v6744_v29, 5  ;;  %v6763_v11 = vrot.slane %v6751_v7, 9  ;;  %v8502_v7 = vld [vmem:[#allocation3 + $0x2b0] sm:$0xff]  }
 0x164   : > { %7758 = vmatprep.subr.bf16.mxu1 %v8480_v51  ;;  %v2342_v49 = vor.u32 %v2341_v17, %v2338_v15 }
 0x165   : > { %v2554_v44 = vsel %vm8765_vm11, %v6759_v30, %v2553_v35  ;;  %v2570_v15 = vsel %vm8765_vm11, %v6763_v11, %v2569_v12  ;;  %v8498_v30 = vld [vmem:[#allocation3 + $0x2a0] sm:$0xff]   ;;  %v6780_v35 = vld [vmem:[%s8640_s6 + $0xc] sm:$0x3] }
 0x166   : > { %8045 = vmatpush3.bf16.msra.mxu0 %v8479_v28  ;;  %v2329_v28 = vrot.slane %v2328_v21, 4  ;;  %v2343_v34 = vrot.slane %v2342_v49, 4  ;;  %v6755_v21 = vld [vmem:[%s8640_s6 + $0x38] sm:$0xe]  ;;  %v6758_v49 = vld [vmem:[%s8640_s6 + $0x44] sm:$0x1] }
 0x167   : > { %8046 = vmatprep.subr.bf16.mxu0 %v8481_v53  ;;  %7759 = vmatpush3.bf16.msra.mxu1 %v8480_v51  ;;  %v2558_v51 = vsel %vm8765_vm11, %v6760_v38, %v2557_v40  ;;  %v6765_v60 = vrot.slane %v6755_v21, 9  ;;  %v2581_v32 = vrot.slane %v6758_v49, 5  ;;  %v6781_v38 = vld [vmem:[%s8640_s6 + $0x10] sm:$0xe]  ;;  %v2773_v40 = vshll.u32 %v6779_v37, 16 }
 0x168   : > { %7760 = vmatprep.subr.bf16.mxu1 %v8482_v9  ;;  %v2334_v39 = vsel %vm8700_vm8, %v2329_v28, %v2333_v13  ;;  %v2348_v42 = vsel %vm8700_vm8, %v2343_v34, %v2347_v23  ;;  %v6767_v50 = vcombine.low %v2554_v44, %v2558_v51  ;;  %v6756_v23 = vld [vmem:[%s8640_s6 + $0x3c] sm:$0x1]  ;;  %v6766_v28 = vrot.slane %v6757_v25, 9  ;;  %v8501_v34 = vld [vmem:[#allocation3 + $0x5a8] sm:$0xff]   ;;  %v6783_v21 = vld [vmem:[%s8640_s6 + $0x18] sm:$0xe] }
 0x169   : > { %v6734_v47 = vcombine.low %v2334_v39, %v2348_v42  ;;  %v2577_v27 = vrot.slane %v6756_v23, 5  ;;  %v6782_v39 = vld [vmem:[%s8640_s6 + $0x14] sm:$0x3]  ;;  %v2779_v42 = vshrl.u32 %v6780_v35, 16  ;;  %v2782_v44 = vshll.u32 %v6780_v35, 16 }
 0x16a   : > { %8047 = vmatpush3.bf16.msra.mxu0 %v8481_v53  ;;  %v6747_v53 = vld [vmem:[%s8640_s6 + $0x18] sm:$0xe]  ;;  %v2788_v46 = vshrl.u32 %v6781_v38, 16  ;;  %v2775_v51 = vrot.slane %v2773_v40, 6  ;;  %v6784_v49 = vld [vmem:[%s8640_s6 + $0x1c] sm:$0x3] }
 0x16b   : > { %8048 = vmatprep.subr.bf16.mxu0 %v8483_v10  ;;  %7761 = vmatpush3.bf16.msra.mxu1 %v8482_v9  ;;  %v6761_v57 = vrot.slane %v6747_v53, 9  ;;  %v6753_v9 = vld [vmem:[%s8640_s6 + $0x30] sm:$0xe]  ;;  %v2578_v29 = vsel %vm8765_vm11, %v6765_v60, %v2577_v27  ;;  %v2797_v53 = vshrl.u32 %v6782_v39, 16  ;;  %v2781_v56 = vrot.slane %v2779_v42, 5 }
 0x16c   : > { %7762 = vmatprep.subr.bf16.mxu1 %v8484_v33  ;;  %7747 = vmatmul.mubr.bf16.gmra.mrb[4].mxu1 %v6734_v47  ;;  %v6764_v13 = vrot.slane %v6753_v9, 9  ;;  %v2791_v47 = vshll.u32 %v6781_v38, 16  ;;  %v6785_v60 = vld [vmem:[%s8640_s6 + $0x20] sm:$0xe]  ;;  %v2806_v27 = vshrl.u32 %v6783_v21, 16  ;;  %v2818_v35 = vshll.u32 %v6784_v49, 16 }
 0x16d   : > { %7766 = vmatprep.mubr.bf16.mxu1 %v6767_v50  ;;  %v2562_v0 = vsel %vm8765_vm11, %v6761_v57, %v2561_v58  ;;  %v2800_v50 = vshll.u32 %v6782_v39, 16  ;;  %v2784_v57 = vrot.slane %v2782_v44, 6  ;;  %v2790_v58 = vrot.slane %v2788_v46, 5  ;;  %v7143_v38 = vld [vmem:[%s8640_s6 + $0x28] sm:$0xf] }
 0x16e   : > { %8049 = vmatpush3.bf16.msra.mxu0 %v8483_v10  ;;  %v6768_v2 = vcombine.low %v2562_v0, %v2566_v1  ;;  %v6754_v10 = vld [vmem:[%s8640_s6 + $0x34] sm:$0x1]  ;;  %v2793_v31 = vrot.slane %v2791_v47, 6  ;;  %v7140_v0 = vld [vmem:[%s8640_s6 + $0x1c] sm:$0x1]  ;;  %v2824_v40 = vshrl.u32 %v6785_v60, 16 }
 0x16f   : > { %8050 = vmatprep.subr.bf16.mxu0 %v8485_v20  ;;  %7763 = vmatpush3.bf16.msra.mxu1 %v8484_v33  ;;  %v2573_v14 = vrot.slane %v6754_v10, 5  ;;  %v2582_v33 = vsel %vm8765_vm11, %v6766_v28, %v2581_v32  ;;  %v2785_v1 = vor.u32 %v2784_v57, %v2781_v56  ;;  %v5941_v10 = vshll.u32 %v7140_v0, 16  ;;  %v7144_v44 = vld [vmem:[%s8640_s6 + $0x2c] sm:$0x1] }
 0x170   : > { %7764 = vmatprep.subr.bf16.mxu1 %v8486_v48  ;;  %v6770_v36 = vcombine.low %v2578_v29, %v2582_v33  ;;  %v6786_v29 = vld [vmem:[%s8640_s6 + $0x24] sm:$0x3]  ;;  %v8506_v33 = vld [vmem:[#allocation3 + $0x2b8] sm:$0xff]   ;;  %v2827_v42 = vshll.u32 %v6785_v60, 16  ;;  %v2826_v56 = vrot.slane %v2824_v40, 5 }
 0x171   : > { %v2574_v17 = vsel %vm8765_vm11, %v6764_v13, %v2573_v14 }
 0x172   : > { %8051 = vmatpush3.bf16.msra.mxu0 %v8485_v20  ;;  %v6769_v20 = vcombine.low %v2570_v15, %v2574_v17  ;;  %v8507_v15 = vld [vmem:[#allocation3 + $0x5b8] sm:$0xff]   ;;  %v2829_v57 = vrot.slane %v2827_v42, 6 }
 0x173   : > { %8052 = vmatprep.subr.bf16.mxu0 %v8487_v41  ;;  %7765 = vmatpush3.bf16.msra.mxu1 %v8486_v48 }
 0x174   : > { %7774 = vmatprep.subr.bf16.mxu1 %v8488_v62 }
 0x176   : > { %8053 = vmatpush3.bf16.msra.mxu0 %v8487_v41  ;;  %7767 = vmatmul.mubr.bf16.vlgmr.msra.gmra.mrb[0].mxu1 %v6768_v2  ;;  %v2770_v41 = vshrl.u32 %v6779_v37, 16  ;;  %v2794_v2 = vor.u32 %v2793_v31, %v2790_v58  ;;  %v2808_v37 = vrot.slane %v2806_v27, 5  ;;  %v2836_v58 = vshll.u32 %v6786_v29, 16  ;;  %v7146_v31 = vld [vmem:[%s8640_s6 + $0x34] sm:$0x1]  ;;  %v8511_v27 = vld [vmem:[#allocation3 + $0x5c8] sm:$0xff]  }
 0x177   : > { %8062 = vmatprep.subr.bf16.mxu0 %v8490_v61  ;;  %7775 = vmatpush3.bf16.msra.mxu1 %v8488_v62  ;;  %v2802_v62 = vrot.slane %v2800_v50, 6  ;;  %v7145_v50 = vld [vmem:[%s8640_s6 + $0x30] sm:$0xf] }
 0x178   : > { %7776 = vmatprep.subr.bf16.mxu1 %v8492_v4  ;;  %7770 = vmatprep.mubr.bf16.mxu1 %v6769_v20  ;;  %v2772_v48 = vrot.slane %v2770_v41, 5  ;;  %v2795_v12 = vrot.slane %v2794_v2, 4  ;;  %v2830_v2 = vor.u32 %v2829_v57, %v2826_v56 }
 0x179   : > { %8055 = vmatmul.mubr.bf16.vlgmr.msra.gmra.mrb[0].mxu0 %v8491_v63  ;;  %v7139_v63 = vld [vmem:[%s8640_s6 + $0x18] sm:$0xf] }
 0x17a   : > { %8063 = vmatpush3.bf16.msra.mxu0 %v8490_v61  ;;  %8058 = vmatprep.mubr.bf16.mxu0 %v8503_v18  ;;  %v2776_v59 = vor.u32 %v2775_v51, %v2772_v48  ;;  %v2799_v61 = vrot.slane %v2797_v53, 5  ;;  %v5943_v18 = vrot.slane %v5941_v10, 5  ;;  %v9254_v48 = vld [vmem:[#allocation3 + $0x5c0] sm:$0xff]   ;;  %v2820_v51 = vrot.slane %v2818_v35, 6 }
 0x17b   : > { %8064 = vmatprep.subr.bf16.mxu0 %v8493_v3  ;;  %7777 = vmatpush3.bf16.msra.mxu1 %v8492_v4  ;;  %v7142_v4 = vld [vmem:[%s8640_s6 + $0x24] sm:$0x1]  ;;  %v2833_v53 = vshrl.u32 %v6786_v29, 16 }
 0x17c   : > { %7778 = vmatprep.subr.bf16.mxu1 %v8494_v5  ;;  %v2777_v8 = vrot.slane %v2776_v59, 4  ;;  %v2803_v9 = vor.u32 %v2802_v62, %v2799_v61  ;;  %v5955_v20 = vshll.u32 %v7142_v4, 16 }
 0x17d   : > { %v2835_v62 = vrot.slane %v2833_v53, 5 }
 0x17e   : > { %8065 = vmatpush3.bf16.msra.mxu0 %v8493_v3  ;;  %7771 = vmatmul.mubr.bf16.gmra.mrb[4].mxu1 %v6770_v36  ;;  %v7141_v3 = vld [vmem:[%s8640_s6 + $0x20] sm:$0xf]  ;;  %v2786_v17 = vsel %vm8815_vm14, %v2777_v8, %v2785_v1  ;;  %v2804_v23 = vsel %vm8815_vm14, %v2795_v12, %v2803_v9  ;;  %v5957_v32 = vrot.slane %v5955_v20, 5  ;;  %v2831_v9 = vrot.slane %v2830_v2, 4  ;;  %v6791_v2 = vld [vmem:[%s8640_s6 + $0x38] sm:$0xe] }
 0x17f   : > { %8066 = vmatprep.subr.bf16.mxu0 %v8495_v6  ;;  %7779 = vmatpush3.bf16.msra.mxu1 %v8494_v5  ;;  %v5932_v5 = vshrl.u32 %v7139_v63, 16  ;;  %v5946_v11 = vshrl.u32 %v7141_v3, 16  ;;  %v6795_v28 = vcombine.low %v2786_v17, %v2804_v23  ;;  %v8510_v17 = vld [vmem:[#allocation3 + $0x2c8] sm:$0xff]  }
 0x180   : > { %7780 = vmatprep.subr.bf16.mxu1 %v8496_v19 }
 0x181   : > { %8059 = vmatmul.mubr.bf16.gmra.mrb[4].mxu0 %v8505_v26  ;;  %v5934_v13 = vrot.slane %v5932_v5, 4  ;;  %v2809_v26 = vshll.u32 %v6783_v21, 16  ;;  %7790 = vmatprep.mubr.bf16.mxu1 %v6795_v28  ;;  %v5963_v5 = vshll.u32 %v7143_v38, 16  ;;  %v6787_v28 = vld [vmem:[%s8640_s6 + $0x28] sm:$0xe] }
 0x182   : > { %8067 = vmatpush3.bf16.msra.mxu0 %v8495_v6  ;;  %v5935_v6 = vshll.u32 %v7139_v63, 16  ;;  %v5960_v63 = vshrl.u32 %v7143_v38, 16 }
 0x183   : > { %8068 = vmatprep.subr.bf16.mxu0 %v8497_v16  ;;  %7781 = vmatpush3.bf16.msra.mxu1 %v8496_v19  ;;  %v5948_v19 = vrot.slane %v5946_v11, 4  ;;  %v2811_v39 = vrot.slane %v2809_v26, 6  ;;  %v5977_v11 = vshll.u32 %v7145_v50, 16  ;;  %v5965_v12 = vrot.slane %v5963_v5, 5  ;;  %v6789_v26 = vld [vmem:[%s8640_s6 + $0x30] sm:$0xe] }
 0x184   : > { %7782 = vmatprep.subr.bf16.mxu1 %v8498_v30  ;;  %v5937_v14 = vrot.slane %v5935_v6, 5  ;;  %v5962_v4 = vrot.slane %v5960_v63, 4  ;;  %v5969_v6 = vshll.u32 %v7144_v44, 16  ;;  %v2863_v44 = vshll.u32 %v6789_v26, 16 }
 0x186   : > { %8069 = vmatpush3.bf16.msra.mxu0 %v8497_v16  ;;  %v5949_v16 = vshll.u32 %v7141_v3, 16  ;;  %v2838_v3 = vrot.slane %v2836_v58, 6  ;;  %v5971_v20 = vrot.slane %v5969_v6, 5  ;;  %v2865_v57 = vrot.slane %v2863_v44, 6  ;;  %v6792_v6 = vld [vmem:[%s8640_s6 + $0x3c] sm:$0x3] }
 0x187   : > { %8070 = vmatprep.subr.bf16.mxu0 %v8499_v24  ;;  %7783 = vmatpush3.bf16.msra.mxu1 %v8498_v30  ;;  %v2815_v30 = vshrl.u32 %v6784_v49, 16  ;;  %v8512_v49 = vld [vmem:[#allocation3 + $0x2d0] sm:$0xff]  }
 0x188   : > { %7784 = vmatprep.subr.bf16.mxu1 %v8500_v54  ;;  %v5951_v25 = vrot.slane %v5949_v16, 5  ;;  %v2839_v10 = vor.u32 %v2838_v3, %v2835_v62  ;;  %v7153_v44 = vld [vmem:[%s8640_s6 + $0x50] sm:$0xf] }
 0x189   : > { %v2817_v41 = vrot.slane %v2815_v30, 5  ;;  %v6790_v30 = vld [vmem:[%s8640_s6 + $0x34] sm:$0x3] }
 0x18a   : > { %8071 = vmatpush3.bf16.msra.mxu0 %v8499_v24  ;;  %v5938_v24 = vor.u32 %v5937_v14, %v5934_v13  ;;  %v5952_v36 = vor.u32 %v5951_v25, %v5948_v19  ;;  %v5983_v14 = vshll.u32 %v7146_v31, 16  ;;  %v2840_v16 = vsel %vm8815_vm14, %v2831_v9, %v2839_v10  ;;  %v7150_v31 = vld [vmem:[%s8640_s6 + $0x44] sm:$0x1] }
 0x18b   : > { %8072 = vmatprep.subr.bf16.mxu0 %v8501_v34  ;;  %7785 = vmatpush3.bf16.msra.mxu1 %v8500_v54  ;;  %v8508_v54 = vld [vmem:[#allocation3 + $0x2c0] sm:$0xff]   ;;  %v2821_v61 = vor.u32 %v2820_v51, %v2817_v41  ;;  %v5966_v19 = vor.u32 %v5965_v12, %v5962_v4  ;;  %v7147_v41 = vld [vmem:[%s8640_s6 + $0x38] sm:$0xf] }
 0x18c   : > { %7786 = vmatprep.subr.bf16.mxu1 %v8502_v7  ;;  %v5953_v47 = vrot.slane %v5952_v36, 4  ;;  %v5985_v21 = vrot.slane %v5983_v14, 5  ;;  %v6793_v12 = vld [vmem:[%s8640_s6 + $0x40] sm:$0xe] }
 0x18e   : > { %8073 = vmatpush3.bf16.msra.mxu0 %v8501_v34  ;;  %v5939_v34 = vrot.slane %v5938_v24, 4  ;;  %v5958_v59 = vsel %vm8700_vm8, %v5953_v47, %v5957_v32  ;;  %v5967_v24 = vrot.slane %v5966_v19, 4  ;;  %v6788_v32 = vld [vmem:[%s8640_s6 + $0x2c] sm:$0x3]  ;;  %v7148_v47 = vld [vmem:[%s8640_s6 + $0x3c] sm:$0x1] }
 0x18f   : > { %8074 = vmatprep.subr.bf16.mxu0 %v8504_v52  ;;  %7787 = vmatpush3.bf16.msra.mxu1 %v8502_v7  ;;  %v5974_v7 = vshrl.u32 %v7145_v50, 16  ;;  %v2851_v35 = vshrl.u32 %v6788_v32, 16  ;;  %v2854_v38 = vshll.u32 %v6788_v32, 16 }
 0x190   : > { %v5944_v46 = vsel %vm8700_vm8, %v5939_v34, %v5943_v18  ;;  %7788 = vmatprep.subr.bf16.mxu1 %v8506_v33  ;;  %v5972_v60 = vsel %vm8700_vm8, %v5967_v24, %v5971_v20  ;;  %v2845_v34 = vshll.u32 %v6787_v28, 16 }
 0x191   : > { %v7155_v0 = vcombine.low %v5944_v46, %v5958_v59  ;;  %v5976_v13 = vrot.slane %v5974_v7, 4  ;;  %v2869_v46 = vshrl.u32 %v6790_v30, 16  ;;  %v2853_v51 = vrot.slane %v2851_v35, 5  ;;  %v8516_v7 = vld [vmem:[#allocation3 + $0x2e0] sm:$0xff]   ;;  %v7152_v35 = vld [vmem:[%s8640_s6 + $0x4c] sm:$0x1] }
 0x192   : > { %8075 = vmatpush3.bf16.msra.mxu0 %v8504_v52  ;;  %v2812_v52 = vor.u32 %v2811_v39, %v2808_v37  ;;  %v8514_v37 = vld [vmem:[#allocation3 + $0x2d8] sm:$0xff]   ;;  %v2860_v39 = vshrl.u32 %v6789_v26, 16  ;;  %v2847_v42 = vrot.slane %v2845_v34, 6  ;;  %v2856_v53 = vrot.slane %v2854_v38, 6  ;;  %v8517_v38 = vld [vmem:[#allocation3 + $0x5e0] sm:$0xff]  }
 0x193   : > { %8076 = vmatprep.subr.bf16.mxu0 %v8507_v15  ;;  %7789 = vmatpush3.bf16.msra.mxu1 %v8506_v33  ;;  %v2842_v33 = vshrl.u32 %v6787_v28, 16  ;;  %v2871_v58 = vrot.slane %v2869_v46, 5  ;;  %v5988_v59 = vshrl.u32 %v7147_v41, 16 }
 0x194   : > { %v2813_v1 = vrot.slane %v2812_v52, 4  ;;  %8078 = vmatprep.mubr.bf16.mxu0 %v7155_v0  ;;  %7798 = vmatprep.subr.bf16.mxu1 %v8508_v54  ;;  %v2862_v50 = vrot.slane %v2860_v39, 5  ;;  %v7149_v52 = vld [vmem:[%s8640_s6 + $0x40] sm:$0xf]  ;;  %v2857_v62 = vor.u32 %v2856_v53, %v2853_v51  ;;  %v5991_v0 = vshll.u32 %v7147_v41, 16 }
 0x195   : > { %v2844_v40 = vrot.slane %v2842_v33, 5  ;;  %v5990_v5 = vrot.slane %v5988_v59, 4 }
 0x196   : > { %8077 = vmatpush3.bf16.msra.mxu0 %v8507_v15  ;;  %v2822_v8 = vsel %vm8815_vm14, %v2813_v1, %v2821_v61  ;;  %v5979_v15 = vrot.slane %v5977_v11, 5  ;;  %v8513_v61 = vld [vmem:[#allocation3 + $0x5d0] sm:$0xff]   ;;  %v5997_v1 = vshll.u32 %v7148_v47, 16  ;;  %v2866_v4 = vor.u32 %v2865_v57, %v2862_v50 }
 0x197   : > { %8086 = vmatprep.subr.bf16.mxu0 %v9254_v48  ;;  %v6796_v18 = vcombine.low %v2822_v8, %v2840_v16  ;;  %v2848_v56 = vor.u32 %v2847_v42, %v2844_v40  ;;  %v5993_v9 = vrot.slane %v5991_v0, 5  ;;  %v6005_v11 = vshll.u32 %v7149_v52, 16  ;;  %v7154_v50 = vld [vmem:[%s8640_s6 + $0x54] sm:$0x1] }
 0x198   : > { %v5980_v23 = vor.u32 %v5979_v15, %v5976_v13  ;;  %v5999_v10 = vrot.slane %v5997_v1, 5  ;;  %v2867_v14 = vrot.slane %v2866_v4, 4  ;;  %v6011_v15 = vshll.u32 %v7150_v31, 16  ;;  %v8520_v57 = vld [vmem:[#allocation3 + $0x2f0] sm:$0xff]   ;;  %v8519_v31 = vld [vmem:[#allocation3 + $0x5e8] sm:$0xff]   ;;  %v8522_v4 = vld [vmem:[#allocation3 + $0x2f8] sm:$0xff]  }
 0x199   : > { %7791 = vmatmul.mubr.bf16.vlgmr.msra.gmra.mrb[0].mxu1 %v6796_v18  ;;  %v2849_v3 = vrot.slane %v2848_v56, 4  ;;  %v8515_v18 = vld [vmem:[#allocation3 + $0x5d8] sm:$0xff]   ;;  %v5994_v19 = vor.u32 %v5993_v9, %v5990_v5  ;;  %v6007_v20 = vrot.slane %v6005_v11, 5  ;;  %v2899_v40 = vshll.u32 %v6793_v12, 16 }
 0x19a   : > { %7799 = vmatpush3.bf16.msra.mxu1 %v8508_v54  ;;  %v5981_v25 = vrot.slane %v5980_v23, 4  ;;  %v2872_v54 = vshll.u32 %v6790_v30, 16  ;;  %v2881_v23 = vshll.u32 %v6791_v2, 16  ;;  %v7151_v30 = vld [vmem:[%s8640_s6 + $0x48] sm:$0xf] }
 0x19b   : > { %7800 = vmatprep.subr.bf16.mxu1 %v8510_v17  ;;  %v2858_v13 = vsel %vm8815_vm14, %v2849_v3, %v2857_v62  ;;  %v5995_v32 = vrot.slane %v5994_v19, 4  ;;  %v6030_v3 = vshrl.u32 %v7153_v44, 16 }
 0x19c   : > { %v5986_v29 = vsel %vm8700_vm8, %v5981_v25, %v5985_v21  ;;  %v2874_v63 = vrot.slane %v2872_v54, 6  ;;  %v2878_v21 = vshrl.u32 %v6791_v2, 16  ;;  %v6013_v25 = vrot.slane %v6011_v15, 5  ;;  %v6809_v15 = vld [vmem:[%s8640_s6 + $0x10] sm:$0xc] }
 0x19d   : > { %v7156_v36 = vcombine.low %v5972_v60, %v5986_v29  ;;  %v2890_v60 = vshll.u32 %v6792_v6, 16  ;;  %v2883_v33 = vrot.slane %v2881_v23, 6  ;;  %v6000_v39 = vsel %vm8700_vm8, %v5995_v32, %v5999_v10  ;;  %v7168_v32 = vld [vmem:[%s8640_s6 + $0x1c] sm:$0x1] }
 0x19e   : > { %7801 = vmatpush3.bf16.msra.mxu1 %v8510_v17  ;;  %v2875_v8 = vor.u32 %v2874_v63, %v2871_v58  ;;  %v6794_v17 = vld [vmem:[%s8640_s6 + $0x44] sm:$0x3]  ;;  %v2880_v26 = vrot.slane %v2878_v21, 5  ;;  %v6016_v58 = vshrl.u32 %v7151_v30, 16  ;;  %v6019_v63 = vshll.u32 %v7151_v30, 16  ;;  %v8521_v21 = vld [vmem:[#allocation3 + $0x5f0] sm:$0xff]  }
 0x19f   : > { %8079 = vmatmul.mubr.bf16.vlgmr.msra.gmra.mrb[0].mxu0 %v7156_v36  ;;  %7802 = vmatprep.subr.bf16.mxu1 %v8512_v49  ;;  %v2892_v36 = vrot.slane %v2890_v60, 6  ;;  %v2905_v42 = vshrl.u32 %v6794_v17, 16  ;;  %v2908_v53 = vshll.u32 %v6794_v17, 16  ;;  %v6025_v2 = vshll.u32 %v7152_v35, 16  ;;  %v6810_v17 = vld [vmem:[%s8640_s6 + $0x14] sm:$0x3] }
 0x1a0   : > { %8087 = vmatpush3.bf16.msra.mxu0 %v9254_v48  ;;  %v6002_v48 = vshrl.u32 %v7149_v52, 16  ;;  %v2876_v24 = vsel %vm8815_vm14, %v2867_v14, %v2875_v8  ;;  %v2884_v46 = vor.u32 %v2883_v33, %v2880_v26  ;;  %v2901_v52 = vrot.slane %v2899_v40, 6  ;;  %v6807_v8 = vld [vmem:[%s8640_s6 + $0x8] sm:$0xc]  ;;  %v8523_v26 = vld [vmem:[#allocation3 + $0x5f8] sm:$0xff]  }
 0x1a1   : > { %8088 = vmatprep.subr.bf16.mxu0 %v8511_v27  ;;  %v6797_v28 = vcombine.low %v2858_v13, %v2876_v24  ;;  %v2907_v56 = vrot.slane %v2905_v42, 5  ;;  %v2910_v62 = vrot.slane %v2908_v53, 6  ;;  %v6018_v1 = vrot.slane %v6016_v58, 4  ;;  %v6808_v13 = vld [vmem:[%s8640_s6 + $0xc] sm:$0x3] }
 0x1a2   : > { %7803 = vmatpush3.bf16.msra.mxu1 %v8512_v49  ;;  %v6004_v16 = vrot.slane %v6002_v48, 4  ;;  %v2887_v49 = vshrl.u32 %v6792_v6, 16  ;;  %v6021_v6 = vrot.slane %v6019_v63, 5  ;;  %v6027_v10 = vrot.slane %v6025_v2, 5  ;;  %v7170_v30 = vld [vmem:[%s8640_s6 + $0x24] sm:$0x1] }
 0x1a3   : > { %7804 = vmatprep.subr.bf16.mxu1 %v8514_v37  ;;  %7794 = vmatprep.mubr.bf16.mxu1 %v6797_v28  ;;  %v2911_v48 = vor.u32 %v2910_v62, %v2907_v56  ;;  %v6032_v11 = vrot.slane %v6030_v3, 4  ;;  %v3117_v23 = vrot.slane %v6808_v13, 6  ;;  %v6824_v24 = vrot.slane %v6809_v15, 10  ;;  %v6812_v40 = vld [vmem:[%s8640_s6 + $0x1c] sm:$0x3] }
 0x1a4   : > { %8089 = vmatpush3.bf16.msra.mxu0 %v8511_v27  ;;  %v8518_v27 = vld [vmem:[#allocation3 + $0x2e8] sm:$0xff]   ;;  %v6008_v29 = vor.u32 %v6007_v20, %v6004_v16  ;;  %v2889_v34 = vrot.slane %v2887_v49, 5  ;;  %v6022_v14 = vor.u32 %v6021_v6, %v6018_v1  ;;  %v3121_v28 = vrot.slane %v6810_v17, 6  ;;  %v7174_v62 = vld [vmem:[%s8640_s6 + $0x34] sm:$0x1] }
 0x1a5   : > { %8090 = vmatprep.subr.bf16.mxu0 %v8513_v61  ;;  %v3125_v53 = vrot.slane %v6812_v40, 6  ;;  %v7172_v58 = vld [vmem:[%s8640_s6 + $0x2c] sm:$0x1]  ;;  %v7186_v2 = vrot.slane %v7173_v45, 9  ;;  %v6259_v3 = vrot.slane %v7174_v62, 5 }
 0x1a6   : > { %7805 = vmatpush3.bf16.msra.mxu1 %v8514_v37  ;;  %v2896_v37 = vshrl.u32 %v6793_v12, 16  ;;  %v6009_v41 = vrot.slane %v6008_v29, 4  ;;  %v2893_v47 = vor.u32 %v2892_v36, %v2889_v34  ;;  %v6039_v12 = vshll.u32 %v7154_v50, 16  ;;  %v7169_v29 = vld [vmem:[%s8640_s6 + $0x20] sm:$0xe] }
 0x1a7   : > { %7806 = vmatprep.subr.bf16.mxu1 %v8516_v7  ;;  %v6023_v60 = vrot.slane %v6022_v14, 4  ;;  %v6247_v34 = vrot.slane %v7168_v32, 5  ;;  %v7184_v36 = vrot.slane %v7169_v29, 9  ;;  %v6255_v1 = vrot.slane %v7172_v58, 5  ;;  %v6817_v6 = vld [vmem:[%s8640_s6 + $0x30] sm:$0xc] }
 0x1a8   : > { %8091 = vmatpush3.bf16.msra.mxu0 %v8513_v61  ;;  %v2898_v51 = vrot.slane %v2896_v37, 5  ;;  %v6014_v54 = vsel %vm8700_vm8, %v6009_v41, %v6013_v25  ;;  %v2885_v61 = vrot.slane %v2884_v46, 4  ;;  %v6041_v20 = vrot.slane %v6039_v12, 5  ;;  %v7167_v25 = vld [vmem:[%s8640_s6 + $0x18] sm:$0xe] }
 0x1a9   : > { %8092 = vmatprep.subr.bf16.mxu0 %v8515_v18  ;;  %v7157_v59 = vcombine.low %v6000_v39, %v6014_v54  ;;  %v7183_v33 = vrot.slane %v7167_v25, 9  ;;  %v6028_v37 = vsel %vm8700_vm8, %v6023_v60, %v6027_v10  ;;  %v6251_v39 = vrot.slane %v7170_v30, 5  ;;  %v6811_v41 = vld [vmem:[%s8640_s6 + $0x18] sm:$0xc]  ;;  %v6813_v46 = vld [vmem:[%s8640_s6 + $0x20] sm:$0xc] }
 0x1aa   : > { %7807 = vmatpush3.bf16.msra.mxu1 %v8516_v7  ;;  %v2902_v0 = vor.u32 %v2901_v52, %v2898_v51  ;;  %v2894_v5 = vsel %vm8815_vm14, %v2885_v61, %v2893_v47  ;;  %v6033_v7 = vshll.u32 %v7153_v44, 16  ;;  %v6814_v47 = vld [vmem:[%s8640_s6 + $0x24] sm:$0x3]  ;;  %v6825_v51 = vrot.slane %v6811_v41, 10  ;;  %v7175_v12 = vld [vmem:[%s8640_s6 + $0x38] sm:$0xe] }
 0x1ab   : > { %7808 = vmatprep.subr.bf16.mxu1 %v8518_v27  ;;  %8082 = vmatprep.mubr.bf16.mxu0 %v7157_v59  ;;  %v6248_v44 = vsel %vm8765_vm11, %v7183_v33, %v6247_v34  ;;  %v6252_v54 = vsel %vm8765_vm11, %v7184_v36, %v6251_v39  ;;  %v6826_v52 = vrot.slane %v6813_v46, 10  ;;  %v3129_v56 = vrot.slane %v6814_v47, 6  ;;  %v7176_v13 = vld [vmem:[%s8640_s6 + $0x3c] sm:$0x1]  ;;  %v7177_v15 = vld [vmem:[%s8640_s6 + $0x40] sm:$0xe] }
 0x1ac   : > { %8093 = vmatpush3.bf16.msra.mxu0 %v8515_v18  ;;  %v2903_v9 = vrot.slane %v2902_v0, 4  ;;  %v6035_v16 = vrot.slane %v6033_v7, 5  ;;  %v6823_v18 = vrot.slane %v6807_v8, 10  ;;  %v7191_v59 = vcombine.low %v6248_v44, %v6252_v54  ;;  %v6818_v7 = vld [vmem:[%s8640_s6 + $0x34] sm:$0x3] }
 0x1ad   : > { %8094 = vmatprep.subr.bf16.mxu0 %v8517_v38  ;;  %v3126_v61 = vsel %vm8880_vm1, %v6825_v51, %v3125_v53  ;;  %v3130_v0 = vsel %vm8880_vm1, %v6826_v52, %v3129_v56  ;;  %v6828_v14 = vrot.slane %v6817_v6, 10  ;;  %v7178_v17 = vld [vmem:[%s8640_s6 + $0x44] sm:$0x1]  ;;  %v6820_v60 = vld [vmem:[%s8640_s6 + $0x3c] sm:$0x3] }
 0x1ae   : > { %7809 = vmatpush3.bf16.msra.mxu1 %v8518_v27  ;;  %v2912_v19 = vsel %vm8815_vm14, %v2903_v9, %v2911_v48  ;;  %v6036_v27 = vor.u32 %v6035_v16, %v6032_v11  ;;  %v3118_v22 = vsel %vm8880_vm1, %v6823_v18, %v3117_v23  ;;  %v6816_v48 = vld [vmem:[%s8640_s6 + $0x2c] sm:$0x3]  ;;  %v6260_v9 = vsel %vm8765_vm11, %v7186_v2, %v6259_v3  ;;  %v6819_v23 = vld [vmem:[%s8640_s6 + $0x38] sm:$0xc]  ;;  %v7179_v33 = vld [vmem:[%s8640_s6 + $0x48] sm:$0xe] }
 0x1af   : > { %7810 = vmatprep.subr.bf16.mxu1 %v8520_v57  ;;  %v6798_v49 = vcombine.low %v2894_v5, %v2912_v19  ;;  %v6832_v5 = vcombine.low %v3126_v61, %v3130_v0  ;;  %v3133_v11 = vrot.slane %v6816_v48, 6  ;;  %v3137_v16 = vrot.slane %v6818_v7, 6  ;;  %v7182_v40 = vld [vmem:[%s8640_s6 + $0x54] sm:$0x1]  ;;  %v7203_v61 = vld [vmem:[%s9378_s2] ss:$0 sm:$0xff] }
 0x1b0   : > { %8095 = vmatpush3.bf16.msra.mxu0 %v8517_v38  ;;  %v6037_v35 = vrot.slane %v6036_v27, 4  ;;  %v3122_v38 = vsel %vm8880_vm1, %v6824_v24, %v3121_v28  ;;  %v7187_v19 = vrot.slane %v7175_v12, 9  ;;  %v6821_v27 = vld [vmem:[%s8640_s6 + $0x40] sm:$0xc]  ;;  %v6829_v28 = vrot.slane %v6819_v23, 10 }
 0x1b1   : > { %8096 = vmatprep.subr.bf16.mxu0 %v8519_v31  ;;  %7795 = vmatmul.mubr.bf16.gmra.mrb[4].mxu1 %v6798_v49  ;;  %v6831_v42 = vcombine.low %v3118_v22, %v3122_v38  ;;  %v3138_v25 = vsel %vm8880_vm1, %v6828_v14, %v3137_v16  ;;  %v6267_v49 = vrot.slane %v7178_v17, 5  ;;  %v3141_v22 = vrot.slane %v6820_v60, 6 }
 0x1b2   : > { %7811 = vmatpush3.bf16.msra.mxu1 %v8520_v57  ;;  %v6042_v50 = vsel %vm8700_vm8, %v6037_v35, %v6041_v20  ;;  %v7171_v57 = vld [vmem:[%s8640_s6 + $0x28] sm:$0xe]  ;;  %v6263_v20 = vrot.slane %v7176_v13, 5  ;;  %v6830_v30 = vrot.slane %v6821_v27, 10  ;;  %v7181_v35 = vld [vmem:[%s8640_s6 + $0x50] sm:$0xe] }
 0x1b3   : > { %7812 = vmatprep.subr.bf16.mxu1 %v8522_v4  ;;  %7814 = vmatprep.mubr.bf16.mxu1 %v6831_v42  ;;  %v7185_v63 = vrot.slane %v7171_v57, 9  ;;  %v7189_v38 = vrot.slane %v7179_v33, 9  ;;  %v3142_v41 = vsel %vm8880_vm1, %v6829_v28, %v3141_v22  ;;  %v7190_v44 = vrot.slane %v7181_v35, 9 }
 0x1b4   : > { %8097 = vmatpush3.bf16.msra.mxu0 %v8519_v31  ;;  %v7158_v31 = vcombine.low %v6028_v37, %v6042_v50  ;;  %v6264_v29 = vsel %vm8765_vm11, %v7187_v19, %v6263_v20  ;;  %v7180_v37 = vld [vmem:[%s8640_s6 + $0x4c] sm:$0x1]  ;;  %v6275_v47 = vrot.slane %v7182_v40, 5 }
 0x1b5   : > { %8098 = vmatprep.subr.bf16.mxu0 %v8521_v21  ;;  %v6256_v8 = vsel %vm8765_vm11, %v7185_v63, %v6255_v1  ;;  %v6271_v42 = vrot.slane %v7180_v37, 5 }
 0x1b6   : > { %7813 = vmatpush3.bf16.msra.mxu1 %v8522_v4  ;;  %v6815_v4 = vld [vmem:[%s8640_s6 + $0x28] sm:$0xc]  ;;  %8083 = vmatmul.mubr.bf16.gmra.mrb[4].mxu0 %v7158_v31  ;;  %v7192_v24 = vcombine.low %v6256_v8, %v6260_v9  ;;  %v6276_v50 = vsel %vm8765_vm11, %v7190_v44, %v6275_v47 }
 0x1b7   : > { %8102 = vmatprep.mubr.bf16.mxu0 %v7191_v59  ;;  %v6827_v10 = vrot.slane %v6815_v4, 10  ;;  %v6272_v53 = vsel %vm8765_vm11, %v7189_v38, %v6271_v42 }
 0x1b8   : > { %8099 = vmatpush3.bf16.msra.mxu0 %v8521_v21  ;;  %v7188_v21 = vrot.slane %v7177_v15, 9  ;;  %v7194_v54 = vcombine.low %v6272_v53, %v6276_v50 }
 0x1b9   : > { %8100 = vmatprep.subr.bf16.mxu0 %v8523_v26  ;;  %7815 = vmatmul.mubr.bf16.vlgmr.msra.gmra.mrb[0].mxu1 %v6832_v5  ;;  %v3134_v18 = vsel %vm8880_vm1, %v6827_v10, %v3133_v11 }
 0x1ba   : > { %v6833_v32 = vcombine.low %v3134_v18, %v3138_v25  ;;  %v6268_v34 = vsel %vm8765_vm11, %v7188_v21, %v6267_v49 }
 0x1bb   : > { %v7193_v39 = vcombine.low %v6264_v29, %v6268_v34 }
 0x1bc   : > { %8101 = vmatpush3.bf16.msra.mxu0 %v8523_v26  ;;  %v6822_v26 = vld [vmem:[%s8640_s6 + $0x44] sm:$0x3]  ;;  %7818 = vmatprep.mubr.bf16.mxu1 %v6833_v32 }
 0x1bd   : > { %v3145_v36 = vrot.slane %v6822_v26, 6 }
 0x1bf   : > { %8103 = vmatmul.mubr.bf16.vlgmr.msra.gmra.mrb[0].mxu0 %v7192_v24  ;;  %v3146_v46 = vsel %vm8880_vm1, %v6830_v30, %v3145_v36 }
 0x1c0   : > { %8106 = vmatprep.mubr.bf16.mxu0 %v7193_v39  ;;  %v6834_v51 = vcombine.low %v3142_v41, %v3146_v46 }
 0x1c2   : > { %7819 = vmatmul.mubr.bf16.gmra.mrb[4].mxu1 %v6834_v51 }
 0x1c7   : > { %8107 = vmatmul.mubr.bf16.gmra.mrb[4].mxu0 %v7194_v54 }
 0x28c   : > { %v7816_v52 = vpop.f32.mrb[0].mxu1 }
 0x28d   : > { %v3262_v56 = vpop.f32.mrb[1].mxu1 }
 0x28e   : > { %v7817_v57 = vpop.f32.mrb[2].mxu1 }
 0x28f   : > { %v3265_v58 = vpop.f32.mrb[3].mxu1 }
 0x292   : > { %v8104_v31 = vpop.f32.mrb[0].mxu0 }
 0x293   : > { %v8110_v43 = vadd.f32 %v8104_v31, %v7816_v52  ;;  %v6392_v59 = vpop.f32.mrb[1].mxu0 }
 0x294   : > { %v8111_v45 = vadd.f32 %v6392_v59, %v3262_v56  ;;  %v8105_v62 = vpop.f32.mrb[2].mxu0 }
 0x295   : > { %v8112_v63 = vadd.f32 %v8105_v62, %v7817_v57  ;;  %v6395_v55 = vpop.f32.mrb[3].mxu0  ;;  %v7820_v0 = vpop.f32.mrb[4].mxu1  ;;  %v6464_v3 = vadd.f32 %v8110_v43, %v7203_v61 }
 0x296   : > { %v8113_v1 = vadd.f32 %v6395_v55, %v3265_v58  ;;  %v3278_v2 = vpop.f32.mrb[5].mxu1  ;;  %v6462_v48 = vadd.f32 %v8111_v45, %v7203_v61 }
 0x297   : > { %v6465_v4 = vadd.f32 %v8112_v63, %v7203_v61  ;;  %v7821_v5 = vpop.f32.mrb[6].mxu1 }
 0x298   : > { %v6463_v6 = vadd.f32 %v8113_v1, %v7203_v61  ;;  %v3281_v7 = vpop.f32.mrb[7].mxu1 }
 0x299   : > { %v7231_v8 = vpack.c.bf16 %v6465_v4, %v6464_v3 }
 0x29a   : > { %v7226_v9 = vpack.c.bf16 %v6463_v6, %v6462_v48  ;;  %v8108_v10 = vpop.f32.mrb[4].mxu0 }
 0x29b   : > { %7243 = vst [vmem:[%s185_s14 + $0x8] sm:$0xff] %v7231_v8   ;;  %v8114_v11 = vadd.f32 %v8108_v10, %v7820_v0  ;;  %v6408_v12 = vpop.f32.mrb[5].mxu0 }
 0x29c   : > { %7227 = vst [vmem:[%s185_s14] sm:$0xff] %v7226_v9   ;;  %v8115_v13 = vadd.f32 %v6408_v12, %v3278_v2  ;;  %v8109_v14 = vpop.f32.mrb[6].mxu0 }
 0x29d   : > { %v8116_v16 = vadd.f32 %v8109_v14, %v7821_v5  ;;  %v6411_v15 = vpop.f32.mrb[7].mxu0  ;;  %v6468_v18 = vadd.f32 %v8114_v11, %v7203_v61 }
 0x29e   : > { %v8117_v17 = vadd.f32 %v6411_v15, %v3281_v7  ;;  %v6466_v20 = vadd.f32 %v8115_v13, %v7203_v61 }
 0x29f   : > { %v6469_v19 = vadd.f32 %v8116_v16, %v7203_v61 }
 0x2a0   : > { %v6467_v21 = vadd.f32 %v8117_v17, %v7203_v61 }
 0x2a1   : > { %v7241_v23 = vpack.c.bf16 %v6469_v19, %v6468_v18 }
 0x2a2   : > { %v7236_v24 = vpack.c.bf16 %v6467_v21, %v6466_v20 }
 0x2a3   : > { %7245 = vst [vmem:[%s185_s14 + $0x18] sm:$0xff] %v7241_v23  }
 0x2a4   : > { %7244 = vst [vmem:[%s185_s14 + $0x10] sm:$0xff] %v7236_v24  }
 0x2a5 PF: > { %s14_s12 = sadd.s32 1, %s8562_s12  }
 0x2a6   : > { %p11_p3 = scmp.ge.s32.totalorder %s14_s12, 4  }
 0x2a8   :  { %13 = sbr.rel (!%p11_p3) target bundleno = 1 (0x1), region = 93 }
 0x2af   :  { %6531 = vsyncpa [#allocation4], 1 }
 0x2b0   :  { %6533 = vsyncpa [#allocation4 + $0x1], 1 }

// kernel: pixelcnn_forward.10
= control target key start
LH: loop header
LB: loop body
LE: loop exit
PB: predicated region body
PF: predicated region fallthrough
CT: control target
= control target key end

     0   :  { %s9328_s12 = smov 0   ;;  %s10728_s0 = inlined_call_operand.vmem [shape: bf16[2,14,14,128], index: 0, kind: input, shape index: {}]   ;;  %s10729_s1 = inlined_call_operand.vmem [shape: bf16[25,128,128], index: 1, kind: input, shape index: {}]   ;;  %s10730_s2 = inlined_call_operand.vmem [shape: f32[1,128], index: 2, kind: input, shape index: {}]   ;;  %s10731_s3 = inlined_call_operand.vmem [shape: bf16[2,64,128], index: 3, kind: output, shape index: {}]  }
   0x1 LB: > { %s6888_s13 = sadd.s32 4294967295, %s9306_s12   ;;  %p6892_p0 = scmp.ge.s32.totalorder %s9306_s12, 1  ;;  %s9306_s12 = sphi %s9328_s12, %s13_s12  }
   0x2   : > { %p137_p1 = scmp.lt.s32.totalorder %s9306_s12, 3 }
   0x4   : > { %p138_p2 = pnand %p6892_p0, %p137_p1 }
   0x5   : > { %v9084_v0 = vld [vmem:[%s10729_s1] sm:$0xff] (!%p138_p2)   ;;  %v9086_v2 = vld [vmem:[%s10729_s1 + $0x8] sm:$0xff] (!%p138_p2)   ;;  %p161_p3 = scmp.lt.s32.totalorder (!%p138_p2), %s6888_s13, 1  ;;  %v9088_v4 = vld [vmem:[%s10729_s1 + $0x10] sm:$0xff] (!%p138_p2)   ;;  %vm1465_vm0 = vsmask.f32 (!%p138_p2), 1280 }
   0x6   : > { %141 = sbr.rel (%p138_p2) target bundleno = 665 (0x299), region = 32  ;;  %v9085_v1 = vld [vmem:[%s10729_s1 + $0x300] sm:$0xff] (!%p138_p2)   ;;  %8267 = vmatprep.subr.bf16.mxu1 (!%p138_p2), %v9084_v0  ;;  %v9087_v3 = vld [vmem:[%s10729_s1 + $0x308] sm:$0xff] (!%p138_p2)   ;;  %v9089_v5 = vld [vmem:[%s10729_s1 + $0x310] sm:$0xff] (!%p138_p2)   ;;  %vm1466_vm1 = vsmask.f32 (!%p138_p2), 5392 }
   0x7   : > { %8555 = vmatprep.subr.bf16.mxu0 (!%p138_p2), %v9085_v1  ;;  %8268 = vmatpush3.bf16.msra.mxu1 (!%p138_p2), %v9084_v0  ;;  %v9090_v6 = vld [vmem:[%s10729_s1 + $0x18] sm:$0xff] (!%p138_p2)   ;;  %v9092_v8 = vld [vmem:[%s10729_s1 + $0x20] sm:$0xff] (!%p138_p2)   ;;  %v9094_v10 = vld [vmem:[%s10729_s1 + $0x28] sm:$0xff] (!%p138_p2)   ;;  %vm1814_vm3 = vcmask (!%p138_p2), 1040384   ;;  %vm1815_vm4 = vcmask (!%p138_p2), 1044484   ;;  %vm674_vm9 = vcmask (!%p138_p2), 1042432  }
   0x8   : > { %8556 = vmatpush3.bf16.msra.mxu0 (!%p138_p2), %v9085_v1  ;;  %8269 = vmatprep.subr.bf16.mxu1 (!%p138_p2), %v9086_v2  ;;  %v9091_v7 = vld [vmem:[%s10729_s1 + $0x318] sm:$0xff] (!%p138_p2)   ;;  %v9093_v9 = vld [vmem:[%s10729_s1 + $0x320] sm:$0xff] (!%p138_p2)   ;;  %v9095_v12 = vld [vmem:[%s10729_s1 + $0x328] sm:$0xff] (!%p138_p2)   ;;  %vm357_vm5 = vsmask.f32 (!%p138_p2), 3328  ;;  %vm675_vm10 = vcmask (!%p138_p2), 1046532  }
   0x9   : > { %8557 = vmatprep.subr.bf16.mxu0 (!%p138_p2), %v9087_v3  ;;  %v9096_v13 = vld [vmem:[%s10729_s1 + $0x30] sm:$0xff] (!%p138_p2)   ;;  %v9098_v33 = vld [vmem:[%s10729_s1 + $0x38] sm:$0xff] (!%p138_p2)   ;;  %vm9399_vm2 = vmor (!%p138_p2), %vm1465_vm0, %vm1466_vm1  ;;  %vm358_vm6 = vsmask.f32 (!%p138_p2), 7440  ;;  %vm895_vm12 = vsmask.f32 (!%p138_p2), 2304 }
   0xa   : > { %v9097_v15 = vld [vmem:[%s10729_s1 + $0x330] sm:$0xff] (!%p138_p2)   ;;  %v9099_v34 = vld [vmem:[%s10729_s1 + $0x338] sm:$0xff] (!%p138_p2)   ;;  %v9101_v56 = vld [vmem:[%s10729_s1 + $0x40] sm:$0xff] (!%p138_p2)   ;;  %vm896_vm13 = vsmask.f32 (!%p138_p2), 6416  ;;  %vm1244_vm15 = vcmask (!%p138_p2), 1041408  }
   0xb   : > { %8270 = vmatpush3.bf16.msra.mxu1 (!%p138_p2), %v9086_v2  ;;  %v9102_v63 = vld [vmem:[%s10729_s1 + $0x340] sm:$0xff] (!%p138_p2)   ;;  %vm9493_vm7 = vmor (!%p138_p2), %vm1814_vm3, %vm1815_vm4  ;;  %vm1245_vm0 = vcmask (!%p138_p2), 1045508  }
   0xc   : > { %8558 = vmatpush3.bf16.msra.mxu0 (!%p138_p2), %v9087_v3  ;;  %8271 = vmatprep.subr.bf16.mxu1 (!%p138_p2), %v9088_v4  ;;  %vm9503_vm8 = vmor (!%p138_p2), %vm357_vm5, %vm358_vm6 }
   0xd   : > { %s10745_s13 = smov (!%p161_p3, %s6888_s13), 1  ;;  %8559 = vmatprep.subr.bf16.mxu0 %v9089_v5  ;;  %vm9602_vm11 = vmor %vm674_vm9, %vm675_vm10 }
   0xe   : > { %s9075_s30 = smul.u32 112, %s10745_s13  ;;  %vm9699_vm14 = vmor %vm895_vm12, %vm896_vm13  ;;  %s7935_s7 = sshll.u32 %s10745_s13, 5 }
   0xf   : > { %8272 = vmatpush3.bf16.msra.mxu1 %v9088_v4  ;;  %vm9819_vm1 = vmor %vm1244_vm15, %vm1245_vm0  ;;  %s170_s10 = scalar_lea.vmem %s10731_s3, %s7935_s7 }
  0x10   : > { %8560 = vmatpush3.bf16.msra.mxu0 %v9089_v5  ;;  %8273 = vmatprep.subr.bf16.mxu1 %v9090_v6  ;;  %s9375_s14 = scalar_lea.vmem %s10728_s0, %s9075_s30 }
  0x11   : > { %8561 = vmatprep.subr.bf16.mxu0 %v9091_v7  ;;  %v9100_v11 = vld [vmem:[%s9375_s14] ss:$8 sps:$4 sm:$0xff]   ;;  %v7329_v16 = vld [vmem:[%s9375_s14 + $0xc] sm:$0x7]  ;;  %v7330_v17 = vld [vmem:[%s9375_s14 + $0x10] sm:$0xc] }
  0x12   : > { %8283 = vmatprep.mubr.bf16.mxu1 %v9100_v11  ;;  %v7328_v14 = vld [vmem:[%s9375_s14 + $0x8] sm:$0xc]  ;;  %v7331_v20 = vld [vmem:[%s9375_s14 + $0x14] sm:$0x7]  ;;  %v3328_v21 = vshrl.u32 %v7329_v16, 16  ;;  %v3331_v22 = vshll.u32 %v7329_v16, 16 }
  0x13   : > { %8274 = vmatpush3.bf16.msra.mxu1 %v9090_v6  ;;  %v3319_v18 = vshrl.u32 %v7328_v14, 16  ;;  %v3322_v19 = vshll.u32 %v7328_v14, 16  ;;  %v3337_v23 = vshrl.u32 %v7330_v17, 16  ;;  %v3340_v24 = vshll.u32 %v7330_v17, 16  ;;  %v7332_v41 = vld [vmem:[%s9375_s14 + $0x18] sm:$0xc] }
  0x14   : > { %8562 = vmatpush3.bf16.msra.mxu0 %v9091_v7  ;;  %8275 = vmatprep.subr.bf16.mxu1 %v9092_v8  ;;  %v3346_v27 = vshrl.u32 %v7331_v20, 16  ;;  %v3349_v28 = vshll.u32 %v7331_v20, 16  ;;  %v3330_v29 = vrot.slane %v3328_v21, 6  ;;  %v3333_v30 = vrot.slane %v3331_v22, 7  ;;  %v7333_v44 = vld [vmem:[%s9375_s14 + $0x1c] sm:$0x7] }
  0x15   : > { %8563 = vmatprep.subr.bf16.mxu0 %v9093_v9  ;;  %v3321_v25 = vrot.slane %v3319_v18, 6  ;;  %v3324_v26 = vrot.slane %v3322_v19, 7  ;;  %v3339_v31 = vrot.slane %v3337_v23, 6  ;;  %v3342_v32 = vrot.slane %v3340_v24, 7  ;;  %v7334_v45 = vld [vmem:[%s9375_s14 + $0x20] sm:$0xc] }
  0x16   : > { %v3348_v36 = vrot.slane %v3346_v27, 6  ;;  %v3351_v37 = vrot.slane %v3349_v28, 7  ;;  %v3334_v39 = vor.u32 %v3333_v30, %v3330_v29  ;;  %v3355_v46 = vshrl.u32 %v7332_v41, 16  ;;  %v7335_v48 = vld [vmem:[%s9375_s14 + $0x24] sm:$0x7]  ;;  %v9105_v17 = vld [vmem:[%s10729_s1 + $0x348] sm:$0xff]  }
  0x17   : > { %8276 = vmatpush3.bf16.msra.mxu1 %v9092_v8  ;;  %v3325_v35 = vor.u32 %v3324_v26, %v3321_v25  ;;  %v3343_v40 = vor.u32 %v3342_v32, %v3339_v31  ;;  %v3358_v49 = vshll.u32 %v7332_v41, 16  ;;  %v3364_v50 = vshrl.u32 %v7333_v44, 16  ;;  %v9103_v58 = vld [vmem:[%s9375_s14 + $0x10] ss:$8 sps:$4 sm:$0xff]   ;;  %v9104_v8 = vld [vmem:[%s10729_s1 + $0x48] sm:$0xff]  }
  0x18   : > { %8564 = vmatpush3.bf16.msra.mxu0 %v9093_v9  ;;  %8277 = vmatprep.subr.bf16.mxu1 %v9094_v10  ;;  %v3352_v43 = vor.u32 %v3351_v37, %v3348_v36  ;;  %v3367_v51 = vshll.u32 %v7333_v44, 16  ;;  %v3357_v53 = vrot.slane %v3355_v46, 6  ;;  %v3373_v54 = vshrl.u32 %v7334_v45, 16  ;;  %v9114_v18 = vld [vmem:[%s9375_s14 + $0x20] ss:$8 sps:$4 sm:$0xff]   ;;  %v9107_v19 = vld [vmem:[%s10729_s1 + $0x350] sm:$0xff]  }
  0x19   : > { %8565 = vmatprep.subr.bf16.mxu0 %v9095_v12  ;;  %v3326_v42 = vrot.slane %v3325_v35, 4  ;;  %v3344_v47 = vrot.slane %v3343_v40, 4  ;;  %v3376_v55 = vshll.u32 %v7334_v45, 16  ;;  %v3360_v59 = vrot.slane %v3358_v49, 7  ;;  %v9108_v20 = vld [vmem:[%s10729_s1 + $0x58] sm:$0xff]  }
  0x1a   : > { %v3366_v60 = vrot.slane %v3364_v50, 6  ;;  %v3369_v61 = vrot.slane %v3367_v51, 7  ;;  %v3375_v0 = vrot.slane %v3373_v54, 6  ;;  %v3382_v2 = vshrl.u32 %v7335_v48, 16  ;;  %v7336_v21 = vld [vmem:[%s9375_s14 + $0x28] sm:$0xc] }
  0x1b   : > { %8278 = vmatpush3.bf16.msra.mxu1 %v9094_v10  ;;  %v3335_v52 = vsel %vm9399_vm2, %v3326_v42, %v3334_v39  ;;  %v3353_v57 = vsel %vm9399_vm2, %v3344_v47, %v3352_v43  ;;  %v3378_v1 = vrot.slane %v3376_v55, 7  ;;  %v3361_v3 = vor.u32 %v3360_v59, %v3357_v53  ;;  %v7337_v22 = vld [vmem:[%s9375_s14 + $0x2c] sm:$0x7]  ;;  %v7338_v23 = vld [vmem:[%s9375_s14 + $0x30] sm:$0xc]  ;;  %v9109_v37 = vld [vmem:[%s10729_s1 + $0x358] sm:$0xff]  }
  0x1c   : > { %8566 = vmatpush3.bf16.msra.mxu0 %v9095_v12  ;;  %8279 = vmatprep.subr.bf16.mxu1 %v9096_v13  ;;  %v7360_v62 = vcombine.low %v3335_v52, %v3353_v57  ;;  %v3370_v4 = vor.u32 %v3369_v61, %v3366_v60  ;;  %v3385_v5 = vshll.u32 %v7335_v48, 16  ;;  %v3384_v7 = vrot.slane %v3382_v2, 6  ;;  %v7339_v24 = vld [vmem:[%s9375_s14 + $0x34] sm:$0x7]  ;;  %v9110_v39 = vld [vmem:[%s10729_s1 + $0x60] sm:$0xff]   ;;  %v9112_v47 = vld [vmem:[%s10729_s1 + $0x68] sm:$0xff]  }
  0x1d   : > { %8567 = vmatprep.subr.bf16.mxu0 %v9097_v15  ;;  %v3379_v6 = vor.u32 %v3378_v1, %v3375_v0  ;;  %v3362_v9 = vrot.slane %v3361_v3, 4  ;;  %v3391_v25 = vshrl.u32 %v7336_v21, 16  ;;  %v3394_v26 = vshll.u32 %v7336_v21, 16  ;;  %v9117_v46 = vld [vmem:[%s9375_s14 + $0x30] ss:$8 sps:$4 sm:$0xff]  }
  0x1e   : > { %8571 = vmatprep.mubr.bf16.mxu0 %v7360_v62  ;;  %v3387_v10 = vrot.slane %v3385_v5, 7  ;;  %v3400_v27 = vshrl.u32 %v7337_v22, 16  ;;  %v3403_v28 = vshll.u32 %v7337_v22, 16  ;;  %v3409_v29 = vshrl.u32 %v7338_v23, 16  ;;  %v7340_v50 = vld [vmem:[%s9375_s14 + $0x38] sm:$0xc] }
  0x1f   : > { %8280 = vmatpush3.bf16.msra.mxu1 %v9096_v13  ;;  %v3380_v11 = vrot.slane %v3379_v6, 4  ;;  %v3371_v12 = vsel %vm9399_vm2, %v3362_v9, %v3370_v4  ;;  %v3412_v30 = vshll.u32 %v7338_v23, 16  ;;  %v3418_v31 = vshrl.u32 %v7339_v24, 16  ;;  %v7341_v51 = vld [vmem:[%s9375_s14 + $0x3c] sm:$0x7]  ;;  %v9111_v62 = vld [vmem:[%s10729_s1 + $0x360] sm:$0xff]  }
  0x20   : > { %8568 = vmatpush3.bf16.msra.mxu0 %v9097_v15  ;;  %8281 = vmatprep.subr.bf16.mxu1 %v9098_v33  ;;  %v3388_v13 = vor.u32 %v3387_v10, %v3384_v7  ;;  %v9106_v15 = vld [vmem:[%s10729_s1 + $0x50] sm:$0xff]   ;;  %v3421_v32 = vshll.u32 %v7339_v24, 16  ;;  %v3402_v35 = vrot.slane %v3400_v27, 6  ;;  %v3405_v36 = vrot.slane %v3403_v28, 7  ;;  %v7342_v52 = vld [vmem:[%s9375_s14 + $0x40] sm:$0xc] }
  0x21   : > { %8569 = vmatprep.subr.bf16.mxu0 %v9099_v34  ;;  %v3411_v40 = vrot.slane %v3409_v29, 6  ;;  %v3414_v41 = vrot.slane %v3412_v30, 7  ;;  %v3420_v42 = vrot.slane %v3418_v31, 6  ;;  %v7343_v54 = vld [vmem:[%s9375_s14 + $0x44] sm:$0x7]  ;;  %v3427_v55 = vshrl.u32 %v7340_v50, 16 }
  0x22   : > { %v3389_v14 = vsel %vm9399_vm2, %v3380_v11, %v3388_v13  ;;  %v3423_v43 = vrot.slane %v3421_v32, 7  ;;  %v3406_v45 = vor.u32 %v3405_v36, %v3402_v35  ;;  %v3436_v57 = vshrl.u32 %v7341_v51, 16  ;;  %v9115_v3 = vld [vmem:[%s10729_s1 + $0x70] sm:$0xff]   ;;  %v9118_v23 = vld [vmem:[%s10729_s1 + $0x78] sm:$0xff]  }
  0x23   : > { %8282 = vmatpush3.bf16.msra.mxu1 %v9098_v33  ;;  %v7361_v16 = vcombine.low %v3371_v12, %v3389_v14  ;;  %v3393_v33 = vrot.slane %v3391_v25, 6  ;;  %v3415_v48 = vor.u32 %v3414_v41, %v3411_v40  ;;  %v3439_v59 = vshll.u32 %v7341_v51, 16  ;;  %v341_v12 = vld [vmem:[%s9375_s14] sm:$0xf]  ;;  %v9116_v35 = vld [vmem:[%s10729_s1 + $0x370] sm:$0xff]  }
  0x24   : > { %8570 = vmatpush3.bf16.msra.mxu0 %v9099_v34  ;;  %8291 = vmatprep.subr.bf16.mxu1 %v9101_v56  ;;  %v3396_v34 = vrot.slane %v3394_v26, 7  ;;  %v3424_v49 = vor.u32 %v3423_v43, %v3420_v42  ;;  %v3445_v60 = vshrl.u32 %v7342_v52, 16  ;;  %v3448_v61 = vshll.u32 %v7342_v52, 16  ;;  %v7374_v40 = vld [vmem:[%s9375_s14 + $0x10] sm:$0x8] }
  0x25   : > { %8579 = vmatprep.subr.bf16.mxu0 %v9102_v63  ;;  %v3429_v0 = vrot.slane %v3427_v55, 6  ;;  %v3438_v2 = vrot.slane %v3436_v57, 6  ;;  %v3441_v5 = vrot.slane %v3439_v59, 7  ;;  %v3454_v10 = vshrl.u32 %v7343_v54, 16  ;;  %v345_v57 = vld [vmem:[%s9375_s14 + $0x10] sm:$0xf] }
  0x26   : > { %8284 = vmatmul.mubr.bf16.vlgmr.msra.gmra.mrb[0].mxu1 %v9103_v58  ;;  %v3397_v44 = vor.u32 %v3396_v34, %v3393_v33  ;;  %v3416_v58 = vrot.slane %v3415_v48, 4  ;;  %v3447_v6 = vrot.slane %v3445_v60, 6  ;;  %v3450_v7 = vrot.slane %v3448_v61, 7  ;;  %v7372_v34 = vld [vmem:[%s9375_s14 + $0x8] sm:$0x8]  ;;  %v9119_v48 = vld [vmem:[%s10729_s1 + $0x378] sm:$0xff]  }
  0x27   : > { %8292 = vmatpush3.bf16.msra.mxu1 %v9101_v56  ;;  %8572 = vmatmul.mubr.bf16.vlgmr.msra.gmra.mrb[0].mxu0 %v7361_v16  ;;  %v3430_v56 = vshll.u32 %v7340_v50, 16  ;;  %v3457_v11 = vshll.u32 %v7343_v54, 16  ;;  %v3442_v13 = vor.u32 %v3441_v5, %v3438_v2  ;;  %v343_v16 = vld [vmem:[%s9375_s14 + $0x8] sm:$0xf]  ;;  %v361_v24 = vshrl.u32 %v341_v12, 16 }
  0x28   : > { %8293 = vmatprep.subr.bf16.mxu1 %v9104_v8  ;;  %8580 = vmatpush3.bf16.msra.mxu0 %v9102_v63  ;;  %v3398_v53 = vrot.slane %v3397_v44, 4  ;;  %v3425_v4 = vsel %vm9399_vm2, %v3416_v58, %v3424_v49  ;;  %v3451_v14 = vor.u32 %v3450_v7, %v3447_v6  ;;  %v364_v25 = vshll.u32 %v341_v12, 16  ;;  %v346_v58 = vld [vmem:[%s9375_s14 + $0x14] sm:$0x1]  ;;  %v347_v61 = vld [vmem:[%s9375_s14 + $0x18] sm:$0xf] }
  0x29   : > { %8581 = vmatprep.subr.bf16.mxu0 %v9105_v17  ;;  %8287 = vmatprep.mubr.bf16.mxu1 %v9114_v18  ;;  %v3432_v1 = vrot.slane %v3430_v56, 7  ;;  %v9113_v18 = vld [vmem:[%s10729_s1 + $0x368] sm:$0xff]   ;;  %v3459_v21 = vrot.slane %v3457_v11, 7  ;;  %v375_v29 = vshrl.u32 %v343_v16, 16  ;;  %v363_v30 = vrot.slane %v361_v24, 4 }
  0x2a   : > { %v3407_v63 = vsel %vm9399_vm2, %v3398_v53, %v3406_v45  ;;  %v3452_v22 = vrot.slane %v3451_v14, 4  ;;  %v366_v31 = vrot.slane %v364_v25, 5  ;;  %v378_v32 = vshll.u32 %v343_v16, 16  ;;  %v9489_v45 = vld [vmem:[%s10729_s1 + $0x80] sm:$0xff]   ;;  %v7376_v5 = vld [vmem:[%s9375_s14 + $0x18] sm:$0x8] }
  0x2b   : > { %8294 = vmatpush3.bf16.msra.mxu1 %v9104_v8  ;;  %v7362_v8 = vcombine.low %v3407_v63, %v3425_v4  ;;  %v3433_v9 = vor.u32 %v3432_v1, %v3429_v0  ;;  %v7388_v50 = vrot.slane %v7372_v34, 11  ;;  %v7389_v52 = vrot.slane %v7374_v40, 11  ;;  %v7377_v6 = vld [vmem:[%s9375_s14 + $0x1c] sm:$0x7]  ;;  %v7378_v11 = vld [vmem:[%s9375_s14 + $0x20] sm:$0x8] }
  0x2c   : > { %8295 = vmatprep.subr.bf16.mxu1 %v9106_v15  ;;  %8582 = vmatpush3.bf16.msra.mxu0 %v9105_v17  ;;  %v344_v17 = vld [vmem:[%s9375_s14 + $0xc] sm:$0x1]  ;;  %v367_v42 = vor.u32 %v366_v31, %v363_v30  ;;  %v380_v44 = vrot.slane %v378_v32, 5  ;;  %v389_v63 = vshrl.u32 %v345_v57, 16  ;;  %v392_v0 = vshll.u32 %v345_v57, 16  ;;  %v9127_v40 = vld [vmem:[%s10729_s1 + $0x398] sm:$0xff]  }
  0x2d   : > { %8583 = vmatprep.subr.bf16.mxu0 %v9107_v19  ;;  %8575 = vmatprep.mubr.bf16.mxu0 %v7362_v8  ;;  %v384_v33 = vshll.u32 %v344_v17, 16  ;;  %v398_v4 = vshll.u32 %v346_v58, 16  ;;  %v7379_v16 = vld [vmem:[%s9375_s14 + $0x24] sm:$0x7]  ;;  %v7390_v17 = vrot.slane %v7376_v5, 11 }
  0x2e   : > { %8288 = vmatmul.mubr.bf16.gmra.mrb[4].mxu1 %v9117_v46  ;;  %v368_v54 = vrot.slane %v367_v42, 4  ;;  %v391_v7 = vrot.slane %v389_v63, 4  ;;  %v394_v8 = vrot.slane %v392_v0, 5  ;;  %v3678_v24 = vrot.slane %v7379_v16, 7  ;;  %v350_v42 = vld [vmem:[%s9375_s14 + $0x24] sm:$0x1] }
  0x2f   : > { %8296 = vmatpush3.bf16.msra.mxu1 %v9106_v15  ;;  %v342_v15 = vld [vmem:[%s9375_s14 + $0x4] sm:$0x1]  ;;  %v386_v56 = vrot.slane %v384_v33, 5  ;;  %v400_v14 = vrot.slane %v398_v4, 5  ;;  %v9123_v33 = vld [vmem:[%s10729_s1 + $0x388] sm:$0xff]  }
  0x30   : > { %8297 = vmatprep.subr.bf16.mxu1 %v9108_v20  ;;  %8584 = vmatpush3.bf16.msra.mxu0 %v9107_v19  ;;  %v3434_v19 = vrot.slane %v3433_v9, 4  ;;  %v370_v28 = vshll.u32 %v342_v15, 16  ;;  %v403_v9 = vshrl.u32 %v347_v61, 16  ;;  %v9129_v58 = vld [vmem:[%s10729_s1 + $0x3a0] sm:$0xff]   ;;  %v7382_v0 = vld [vmem:[%s9375_s14 + $0x30] sm:$0x8] }
  0x31   : > { %8585 = vmatprep.subr.bf16.mxu0 %v9109_v37  ;;  %v7393_v5 = vrot.slane %v7382_v0, 11 }
  0x32   : > { %v3443_v26 = vsel %vm9399_vm2, %v3434_v19, %v3442_v13  ;;  %v372_v43 = vrot.slane %v370_v28, 5  ;;  %v9121_v13 = vld [vmem:[%s10729_s1 + $0x380] sm:$0xff]   ;;  %v395_v19 = vor.u32 %v394_v8, %v391_v7 }
  0x33   : > { %8298 = vmatpush3.bf16.msra.mxu1 %v9108_v20  ;;  %v3456_v20 = vrot.slane %v3454_v10, 6  ;;  %v406_v10 = vshll.u32 %v347_v61, 16  ;;  %v7380_v61 = vld [vmem:[%s9375_s14 + $0x28] sm:$0x8]  ;;  %v9128_v7 = vld [vmem:[%s10729_s1 + $0xa0] sm:$0xff]  }
  0x34   : > { %8299 = vmatprep.subr.bf16.mxu1 %v9110_v39  ;;  %8586 = vmatpush3.bf16.msra.mxu0 %v9109_v37  ;;  %v377_v37 = vrot.slane %v375_v29, 4  ;;  %v373_v1 = vsel %vm9503_vm8, %v368_v54, %v372_v43  ;;  %v396_v25 = vrot.slane %v395_v19, 4  ;;  %v351_v43 = vld [vmem:[%s9375_s14 + $0x28] sm:$0xf] }
  0x35   : > { %8587 = vmatprep.subr.bf16.mxu0 %v9111_v62  ;;  %v3460_v27 = vor.u32 %v3459_v21, %v3456_v20  ;;  %v405_v20 = vrot.slane %v403_v9, 4  ;;  %v408_v21 = vrot.slane %v406_v10, 5  ;;  %v353_v10 = vld [vmem:[%s9375_s14 + $0x30] sm:$0xf] }
  0x36   : > { %v381_v55 = vor.u32 %v380_v44, %v377_v37  ;;  %v401_v30 = vsel %vm9503_vm8, %v396_v25, %v400_v14  ;;  %v9125_v37 = vld [vmem:[%s10729_s1 + $0x390] sm:$0xff]   ;;  %v352_v44 = vld [vmem:[%s9375_s14 + $0x2c] sm:$0x1]  ;;  %v355_v14 = vld [vmem:[%s9375_s14 + $0x38] sm:$0xf]  ;;  %v445_v16 = vshrl.u32 %v353_v10, 16 }
  0x37   : > { %8300 = vmatpush3.bf16.msra.mxu1 %v9110_v39  ;;  %v3461_v36 = vsel %vm9399_vm2, %v3452_v22, %v3460_v27  ;;  %v7373_v39 = vld [vmem:[%s9375_s14 + $0xc] sm:$0x7]  ;;  %v3674_v22 = vrot.slane %v7377_v6, 7  ;;  %v448_v19 = vshll.u32 %v353_v10, 16  ;;  %v648_v10 = vld [vmem:[%s9375_s14 + $0x18] sm:$0xe] }
  0x38   : > { %8301 = vmatprep.subr.bf16.mxu1 %v9112_v47  ;;  %8588 = vmatpush3.bf16.msra.mxu0 %v9111_v62  ;;  %v7363_v41 = vcombine.low %v3443_v26, %v3461_v36  ;;  %v3666_v51 = vrot.slane %v7373_v39, 7  ;;  %v348_v62 = vld [vmem:[%s9375_s14 + $0x1c] sm:$0x1]  ;;  %v382_v2 = vrot.slane %v381_v55, 4  ;;  %v409_v26 = vor.u32 %v408_v21, %v405_v20  ;;  %v9122_v36 = vld [vmem:[%s10729_s1 + $0x88] sm:$0xff]   ;;  %v9124_v39 = vld [vmem:[%s10729_s1 + $0x90] sm:$0xff]  }
  0x39   : > { %8589 = vmatprep.subr.bf16.mxu0 %v9113_v18  ;;  %v412_v15 = vshll.u32 %v348_v62, 16  ;;  %v3675_v28 = vsel %vm9493_vm7, %v7390_v17, %v3674_v22  ;;  %v7381_v62 = vld [vmem:[%s9375_s14 + $0x2c] sm:$0x7]  ;;  %v7384_v21 = vld [vmem:[%s9375_s14 + $0x38] sm:$0x8]  ;;  %v447_v25 = vrot.slane %v445_v16, 4 }
  0x3a   : > { %8576 = vmatmul.mubr.bf16.gmra.mrb[4].mxu0 %v7363_v41  ;;  %v3667_v59 = vsel %vm9493_vm7, %v7388_v50, %v3666_v51  ;;  %v387_v12 = vsel %vm9503_vm8, %v382_v2, %v386_v56  ;;  %v410_v31 = vrot.slane %v409_v26, 4  ;;  %v349_v41 = vld [vmem:[%s9375_s14 + $0x20] sm:$0xf]  ;;  %v426_v50 = vshll.u32 %v350_v42, 16  ;;  %v7385_v22 = vld [vmem:[%s9375_s14 + $0x3c] sm:$0x7] }
  0x3b   : > { %8302 = vmatpush3.bf16.msra.mxu1 %v9112_v47  ;;  %v7375_v47 = vld [vmem:[%s9375_s14 + $0x14] sm:$0x7]  ;;  %v414_v27 = vrot.slane %v412_v15, 5  ;;  %v431_v51 = vshrl.u32 %v351_v43, 16  ;;  %v7392_v2 = vrot.slane %v7380_v61, 11  ;;  %v459_v26 = vshrl.u32 %v355_v14, 16 }
  0x3c   : > { %8303 = vmatprep.subr.bf16.mxu1 %v9115_v3  ;;  %v3670_v53 = vrot.slane %v7375_v47, 7  ;;  %8590 = vmatpush3.bf16.msra.mxu0 %v9113_v18  ;;  %v6924_v18 = vcombine.low %v373_v1, %v387_v12  ;;  %v417_v47 = vshrl.u32 %v349_v41, 16  ;;  %v428_v56 = vrot.slane %v426_v50, 5  ;;  %v7383_v1 = vld [vmem:[%s9375_s14 + $0x34] sm:$0x7]  ;;  %v9138_v16 = vld [vmem:[%s10729_s1 + $0x3c0] sm:$0xff]  }
  0x3d   : > { %8591 = vmatprep.subr.bf16.mxu0 %v9116_v35  ;;  %v415_v34 = vsel %vm9503_vm8, %v410_v31, %v414_v27  ;;  %v433_v57 = vrot.slane %v431_v51, 4  ;;  %v3686_v6 = vrot.slane %v7383_v1, 7  ;;  %v356_v15 = vld [vmem:[%s9375_s14 + $0x3c] sm:$0x1]  ;;  %v462_v27 = vshll.u32 %v355_v14, 16 }
  0x3e   : > { %v3671_v60 = vsel %vm9493_vm7, %v7389_v52, %v3670_v53  ;;  %8307 = vmatprep.mubr.bf16.mxu1 %v6924_v18  ;;  %v434_v52 = vshll.u32 %v351_v43, 16  ;;  %v440_v53 = vshll.u32 %v352_v44, 16  ;;  %v419_v54 = vrot.slane %v417_v47, 4  ;;  %v642_v50 = vld [vmem:[%s9375_s14] sm:$0xe] }
  0x3f   : > { %8304 = vmatpush3.bf16.msra.mxu1 %v9115_v3  ;;  %v7412_v3 = vcombine.low %v3667_v59, %v3671_v60  ;;  %v450_v31 = vrot.slane %v448_v19, 5  ;;  %v6939_v14 = vrot.slane %v648_v10, 9  ;;  %v9152_v10 = vld [vmem:[%s10729_s1 + $0x3f0] sm:$0xff]  }
  0x40   : > { %8305 = vmatprep.subr.bf16.mxu1 %v9118_v23  ;;  %8592 = vmatpush3.bf16.msra.mxu0 %v9116_v35  ;;  %v6925_v35 = vcombine.low %v401_v30, %v415_v34  ;;  %v436_v59 = vrot.slane %v434_v52, 5  ;;  %v442_v60 = vrot.slane %v440_v53, 5  ;;  %v7387_v34 = vld [vmem:[%s9375_s14 + $0x44] sm:$0x7] }
  0x41   : > { %8593 = vmatprep.subr.bf16.mxu0 %v9119_v48  ;;  %8595 = vmatprep.mubr.bf16.mxu0 %v7412_v3  ;;  %v3682_v3 = vrot.slane %v7381_v62, 7  ;;  %v3694_v44 = vrot.slane %v7387_v34, 7  ;;  %v643_v53 = vld [vmem:[%s9375_s14 + $0x4] sm:$0x1] }
  0x42   : > { %v437_v4 = vor.u32 %v436_v59, %v433_v57  ;;  %v645_v59 = vld [vmem:[%s9375_s14 + $0xc] sm:$0x1] }
  0x43   : > { %8306 = vmatpush3.bf16.msra.mxu1 %v9118_v23  ;;  %v7391_v23 = vrot.slane %v7378_v11, 11  ;;  %v3683_v9 = vsel %vm9493_vm7, %v7392_v2, %v3682_v3  ;;  %v354_v11 = vld [vmem:[%s9375_s14 + $0x34] sm:$0x1]  ;;  %v683_v0 = vrot.slane %v645_v59, 5  ;;  %v9137_v3 = vld [vmem:[%s9375_s14 + $0x10] ss:$8 sps:$4 sm:$0xff]  }
  0x44   : > { %8315 = vmatprep.subr.bf16.mxu1 %v9489_v45  ;;  %8594 = vmatpush3.bf16.msra.mxu0 %v9119_v48  ;;  %v420_v48 = vshll.u32 %v349_v41, 16  ;;  %v438_v12 = vrot.slane %v437_v4, 4  ;;  %v454_v20 = vshll.u32 %v354_v11, 16  ;;  %v451_v41 = vor.u32 %v450_v31, %v447_v25  ;;  %v649_v11 = vld [vmem:[%s9375_s14 + $0x1c] sm:$0x1] }
  0x45   : > { %v3679_v29 = vsel %vm9493_vm7, %v7391_v23, %v3678_v24  ;;  %8603 = vmatprep.subr.bf16.mxu0 %v9121_v13  ;;  %v9131_v23 = vld [vmem:[%s10729_s1 + $0x3a8] sm:$0xff]   ;;  %v650_v25 = vld [vmem:[%s9375_s14 + $0x20] sm:$0xe] }
  0x46   : > { %v7413_v32 = vcombine.low %v3675_v28, %v3679_v29  ;;  %8308 = vmatmul.mubr.bf16.vlgmr.msra.gmra.mrb[0].mxu1 %v6925_v35  ;;  %v422_v55 = vrot.slane %v420_v48, 5  ;;  %v443_v24 = vsel %vm9503_vm8, %v438_v12, %v442_v60  ;;  %v7386_v28 = vld [vmem:[%s9375_s14 + $0x40] sm:$0x8]  ;;  %v9130_v29 = vld [vmem:[%s10729_s1 + $0xa8] sm:$0xff]   ;;  %v461_v35 = vrot.slane %v459_v26, 4 }
  0x47   : > { %8316 = vmatpush3.bf16.msra.mxu1 %v9489_v45  ;;  %v9126_v45 = vld [vmem:[%s10729_s1 + $0x98] sm:$0xff]   ;;  %v7395_v43 = vrot.slane %v7386_v28, 11  ;;  %v452_v51 = vrot.slane %v451_v41, 4  ;;  %v679_v60 = vrot.slane %v643_v53, 5  ;;  %v651_v26 = vld [vmem:[%s9375_s14 + $0x24] sm:$0x1] }
  0x48   : > { %8596 = vmatmul.mubr.bf16.vlgmr.msra.gmra.mrb[0].mxu0 %v7413_v32  ;;  %8317 = vmatprep.subr.bf16.mxu1 %v9122_v36  ;;  %v423_v63 = vor.u32 %v422_v55, %v419_v54  ;;  %v456_v32 = vrot.slane %v454_v20, 5  ;;  %v6936_v55 = vrot.slane %v642_v50, 9  ;;  %v9139_v20 = vld [vmem:[%s9375_s14 + $0x20] ss:$8 sps:$4 sm:$0xff]   ;;  %v9142_v28 = vld [vmem:[%s10729_s1 + $0xd0] sm:$0xff]   ;;  %v695_v31 = vrot.slane %v651_v26, 5 }
  0x49   : > { %8604 = vmatpush3.bf16.msra.mxu0 %v9121_v13  ;;  %v3687_v13 = vsel %vm9493_vm7, %v7393_v5, %v3686_v6  ;;  %v3695_v52 = vsel %vm9493_vm7, %v7395_v43, %v3694_v44  ;;  %v9134_v5 = vld [vmem:[%s10729_s1 + $0xb8] sm:$0xff]   ;;  %v9147_v41 = vld [vmem:[%s10729_s1 + $0x3e0] sm:$0xff]   ;;  %v655_v43 = vld [vmem:[%s9375_s14 + $0x34] sm:$0x1] }
  0x4a   : > { %8605 = vmatprep.subr.bf16.mxu0 %v9123_v33  ;;  %v424_v8 = vrot.slane %v423_v63, 4  ;;  %v7414_v18 = vcombine.low %v3683_v9, %v3687_v13  ;;  %v457_v62 = vsel %vm9503_vm8, %v452_v51, %v456_v32  ;;  %v9135_v63 = vld [vmem:[%s10729_s1 + $0x3b8] sm:$0xff]   ;;  %v680_v2 = vsel %vm9602_vm11, %v6936_v55, %v679_v60  ;;  %v647_v9 = vld [vmem:[%s9375_s14 + $0x14] sm:$0x1]  ;;  %v9153_v53 = vld [vmem:[%s9375_s14 + $0x40] ss:$8 sps:$4 sm:$0xff]  }
  0x4b   : > { %8318 = vmatpush3.bf16.msra.mxu1 %v9122_v36  ;;  %v464_v36 = vrot.slane %v462_v27, 5  ;;  %v687_v13 = vrot.slane %v647_v9, 5  ;;  %v652_v27 = vld [vmem:[%s9375_s14 + $0x28] sm:$0xe]  ;;  %v656_v44 = vld [vmem:[%s9375_s14 + $0x38] sm:$0xe] }
  0x4c   : > { %8319 = vmatprep.subr.bf16.mxu1 %v9124_v39  ;;  %v429_v17 = vsel %vm9503_vm8, %v424_v8, %v428_v56  ;;  %8599 = vmatprep.mubr.bf16.mxu0 %v7414_v18  ;;  %v9132_v56 = vld [vmem:[%s10729_s1 + $0xb0] sm:$0xff]   ;;  %v6941_v32 = vrot.slane %v652_v27, 9  ;;  %v703_v50 = vrot.slane %v655_v43, 5  ;;  %v6943_v51 = vrot.slane %v656_v44, 9  ;;  %v879_v59 = vld [vmem:[%s9375_s14] sm:$0xe] }
  0x4d   : > { %8606 = vmatpush3.bf16.msra.mxu0 %v9123_v33  ;;  %v6926_v30 = vcombine.low %v429_v17, %v443_v24  ;;  %v468_v33 = vshll.u32 %v356_v15, 16  ;;  %v465_v47 = vor.u32 %v464_v36, %v461_v35  ;;  %v691_v15 = vrot.slane %v649_v11, 5  ;;  %v9136_v17 = vld [vmem:[%s10729_s1 + $0xc0] sm:$0xff]   ;;  %v9143_v24 = vld [vmem:[%s10729_s1 + $0x3d0] sm:$0xff]   ;;  %v9144_v35 = vld [vmem:[%s10729_s1 + $0xd8] sm:$0xff]  }
  0x4e   : > { %8607 = vmatprep.subr.bf16.mxu0 %v9125_v37  ;;  %v880_v60 = vld [vmem:[%s9375_s14 + $0x4] sm:$0x3]  ;;  %v9150_v27 = vld [vmem:[%s10729_s1 + $0xf0] sm:$0xff]  }
  0x4f   : > { %8320 = vmatpush3.bf16.msra.mxu1 %v9124_v39  ;;  %v3690_v39 = vrot.slane %v7385_v22, 7  ;;  %v470_v42 = vrot.slane %v468_v33, 5  ;;  %8311 = vmatprep.mubr.bf16.mxu1 %v6926_v30  ;;  %v466_v57 = vrot.slane %v465_v47, 4  ;;  %v692_v19 = vsel %vm9602_vm11, %v6939_v14, %v691_v15  ;;  %v9141_v22 = vld [vmem:[%s10729_s1 + $0x3c8] sm:$0xff]   ;;  %v9145_v33 = vld [vmem:[%s10729_s1 + $0x3d8] sm:$0xff]  }
  0x50   : > { %8321 = vmatprep.subr.bf16.mxu1 %v9126_v45  ;;  %v6940_v30 = vrot.slane %v650_v25, 9  ;;  %v657_v47 = vld [vmem:[%s9375_s14 + $0x3c] sm:$0x1]  ;;  %v7883_v54 = vld [vmem:[%s9375_s14 + $0x24] sm:$0x3] }
  0x51   : > { %8608 = vmatpush3.bf16.msra.mxu0 %v9125_v37  ;;  %v7394_v37 = vrot.slane %v7384_v21, 11  ;;  %v471_v1 = vsel %vm9503_vm8, %v466_v57, %v470_v42  ;;  %v9149_v57 = vld [vmem:[%s10729_s1 + $0x3e8] sm:$0xff]  }
  0x52   : > { %8609 = vmatprep.subr.bf16.mxu0 %v9127_v40  ;;  %v6927_v4 = vcombine.low %v457_v62, %v471_v1  ;;  %v696_v36 = vsel %vm9602_vm11, %v6940_v30, %v695_v31  ;;  %v882_v62 = vld [vmem:[%s9375_s14 + $0xc] sm:$0x3]  ;;  %v902_v1 = vshll.u32 %v879_v59, 16 }
  0x53   : > { %8322 = vmatpush3.bf16.msra.mxu1 %v9126_v45  ;;  %v3691_v48 = vsel %vm9493_vm7, %v7394_v37, %v3690_v39  ;;  %v644_v45 = vld [vmem:[%s9375_s14 + $0x8] sm:$0xe]  ;;  %v9151_v37 = vld [vmem:[%s9375_s14 + $0x30] ss:$8 sps:$4 sm:$0xff]   ;;  %v929_v9 = vshll.u32 %v882_v62, 16 }
  0x54   : > { %8323 = vmatprep.subr.bf16.mxu1 %v9128_v7  ;;  %v6937_v61 = vrot.slane %v644_v45, 9  ;;  %8312 = vmatmul.mubr.bf16.gmra.mrb[4].mxu1 %v6927_v4  ;;  %v9146_v45 = vld [vmem:[%s10729_s1 + $0xe0] sm:$0xff]  }
  0x55   : > { %8610 = vmatpush3.bf16.msra.mxu0 %v9127_v40  ;;  %v9133_v40 = vld [vmem:[%s10729_s1 + $0x3b0] sm:$0xff]  }
  0x56   : > { %8611 = vmatprep.subr.bf16.mxu0 %v9129_v58  ;;  %v684_v6 = vsel %vm9602_vm11, %v6937_v61, %v683_v0  ;;  %v881_v61 = vld [vmem:[%s9375_s14 + $0x8] sm:$0xe]  ;;  %v899_v0 = vshrl.u32 %v879_v59, 16 }
  0x57   : > { %8324 = vmatpush3.bf16.msra.mxu1 %v9128_v7  ;;  %v646_v7 = vld [vmem:[%s9375_s14 + $0x10] sm:$0xe]  ;;  %v6960_v8 = vcombine.low %v680_v2, %v684_v6  ;;  %v908_v2 = vshrl.u32 %v880_v60, 16  ;;  %v917_v4 = vshrl.u32 %v881_v61, 16 }
  0x58   : > { %8325 = vmatprep.subr.bf16.mxu1 %v9130_v29  ;;  %v6938_v12 = vrot.slane %v646_v7, 9  ;;  %v901_v6 = vrot.slane %v899_v0, 5  ;;  %v904_v7 = vrot.slane %v902_v1, 6 }
  0x59   : > { %8612 = vmatpush3.bf16.msra.mxu0 %v9129_v58  ;;  %v7415_v58 = vcombine.low %v3691_v48, %v3695_v52  ;;  %8331 = vmatprep.mubr.bf16.mxu1 %v6960_v8  ;;  %v707_v52 = vrot.slane %v657_v47, 5  ;;  %v926_v8 = vshrl.u32 %v882_v62, 16  ;;  %v910_v11 = vrot.slane %v908_v2, 5 }
  0x5a   : > { %8613 = vmatprep.subr.bf16.mxu0 %v9131_v23  ;;  %v688_v18 = vsel %vm9602_vm11, %v6938_v12, %v687_v13  ;;  %v919_v13 = vrot.slane %v917_v4, 5  ;;  %v905_v15 = vor.u32 %v904_v7, %v901_v6  ;;  %v7465_v4 = vld [vmem:[%s9375_s14 + $0x24] sm:$0x1] }
  0x5b   : > { %8600 = vmatmul.mubr.bf16.gmra.mrb[4].mxu0 %v7415_v58  ;;  %8326 = vmatpush3.bf16.msra.mxu1 %v9130_v29  ;;  %v6961_v21 = vcombine.low %v688_v18, %v692_v19  ;;  %v653_v29 = vld [vmem:[%s9375_s14 + $0x2c] sm:$0x1]  ;;  %v7460_v18 = vld [vmem:[%s9375_s14 + $0x10] sm:$0xf]  ;;  %v7461_v19 = vld [vmem:[%s9375_s14 + $0x14] sm:$0x1] }
  0x5c   : > { %8619 = vmatprep.mubr.bf16.mxu0 %v9137_v3  ;;  %8327 = vmatprep.subr.bf16.mxu1 %v9132_v56  ;;  %v699_v34 = vrot.slane %v653_v29, 5  ;;  %v911_v3 = vshll.u32 %v880_v60, 16  ;;  %v4070_v25 = vshrl.u32 %v7460_v18, 16  ;;  %v4073_v26 = vshll.u32 %v7460_v18, 16  ;;  %v9725_v60 = vld [vmem:[%s10729_s1 + $0x400] sm:$0xff]  }
  0x5d   : > { %8614 = vmatpush3.bf16.msra.mxu0 %v9131_v23  ;;  %v9140_v23 = vld [vmem:[%s10729_s1 + $0xc8] sm:$0xff]   ;;  %v4079_v30 = vshll.u32 %v7461_v19, 16 }
  0x5e   : > { %8615 = vmatprep.subr.bf16.mxu0 %v9133_v40  ;;  %v700_v39 = vsel %vm9602_vm11, %v6941_v32, %v699_v34  ;;  %v913_v12 = vrot.slane %v911_v3, 6  ;;  %v4075_v34 = vrot.slane %v4073_v26, 5 }
  0x5f   : > { %8328 = vmatpush3.bf16.msra.mxu1 %v9132_v56  ;;  %v6962_v42 = vcombine.low %v696_v36, %v700_v39  ;;  %v708_v56 = vsel %vm9602_vm11, %v6943_v51, %v707_v52  ;;  %v9155_v36 = vld [vmem:[%s10729_s1 + $0x3f8] sm:$0xff]   ;;  %v4081_v39 = vrot.slane %v4079_v30, 5 }
  0x60   : > { %8329 = vmatprep.subr.bf16.mxu1 %v9134_v5  ;;  %v9154_v52 = vld [vmem:[%s10729_s1 + $0xf8] sm:$0xff]  }
  0x61   : > { %8616 = vmatpush3.bf16.msra.mxu0 %v9133_v40  ;;  %v654_v40 = vld [vmem:[%s9375_s14 + $0x30] sm:$0xe] }
  0x62   : > { %8617 = vmatprep.subr.bf16.mxu0 %v9135_v63  ;;  %v6942_v48 = vrot.slane %v654_v40, 9 }
  0x63   : > { %8330 = vmatpush3.bf16.msra.mxu1 %v9134_v5  ;;  %v920_v5 = vshll.u32 %v881_v61, 16 }
  0x64   : > { %8339 = vmatprep.subr.bf16.mxu1 %v9136_v17  ;;  %v704_v55 = vsel %vm9602_vm11, %v6942_v48, %v703_v50  ;;  %v884_v48 = vld [vmem:[%s9375_s14 + $0x14] sm:$0x3]  ;;  %v885_v50 = vld [vmem:[%s9375_s14 + $0x18] sm:$0xe] }
  0x65   : > { %8618 = vmatpush3.bf16.msra.mxu0 %v9135_v63  ;;  %v6963_v58 = vcombine.low %v704_v55, %v708_v56  ;;  %v9148_v63 = vld [vmem:[%s10729_s1 + $0xe8] sm:$0xff]   ;;  %v922_v14 = vrot.slane %v920_v5, 6  ;;  %v886_v55 = vld [vmem:[%s9375_s14 + $0x1c] sm:$0x3]  ;;  %v947_v62 = vshll.u32 %v884_v48, 16  ;;  %v953_v2 = vshrl.u32 %v885_v50, 16 }
  0x66   : > { %8627 = vmatprep.subr.bf16.mxu0 %v9138_v16  ;;  %8332 = vmatmul.mubr.bf16.vlgmr.msra.gmra.mrb[0].mxu1 %v6961_v21  ;;  %v914_v21 = vor.u32 %v913_v12, %v910_v11  ;;  %v956_v3 = vshll.u32 %v885_v50, 16  ;;  %v9160_v50 = vld [vmem:[%s10729_s1 + $0x110] sm:$0xff]  }
  0x67   : > { %8340 = vmatpush3.bf16.msra.mxu1 %v9136_v17  ;;  %8335 = vmatprep.mubr.bf16.mxu1 %v6962_v42  ;;  %v931_v17 = vrot.slane %v929_v9, 6  ;;  %v883_v42 = vld [vmem:[%s9375_s14 + $0x10] sm:$0xe]  ;;  %v949_v7 = vrot.slane %v947_v62, 6  ;;  %v7466_v9 = vld [vmem:[%s9375_s14 + $0x28] sm:$0xf] }
  0x68   : > { %8620 = vmatmul.mubr.bf16.vlgmr.msra.gmra.mrb[0].mxu0 %v9139_v20  ;;  %8341 = vmatprep.subr.bf16.mxu1 %v9140_v23  ;;  %v935_v51 = vshrl.u32 %v883_v42, 16  ;;  %v938_v56 = vshll.u32 %v883_v42, 16  ;;  %v955_v12 = vrot.slane %v953_v2, 5  ;;  %v9162_v62 = vld [vmem:[%s10729_s1 + $0x118] sm:$0xff]  }
  0x69   : > { %8628 = vmatpush3.bf16.msra.mxu0 %v9138_v16  ;;  %8623 = vmatprep.mubr.bf16.mxu0 %v9151_v37  ;;  %v928_v16 = vrot.slane %v926_v8, 5  ;;  %v962_v8 = vshrl.u32 %v886_v55, 16 }
  0x6a   : > { %8629 = vmatprep.subr.bf16.mxu0 %v9141_v22  ;;  %v937_v61 = vrot.slane %v935_v51, 5  ;;  %v940_v0 = vrot.slane %v938_v56, 6  ;;  %v889_v56 = vld [vmem:[%s9375_s14 + $0x28] sm:$0xe] }
  0x6b   : > { %8342 = vmatpush3.bf16.msra.mxu1 %v9140_v23  ;;  %v7462_v23 = vld [vmem:[%s9375_s14 + $0x18] sm:$0xf]  ;;  %v932_v29 = vor.u32 %v931_v17, %v928_v16  ;;  %v964_v18 = vrot.slane %v962_v8, 5 }
  0x6c   : > { %8343 = vmatprep.subr.bf16.mxu1 %v9142_v28  ;;  %v4084_v31 = vshrl.u32 %v7462_v23, 16  ;;  %v941_v11 = vor.u32 %v940_v0, %v937_v61 }
  0x6d   : > { %8630 = vmatpush3.bf16.msra.mxu0 %v9141_v22  ;;  %v923_v22 = vor.u32 %v922_v14, %v919_v13  ;;  %v958_v13 = vrot.slane %v956_v3, 6  ;;  %v965_v14 = vshll.u32 %v886_v55, 16 }
  0x6e   : > { %8631 = vmatprep.subr.bf16.mxu0 %v9143_v24  ;;  %8336 = vmatmul.mubr.bf16.gmra.mrb[4].mxu1 %v6963_v58  ;;  %v4086_v40 = vrot.slane %v4084_v31, 4 }
  0x6f   : > { %8344 = vmatpush3.bf16.msra.mxu1 %v9142_v28  ;;  %v906_v28 = vrot.slane %v905_v15, 4  ;;  %v924_v32 = vrot.slane %v923_v22, 4  ;;  %v7467_v15 = vld [vmem:[%s9375_s14 + $0x2c] sm:$0x1]  ;;  %v942_v22 = vrot.slane %v941_v11, 4 }
  0x70   : > { %8345 = vmatprep.subr.bf16.mxu1 %v9144_v35  ;;  %8624 = vmatmul.mubr.bf16.gmra.mrb[4].mxu0 %v9153_v53 }
  0x71   : > { %8632 = vmatpush3.bf16.msra.mxu0 %v9143_v24  ;;  %v7463_v24 = vld [vmem:[%s9375_s14 + $0x1c] sm:$0x1]  ;;  %v915_v37 = vsel %vm9699_vm14, %v906_v28, %v914_v21  ;;  %v933_v43 = vsel %vm9699_vm14, %v924_v32, %v932_v29  ;;  %v4112_v28 = vshrl.u32 %v7466_v9, 16  ;;  %v4115_v32 = vshll.u32 %v7466_v9, 16 }
  0x72   : > { %8633 = vmatprep.subr.bf16.mxu0 %v9145_v33  ;;  %v6988_v53 = vcombine.low %v915_v37, %v933_v43 }
  0x73   : > { %8346 = vmatpush3.bf16.msra.mxu1 %v9144_v35  ;;  %v4087_v35 = vshll.u32 %v7462_v23, 16  ;;  %v959_v23 = vor.u32 %v958_v13, %v955_v12  ;;  %v4117_v37 = vrot.slane %v4115_v32, 5 }
  0x74   : > { %8347 = vmatprep.subr.bf16.mxu1 %v9146_v45  ;;  %8355 = vmatprep.mubr.bf16.mxu1 %v6988_v53  ;;  %v887_v53 = vld [vmem:[%s9375_s14 + $0x20] sm:$0xe] }
  0x75   : > { %8634 = vmatpush3.bf16.msra.mxu0 %v9145_v33  ;;  %v4072_v33 = vrot.slane %v4070_v25, 4  ;;  %v4089_v47 = vrot.slane %v4087_v35, 5  ;;  %v960_v30 = vrot.slane %v959_v23, 4  ;;  %v4121_v35 = vshll.u32 %v7467_v15, 16  ;;  %v7470_v15 = vld [vmem:[%s9375_s14 + $0x38] sm:$0xf] }
  0x76   : > { %8635 = vmatprep.subr.bf16.mxu0 %v9147_v41 }
  0x77   : > { %8348 = vmatpush3.bf16.msra.mxu1 %v9146_v45  ;;  %v4076_v44 = vor.u32 %v4075_v34, %v4072_v33  ;;  %v4090_v59 = vor.u32 %v4089_v47, %v4086_v40  ;;  %v4114_v34 = vrot.slane %v4112_v28, 4  ;;  %v4123_v43 = vrot.slane %v4121_v35, 5  ;;  %v9163_v35 = vld [vmem:[%s10729_s1 + $0x418] sm:$0xff]  }
  0x78   : > { %8349 = vmatprep.subr.bf16.mxu1 %v9148_v63 }
  0x79   : > { %8636 = vmatpush3.bf16.msra.mxu0 %v9147_v41  ;;  %v4093_v41 = vshll.u32 %v7463_v24, 16  ;;  %v4077_v58 = vrot.slane %v4076_v44, 4  ;;  %v4091_v6 = vrot.slane %v4090_v59, 4  ;;  %v967_v24 = vrot.slane %v965_v14, 6  ;;  %v7469_v14 = vld [vmem:[%s9375_s14 + $0x34] sm:$0x1] }
  0x7a   : > { %8637 = vmatprep.subr.bf16.mxu0 %v9149_v57  ;;  %v4118_v44 = vor.u32 %v4117_v37, %v4114_v34  ;;  %v974_v59 = vshll.u32 %v887_v53, 16  ;;  %v891_v34 = vld [vmem:[%s9375_s14 + $0x30] sm:$0xe] }
  0x7b   : > { %8350 = vmatpush3.bf16.msra.mxu1 %v9148_v63  ;;  %v4095_v45 = vrot.slane %v4093_v41, 5  ;;  %v7464_v63 = vld [vmem:[%s9375_s14 + $0x20] sm:$0xf]  ;;  %v4082_v5 = vsel %vm9503_vm8, %v4077_v58, %v4081_v39  ;;  %v968_v31 = vor.u32 %v967_v24, %v964_v18  ;;  %v9158_v39 = vld [vmem:[%s10729_s1 + $0x108] sm:$0xff]   ;;  %v971_v58 = vshrl.u32 %v887_v53, 16 }
  0x7c   : > { %8351 = vmatprep.subr.bf16.mxu1 %v9150_v27  ;;  %v4098_v19 = vshrl.u32 %v7464_v63, 16  ;;  %v4101_v26 = vshll.u32 %v7464_v63, 16  ;;  %v976_v3 = vrot.slane %v974_v59, 6 }
  0x7d   : > { %8638 = vmatpush3.bf16.msra.mxu0 %v9149_v57  ;;  %v944_v57 = vshrl.u32 %v884_v48, 16  ;;  %v4096_v16 = vsel %vm9503_vm8, %v4091_v6, %v4095_v45  ;;  %v4119_v48 = vrot.slane %v4118_v44, 4  ;;  %v888_v45 = vld [vmem:[%s9375_s14 + $0x24] sm:$0x3]  ;;  %v973_v2 = vrot.slane %v971_v58, 5 }
  0x7e   : > { %8639 = vmatprep.subr.bf16.mxu0 %v9152_v10  ;;  %v7492_v21 = vcombine.low %v4082_v5, %v4096_v16  ;;  %v4100_v25 = vrot.slane %v4098_v19, 4  ;;  %v4103_v33 = vrot.slane %v4101_v26, 5  ;;  %v980_v63 = vshrl.u32 %v888_v45, 16  ;;  %v9161_v16 = vld [vmem:[%s10729_s1 + $0x410] sm:$0xff]   ;;  %v7471_v19 = vld [vmem:[%s9375_s14 + $0x3c] sm:$0x1] }
  0x7f   : > { %v946_v1 = vrot.slane %v944_v57, 5  ;;  %8352 = vmatpush3.bf16.msra.mxu1 %v9150_v27  ;;  %v4107_v27 = vshll.u32 %v7465_v4, 16  ;;  %v4124_v55 = vsel %vm9503_vm8, %v4119_v48, %v4123_v43  ;;  %v890_v57 = vld [vmem:[%s9375_s14 + $0x2c] sm:$0x3]  ;;  %v983_v0 = vshll.u32 %v888_v45, 16  ;;  %v9164_v26 = vld [vmem:[%s10729_s1 + $0x120] sm:$0xff]  }
  0x80   : > { %8353 = vmatprep.subr.bf16.mxu1 %v9154_v52  ;;  %8643 = vmatprep.mubr.bf16.mxu0 %v7492_v21  ;;  %v4104_v41 = vor.u32 %v4103_v33, %v4100_v25  ;;  %v992_v4 = vshll.u32 %v889_v56, 16  ;;  %v998_v5 = vshrl.u32 %v890_v57, 16  ;;  %v982_v6 = vrot.slane %v980_v63, 5  ;;  %v893_v43 = vld [vmem:[%s9375_s14 + $0x38] sm:$0xe] }
  0x81   : > { %8640 = vmatpush3.bf16.msra.mxu0 %v9152_v10  ;;  %v9156_v10 = vld [vmem:[%s10729_s1 + $0x100] sm:$0xff]   ;;  %v950_v17 = vor.u32 %v949_v7, %v946_v1  ;;  %v4109_v42 = vrot.slane %v4107_v27, 5  ;;  %v989_v1 = vshrl.u32 %v889_v56, 16  ;;  %v985_v7 = vrot.slane %v983_v0, 6 }
  0x82   : > { %8641 = vmatprep.subr.bf16.mxu0 %v9155_v36  ;;  %v4105_v47 = vrot.slane %v4104_v41, 4  ;;  %v1001_v9 = vshll.u32 %v890_v57, 16  ;;  %v977_v11 = vor.u32 %v976_v3, %v973_v2  ;;  %v994_v12 = vrot.slane %v992_v4, 6  ;;  %v892_v41 = vld [vmem:[%s9375_s14 + $0x34] sm:$0x3] }
  0x83   : > { %8354 = vmatpush3.bf16.msra.mxu1 %v9154_v52  ;;  %v951_v29 = vsel %vm9699_vm14, %v942_v22, %v950_v17  ;;  %v9159_v52 = vld [vmem:[%s10729_s1 + $0x408] sm:$0xff]   ;;  %v991_v8 = vrot.slane %v989_v1, 5  ;;  %v1000_v13 = vrot.slane %v998_v5, 5  ;;  %v986_v17 = vor.u32 %v985_v7, %v982_v6  ;;  %v7473_v3 = vld [vmem:[%s9375_s14 + $0x44] sm:$0x1] }
  0x84   : > { %8363 = vmatprep.subr.bf16.mxu1 %v9156_v10  ;;  %v4110_v51 = vsel %vm9503_vm8, %v4105_v47, %v4109_v42  ;;  %v1003_v18 = vrot.slane %v1001_v9, 6  ;;  %v978_v23 = vrot.slane %v977_v11, 4  ;;  %v4140_v25 = vshrl.u32 %v7470_v15, 16  ;;  %v7474_v4 = vld [vmem:[%s9375_s14 + $0x48] sm:$0xf] }
  0x85   : > { %8642 = vmatpush3.bf16.msra.mxu0 %v9155_v36  ;;  %v969_v36 = vsel %vm9699_vm14, %v960_v30, %v968_v31  ;;  %v7493_v61 = vcombine.low %v4110_v51, %v4124_v55  ;;  %v995_v24 = vor.u32 %v994_v12, %v991_v8  ;;  %v4143_v30 = vshll.u32 %v7470_v15, 16  ;;  %v894_v55 = vld [vmem:[%s9375_s14 + $0x3c] sm:$0x3]  ;;  %v7475_v9 = vld [vmem:[%s9375_s14 + $0x4c] sm:$0x1] }
  0x86   : > { %8651 = vmatprep.subr.bf16.mxu0 %v9725_v60  ;;  %v6989_v40 = vcombine.low %v951_v29, %v969_v36  ;;  %v1004_v27 = vor.u32 %v1003_v18, %v1000_v13  ;;  %v987_v31 = vsel %vm9699_vm14, %v978_v23, %v986_v17  ;;  %v4142_v33 = vrot.slane %v4140_v25, 4 }
  0x87   : > { %v996_v32 = vrot.slane %v995_v24, 4  ;;  %v1007_v44 = vshrl.u32 %v891_v34, 16  ;;  %v1010_v47 = vshll.u32 %v891_v34, 16  ;;  %v1016_v48 = vshrl.u32 %v892_v41, 16 }
  0x88   : > { %8356 = vmatmul.mubr.bf16.vlgmr.msra.gmra.mrb[0].mxu1 %v6989_v40  ;;  %8644 = vmatmul.mubr.bf16.vlgmr.msra.gmra.mrb[0].mxu0 %v7493_v61  ;;  %v4149_v40 = vshll.u32 %v7471_v19, 16  ;;  %v1019_v59 = vshll.u32 %v892_v41, 16  ;;  %v7472_v61 = vld [vmem:[%s9375_s14 + $0x40] sm:$0xf]  ;;  %v1025_v1 = vshrl.u32 %v893_v43, 16  ;;  %v1028_v2 = vshll.u32 %v893_v43, 16 }
  0x89   : > { %8364 = vmatpush3.bf16.msra.mxu1 %v9156_v10  ;;  %v7468_v10 = vld [vmem:[%s9375_s14 + $0x30] sm:$0xf]  ;;  %8652 = vmatpush3.bf16.msra.mxu0 %v9725_v60  ;;  %v4135_v60 = vshll.u32 %v7469_v14, 16  ;;  %v1005_v42 = vsel %vm9699_vm14, %v996_v32, %v1004_v27  ;;  %v1009_v56 = vrot.slane %v1007_v44, 5  ;;  %v1012_v57 = vrot.slane %v1010_v47, 6  ;;  %v9167_v19 = vld [vmem:[%s10729_s1 + $0x428] sm:$0xff]  }
  0x8a   : > { %8365 = vmatprep.subr.bf16.mxu1 %v9158_v39  ;;  %8653 = vmatprep.subr.bf16.mxu0 %v9159_v52  ;;  %v4126_v21 = vshrl.u32 %v7468_v10, 16  ;;  %v4129_v22 = vshll.u32 %v7468_v10, 16  ;;  %v6990_v51 = vcombine.low %v987_v31, %v1005_v42  ;;  %v4151_v45 = vrot.slane %v4149_v40, 5  ;;  %v9168_v10 = vld [vmem:[%s10729_s1 + $0x130] sm:$0xff]   ;;  %v1215_v41 = vld [vmem:[%s9375_s14 + $0xc] sm:$0x3] }
  0x8b   : > { %v4137_v37 = vrot.slane %v4135_v60, 5  ;;  %v1018_v58 = vrot.slane %v1016_v48, 5  ;;  %v1013_v5 = vor.u32 %v1012_v57, %v1009_v56  ;;  %v1021_v6 = vrot.slane %v1019_v59, 6  ;;  %v1212_v60 = vld [vmem:[%s9375_s14] sm:$0xc] }
  0x8c   : > { %v4128_v28 = vrot.slane %v4126_v21, 4  ;;  %v4131_v29 = vrot.slane %v4129_v22, 5  ;;  %8359 = vmatprep.mubr.bf16.mxu1 %v6990_v51  ;;  %v1034_v7 = vshrl.u32 %v894_v55, 16  ;;  %v1037_v8 = vshll.u32 %v894_v55, 16  ;;  %v9828_v51 = vld [vmem:[%s10729_s1 + $0x140] sm:$0xff]  }
  0x8d   : > { %8366 = vmatpush3.bf16.msra.mxu1 %v9158_v39  ;;  %8654 = vmatpush3.bf16.msra.mxu0 %v9159_v52  ;;  %v4145_v39 = vrot.slane %v4143_v30, 5  ;;  %v1027_v12 = vrot.slane %v1025_v1, 5  ;;  %v1030_v13 = vrot.slane %v1028_v2, 6  ;;  %v4154_v14 = vshrl.u32 %v7472_v61, 16  ;;  %v9169_v30 = vld [vmem:[%s10729_s1 + $0x430] sm:$0xff]   ;;  %v10670_v42 = vld [vmem:[%s10729_s1 + $0x620] sm:$0xff]  }
  0x8e   : > { %8367 = vmatprep.subr.bf16.mxu1 %v9160_v50  ;;  %8655 = vmatprep.subr.bf16.mxu0 %v9161_v16  ;;  %v4132_v36 = vor.u32 %v4131_v29, %v4128_v28  ;;  %v1022_v17 = vor.u32 %v1021_v6, %v1018_v58  ;;  %v1036_v18 = vrot.slane %v1034_v7, 5  ;;  %v1039_v22 = vrot.slane %v1037_v8, 6  ;;  %v1213_v29 = vld [vmem:[%s9375_s14 + $0x4] sm:$0x3]  ;;  %v7504_v56 = vld [vmem:[%s9375_s14 + $0x10] sm:$0xe] }
  0x8f   : > { %v4146_v53 = vor.u32 %v4145_v39, %v4142_v33  ;;  %v1031_v21 = vor.u32 %v1030_v13, %v1027_v12  ;;  %v4156_v23 = vrot.slane %v4154_v14, 4  ;;  %v4157_v24 = vshll.u32 %v7472_v61, 16  ;;  %v7505_v57 = vld [vmem:[%s9375_s14 + $0x14] sm:$0x1]  ;;  %v7506_v61 = vld [vmem:[%s9375_s14 + $0x18] sm:$0xe] }
  0x90   : > { %v4133_v52 = vrot.slane %v4132_v36, 4  ;;  %v4168_v27 = vshrl.u32 %v7474_v4, 16  ;;  %v4171_v28 = vshll.u32 %v7474_v4, 16  ;;  %v1040_v32 = vor.u32 %v1039_v22, %v1036_v18  ;;  %v1214_v36 = vld [vmem:[%s9375_s14 + $0x8] sm:$0xc] }
  0x91   : > { %8368 = vmatpush3.bf16.msra.mxu1 %v9160_v50  ;;  %v9166_v50 = vld [vmem:[%s10729_s1 + $0x128] sm:$0xff]   ;;  %8656 = vmatpush3.bf16.msra.mxu0 %v9161_v16  ;;  %v4147_v0 = vrot.slane %v4146_v53, 4  ;;  %v1014_v16 = vrot.slane %v1013_v5, 4  ;;  %v1032_v31 = vrot.slane %v1031_v21, 4  ;;  %v4159_v33 = vrot.slane %v4157_v24, 5  ;;  %v9171_v5 = vld [vmem:[%s10729_s1 + $0x438] sm:$0xff]  }
  0x92   : > { %8369 = vmatprep.subr.bf16.mxu1 %v9162_v62  ;;  %8657 = vmatprep.subr.bf16.mxu0 %v9163_v35  ;;  %v4138_v63 = vsel %vm9503_vm8, %v4133_v52, %v4137_v37  ;;  %v4177_v34 = vshll.u32 %v7475_v9, 16  ;;  %v4170_v39 = vrot.slane %v4168_v27, 4  ;;  %v4173_v40 = vrot.slane %v4171_v28, 5  ;;  %v1216_v8 = vld [vmem:[%s9375_s14 + $0x10] sm:$0xc] }
  0x93   : > { %v4152_v11 = vsel %vm9503_vm8, %v4147_v0, %v4151_v45  ;;  %v1023_v25 = vsel %vm9699_vm14, %v1014_v16, %v1022_v17  ;;  %v7000_v43 = vrot.slane %v1212_v60, 10  ;;  %v1041_v44 = vsel %vm9699_vm14, %v1032_v31, %v1040_v32  ;;  %v1218_v12 = vld [vmem:[%s9375_s14 + $0x18] sm:$0xc]  ;;  %v1219_v13 = vld [vmem:[%s9375_s14 + $0x1c] sm:$0x3]  ;;  %v9174_v32 = vld [vmem:[%s10729_s1 + $0x148] sm:$0xff]  }
  0x94   : > { %v7494_v15 = vcombine.low %v4138_v63, %v4152_v11  ;;  %v4160_v47 = vor.u32 %v4159_v33, %v4156_v23  ;;  %v4179_v48 = vrot.slane %v4177_v34, 5  ;;  %v6991_v52 = vcombine.low %v1023_v25, %v1041_v44  ;;  %v1217_v11 = vld [vmem:[%s9375_s14 + $0x14] sm:$0x3]  ;;  %v7508_v18 = vld [vmem:[%s9375_s14 + $0x20] sm:$0xe] }
  0x95   : > { %8370 = vmatpush3.bf16.msra.mxu1 %v9162_v62  ;;  %v9165_v62 = vld [vmem:[%s10729_s1 + $0x420] sm:$0xff]   ;;  %8658 = vmatpush3.bf16.msra.mxu0 %v9163_v35  ;;  %v9170_v35 = vld [vmem:[%s10729_s1 + $0x138] sm:$0xff]   ;;  %v4174_v53 = vor.u32 %v4173_v40, %v4170_v39  ;;  %v7001_v45 = vrot.slane %v1214_v36, 10  ;;  %v1253_v55 = vrot.slane %v1215_v41, 6  ;;  %v7520_v63 = vrot.slane %v7504_v56, 9  ;;  %v9176_v39 = vld [vmem:[%s10729_s1 + $0x150] sm:$0xff]  }
  0x96   : > { %8371 = vmatprep.subr.bf16.mxu1 %v9164_v26  ;;  %8659 = vmatprep.subr.bf16.mxu0 %v9165_v62  ;;  %v4161_v58 = vrot.slane %v4160_v47, 4  ;;  %v4385_v2 = vrot.slane %v7505_v57, 5  ;;  %v7002_v16 = vrot.slane %v1216_v8, 10  ;;  %v1257_v17 = vrot.slane %v1217_v11, 6  ;;  %v7510_v24 = vld [vmem:[%s9375_s14 + $0x28] sm:$0xe] }
  0x97   : > { %8647 = vmatprep.mubr.bf16.mxu0 %v7494_v15  ;;  %8360 = vmatmul.mubr.bf16.gmra.mrb[4].mxu1 %v6991_v52  ;;  %v4175_v0 = vrot.slane %v4174_v53, 4  ;;  %v1254_v1 = vsel %vm9819_vm1, %v7001_v45, %v1253_v55  ;;  %v7003_v22 = vrot.slane %v1218_v12, 10  ;;  %v1261_v23 = vrot.slane %v1219_v13, 6  ;;  %v7511_v60 = vld [vmem:[%s9375_s14 + $0x2c] sm:$0x1]  ;;  %v9173_v25 = vld [vmem:[%s10729_s1 + $0x440] sm:$0xff]  }
  0x98   : > { %v7522_v27 = vrot.slane %v7508_v18, 9  ;;  %v4397_v31 = vrot.slane %v7511_v60, 5  ;;  %v1220_v40 = vld [vmem:[%s9375_s14 + $0x20] sm:$0xc]  ;;  %v9177_v41 = vld [vmem:[%s10729_s1 + $0x450] sm:$0xff]   ;;  %v9178_v53 = vld [vmem:[%s10729_s1 + $0x158] sm:$0xff]  }
  0x99   : > { %8372 = vmatpush3.bf16.msra.mxu1 %v9164_v26  ;;  %v4163_v26 = vshll.u32 %v7473_v3, 16  ;;  %8660 = vmatpush3.bf16.msra.mxu0 %v9165_v62  ;;  %v7507_v62 = vld [vmem:[%s9375_s14 + $0x1c] sm:$0x1]  ;;  %v7521_v3 = vrot.slane %v7506_v61, 9  ;;  %v4180_v9 = vsel %vm9503_vm8, %v4175_v0, %v4179_v48  ;;  %v1222_v44 = vld [vmem:[%s9375_s14 + $0x28] sm:$0xc] }
  0x9a   : > { %8373 = vmatprep.subr.bf16.mxu1 %v9166_v50  ;;  %8661 = vmatprep.subr.bf16.mxu0 %v9167_v19  ;;  %v4389_v7 = vrot.slane %v7507_v62, 5  ;;  %v1223_v47 = vld [vmem:[%s9375_s14 + $0x2c] sm:$0x3]  ;;  %v7004_v48 = vrot.slane %v1220_v40, 10  ;;  %v7005_v52 = vrot.slane %v1222_v44, 10  ;;  %v9179_v61 = vld [vmem:[%s10729_s1 + $0x458] sm:$0xff]  }
  0x9b   : > { %v4165_v37 = vrot.slane %v4163_v26, 5  ;;  %v1258_v26 = vsel %vm9819_vm1, %v7002_v16, %v1257_v17  ;;  %v7512_v45 = vld [vmem:[%s9375_s14 + $0x30] sm:$0xe]  ;;  %v7513_v57 = vld [vmem:[%s9375_s14 + $0x34] sm:$0x1]  ;;  %v9182_v60 = vld [vmem:[%s10729_s1 + $0x168] sm:$0xff]  }
  0x9c   : > { %v4390_v15 = vsel %vm9602_vm11, %v7521_v3, %v4389_v7  ;;  %v4401_v0 = vrot.slane %v7513_v57, 5  ;;  %v1226_v7 = vld [vmem:[%s9375_s14 + $0x38] sm:$0xc]  ;;  %v1227_v8 = vld [vmem:[%s9375_s14 + $0x3c] sm:$0x3] }
  0x9d   : > { %8374 = vmatpush3.bf16.msra.mxu1 %v9166_v50  ;;  %v1249_v50 = vrot.slane %v1213_v29, 6  ;;  %8662 = vmatpush3.bf16.msra.mxu0 %v9167_v19  ;;  %v4166_v4 = vsel %vm9503_vm8, %v4161_v58, %v4165_v37  ;;  %v7509_v19 = vld [vmem:[%s9375_s14 + $0x24] sm:$0x1]  ;;  %v7523_v29 = vrot.slane %v7510_v24, 9  ;;  %v9175_v37 = vld [vmem:[%s10729_s1 + $0x448] sm:$0xff]   ;;  %v7007_v12 = vrot.slane %v1226_v7, 10 }
  0x9e   : > { %8375 = vmatprep.subr.bf16.mxu1 %v9168_v10  ;;  %8663 = vmatprep.subr.bf16.mxu0 %v9169_v30  ;;  %v7495_v14 = vcombine.low %v4166_v4, %v4180_v9  ;;  %v4393_v28 = vrot.slane %v7509_v19, 5  ;;  %v7514_v58 = vld [vmem:[%s9375_s14 + $0x38] sm:$0xe]  ;;  %v1224_v4 = vld [vmem:[%s9375_s14 + $0x30] sm:$0xc]  ;;  %v1277_v16 = vrot.slane %v1227_v8, 6 }
  0x9f   : > { %v1250_v59 = vsel %vm9819_vm1, %v7000_v43, %v1249_v50  ;;  %v1221_v43 = vld [vmem:[%s9375_s14 + $0x24] sm:$0x3]  ;;  %v7516_v13 = vld [vmem:[%s9375_s14 + $0x40] sm:$0xe]  ;;  %v7518_v18 = vld [vmem:[%s9375_s14 + $0x48] sm:$0xe] }
  0xa0   : > { %v7024_v6 = vcombine.low %v1250_v59, %v1254_v1  ;;  %8648 = vmatmul.mubr.bf16.gmra.mrb[4].mxu0 %v7495_v14  ;;  %v4394_v34 = vsel %vm9602_vm11, %v7522_v27, %v4393_v28  ;;  %v1265_v50 = vrot.slane %v1221_v43, 6  ;;  %v7515_v59 = vld [vmem:[%s9375_s14 + $0x3c] sm:$0x1]  ;;  %v7525_v1 = vrot.slane %v7514_v58, 9  ;;  %v9181_v14 = vld [vmem:[%s10729_s1 + $0x460] sm:$0xff]  }
  0xa1   : > { %8376 = vmatpush3.bf16.msra.mxu1 %v9168_v10  ;;  %v4386_v10 = vsel %vm9602_vm11, %v7520_v63, %v4385_v2  ;;  %8664 = vmatpush3.bf16.msra.mxu0 %v9169_v30  ;;  %v1262_v30 = vsel %vm9819_vm1, %v7003_v22, %v1261_v23  ;;  %v7524_v63 = vrot.slane %v7512_v45, 9  ;;  %v9180_v2 = vld [vmem:[%s10729_s1 + $0x160] sm:$0xff]   ;;  %v4405_v3 = vrot.slane %v7515_v59, 5  ;;  %v7519_v22 = vld [vmem:[%s9375_s14 + $0x4c] sm:$0x1] }
  0xa2   : > { %8377 = vmatprep.subr.bf16.mxu1 %v9170_v35  ;;  %8379 = vmatprep.mubr.bf16.mxu1 %v7024_v6  ;;  %v7544_v21 = vcombine.low %v4386_v10, %v4390_v15  ;;  %v7025_v33 = vcombine.low %v1258_v26, %v1262_v30  ;;  %v1266_v55 = vsel %vm9819_vm1, %v7004_v48, %v1265_v50  ;;  %v1225_v6 = vld [vmem:[%s9375_s14 + $0x34] sm:$0x3]  ;;  %v7006_v10 = vrot.slane %v1224_v4, 10  ;;  %v7517_v17 = vld [vmem:[%s9375_s14 + $0x44] sm:$0x1]  ;;  %v9186_v4 = vld [vmem:[%s10729_s1 + $0x178] sm:$0xff]  }
  0xa3   : > { %8665 = vmatprep.subr.bf16.mxu0 %v9171_v5  ;;  %v4406_v9 = vsel %vm9602_vm11, %v7525_v1, %v4405_v3  ;;  %v1273_v11 = vrot.slane %v1225_v6, 6  ;;  %v7526_v19 = vrot.slane %v7516_v13, 9  ;;  %v4409_v23 = vrot.slane %v7517_v17, 5  ;;  %v1450_v30 = vld [vmem:[%s9375_s14 + $0x4] sm:$0x7] }
  0xa4   : > { %8667 = vmatprep.mubr.bf16.mxu0 %v7544_v21  ;;  %v7527_v24 = vrot.slane %v7518_v18, 9  ;;  %v4413_v26 = vrot.slane %v7519_v22, 5  ;;  %v1478_v40 = vshrl.u32 %v1450_v30, 16  ;;  %v7557_v59 = vld [vmem:[%s9375_s14 + $0x14] sm:$0x3] }
  0xa5   : > { %8378 = vmatpush3.bf16.msra.mxu1 %v9170_v35  ;;  %8666 = vmatpush3.bf16.msra.mxu0 %v9171_v5  ;;  %v4398_v35 = vsel %vm9602_vm11, %v7523_v29, %v4397_v31  ;;  %v4402_v5 = vsel %vm9602_vm11, %v7524_v63, %v4401_v0  ;;  %v1274_v21 = vsel %vm9819_vm1, %v7006_v10, %v1273_v11  ;;  %v1449_v29 = vld [vmem:[%s9375_s14] sm:$0xc]  ;;  %v9183_v31 = vld [vmem:[%s10729_s1 + $0x468] sm:$0xff]   ;;  %v7559_v1 = vld [vmem:[%s9375_s14 + $0x1c] sm:$0x3]  ;;  %v4611_v7 = vshrl.u32 %v7557_v59, 16 }
  0xa6   : > { %8387 = vmatprep.subr.bf16.mxu1 %v9828_v51  ;;  %8675 = vmatprep.subr.bf16.mxu0 %v9173_v25  ;;  %v7545_v36 = vcombine.low %v4394_v34, %v4398_v35  ;;  %v7546_v15 = vcombine.low %v4402_v5, %v4406_v9  ;;  %v4410_v28 = vsel %vm9602_vm11, %v7526_v19, %v4409_v23  ;;  %v1452_v34 = vld [vmem:[%s9375_s14 + $0xc] sm:$0x7]  ;;  %v1469_v35 = vshrl.u32 %v1449_v29, 16  ;;  %v1453_v17 = vld [vmem:[%s9375_s14 + $0x10] sm:$0xc] }
  0xa7   : > { %v1496_v50 = vshrl.u32 %v1452_v34, 16  ;;  %v1499_v45 = vshll.u32 %v1452_v34, 16  ;;  %v4614_v8 = vshll.u32 %v7557_v59, 16  ;;  %v4629_v22 = vshrl.u32 %v7559_v1, 16  ;;  %v1454_v23 = vld [vmem:[%s9375_s14 + $0x14] sm:$0x7] }
  0xa8   : > { %8380 = vmatmul.mubr.bf16.vlgmr.msra.gmra.mrb[0].mxu1 %v7025_v33  ;;  %8668 = vmatmul.mubr.bf16.vlgmr.msra.gmra.mrb[0].mxu0 %v7545_v36  ;;  %v1451_v33 = vld [vmem:[%s9375_s14 + $0x8] sm:$0xc]  ;;  %v1472_v36 = vshll.u32 %v1449_v29, 16  ;;  %v1471_v44 = vrot.slane %v1469_v35, 6  ;;  %v1456_v35 = vld [vmem:[%s9375_s14 + $0x1c] sm:$0x7] }
  0xa9   : > { %8388 = vmatpush3.bf16.msra.mxu1 %v9828_v51  ;;  %8676 = vmatpush3.bf16.msra.mxu0 %v9173_v25  ;;  %v1269_v51 = vrot.slane %v1223_v47, 6  ;;  %v1278_v25 = vsel %vm9819_vm1, %v7007_v12, %v1277_v16  ;;  %v1487_v43 = vshrl.u32 %v1451_v33, 16  ;;  %v1490_v48 = vshll.u32 %v1451_v33, 16  ;;  %v7562_v59 = vld [vmem:[%s9375_s14 + $0x28] sm:$0xe] }
  0xaa   : > { %8389 = vmatprep.subr.bf16.mxu1 %v9174_v32  ;;  %8677 = vmatprep.subr.bf16.mxu0 %v9175_v37  ;;  %v7027_v27 = vcombine.low %v1274_v21, %v1278_v25  ;;  %v1474_v47 = vrot.slane %v1472_v36, 7  ;;  %v1498_v58 = vrot.slane %v1496_v50, 6  ;;  %v1501_v0 = vrot.slane %v1499_v45, 7  ;;  %v9971_v50 = vld [vmem:[%s10729_s1 + $0x480] sm:$0xff]  }
  0xab   : > { %v1270_v56 = vsel %vm9819_vm1, %v7005_v52, %v1269_v51  ;;  %8671 = vmatprep.mubr.bf16.mxu0 %v7546_v15  ;;  %v1480_v52 = vrot.slane %v1478_v40, 6  ;;  %v1492_v57 = vrot.slane %v1490_v48, 7  ;;  %v4613_v15 = vrot.slane %v4611_v7, 5  ;;  %v7561_v45 = vld [vmem:[%s9375_s14 + $0x24] sm:$0x3] }
  0xac   : > { %v7026_v62 = vcombine.low %v1266_v55, %v1270_v56  ;;  %v7556_v55 = vld [vmem:[%s9375_s14 + $0x10] sm:$0xe]  ;;  %v1475_v56 = vor.u32 %v1474_v47, %v1471_v44  ;;  %v1502_v9 = vor.u32 %v1501_v0, %v1498_v58  ;;  %v4616_v16 = vrot.slane %v4614_v8, 6  ;;  %v7560_v47 = vld [vmem:[%s9375_s14 + $0x20] sm:$0xe] }
  0xad   : > { %8390 = vmatpush3.bf16.msra.mxu1 %v9174_v32  ;;  %8678 = vmatpush3.bf16.msra.mxu0 %v9175_v37  ;;  %v4414_v32 = vsel %vm9602_vm11, %v7527_v24, %v4413_v26  ;;  %v9184_v37 = vld [vmem:[%s10729_s1 + $0x170] sm:$0xff]   ;;  %v4605_v3 = vshll.u32 %v7556_v55, 16  ;;  %v9187_v24 = vld [vmem:[%s10729_s1 + $0x478] sm:$0xff]   ;;  %v4632_v26 = vshll.u32 %v7559_v1, 16  ;;  %v4631_v33 = vrot.slane %v4629_v22, 5 }
  0xae   : > { %8391 = vmatprep.subr.bf16.mxu1 %v9176_v39  ;;  %8679 = vmatprep.subr.bf16.mxu0 %v9177_v41  ;;  %v1476_v5 = vrot.slane %v1475_v56, 4  ;;  %v4617_v25 = vor.u32 %v4616_v16, %v4613_v15  ;;  %v1532_v58 = vshrl.u32 %v1456_v35, 16  ;;  %v4638_v0 = vshrl.u32 %v7560_v47, 16 }
  0xaf   : > { %8383 = vmatprep.mubr.bf16.mxu1 %v7026_v62  ;;  %v9185_v62 = vld [vmem:[%s10729_s1 + $0x470] sm:$0xff]   ;;  %v4607_v11 = vrot.slane %v4605_v3, 6  ;;  %v4634_v34 = vrot.slane %v4632_v26, 6  ;;  %v4659_v22 = vshll.u32 %v7562_v59, 16  ;;  %v9190_v26 = vld [vmem:[%s10729_s1 + $0x188] sm:$0xff]  }
  0xb0   : > { %8384 = vmatmul.mubr.bf16.gmra.mrb[4].mxu1 %v7027_v27  ;;  %v1455_v27 = vld [vmem:[%s9375_s14 + $0x18] sm:$0xc]  ;;  %v1534_v3 = vrot.slane %v1532_v58, 6 }
  0xb1   : > { %8392 = vmatpush3.bf16.msra.mxu1 %v9176_v39  ;;  %8680 = vmatpush3.bf16.msra.mxu0 %v9177_v41  ;;  %v7547_v39 = vcombine.low %v4410_v28, %v4414_v32  ;;  %v1481_v41 = vshll.u32 %v1450_v30, 16  ;;  %v1505_v28 = vshrl.u32 %v1453_v17, 16  ;;  %v9962_v30 = vld [vmem:[%s10729_s1 + $0x180] sm:$0xff]   ;;  %v1523_v44 = vshrl.u32 %v1455_v27, 16 }
  0xb2   : > { %8393 = vmatprep.subr.bf16.mxu1 %v9178_v53  ;;  %8681 = vmatprep.subr.bf16.mxu0 %v9179_v61  ;;  %v4635_v48 = vor.u32 %v4634_v34, %v4631_v33 }
  0xb3   : > { %8672 = vmatmul.mubr.bf16.gmra.mrb[4].mxu0 %v7547_v39  ;;  %v1483_v51 = vrot.slane %v1481_v41, 7  ;;  %v1507_v36 = vrot.slane %v1505_v28, 6  ;;  %v1514_v39 = vshrl.u32 %v1454_v23, 16 }
  0xb5   : > { %8394 = vmatpush3.bf16.msra.mxu1 %v9178_v53  ;;  %8682 = vmatpush3.bf16.msra.mxu0 %v9179_v61  ;;  %v1489_v53 = vrot.slane %v1487_v43, 6  ;;  %v7558_v61 = vld [vmem:[%s9375_s14 + $0x18] sm:$0xe]  ;;  %v1484_v63 = vor.u32 %v1483_v51, %v1480_v52  ;;  %v1517_v43 = vshll.u32 %v1454_v23, 16  ;;  %v1516_v51 = vrot.slane %v1514_v39, 6 }
  0xb6   : > { %8395 = vmatprep.subr.bf16.mxu1 %v9180_v2  ;;  %8683 = vmatprep.subr.bf16.mxu0 %v9181_v14  ;;  %v4620_v12 = vshrl.u32 %v7558_v61, 16  ;;  %v4623_v21 = vshll.u32 %v7558_v61, 16  ;;  %v1458_v39 = vld [vmem:[%s9375_s14 + $0x24] sm:$0x7] }
  0xb7   : > { %v1493_v6 = vor.u32 %v1492_v57, %v1489_v53  ;;  %v1485_v13 = vsel %vm9399_vm2, %v1476_v5, %v1484_v63  ;;  %v1526_v53 = vshll.u32 %v1455_v27, 16  ;;  %v1519_v56 = vrot.slane %v1517_v43, 7  ;;  %v1459_v43 = vld [vmem:[%s9375_s14 + $0x28] sm:$0xc] }
  0xb8   : > { %v4622_v19 = vrot.slane %v4620_v12, 5  ;;  %v4625_v32 = vrot.slane %v4623_v21, 6  ;;  %v1525_v57 = vrot.slane %v1523_v44, 6  ;;  %v1535_v63 = vshll.u32 %v1456_v35, 16  ;;  %v9192_v35 = vld [vmem:[%s10729_s1 + $0x190] sm:$0xff]  }
  0xb9   : > { %8396 = vmatpush3.bf16.msra.mxu1 %v9180_v2  ;;  %8684 = vmatpush3.bf16.msra.mxu0 %v9181_v14  ;;  %v4602_v2 = vshrl.u32 %v7556_v55, 16  ;;  %v1494_v14 = vrot.slane %v1493_v6, 4  ;;  %v4641_v5 = vshll.u32 %v7560_v47, 16  ;;  %v4647_v12 = vshrl.u32 %v7561_v45, 16  ;;  %v1460_v44 = vld [vmem:[%s9375_s14 + $0x2c] sm:$0x7] }
  0xba   : > { %8397 = vmatprep.subr.bf16.mxu1 %v9182_v60  ;;  %8685 = vmatprep.subr.bf16.mxu0 %v9183_v31  ;;  %v4626_v41 = vor.u32 %v4625_v32, %v4622_v19 }
  0xbb   : > { %v4604_v10 = vrot.slane %v4602_v2, 5  ;;  %v1520_v2 = vor.u32 %v1519_v56, %v1516_v51  ;;  %v4649_v19 = vrot.slane %v4647_v12, 5  ;;  %v1553_v51 = vshll.u32 %v1458_v39, 16  ;;  %v9193_v12 = vld [vmem:[%s10729_s1 + $0x490] sm:$0xff]  }
  0xbc   : > { %v4627_v55 = vrot.slane %v4626_v41, 4  ;;  %v1562_v56 = vshll.u32 %v1459_v43, 16 }
  0xbd   : > { %8398 = vmatpush3.bf16.msra.mxu1 %v9182_v60  ;;  %8686 = vmatpush3.bf16.msra.mxu0 %v9183_v31  ;;  %v4608_v18 = vor.u32 %v4607_v11, %v4604_v10  ;;  %v1503_v60 = vsel %vm9399_vm2, %v1494_v14, %v1502_v9  ;;  %v1537_v9 = vrot.slane %v1535_v63, 7  ;;  %v4640_v10 = vrot.slane %v4638_v0, 5  ;;  %v7564_v0 = vld [vmem:[%s9375_s14 + $0x30] sm:$0xe] }
  0xbe   : > { %8399 = vmatprep.subr.bf16.mxu1 %v9184_v37  ;;  %8687 = vmatprep.subr.bf16.mxu0 %v9185_v62  ;;  %v7052_v29 = vcombine.low %v1485_v13, %v1503_v60  ;;  %v4636_v1 = vsel %vm9699_vm14, %v4627_v55, %v4635_v48  ;;  %v4643_v11 = vrot.slane %v4641_v5, 6  ;;  %v4650_v13 = vshll.u32 %v7561_v45, 16  ;;  %v7565_v5 = vld [vmem:[%s9375_s14 + $0x34] sm:$0x3] }
  0xbf   : > { %v4609_v31 = vrot.slane %v4608_v18, 4  ;;  %v1538_v16 = vor.u32 %v1537_v9, %v1534_v3  ;;  %v1555_v63 = vrot.slane %v1553_v51, 7  ;;  %v7567_v9 = vld [vmem:[%s9375_s14 + $0x3c] sm:$0x3] }
  0xc0   : > { %8403 = vmatprep.mubr.bf16.mxu1 %v7052_v29  ;;  %v4644_v18 = vor.u32 %v4643_v11, %v4640_v10  ;;  %v4652_v21 = vrot.slane %v4650_v13, 6  ;;  %v4674_v10 = vshrl.u32 %v7564_v0, 16  ;;  %v4677_v11 = vshll.u32 %v7564_v0, 16  ;;  %v7569_v0 = vld [vmem:[%s9375_s14 + $0x44] sm:$0x3] }
  0xc1   : > { %8400 = vmatpush3.bf16.msra.mxu1 %v9184_v37  ;;  %v1508_v37 = vshll.u32 %v1453_v17, 16  ;;  %8688 = vmatpush3.bf16.msra.mxu0 %v9185_v62  ;;  %v4618_v40 = vsel %vm9699_vm14, %v4609_v31, %v4617_v25  ;;  %v1528_v62 = vrot.slane %v1526_v53, 7  ;;  %v4656_v17 = vshrl.u32 %v7562_v59, 16  ;;  %v9194_v59 = vld [vmem:[%s10729_s1 + $0x198] sm:$0xff]  }
  0xc2   : > { %8401 = vmatprep.subr.bf16.mxu1 %v9186_v4  ;;  %8689 = vmatprep.subr.bf16.mxu0 %v9187_v24  ;;  %v7588_v6 = vcombine.low %v4618_v40, %v4636_v1  ;;  %v4645_v28 = vrot.slane %v4644_v18, 4  ;;  %v4653_v29 = vor.u32 %v4652_v21, %v4649_v19  ;;  %v4661_v31 = vrot.slane %v4659_v22, 6 }
  0xc3   : > { %v1510_v52 = vrot.slane %v1508_v37, 7  ;;  %v1529_v8 = vor.u32 %v1528_v62, %v1525_v57  ;;  %v1457_v37 = vld [vmem:[%s9375_s14 + $0x20] sm:$0xc]  ;;  %v1559_v53 = vshrl.u32 %v1459_v43, 16  ;;  %v1568_v57 = vshrl.u32 %v1460_v44, 16 }
  0xc4   : > { %8691 = vmatprep.mubr.bf16.mxu0 %v7588_v6  ;;  %v4654_v40 = vsel %vm9699_vm14, %v4645_v28, %v4653_v29  ;;  %v1541_v47 = vshrl.u32 %v1457_v37, 16  ;;  %v1544_v48 = vshll.u32 %v1457_v37, 16  ;;  %v4676_v18 = vrot.slane %v4674_v10, 5  ;;  %v9198_v37 = vld [vmem:[%s10729_s1 + $0x1a8] sm:$0xff]   ;;  %v1463_v43 = vld [vmem:[%s9375_s14 + $0x38] sm:$0xc] }
  0xc5   : > { %8402 = vmatpush3.bf16.msra.mxu1 %v9186_v4  ;;  %v1511_v61 = vor.u32 %v1510_v52, %v1507_v36  ;;  %8690 = vmatpush3.bf16.msra.mxu0 %v9187_v24  ;;  %v7563_v4 = vld [vmem:[%s9375_s14 + $0x2c] sm:$0x3]  ;;  %v1530_v15 = vrot.slane %v1529_v8, 4  ;;  %v4658_v24 = vrot.slane %v4656_v17, 5  ;;  %v1550_v52 = vshrl.u32 %v1458_v39, 16 }
  0xc6   : > { %8411 = vmatprep.subr.bf16.mxu1 %v9962_v30  ;;  %8699 = vmatprep.subr.bf16.mxu0 %v9971_v50  ;;  %v4665_v60 = vshrl.u32 %v7563_v4, 16  ;;  %v4668_v25 = vshll.u32 %v7563_v4, 16  ;;  %v1543_v55 = vrot.slane %v1541_v47, 6  ;;  %v1561_v1 = vrot.slane %v1559_v53, 6  ;;  %v7566_v8 = vld [vmem:[%s9375_s14 + $0x38] sm:$0xe] }
  0xc7   : > { %v1512_v7 = vrot.slane %v1511_v61, 4  ;;  %v1539_v23 = vsel %vm9399_vm2, %v1530_v15, %v1538_v16  ;;  %v4662_v34 = vor.u32 %v4661_v31, %v4658_v24  ;;  %v1546_v61 = vrot.slane %v1544_v48, 7  ;;  %v1462_v31 = vld [vmem:[%s9375_s14 + $0x34] sm:$0x7] }
  0xc8   : > { %v4667_v32 = vrot.slane %v4665_v60, 5  ;;  %v4670_v33 = vrot.slane %v4668_v25, 6  ;;  %v1552_v62 = vrot.slane %v1550_v52, 6  ;;  %v1570_v3 = vrot.slane %v1568_v57, 6  ;;  %v1461_v25 = vld [vmem:[%s9375_s14 + $0x30] sm:$0xc] }
  0xc9   : > { %v1521_v14 = vsel %vm9399_vm2, %v1512_v7, %v1520_v2  ;;  %v4663_v41 = vrot.slane %v4662_v34, 4  ;;  %v1564_v2 = vrot.slane %v1562_v56, 7  ;;  %v1571_v4 = vshll.u32 %v1460_v44, 16  ;;  %v1464_v52 = vld [vmem:[%s9375_s14 + $0x3c] sm:$0x7] }
  0xca   : > { %v7053_v27 = vcombine.low %v1521_v14, %v1539_v23  ;;  %v4671_v36 = vor.u32 %v4670_v33, %v4667_v32  ;;  %v1547_v6 = vor.u32 %v1546_v61, %v1543_v55  ;;  %v1556_v7 = vor.u32 %v1555_v63, %v1552_v62  ;;  %v9195_v32 = vld [vmem:[%s10729_s1 + $0x498] sm:$0xff]   ;;  %v7568_v57 = vld [vmem:[%s9375_s14 + $0x40] sm:$0xe] }
  0xcb   : > { %v1565_v13 = vor.u32 %v1564_v2, %v1561_v1  ;;  %v1573_v14 = vrot.slane %v1571_v4, 7  ;;  %v4683_v15 = vshrl.u32 %v7565_v5, 16  ;;  %v4686_v16 = vshll.u32 %v7565_v5, 16  ;;  %v9200_v5 = vld [vmem:[%s10729_s1 + $0x1b0] sm:$0xff]  }
  0xcc   : > { %8404 = vmatmul.mubr.bf16.vlgmr.msra.gmra.mrb[0].mxu1 %v7053_v27  ;;  %v4672_v45 = vsel %vm9699_vm14, %v4663_v41, %v4671_v36  ;;  %v1548_v17 = vrot.slane %v1547_v6, 4  ;;  %v4679_v19 = vrot.slane %v4677_v11, 6  ;;  %v4692_v21 = vshrl.u32 %v7566_v8, 16 }
  0xcd   : > { %8412 = vmatpush3.bf16.msra.mxu1 %v9962_v30  ;;  %v9191_v30 = vld [vmem:[%s10729_s1 + $0x488] sm:$0xff]   ;;  %v7589_v58 = vcombine.low %v4654_v40, %v4672_v45  ;;  %v1566_v22 = vrot.slane %v1565_v13, 4  ;;  %v1574_v23 = vor.u32 %v1573_v14, %v1570_v3  ;;  %v4685_v24 = vrot.slane %v4683_v15, 5 }
  0xce   : > { %8413 = vmatprep.subr.bf16.mxu1 %v9190_v26  ;;  %v4688_v60 = vrot.slane %v4686_v16, 6  ;;  %v4680_v27 = vor.u32 %v4679_v19, %v4676_v18  ;;  %v4694_v28 = vrot.slane %v4692_v21, 5  ;;  %v4695_v29 = vshll.u32 %v7566_v8, 16  ;;  %v7570_v14 = vld [vmem:[%s9375_s14 + $0x48] sm:$0xe] }
  0xcf   : > { %8692 = vmatmul.mubr.bf16.vlgmr.msra.gmra.mrb[0].mxu0 %v7589_v58  ;;  %v1575_v33 = vsel %vm9399_vm2, %v1566_v22, %v1574_v23  ;;  %v4704_v36 = vshll.u32 %v7567_v9, 16  ;;  %v1577_v44 = vshrl.u32 %v1461_v25, 16  ;;  %v1580_v51 = vshll.u32 %v1461_v25, 16  ;;  %v9197_v58 = vld [vmem:[%s10729_s1 + $0x4a0] sm:$0xff]   ;;  %v9199_v15 = vld [vmem:[%s10729_s1 + $0x4a8] sm:$0xff]  }
  0xd0   : > { %8700 = vmatpush3.bf16.msra.mxu0 %v9971_v50  ;;  %v9196_v50 = vld [vmem:[%s10729_s1 + $0x1a0] sm:$0xff]   ;;  %v4689_v34 = vor.u32 %v4688_v60, %v4685_v24  ;;  %v4681_v40 = vrot.slane %v4680_v27, 4  ;;  %v4697_v41 = vrot.slane %v4695_v29, 6  ;;  %v1586_v53 = vshrl.u32 %v1462_v31, 16  ;;  %v7571_v19 = vld [vmem:[%s9375_s14 + $0x4c] sm:$0x3] }
  0xd1   : > { %8414 = vmatpush3.bf16.msra.mxu1 %v9190_v26  ;;  %8701 = vmatprep.subr.bf16.mxu0 %v9191_v30  ;;  %v1557_v26 = vsel %vm9399_vm2, %v1548_v17, %v1556_v7  ;;  %v4706_v48 = vrot.slane %v4704_v36, 6  ;;  %v1579_v55 = vrot.slane %v1577_v44, 6  ;;  %v1589_v56 = vshll.u32 %v1462_v31, 16  ;;  %v9202_v60 = vld [vmem:[%s10729_s1 + $0x1b8] sm:$0xff]   ;;  %v1782_v25 = vld [vmem:[%s9375_s14] sm:$0x8] }
  0xd2   : > { %8415 = vmatprep.subr.bf16.mxu1 %v9192_v35  ;;  %v7054_v39 = vcombine.low %v1557_v26, %v1575_v33  ;;  %v4690_v45 = vsel %vm9699_vm14, %v4681_v40, %v4689_v34  ;;  %v1582_v61 = vrot.slane %v1580_v51, 7  ;;  %v1588_v62 = vrot.slane %v1586_v53, 6  ;;  %v1783_v31 = vld [vmem:[%s9375_s14 + $0x4] sm:$0x7]  ;;  %v1785_v33 = vld [vmem:[%s9375_s14 + $0xc] sm:$0x7] }
  0xd3   : > { %v1595_v63 = vshrl.u32 %v1463_v43, 16  ;;  %v1591_v2 = vrot.slane %v1589_v56, 7  ;;  %v1598_v3 = vshll.u32 %v1463_v43, 16  ;;  %v1604_v4 = vshrl.u32 %v1464_v52, 16  ;;  %v9201_v34 = vld [vmem:[%s10729_s1 + $0x4b0] sm:$0xff]  }
  0xd4   : > { %8702 = vmatpush3.bf16.msra.mxu0 %v9191_v30  ;;  %8407 = vmatprep.mubr.bf16.mxu1 %v7054_v39  ;;  %v4698_v30 = vor.u32 %v4697_v41, %v4694_v28  ;;  %v1583_v6 = vor.u32 %v1582_v61, %v1579_v55  ;;  %v1607_v8 = vshll.u32 %v1464_v52, 16  ;;  %v4713_v22 = vshll.u32 %v7568_v57, 16  ;;  %v7600_v40 = vld [vmem:[%s9375_s14 + $0x10] sm:$0xc]  ;;  %v7602_v55 = vld [vmem:[%s9375_s14 + $0x18] sm:$0xc] }
  0xd5   : > { %8416 = vmatpush3.bf16.msra.mxu1 %v9192_v35  ;;  %v4701_v35 = vshrl.u32 %v7567_v9, 16  ;;  %8703 = vmatprep.subr.bf16.mxu0 %v9193_v12  ;;  %v1597_v7 = vrot.slane %v1595_v63, 6  ;;  %v4710_v9 = vshrl.u32 %v7568_v57, 16  ;;  %v1592_v11 = vor.u32 %v1591_v2, %v1588_v62  ;;  %v7603_v56 = vld [vmem:[%s9375_s14 + $0x1c] sm:$0x3] }
  0xd6   : > { %8417 = vmatprep.subr.bf16.mxu1 %v9194_v59  ;;  %v4699_v1 = vrot.slane %v4698_v30, 4  ;;  %v1606_v13 = vrot.slane %v1604_v4, 6  ;;  %v1584_v17 = vrot.slane %v1583_v6, 4  ;;  %v1609_v18 = vrot.slane %v1607_v8, 7  ;;  %v10066_v30 = vld [vmem:[%s10729_s1 + $0x1c0] sm:$0xff]  }
  0xd7   : > { %v4703_v47 = vrot.slane %v4701_v35, 5  ;;  %v4712_v21 = vrot.slane %v4710_v9, 5  ;;  %v4719_v23 = vshrl.u32 %v7569_v0, 16  ;;  %v4722_v24 = vshll.u32 %v7569_v0, 16  ;;  %v1786_v2 = vld [vmem:[%s9375_s14 + $0x10] sm:$0x8] }
  0xd8   : > { %8704 = vmatpush3.bf16.msra.mxu0 %v9193_v12  ;;  %v1600_v12 = vrot.slane %v1598_v3, 7  ;;  %v1593_v26 = vsel %vm9399_vm2, %v1584_v17, %v1592_v11  ;;  %v1610_v27 = vor.u32 %v1609_v18, %v1606_v13  ;;  %v4728_v28 = vshrl.u32 %v7570_v14, 16  ;;  %v9203_v9 = vld [vmem:[%s10729_s1 + $0x4b8] sm:$0xff]  }
  0xd9   : > { %8418 = vmatpush3.bf16.msra.mxu1 %v9194_v59  ;;  %v4707_v59 = vor.u32 %v4706_v48, %v4703_v47  ;;  %8705 = vmatprep.subr.bf16.mxu0 %v9195_v32  ;;  %v4731_v29 = vshll.u32 %v7570_v14, 16  ;;  %v4715_v36 = vrot.slane %v4713_v22, 6  ;;  %v4724_v39 = vrot.slane %v4722_v24, 6  ;;  %v7601_v48 = vld [vmem:[%s9375_s14 + $0x14] sm:$0x3] }
  0xda   : > { %8419 = vmatprep.subr.bf16.mxu1 %v9196_v50  ;;  %v4730_v41 = vrot.slane %v4728_v28, 5  ;;  %v4737_v44 = vshrl.u32 %v7571_v19, 16  ;;  %v4740_v47 = vshll.u32 %v7571_v19, 16  ;;  %v1819_v63 = vrot.slane %v1783_v31, 7  ;;  %v1788_v13 = vld [vmem:[%s9375_s14 + $0x18] sm:$0x8] }
  0xdb   : > { %v4708_v10 = vsel %vm9699_vm14, %v4699_v1, %v4707_v59  ;;  %v4733_v43 = vrot.slane %v4731_v29, 6  ;;  %v4716_v51 = vor.u32 %v4715_v36, %v4712_v21  ;;  %v1823_v1 = vrot.slane %v1785_v33, 7  ;;  %v1789_v14 = vld [vmem:[%s9375_s14 + $0x1c] sm:$0x7]  ;;  %v7604_v19 = vld [vmem:[%s9375_s14 + $0x20] sm:$0xc] }
  0xdc   : > { %8706 = vmatpush3.bf16.msra.mxu0 %v9195_v32  ;;  %v7590_v16 = vcombine.low %v4690_v45, %v4708_v10  ;;  %v1784_v32 = vld [vmem:[%s9375_s14 + $0x8] sm:$0x8]  ;;  %v7064_v45 = vrot.slane %v1782_v25, 11  ;;  %v4739_v59 = vrot.slane %v4737_v44, 5  ;;  %v4742_v61 = vrot.slane %v4740_v47, 6  ;;  %v9208_v47 = vld [vmem:[%s10729_s1 + $0x1d0] sm:$0xff]  }
  0xdd   : > { %8420 = vmatpush3.bf16.msra.mxu1 %v9196_v50  ;;  %8707 = vmatprep.subr.bf16.mxu0 %v9197_v58  ;;  %v1601_v50 = vor.u32 %v1600_v12, %v1597_v7  ;;  %v4717_v62 = vrot.slane %v4716_v51, 4  ;;  %v7065_v0 = vrot.slane %v1784_v32, 11  ;;  %v4949_v6 = vrot.slane %v7601_v48, 6  ;;  %v1787_v7 = vld [vmem:[%s9375_s14 + $0x14] sm:$0x7]  ;;  %v9206_v36 = vld [vmem:[%s10729_s1 + $0x1c8] sm:$0xff]  }
  0xde   : > { %8421 = vmatprep.subr.bf16.mxu1 %v9198_v37  ;;  %8695 = vmatprep.mubr.bf16.mxu0 %v7590_v16  ;;  %v4743_v4 = vor.u32 %v4742_v61, %v4739_v59  ;;  %v1820_v10 = vsel %vm9493_vm7, %v7064_v45, %v1819_v63  ;;  %v7617_v12 = vrot.slane %v7602_v55, 10  ;;  %v4953_v18 = vrot.slane %v7603_v56, 6  ;;  %v7605_v21 = vld [vmem:[%s9375_s14 + $0x24] sm:$0x3]  ;;  %v7607_v28 = vld [vmem:[%s9375_s14 + $0x2c] sm:$0x3] }
  0xdf   : > { %v1602_v35 = vrot.slane %v1601_v50, 4  ;;  %v1824_v11 = vsel %vm9493_vm7, %v7065_v0, %v1823_v1  ;;  %v7066_v22 = vrot.slane %v1786_v2, 11  ;;  %v7067_v24 = vrot.slane %v1788_v13, 11  ;;  %v9207_v44 = vld [vmem:[%s10729_s1 + $0x4c8] sm:$0xff]   ;;  %v1790_v48 = vld [vmem:[%s9375_s14 + $0x20] sm:$0x8] }
  0xe0   : > { %8708 = vmatpush3.bf16.msra.mxu0 %v9197_v58  ;;  %v4734_v58 = vor.u32 %v4733_v43, %v4730_v41  ;;  %v7088_v16 = vcombine.low %v1820_v10, %v1824_v11  ;;  %v4954_v25 = vsel %vm9819_vm1, %v7617_v12, %v4953_v18  ;;  %v7618_v29 = vrot.slane %v7604_v19, 10  ;;  %v9209_v51 = vld [vmem:[%s10729_s1 + $0x4d0] sm:$0xff]   ;;  %v1793_v45 = vld [vmem:[%s9375_s14 + $0x2c] sm:$0x7]  ;;  %v7610_v0 = vld [vmem:[%s9375_s14 + $0x38] sm:$0xc] }
  0xe1   : > { %8422 = vmatpush3.bf16.msra.mxu1 %v9198_v37  ;;  %v4721_v37 = vrot.slane %v4719_v23, 5  ;;  %8709 = vmatprep.subr.bf16.mxu0 %v9199_v15  ;;  %v1611_v52 = vsel %vm9399_vm2, %v1602_v35, %v1610_v27  ;;  %v1827_v23 = vrot.slane %v1787_v7, 7  ;;  %v1831_v27 = vrot.slane %v1789_v14, 7  ;;  %v7608_v61 = vld [vmem:[%s9375_s14 + $0x30] sm:$0xc] }
  0xe2   : > { %8423 = vmatprep.subr.bf16.mxu1 %v9200_v5  ;;  %v7055_v57 = vcombine.low %v1593_v26, %v1611_v52  ;;  %v4735_v3 = vrot.slane %v4734_v58, 4  ;;  %v9205_v26 = vld [vmem:[%s10729_s1 + $0x4c0] sm:$0xff]   ;;  %v4957_v31 = vrot.slane %v7605_v21, 6  ;;  %v7068_v55 = vrot.slane %v1790_v48, 11  ;;  %v9210_v58 = vld [vmem:[%s10729_s1 + $0x1d8] sm:$0xff]  }
  0xe3   : > { %v4725_v53 = vor.u32 %v4724_v39, %v4721_v37  ;;  %v1828_v33 = vsel %vm9493_vm7, %v7066_v22, %v1827_v23  ;;  %v1832_v37 = vsel %vm9493_vm7, %v7067_v24, %v1831_v27  ;;  %v1791_v52 = vld [vmem:[%s9375_s14 + $0x24] sm:$0x7]  ;;  %v7611_v1 = vld [vmem:[%s9375_s14 + $0x3c] sm:$0x3]  ;;  %v7620_v2 = vrot.slane %v7608_v61, 10 }
  0xe4   : > { %8710 = vmatpush3.bf16.msra.mxu0 %v9199_v15  ;;  %8408 = vmatmul.mubr.bf16.gmra.mrb[4].mxu1 %v7055_v57  ;;  %v4744_v15 = vsel %vm9699_vm14, %v4735_v3, %v4743_v4  ;;  %v4958_v39 = vsel %vm9819_vm1, %v7618_v29, %v4957_v31  ;;  %v1835_v56 = vrot.slane %v1791_v52, 7  ;;  %v9211_v4 = vld [vmem:[%s10729_s1 + $0x4d8] sm:$0xff]   ;;  %v4969_v7 = vrot.slane %v7611_v1, 6  ;;  %v1794_v10 = vld [vmem:[%s9375_s14 + $0x30] sm:$0x8]  ;;  %v9213_v22 = vld [vmem:[%s10729_s1 + $0x4e0] sm:$0xff]  }
  0xe5   : > { %8424 = vmatpush3.bf16.msra.mxu1 %v9200_v5  ;;  %v7616_v5 = vrot.slane %v7600_v40, 10  ;;  %8711 = vmatprep.subr.bf16.mxu0 %v9201_v34  ;;  %v4726_v8 = vsel %vm9699_vm14, %v4717_v62, %v4725_v53  ;;  %v7089_v40 = vcombine.low %v1828_v33, %v1832_v37  ;;  %v1792_v53 = vld [vmem:[%s9375_s14 + $0x28] sm:$0x8]  ;;  %v7609_v62 = vld [vmem:[%s9375_s14 + $0x34] sm:$0x3] }
  0xe6   : > { %8425 = vmatprep.subr.bf16.mxu1 %v9202_v60  ;;  %v7591_v50 = vcombine.low %v4726_v8, %v4744_v15  ;;  %8427 = vmatprep.mubr.bf16.mxu1 %v7088_v16  ;;  %v7069_v57 = vrot.slane %v1792_v53, 11  ;;  %v1836_v59 = vsel %vm9493_vm7, %v7068_v55, %v1835_v56  ;;  %v4965_v3 = vrot.slane %v7609_v62, 6  ;;  %v9212_v8 = vld [vmem:[%s10729_s1 + $0x1e0] sm:$0xff]   ;;  %v1795_v11 = vld [vmem:[%s9375_s14 + $0x34] sm:$0x7]  ;;  %v9214_v31 = vld [vmem:[%s10729_s1 + $0x1e8] sm:$0xff]  }
  0xe7   : > { %v4950_v17 = vsel %vm9819_vm1, %v7616_v5, %v4949_v6  ;;  %v7621_v6 = vrot.slane %v7610_v0, 10  ;;  %v1796_v13 = vld [vmem:[%s9375_s14 + $0x38] sm:$0x8]  ;;  %v1797_v14 = vld [vmem:[%s9375_s14 + $0x3c] sm:$0x7]  ;;  %v7070_v15 = vrot.slane %v1794_v10, 11 }
  0xe8   : > { %8712 = vmatpush3.bf16.msra.mxu0 %v9201_v34  ;;  %v7640_v32 = vcombine.low %v4950_v17, %v4954_v25  ;;  %v4961_v34 = vrot.slane %v7607_v28, 6  ;;  %v1843_v16 = vrot.slane %v1795_v11, 7  ;;  %v7071_v18 = vrot.slane %v1796_v13, 11  ;;  %v7612_v21 = vld [vmem:[%s9375_s14 + $0x40] sm:$0xc] }
  0xe9   : > { %8426 = vmatpush3.bf16.msra.mxu1 %v9202_v60  ;;  %v7606_v60 = vld [vmem:[%s9375_s14 + $0x28] sm:$0xc]  ;;  %8696 = vmatmul.mubr.bf16.gmra.mrb[4].mxu0 %v7591_v50  ;;  %v4970_v12 = vsel %vm9819_vm1, %v7621_v6, %v4969_v7  ;;  %v1847_v19 = vrot.slane %v1797_v14, 7  ;;  %v7613_v50 = vld [vmem:[%s9375_s14 + $0x44] sm:$0x3]  ;;  %v7622_v25 = vrot.slane %v7612_v21, 10 }
  0xea   : > { %8435 = vmatprep.subr.bf16.mxu1 %v10066_v30  ;;  %8713 = vmatprep.subr.bf16.mxu0 %v9203_v9  ;;  %v7619_v35 = vrot.slane %v7606_v60, 10  ;;  %v1844_v23 = vsel %vm9493_vm7, %v7070_v15, %v1843_v16  ;;  %v7614_v24 = vld [vmem:[%s9375_s14 + $0x48] sm:$0xc]  ;;  %v7615_v60 = vld [vmem:[%s9375_s14 + $0x4c] sm:$0x3] }
  0xeb   : > { %8715 = vmatprep.mubr.bf16.mxu0 %v7640_v32  ;;  %v1848_v27 = vsel %vm9493_vm7, %v7071_v18, %v1847_v19  ;;  %v7623_v28 = vrot.slane %v7614_v24, 10  ;;  %v4977_v29 = vrot.slane %v7615_v60, 6  ;;  %v9220_v37 = vld [vmem:[%s9375_s14 + $0x8] ss:$8 sps:$4 sm:$0xff]   ;;  %v7656_v6 = vld [vmem:[%s9375_s14 + $0x20] sm:$0xc] }
  0xec   : > { %v4962_v41 = vsel %vm9819_vm1, %v7619_v35, %v4961_v34  ;;  %8714 = vmatpush3.bf16.msra.mxu0 %v9203_v9  ;;  %8428 = vmatmul.mubr.bf16.vlgmr.msra.gmra.mrb[0].mxu1 %v7089_v40  ;;  %v4966_v9 = vsel %vm9819_vm1, %v7620_v2, %v4965_v3  ;;  %v7091_v32 = vcombine.low %v1844_v23, %v1848_v27  ;;  %v9215_v34 = vld [vmem:[%s10729_s1 + $0x4e8] sm:$0xff]   ;;  %v7652_v40 = vld [vmem:[%s9375_s14 + $0x10] sm:$0xc]  ;;  %v7657_v7 = vld [vmem:[%s9375_s14 + $0x24] sm:$0x7]  ;;  %v5202_v13 = vshrl.u32 %v7656_v6, 16 }
  0xed   : > { %8723 = vmatprep.subr.bf16.mxu0 %v9205_v26  ;;  %v7641_v43 = vcombine.low %v4958_v39, %v4962_v41  ;;  %8436 = vmatpush3.bf16.msra.mxu1 %v10066_v30  ;;  %v1839_v30 = vrot.slane %v1793_v45, 7  ;;  %v7642_v17 = vcombine.low %v4966_v9, %v4970_v12  ;;  %v4978_v35 = vsel %vm9819_vm1, %v7623_v28, %v4977_v29  ;;  %v9216_v39 = vld [vmem:[%s10729_s1 + $0x1f0] sm:$0xff]   ;;  %v7658_v11 = vld [vmem:[%s9375_s14 + $0x28] sm:$0xc]  ;;  %v7659_v12 = vld [vmem:[%s9375_s14 + $0x2c] sm:$0x7] }
  0xee   : > { %8437 = vmatprep.subr.bf16.mxu1 %v9206_v36  ;;  %v7653_v41 = vld [vmem:[%s9375_s14 + $0x14] sm:$0x7]  ;;  %v5169_v48 = vshll.u32 %v7652_v40, 16  ;;  %v5205_v15 = vshll.u32 %v7656_v6, 16  ;;  %v5211_v16 = vshrl.u32 %v7657_v7, 16  ;;  %v9221_v18 = vld [vmem:[%s10729_s1 + $0x200] sm:$0xff]  }
  0xef   : > { %v1840_v63 = vsel %vm9493_vm7, %v7069_v57, %v1839_v30  ;;  %v5175_v52 = vshrl.u32 %v7653_v41, 16  ;;  %v9223_v21 = vld [vmem:[%s9375_s14 + $0x18] ss:$8 sps:$4 sm:$0xff]   ;;  %v5223_v23 = vshll.u32 %v7658_v11, 16 }
  0xf0   : > { %v7090_v5 = vcombine.low %v1836_v59, %v1840_v63  ;;  %v5171_v56 = vrot.slane %v5169_v48, 7  ;;  %v9218_v59 = vld [vmem:[%s10729_s1 + $0x1f8] sm:$0xff]   ;;  %v5207_v60 = vrot.slane %v5205_v15, 7  ;;  %v9226_v48 = vld [vmem:[%s10729_s1 + $0x210] sm:$0xff]   ;;  %v9230_v6 = vld [vmem:[%s10729_s1 + $0x220] sm:$0xff]  }
  0xf1   : > { %8716 = vmatmul.mubr.bf16.vlgmr.msra.gmra.mrb[0].mxu0 %v7641_v43  ;;  %8438 = vmatpush3.bf16.msra.mxu1 %v9206_v36  ;;  %v7654_v43 = vld [vmem:[%s9375_s14 + $0x18] sm:$0xc]  ;;  %v5177_v61 = vrot.slane %v5175_v52, 6  ;;  %v5225_v29 = vrot.slane %v5223_v23, 7  ;;  %v9232_v15 = vld [vmem:[%s10729_s1 + $0x228] sm:$0xff]  }
  0xf2   : > { %8724 = vmatpush3.bf16.msra.mxu0 %v9205_v26  ;;  %8439 = vmatprep.subr.bf16.mxu1 %v9208_v47  ;;  %v4973_v26 = vrot.slane %v7613_v50, 6  ;;  %v5184_v53 = vshrl.u32 %v7654_v43, 16  ;;  %v5187_v45 = vshll.u32 %v7654_v43, 16  ;;  %v5204_v50 = vrot.slane %v5202_v13, 6  ;;  %v7666_v23 = vld [vmem:[%s9375_s14 + $0x48] sm:$0xc] }
  0xf3   : > { %8725 = vmatprep.subr.bf16.mxu0 %v9207_v44  ;;  %8431 = vmatprep.mubr.bf16.mxu1 %v7090_v5 }
  0xf4   : > { %v4974_v33 = vsel %vm9819_vm1, %v7622_v25, %v4973_v26  ;;  %8719 = vmatprep.mubr.bf16.mxu0 %v7642_v17  ;;  %8432 = vmatmul.mubr.bf16.gmra.mrb[4].mxu1 %v7091_v32  ;;  %v5186_v63 = vrot.slane %v5184_v53, 6  ;;  %v5189_v0 = vrot.slane %v5187_v45, 7  ;;  %v5214_v17 = vshll.u32 %v7657_v7, 16  ;;  %v9222_v32 = vld [vmem:[%s10729_s1 + $0x500] sm:$0xff]   ;;  %v9225_v53 = vld [vmem:[%s10729_s1 + $0x508] sm:$0xff]  }
  0xf5   : > { %8440 = vmatpush3.bf16.msra.mxu1 %v9208_v47  ;;  %v7643_v36 = vcombine.low %v4974_v33, %v4978_v35  ;;  %v5166_v47 = vshrl.u32 %v7652_v40, 16  ;;  %8451 = vmatprep.mubr.bf16.mxu1 %v9220_v37  ;;  %v5213_v25 = vrot.slane %v5211_v16, 6  ;;  %v5208_v33 = vor.u32 %v5207_v60, %v5204_v50  ;;  %v9234_v45 = vld [vmem:[%s9375_s14 + $0x28] ss:$8 sps:$4 sm:$0xff]  }
  0xf6   : > { %8726 = vmatpush3.bf16.msra.mxu0 %v9207_v44  ;;  %8441 = vmatprep.subr.bf16.mxu1 %v9210_v58  ;;  %v7655_v44 = vld [vmem:[%s9375_s14 + $0x1c] sm:$0x7]  ;;  %v5190_v5 = vor.u32 %v5189_v0, %v5186_v63  ;;  %v5216_v26 = vrot.slane %v5214_v17, 7 }
  0xf7   : > { %8727 = vmatprep.subr.bf16.mxu0 %v9209_v51  ;;  %v5168_v55 = vrot.slane %v5166_v47, 6  ;;  %v5193_v57 = vshrl.u32 %v7655_v44, 16  ;;  %v5196_v30 = vshll.u32 %v7655_v44, 16  ;;  %v5209_v40 = vrot.slane %v5208_v33, 4  ;;  %v9231_v33 = vld [vmem:[%s10729_s1 + $0x520] sm:$0xff]  }
  0xf8   : > { %v5191_v14 = vrot.slane %v5190_v5, 4  ;;  %v5217_v35 = vor.u32 %v5216_v26, %v5213_v25  ;;  %v9229_v5 = vld [vmem:[%s10729_s1 + $0x518] sm:$0xff]  }
  0xf9   : > { %8442 = vmatpush3.bf16.msra.mxu1 %v9210_v58  ;;  %8720 = vmatmul.mubr.bf16.gmra.mrb[4].mxu0 %v7643_v36  ;;  %v9217_v58 = vld [vmem:[%s10729_s1 + $0x4f0] sm:$0xff]   ;;  %v5172_v1 = vor.u32 %v5171_v56, %v5168_v55  ;;  %v5195_v2 = vrot.slane %v5193_v57, 6  ;;  %v5198_v3 = vrot.slane %v5196_v30, 7  ;;  %v9228_v56 = vld [vmem:[%s10729_s1 + $0x218] sm:$0xff]  }
  0xfa   : > { %8728 = vmatpush3.bf16.msra.mxu0 %v9209_v51  ;;  %8443 = vmatprep.subr.bf16.mxu1 %v9212_v8  ;;  %v5178_v51 = vshll.u32 %v7653_v41, 16  ;;  %v5218_v44 = vsel %vm9399_vm2, %v5209_v40, %v5217_v35  ;;  %v9227_v55 = vld [vmem:[%s10729_s1 + $0x510] sm:$0xff]  }
  0xfb   : > { %8729 = vmatprep.subr.bf16.mxu0 %v9211_v4  ;;  %v5173_v9 = vrot.slane %v5172_v1, 4  ;;  %v5199_v10 = vor.u32 %v5198_v3, %v5195_v2  ;;  %v7660_v57 = vld [vmem:[%s9375_s14 + $0x30] sm:$0xc]  ;;  %v7661_v30 = vld [vmem:[%s9375_s14 + $0x34] sm:$0x7] }
  0xfc   : > { %v5180_v62 = vrot.slane %v5178_v51, 7  ;;  %v5247_v63 = vshrl.u32 %v7661_v30, 16  ;;  %v5250_v0 = vshll.u32 %v7661_v30, 16  ;;  %v7138_v30 = vld [vmem:[%s9375_s14 + $0x10] sm:$0xf] }
  0xfd   : > { %8444 = vmatpush3.bf16.msra.mxu1 %v9212_v8  ;;  %v9219_v8 = vld [vmem:[%s10729_s1 + $0x4f8] sm:$0xff]   ;;  %v5200_v24 = vsel %vm9399_vm2, %v5191_v14, %v5199_v10 }
  0xfe   : > { %8730 = vmatpush3.bf16.msra.mxu0 %v9211_v4  ;;  %8445 = vmatprep.subr.bf16.mxu1 %v9214_v31  ;;  %v5181_v4 = vor.u32 %v5180_v62, %v5177_v61  ;;  %v5238_v61 = vshrl.u32 %v7660_v57, 16  ;;  %v5241_v62 = vshll.u32 %v7660_v57, 16  ;;  %v5252_v10 = vrot.slane %v5250_v0, 7 }
  0xff   : > { %8731 = vmatprep.subr.bf16.mxu0 %v9213_v22 }
 0x100   : > { %v5182_v19 = vsel %vm9399_vm2, %v5173_v9, %v5181_v4  ;;  %v5240_v7 = vrot.slane %v5238_v61, 6  ;;  %v5249_v9 = vrot.slane %v5247_v63, 6 }
 0x101   : > { %8446 = vmatpush3.bf16.msra.mxu1 %v9214_v31  ;;  %v7684_v27 = vcombine.low %v5182_v19, %v5200_v24  ;;  %v5229_v31 = vshrl.u32 %v7659_v12, 16  ;;  %v7664_v19 = vld [vmem:[%s9375_s14 + $0x40] sm:$0xc]  ;;  %v7667_v24 = vld [vmem:[%s9375_s14 + $0x4c] sm:$0x7] }
 0x102   : > { %8732 = vmatpush3.bf16.msra.mxu0 %v9213_v22  ;;  %8447 = vmatprep.subr.bf16.mxu1 %v9216_v39  ;;  %v5220_v22 = vshrl.u32 %v7658_v11, 16  ;;  %v5253_v17 = vor.u32 %v5252_v10, %v5249_v9  ;;  %v5274_v25 = vshrl.u32 %v7664_v19, 16  ;;  %v5277_v26 = vshll.u32 %v7664_v19, 16 }
 0x103   : > { %8733 = vmatprep.subr.bf16.mxu0 %v9215_v34  ;;  %v5231_v37 = vrot.slane %v5229_v31, 6  ;;  %8739 = vmatprep.mubr.bf16.mxu0 %v7684_v27  ;;  %v5292_v31 = vshrl.u32 %v7666_v23, 16  ;;  %v2240_v10 = vshll.u32 %v7138_v30, 16 }
 0x104   : > { %v5222_v28 = vrot.slane %v5220_v22, 6  ;;  %v7665_v22 = vld [vmem:[%s9375_s14 + $0x44] sm:$0x7] }
 0x105   : > { %8448 = vmatpush3.bf16.msra.mxu1 %v9216_v39  ;;  %v9224_v39 = vld [vmem:[%s10729_s1 + $0x208] sm:$0xff]   ;;  %v5283_v27 = vshrl.u32 %v7665_v22, 16 }
 0x106   : > { %8734 = vmatpush3.bf16.msra.mxu0 %v9215_v34  ;;  %8449 = vmatprep.subr.bf16.mxu1 %v9218_v59  ;;  %v5232_v34 = vshll.u32 %v7659_v12, 16  ;;  %v5226_v36 = vor.u32 %v5225_v29, %v5222_v28  ;;  %v5286_v29 = vshll.u32 %v7665_v22, 16 }
 0x107   : > { %8735 = vmatprep.subr.bf16.mxu0 %v9217_v58 }
 0x108   : > { %v5234_v41 = vrot.slane %v5232_v34, 7  ;;  %v5227_v43 = vrot.slane %v5226_v36, 4  ;;  %v5276_v34 = vrot.slane %v5274_v25, 6  ;;  %v5279_v36 = vrot.slane %v5277_v26, 7 }
 0x109   : > { %8450 = vmatpush3.bf16.msra.mxu1 %v9218_v59  ;;  %v7663_v59 = vld [vmem:[%s9375_s14 + $0x3c] sm:$0x7] }
 0x10a   : > { %8736 = vmatpush3.bf16.msra.mxu0 %v9217_v58  ;;  %8459 = vmatprep.subr.bf16.mxu1 %v9221_v18  ;;  %v5235_v47 = vor.u32 %v5234_v41, %v5231_v37  ;;  %v7662_v58 = vld [vmem:[%s9375_s14 + $0x38] sm:$0xc]  ;;  %v5265_v3 = vshrl.u32 %v7663_v59, 16  ;;  %v5268_v4 = vshll.u32 %v7663_v59, 16  ;;  %v5285_v37 = vrot.slane %v5283_v27, 6 }
 0x10b   : > { %8737 = vmatprep.subr.bf16.mxu0 %v9219_v8  ;;  %v5256_v1 = vshrl.u32 %v7662_v58, 16  ;;  %v5259_v2 = vshll.u32 %v7662_v58, 16  ;;  %v5288_v41 = vrot.slane %v5286_v29, 7  ;;  %v7139_v58 = vld [vmem:[%s9375_s14 + $0x14] sm:$0x1] }
 0x10c   : > { %8452 = vmatmul.mubr.bf16.vlgmr.msra.gmra.mrb[0].mxu1 %v9223_v21  ;;  %v5236_v52 = vsel %vm9399_vm2, %v5227_v43, %v5235_v47  ;;  %v5267_v13 = vrot.slane %v5265_v3, 6  ;;  %v5270_v14 = vrot.slane %v5268_v4, 7  ;;  %v5294_v43 = vrot.slane %v5292_v31, 6  ;;  %v9233_v47 = vld [vmem:[%s10729_s1 + $0x528] sm:$0xff]   ;;  %v7140_v29 = vld [vmem:[%s9375_s14 + $0x18] sm:$0xf] }
 0x10d   : > { %8460 = vmatpush3.bf16.msra.mxu1 %v9221_v18  ;;  %v7685_v51 = vcombine.low %v5218_v44, %v5236_v52  ;;  %8455 = vmatprep.mubr.bf16.mxu1 %v9234_v45  ;;  %v5258_v11 = vrot.slane %v5256_v1, 6  ;;  %v5261_v12 = vrot.slane %v5259_v2, 7  ;;  %v9237_v18 = vld [vmem:[%s9375_s14 + $0x38] ss:$8 sps:$4 sm:$0xff]   ;;  %v5280_v52 = vor.u32 %v5279_v36, %v5276_v34  ;;  %v7136_v45 = vld [vmem:[%s9375_s14 + $0x8] sm:$0xf] }
 0x10e   : > { %8738 = vmatpush3.bf16.msra.mxu0 %v9219_v8  ;;  %8461 = vmatprep.subr.bf16.mxu1 %v9224_v39  ;;  %v5243_v8 = vrot.slane %v5241_v62, 7  ;;  %v5271_v50 = vor.u32 %v5270_v14, %v5267_v13  ;;  %v2223_v59 = vshrl.u32 %v7136_v45, 16  ;;  %v2226_v61 = vshll.u32 %v7136_v45, 16  ;;  %v9238_v1 = vld [vmem:[%s10729_s1 + $0x238] sm:$0xff]  }
 0x10f   : > { %8747 = vmatprep.subr.bf16.mxu0 %v9222_v32  ;;  %v5262_v21 = vor.u32 %v5261_v12, %v5258_v11  ;;  %v5281_v62 = vrot.slane %v5280_v52, 4  ;;  %v7696_v11 = vld [vmem:[%s9375_s14 + $0x10] sm:$0x8]  ;;  %v7697_v12 = vld [vmem:[%s9375_s14 + $0x14] sm:$0x7]  ;;  %v2251_v34 = vshrl.u32 %v7140_v29, 16 }
 0x110   : > { %v5244_v16 = vor.u32 %v5243_v8, %v5240_v7  ;;  %v2225_v4 = vrot.slane %v2223_v59, 4  ;;  %v5513_v22 = vrot.slane %v7697_v12, 7  ;;  %v7141_v31 = vld [vmem:[%s9375_s14 + $0x1c] sm:$0x1]  ;;  %v2254_v36 = vshll.u32 %v7140_v29, 16  ;;  %v9243_v12 = vld [vmem:[%s10729_s1 + $0x548] sm:$0xff]  }
 0x111   : > { %8462 = vmatpush3.bf16.msra.mxu1 %v9224_v39  ;;  %8740 = vmatmul.mubr.bf16.vlgmr.msra.gmra.mrb[0].mxu0 %v7685_v51  ;;  %v5263_v28 = vrot.slane %v5262_v21, 4  ;;  %v9235_v39 = vld [vmem:[%s10729_s1 + $0x230] sm:$0xff]   ;;  %v5301_v51 = vshrl.u32 %v7667_v24, 16  ;;  %v2242_v21 = vrot.slane %v2240_v10, 5 }
 0x112   : > { %8463 = vmatprep.subr.bf16.mxu1 %v9226_v48  ;;  %8748 = vmatpush3.bf16.msra.mxu0 %v9222_v32  ;;  %v5245_v60 = vrot.slane %v5244_v16, 4  ;;  %v5295_v32 = vshll.u32 %v7666_v23, 16  ;;  %v2246_v16 = vshll.u32 %v7139_v58, 16  ;;  %v2256_v52 = vrot.slane %v2254_v36, 5  ;;  %v9246_v36 = vld [vmem:[%s10729_s1 + $0x258] sm:$0xff]  }
 0x113   : > { %8749 = vmatprep.subr.bf16.mxu0 %v9225_v53  ;;  %v5272_v40 = vsel %vm9399_vm2, %v5263_v28, %v5271_v50  ;;  %v5303_v63 = vrot.slane %v5301_v51, 6  ;;  %v7712_v50 = vrot.slane %v7696_v11, 11 }
 0x114   : > { %8456 = vmatmul.mubr.bf16.gmra.mrb[4].mxu1 %v9237_v18  ;;  %v5254_v35 = vsel %vm9399_vm2, %v5245_v60, %v5253_v17  ;;  %v5297_v44 = vrot.slane %v5295_v32, 7  ;;  %v7699_v17 = vld [vmem:[%s9375_s14 + $0x1c] sm:$0x7]  ;;  %v9236_v18 = vld [vmem:[%s10729_s1 + $0x530] sm:$0xff]   ;;  %v10272_v60 = vld [vmem:[%s10729_s1 + $0x240] sm:$0xff]   ;;  %v2248_v27 = vrot.slane %v2246_v16, 5 }
 0x115   : > { %8464 = vmatpush3.bf16.msra.mxu1 %v9226_v48  ;;  %v7686_v48 = vcombine.low %v5254_v35, %v5272_v40  ;;  %v5514_v38 = vsel %vm9493_vm7, %v7712_v50, %v5513_v22  ;;  %v5517_v28 = vrot.slane %v7699_v17, 7  ;;  %v7143_v35 = vld [vmem:[%s9375_s14 + $0x24] sm:$0x1]  ;;  %v9242_v16 = vld [vmem:[%s10729_s1 + $0x248] sm:$0xff]   ;;  %v9245_v17 = vld [vmem:[%s10729_s1 + $0x550] sm:$0xff]  }
 0x116   : > { %8465 = vmatprep.subr.bf16.mxu1 %v9228_v56  ;;  %8750 = vmatpush3.bf16.msra.mxu0 %v9225_v53  ;;  %v5304_v53 = vshll.u32 %v7667_v24, 16  ;;  %v5298_v57 = vor.u32 %v5297_v44, %v5294_v43  ;;  %v7700_v44 = vld [vmem:[%s9375_s14 + $0x20] sm:$0x8]  ;;  %v7147_v50 = vld [vmem:[%s9375_s14 + $0x34] sm:$0x1] }
 0x117   : > { %8751 = vmatprep.subr.bf16.mxu0 %v9227_v55  ;;  %8743 = vmatprep.mubr.bf16.mxu0 %v7686_v48  ;;  %v2253_v48 = vrot.slane %v2251_v34, 4  ;;  %v7706_v34 = vld [vmem:[%s9375_s14 + $0x38] sm:$0x8] }
 0x118   : > { %v5306_v0 = vrot.slane %v5304_v53, 7  ;;  %v5299_v3 = vrot.slane %v5298_v57, 4  ;;  %v7701_v53 = vld [vmem:[%s9375_s14 + $0x24] sm:$0x7]  ;;  %v2274_v57 = vshll.u32 %v7143_v35, 16 }
 0x119   : > { %8466 = vmatpush3.bf16.msra.mxu1 %v9228_v56  ;;  %v5289_v56 = vor.u32 %v5288_v41, %v5285_v37  ;;  %v9239_v37 = vld [vmem:[%s10729_s1 + $0x538] sm:$0xff]   ;;  %v2260_v41 = vshll.u32 %v7141_v31, 16  ;;  %v2257_v59 = vor.u32 %v2256_v52, %v2253_v48  ;;  %v7704_v31 = vld [vmem:[%s9375_s14 + $0x30] sm:$0x8]  ;;  %v7705_v35 = vld [vmem:[%s9375_s14 + $0x34] sm:$0x7] }
 0x11a   : > { %8467 = vmatprep.subr.bf16.mxu1 %v9230_v6  ;;  %8752 = vmatpush3.bf16.msra.mxu0 %v9227_v55  ;;  %v7137_v55 = vld [vmem:[%s9375_s14 + $0xc] sm:$0x1]  ;;  %v5307_v8 = vor.u32 %v5306_v0, %v5303_v63  ;;  %v7714_v63 = vrot.slane %v7700_v44, 11  ;;  %v9241_v0 = vld [vmem:[%s10729_s1 + $0x540] sm:$0xff]  }
 0x11b   : > { %8753 = vmatprep.subr.bf16.mxu0 %v9229_v5  ;;  %v2232_v2 = vshll.u32 %v7137_v55, 16  ;;  %v5290_v7 = vsel %vm9399_vm2, %v5281_v62, %v5289_v56  ;;  %v2262_v55 = vrot.slane %v2260_v41, 5  ;;  %v7703_v62 = vld [vmem:[%s9375_s14 + $0x2c] sm:$0x7]  ;;  %v5529_v41 = vrot.slane %v7705_v35, 7  ;;  %v9248_v52 = vld [vmem:[%s10729_s1 + $0x260] sm:$0xff]  }
 0x11c   : > { %v5308_v19 = vsel %vm9399_vm2, %v5299_v3, %v5307_v8  ;;  %v5525_v3 = vrot.slane %v7703_v62, 7 }
 0x11d   : > { %8468 = vmatpush3.bf16.msra.mxu1 %v9230_v6  ;;  %v2237_v6 = vshrl.u32 %v7138_v30, 16  ;;  %v2234_v9 = vrot.slane %v2232_v2, 5  ;;  %v7687_v23 = vcombine.low %v5290_v7, %v5308_v19  ;;  %v7702_v30 = vld [vmem:[%s9375_s14 + $0x28] sm:$0x8]  ;;  %v7145_v19 = vld [vmem:[%s9375_s14 + $0x2c] sm:$0x1] }
 0x11e   : > { %8469 = vmatprep.subr.bf16.mxu1 %v9232_v15  ;;  %8754 = vmatpush3.bf16.msra.mxu0 %v9229_v5  ;;  %v2228_v5 = vrot.slane %v2226_v61, 5  ;;  %v7715_v2 = vrot.slane %v7702_v30, 11 }
 0x11f   : > { %8755 = vmatprep.subr.bf16.mxu0 %v9231_v33  ;;  %v2239_v14 = vrot.slane %v2237_v6, 4  ;;  %8744 = vmatmul.mubr.bf16.gmra.mrb[4].mxu0 %v7687_v23  ;;  %v2276_v6 = vrot.slane %v2274_v57, 5 }
 0x120   : > { %v2229_v13 = vor.u32 %v2228_v5, %v2225_v4  ;;  %v2258_v4 = vrot.slane %v2257_v59, 4  ;;  %v5526_v8 = vsel %vm9493_vm7, %v7715_v2, %v5525_v3  ;;  %v7151_v59 = vld [vmem:[%s9375_s14 + $0x44] sm:$0x1]  ;;  %v7708_v2 = vld [vmem:[%s9375_s14 + $0x40] sm:$0x8] }
 0x121   : > { %8470 = vmatpush3.bf16.msra.mxu1 %v9232_v15  ;;  %v7698_v15 = vld [vmem:[%s9375_s14 + $0x18] sm:$0x8]  ;;  %v2243_v26 = vor.u32 %v2242_v21, %v2239_v14  ;;  %v7146_v21 = vld [vmem:[%s9375_s14 + $0x30] sm:$0xf]  ;;  %v7709_v3 = vld [vmem:[%s9375_s14 + $0x44] sm:$0x7] }
 0x122   : > { %8471 = vmatprep.subr.bf16.mxu1 %v9235_v39  ;;  %8756 = vmatpush3.bf16.msra.mxu0 %v9231_v33  ;;  %v2230_v24 = vrot.slane %v2229_v13, 4  ;;  %v7713_v25 = vrot.slane %v7698_v15, 11  ;;  %v7142_v33 = vld [vmem:[%s9375_s14 + $0x20] sm:$0xf]  ;;  %v9244_v15 = vld [vmem:[%s10729_s1 + $0x250] sm:$0xff]  }
 0x123   : > { %8757 = vmatprep.subr.bf16.mxu0 %v9233_v47  ;;  %v2265_v43 = vshrl.u32 %v7142_v33, 16  ;;  %v2268_v51 = vshll.u32 %v7142_v33, 16 }
 0x124   : > { %v2235_v32 = vsel %vm9503_vm8, %v2230_v24, %v2234_v9  ;;  %v5518_v40 = vsel %vm9493_vm7, %v7713_v25, %v5517_v28  ;;  %v2263_v9 = vsel %vm9503_vm8, %v2258_v4, %v2262_v55  ;;  %v2288_v24 = vshll.u32 %v7145_v19, 16  ;;  %v7148_v55 = vld [vmem:[%s9375_s14 + $0x38] sm:$0xf] }
 0x125   : > { %8472 = vmatpush3.bf16.msra.mxu1 %v9235_v39  ;;  %v2244_v39 = vrot.slane %v2243_v26, 4  ;;  %v2267_v56 = vrot.slane %v2265_v43, 4  ;;  %v2270_v61 = vrot.slane %v2268_v51, 5  ;;  %v2293_v25 = vshrl.u32 %v7146_v21, 16  ;;  %v9249_v51 = vld [vmem:[%s10729_s1 + $0x560] sm:$0xff]  }
 0x126   : > { %8473 = vmatprep.subr.bf16.mxu1 %v9238_v1  ;;  %8758 = vmatpush3.bf16.msra.mxu0 %v9233_v47  ;;  %v7736_v47 = vcombine.low %v5514_v38, %v5518_v40  ;;  %v2296_v26 = vshll.u32 %v7146_v21, 16  ;;  %v7716_v40 = vrot.slane %v7704_v31, 11  ;;  %v7717_v43 = vrot.slane %v7706_v34, 11  ;;  %v9253_v21 = vld [vmem:[%s10729_s1 + $0x570] sm:$0xff]  }
 0x127   : > { %8759 = vmatprep.subr.bf16.mxu0 %v9236_v18  ;;  %v2249_v45 = vsel %vm9503_vm8, %v2244_v39, %v2248_v27  ;;  %v2271_v5 = vor.u32 %v2270_v61, %v2267_v56  ;;  %v2302_v27 = vshll.u32 %v7147_v50, 16  ;;  %v2295_v29 = vrot.slane %v2293_v25, 4  ;;  %v7707_v39 = vld [vmem:[%s9375_s14 + $0x3c] sm:$0x7]  ;;  %v7183_v34 = vld [vmem:[%s9375_s14 + $0x14] sm:$0x1] }
 0x128   : > { %v7168_v58 = vcombine.low %v2235_v32, %v2249_v45  ;;  %8763 = vmatprep.mubr.bf16.mxu0 %v7736_v47  ;;  %v2290_v32 = vrot.slane %v2288_v24, 5  ;;  %v2298_v33 = vrot.slane %v2296_v26, 5  ;;  %v5533_v48 = vrot.slane %v7707_v39, 7  ;;  %v7149_v56 = vld [vmem:[%s9375_s14 + $0x3c] sm:$0x1] }
 0x129   : > { %8474 = vmatpush3.bf16.msra.mxu1 %v9238_v1  ;;  %v5521_v1 = vrot.slane %v7701_v53, 7  ;;  %v2272_v10 = vrot.slane %v2271_v5, 4  ;;  %v2304_v47 = vrot.slane %v2302_v27, 5  ;;  %v5530_v45 = vsel %vm9493_vm7, %v7716_v40, %v5529_v41  ;;  %v7180_v27 = vld [vmem:[%s9375_s14 + $0x8] sm:$0xe]  ;;  %v9255_v39 = vld [vmem:[%s10729_s1 + $0x578] sm:$0xff]  }
 0x12a   : > { %8483 = vmatprep.subr.bf16.mxu1 %v10272_v60  ;;  %8760 = vmatpush3.bf16.msra.mxu0 %v9236_v18  ;;  %v7144_v18 = vld [vmem:[%s9375_s14 + $0x28] sm:$0xf]  ;;  %v2299_v44 = vor.u32 %v2298_v33, %v2295_v29  ;;  %v5534_v30 = vsel %vm9493_vm7, %v7717_v43, %v5533_v48  ;;  %v2307_v61 = vshrl.u32 %v7148_v55, 16  ;;  %v5537_v19 = vrot.slane %v7709_v3, 7  ;;  %v7182_v29 = vld [vmem:[%s9375_s14 + $0x10] sm:$0xe] }
 0x12b   : > { %8761 = vmatprep.subr.bf16.mxu0 %v9239_v37  ;;  %8475 = vmatprep.mubr.bf16.mxu1 %v7168_v58  ;;  %v5522_v7 = vsel %vm9493_vm7, %v7714_v63, %v5521_v1  ;;  %v2277_v13 = vsel %vm9503_vm8, %v2272_v10, %v2276_v6  ;;  %v2279_v22 = vshrl.u32 %v7144_v18, 16  ;;  %v2282_v23 = vshll.u32 %v7144_v18, 16  ;;  %v7150_v58 = vld [vmem:[%s9375_s14 + $0x40] sm:$0xf]  ;;  %v9251_v10 = vld [vmem:[%s10729_s1 + $0x568] sm:$0xff]   ;;  %v9254_v48 = vld [vmem:[%s10729_s1 + $0x278] sm:$0xff]  }
 0x12c   : > { %v7737_v11 = vcombine.low %v5522_v7, %v5526_v8  ;;  %v7169_v14 = vcombine.low %v2263_v9, %v2277_v13  ;;  %v2300_v57 = vrot.slane %v2299_v44, 4  ;;  %v7738_v63 = vcombine.low %v5530_v45, %v5534_v30  ;;  %v7710_v8 = vld [vmem:[%s9375_s14 + $0x48] sm:$0x8]  ;;  %v9257_v44 = vld [vmem:[%s9375_s14 + $0x18] ss:$8 sps:$4 sm:$0xff]  }
 0x12d   : > { %v2281_v38 = vrot.slane %v2279_v22, 4  ;;  %v2284_v28 = vrot.slane %v2282_v23, 5  ;;  %v2316_v1 = vshll.u32 %v7149_v56, 16  ;;  %v2309_v5 = vrot.slane %v2307_v61, 4  ;;  %v9250_v9 = vld [vmem:[%s10729_s1 + $0x268] sm:$0xff]   ;;  %v9258_v61 = vld [vmem:[%s10729_s1 + $0x580] sm:$0xff]  }
 0x12e   : > { %8762 = vmatpush3.bf16.msra.mxu0 %v9239_v37  ;;  %8476 = vmatmul.mubr.bf16.vlgmr.msra.gmra.mrb[0].mxu1 %v7169_v14  ;;  %v2305_v4 = vsel %vm9503_vm8, %v2300_v57, %v2304_v47  ;;  %v2321_v6 = vshrl.u32 %v7150_v58, 16  ;;  %v2324_v7 = vshll.u32 %v7150_v58, 16  ;;  %v2330_v14 = vshll.u32 %v7151_v59, 16  ;;  %v7185_v45 = vld [vmem:[%s9375_s14 + $0x1c] sm:$0x1]  ;;  %v9261_v3 = vld [vmem:[%s10729_s1 + $0x588] sm:$0xff]  }
 0x12f   : > { %8771 = vmatprep.subr.bf16.mxu0 %v9241_v0  ;;  %8484 = vmatpush3.bf16.msra.mxu1 %v10272_v60  ;;  %v9247_v60 = vld [vmem:[%s10729_s1 + $0x558] sm:$0xff]   ;;  %v2285_v37 = vor.u32 %v2284_v28, %v2281_v38  ;;  %v2318_v13 = vrot.slane %v2316_v1, 5  ;;  %v7718_v18 = vrot.slane %v7708_v2, 11  ;;  %v7719_v23 = vrot.slane %v7710_v8, 11  ;;  %v7181_v28 = vld [vmem:[%s9375_s14 + $0xc] sm:$0x1] }
 0x130   : > { %8485 = vmatprep.subr.bf16.mxu1 %v9242_v16  ;;  %v2332_v22 = vrot.slane %v2330_v14, 5  ;;  %v7196_v31 = vrot.slane %v7180_v27, 9  ;;  %v2542_v40 = vrot.slane %v7183_v34, 5  ;;  %v7187_v56 = vld [vmem:[%s9375_s14 + $0x24] sm:$0x1]  ;;  %v2546_v30 = vrot.slane %v7185_v45, 5 }
 0x131   : > { %8764 = vmatmul.mubr.bf16.vlgmr.msra.gmra.mrb[0].mxu0 %v7737_v11  ;;  %v2286_v53 = vrot.slane %v2285_v37, 4  ;;  %v5538_v26 = vsel %vm9493_vm7, %v7718_v18, %v5537_v19  ;;  %v7197_v37 = vrot.slane %v7182_v29, 9  ;;  %v2550_v59 = vrot.slane %v7187_v56, 5  ;;  %v7189_v8 = vld [vmem:[%s9375_s14 + $0x2c] sm:$0x1]  ;;  %v9264_v19 = vld [vmem:[%s10729_s1 + $0x298] sm:$0xff]  }
 0x132   : > { %8772 = vmatpush3.bf16.msra.mxu0 %v9241_v0  ;;  %v2310_v0 = vshll.u32 %v7148_v55, 16  ;;  %8767 = vmatprep.mubr.bf16.mxu0 %v7738_v63  ;;  %v7186_v55 = vld [vmem:[%s9375_s14 + $0x20] sm:$0xe]  ;;  %v9259_v63 = vld [vmem:[%s9375_s14 + $0x28] ss:$8 sps:$4 sm:$0xff]  }
 0x133   : > { %8773 = vmatprep.subr.bf16.mxu0 %v9243_v12  ;;  %8486 = vmatpush3.bf16.msra.mxu1 %v9242_v16  ;;  %v2291_v62 = vsel %vm9503_vm8, %v2286_v53, %v2290_v32  ;;  %v7711_v16 = vld [vmem:[%s9375_s14 + $0x4c] sm:$0x7]  ;;  %v9252_v32 = vld [vmem:[%s10729_s1 + $0x270] sm:$0xff]   ;;  %v7199_v58 = vrot.slane %v7186_v55, 9  ;;  %v9271_v18 = vld [vmem:[%s9375_s14 + $0x38] ss:$8 sps:$4 sm:$0xff]  }
 0x134   : > { %8487 = vmatprep.subr.bf16.mxu1 %v9244_v15  ;;  %v7170_v11 = vcombine.low %v2291_v62, %v2305_v4  ;;  %v5541_v24 = vrot.slane %v7711_v16, 7  ;;  %v9256_v62 = vld [vmem:[%s10729_s1 + $0x280] sm:$0xff]   ;;  %v9260_v4 = vld [vmem:[%s10729_s1 + $0x288] sm:$0xff]   ;;  %v9265_v16 = vld [vmem:[%s10729_s1 + $0x598] sm:$0xff]  }
 0x135   : > { %v2551_v1 = vsel %vm9602_vm11, %v7199_v58, %v2550_v59  ;;  %v9273_v29 = vld [vmem:[%s9375_s14 + $0x48] ss:$8 sps:$4 sm:$0xff]  }
 0x136   : > { %8774 = vmatpush3.bf16.msra.mxu0 %v9243_v12  ;;  %v2312_v12 = vrot.slane %v2310_v0, 5  ;;  %8479 = vmatprep.mubr.bf16.mxu1 %v7170_v11  ;;  %v5542_v38 = vsel %vm9493_vm7, %v7719_v23, %v5541_v24  ;;  %v9267_v23 = vld [vmem:[%s10729_s1 + $0x5a0] sm:$0xff]   ;;  %v7232_v34 = vld [vmem:[%s9375_s14 + $0x8] sm:$0xe]  ;;  %v9272_v55 = vld [vmem:[%s10729_s1 + $0x5b0] sm:$0xff]  }
 0x137   : > { %8775 = vmatprep.subr.bf16.mxu0 %v9245_v17  ;;  %8488 = vmatpush3.bf16.msra.mxu1 %v9244_v15  ;;  %v2323_v15 = vrot.slane %v2321_v6, 4  ;;  %v7739_v35 = vcombine.low %v5538_v26, %v5542_v38  ;;  %v9263_v6 = vld [vmem:[%s10729_s1 + $0x590] sm:$0xff]   ;;  %v7194_v24 = vld [vmem:[%s9375_s14 + $0x40] sm:$0xe]  ;;  %v9268_v45 = vld [vmem:[%s10729_s1 + $0x2a8] sm:$0xff]  }
 0x138   : > { %8489 = vmatprep.subr.bf16.mxu1 %v9246_v36  ;;  %v2313_v50 = vor.u32 %v2312_v12, %v2309_v5  ;;  %v9262_v5 = vld [vmem:[%s10729_s1 + $0x290] sm:$0xff]   ;;  %v2554_v12 = vrot.slane %v7189_v8, 5 }
 0x139   : > { %8768 = vmatmul.mubr.bf16.gmra.mrb[4].mxu0 %v7739_v35 }
 0x13a   : > { %8776 = vmatpush3.bf16.msra.mxu0 %v9245_v17  ;;  %v2326_v17 = vrot.slane %v2324_v7, 5  ;;  %8787 = vmatprep.mubr.bf16.mxu0 %v9257_v44  ;;  %v7188_v7 = vld [vmem:[%s9375_s14 + $0x28] sm:$0xe] }
 0x13b   : > { %8777 = vmatprep.subr.bf16.mxu0 %v9247_v60  ;;  %8490 = vmatpush3.bf16.msra.mxu1 %v9246_v36  ;;  %v2538_v36 = vrot.slane %v7181_v28, 5  ;;  %v7200_v11 = vrot.slane %v7188_v7, 9  ;;  %v9270_v7 = vld [vmem:[%s10729_s1 + $0x2b0] sm:$0xff]  }
 0x13c   : > { %8491 = vmatprep.subr.bf16.mxu1 %v9248_v52  ;;  %v2327_v25 = vor.u32 %v2326_v17, %v2323_v15 }
 0x13d   : > { %v2539_v43 = vsel %vm9602_vm11, %v7196_v31, %v2538_v36  ;;  %v2555_v15 = vsel %vm9602_vm11, %v7200_v11, %v2554_v12  ;;  %v9266_v31 = vld [vmem:[%s10729_s1 + $0x2a0] sm:$0xff]   ;;  %v7233_v36 = vld [vmem:[%s9375_s14 + $0xc] sm:$0x3] }
 0x13e   : > { %8778 = vmatpush3.bf16.msra.mxu0 %v9247_v60  ;;  %v2314_v60 = vrot.slane %v2313_v50, 4  ;;  %v2328_v33 = vrot.slane %v2327_v25, 4  ;;  %v7192_v50 = vld [vmem:[%s9375_s14 + $0x38] sm:$0xe]  ;;  %v7195_v25 = vld [vmem:[%s9375_s14 + $0x44] sm:$0x1] }
 0x13f   : > { %8779 = vmatprep.subr.bf16.mxu0 %v9249_v51  ;;  %8492 = vmatpush3.bf16.msra.mxu1 %v9248_v52  ;;  %v2543_v52 = vsel %vm9602_vm11, %v7197_v37, %v2542_v40  ;;  %v7202_v26 = vrot.slane %v7192_v50, 9  ;;  %v2566_v38 = vrot.slane %v7195_v25, 5  ;;  %v7234_v37 = vld [vmem:[%s9375_s14 + $0x10] sm:$0xe]  ;;  %v2758_v40 = vshll.u32 %v7232_v34, 16 }
 0x140   : > { %8493 = vmatprep.subr.bf16.mxu1 %v9250_v9  ;;  %v2319_v46 = vsel %vm9503_vm8, %v2314_v60, %v2318_v13  ;;  %v2333_v41 = vsel %vm9503_vm8, %v2328_v33, %v2332_v22  ;;  %v7220_v53 = vcombine.low %v2539_v43, %v2543_v52  ;;  %v7193_v22 = vld [vmem:[%s9375_s14 + $0x3c] sm:$0x1]  ;;  %v7203_v60 = vrot.slane %v7194_v24, 9  ;;  %v9269_v33 = vld [vmem:[%s10729_s1 + $0x5a8] sm:$0xff]   ;;  %v7236_v50 = vld [vmem:[%s9375_s14 + $0x18] sm:$0xe] }
 0x141   : > { %v7171_v47 = vcombine.low %v2319_v46, %v2333_v41  ;;  %v2562_v27 = vrot.slane %v7193_v22, 5  ;;  %v7235_v46 = vld [vmem:[%s9375_s14 + $0x14] sm:$0x3]  ;;  %v2764_v41 = vshrl.u32 %v7233_v36, 16  ;;  %v2767_v43 = vshll.u32 %v7233_v36, 16 }
 0x142   : > { %8780 = vmatpush3.bf16.msra.mxu0 %v9249_v51  ;;  %v7184_v51 = vld [vmem:[%s9375_s14 + $0x18] sm:$0xe]  ;;  %v2773_v44 = vshrl.u32 %v7234_v37, 16  ;;  %v2760_v52 = vrot.slane %v2758_v40, 6  ;;  %v7237_v25 = vld [vmem:[%s9375_s14 + $0x1c] sm:$0x3] }
 0x143   : > { %8781 = vmatprep.subr.bf16.mxu0 %v9251_v10  ;;  %8494 = vmatpush3.bf16.msra.mxu1 %v9250_v9  ;;  %v7198_v57 = vrot.slane %v7184_v51, 9  ;;  %v7190_v9 = vld [vmem:[%s9375_s14 + $0x30] sm:$0xe]  ;;  %v2563_v28 = vsel %vm9602_vm11, %v7202_v26, %v2562_v27  ;;  %v2782_v51 = vshrl.u32 %v7235_v46, 16  ;;  %v2766_v56 = vrot.slane %v2764_v41, 5 }
 0x144   : > { %8495 = vmatprep.subr.bf16.mxu1 %v9252_v32  ;;  %8480 = vmatmul.mubr.bf16.gmra.mrb[4].mxu1 %v7171_v47  ;;  %v7201_v13 = vrot.slane %v7190_v9, 9  ;;  %v2776_v47 = vshll.u32 %v7234_v37, 16  ;;  %v7238_v26 = vld [vmem:[%s9375_s14 + $0x20] sm:$0xe]  ;;  %v2791_v27 = vshrl.u32 %v7236_v50, 16  ;;  %v2803_v36 = vshll.u32 %v7237_v25, 16 }
 0x145   : > { %8499 = vmatprep.mubr.bf16.mxu1 %v7220_v53  ;;  %v2547_v0 = vsel %vm9602_vm11, %v7198_v57, %v2546_v30  ;;  %v2785_v53 = vshll.u32 %v7235_v46, 16  ;;  %v2769_v57 = vrot.slane %v2767_v43, 6  ;;  %v2775_v30 = vrot.slane %v2773_v44, 5  ;;  %v7788_v37 = vld [vmem:[%s9375_s14 + $0x28] sm:$0xf] }
 0x146   : > { %8782 = vmatpush3.bf16.msra.mxu0 %v9251_v10  ;;  %v7221_v2 = vcombine.low %v2547_v0, %v2551_v1  ;;  %v7191_v10 = vld [vmem:[%s9375_s14 + $0x34] sm:$0x1]  ;;  %v2778_v58 = vrot.slane %v2776_v47, 6  ;;  %v7785_v0 = vld [vmem:[%s9375_s14 + $0x1c] sm:$0x1]  ;;  %v2809_v40 = vshrl.u32 %v7238_v26, 16 }
 0x147   : > { %8783 = vmatprep.subr.bf16.mxu0 %v9253_v21  ;;  %8496 = vmatpush3.bf16.msra.mxu1 %v9252_v32  ;;  %v2558_v14 = vrot.slane %v7191_v10, 5  ;;  %v2567_v32 = vsel %vm9602_vm11, %v7203_v60, %v2566_v38  ;;  %v2770_v1 = vor.u32 %v2769_v57, %v2766_v56  ;;  %v5926_v10 = vshll.u32 %v7785_v0, 16  ;;  %v7789_v43 = vld [vmem:[%s9375_s14 + $0x2c] sm:$0x1] }
 0x148   : > { %8497 = vmatprep.subr.bf16.mxu1 %v9254_v48  ;;  %v7223_v35 = vcombine.low %v2563_v28, %v2567_v32  ;;  %v7239_v28 = vld [vmem:[%s9375_s14 + $0x24] sm:$0x3]  ;;  %v9274_v32 = vld [vmem:[%s10729_s1 + $0x2b8] sm:$0xff]   ;;  %v2812_v41 = vshll.u32 %v7238_v26, 16  ;;  %v2811_v56 = vrot.slane %v2809_v40, 5 }
 0x149   : > { %v2559_v17 = vsel %vm9602_vm11, %v7201_v13, %v2558_v14 }
 0x14a   : > { %8784 = vmatpush3.bf16.msra.mxu0 %v9253_v21  ;;  %v7222_v21 = vcombine.low %v2555_v15, %v2559_v17  ;;  %v9275_v15 = vld [vmem:[%s10729_s1 + $0x5b8] sm:$0xff]   ;;  %v2814_v57 = vrot.slane %v2812_v41, 6 }
 0x14b   : > { %8785 = vmatprep.subr.bf16.mxu0 %v9255_v39  ;;  %8498 = vmatpush3.bf16.msra.mxu1 %v9254_v48 }
 0x14c   : > { %8507 = vmatprep.subr.bf16.mxu1 %v9256_v62 }
 0x14e   : > { %8786 = vmatpush3.bf16.msra.mxu0 %v9255_v39  ;;  %8500 = vmatmul.mubr.bf16.vlgmr.msra.gmra.mrb[0].mxu1 %v7221_v2  ;;  %v2755_v39 = vshrl.u32 %v7232_v34, 16  ;;  %v2779_v2 = vor.u32 %v2778_v58, %v2775_v30  ;;  %v2793_v34 = vrot.slane %v2791_v27, 5  ;;  %v2821_v30 = vshll.u32 %v7239_v28, 16  ;;  %v7791_v58 = vld [vmem:[%s9375_s14 + $0x34] sm:$0x1]  ;;  %v9279_v27 = vld [vmem:[%s10729_s1 + $0x5c8] sm:$0xff]  }
 0x14f   : > { %8795 = vmatprep.subr.bf16.mxu0 %v9258_v61  ;;  %8508 = vmatpush3.bf16.msra.mxu1 %v9256_v62  ;;  %v2787_v62 = vrot.slane %v2785_v53, 6  ;;  %v7790_v53 = vld [vmem:[%s9375_s14 + $0x30] sm:$0xf] }
 0x150   : > { %8509 = vmatprep.subr.bf16.mxu1 %v9260_v4  ;;  %8503 = vmatprep.mubr.bf16.mxu1 %v7222_v21  ;;  %v2757_v48 = vrot.slane %v2755_v39, 5  ;;  %v2780_v12 = vrot.slane %v2779_v2, 4  ;;  %v2815_v2 = vor.u32 %v2814_v57, %v2811_v56 }
 0x151   : > { %8788 = vmatmul.mubr.bf16.vlgmr.msra.gmra.mrb[0].mxu0 %v9259_v63  ;;  %v7784_v63 = vld [vmem:[%s9375_s14 + $0x18] sm:$0xf] }
 0x152   : > { %8796 = vmatpush3.bf16.msra.mxu0 %v9258_v61  ;;  %8791 = vmatprep.mubr.bf16.mxu0 %v9271_v18  ;;  %v2761_v59 = vor.u32 %v2760_v52, %v2757_v48  ;;  %v2784_v61 = vrot.slane %v2782_v51, 5  ;;  %v5928_v18 = vrot.slane %v5926_v10, 5  ;;  %v10487_v48 = vld [vmem:[%s10729_s1 + $0x5c0] sm:$0xff]   ;;  %v2805_v52 = vrot.slane %v2803_v36, 6 }
 0x153   : > { %8797 = vmatprep.subr.bf16.mxu0 %v9261_v3  ;;  %8510 = vmatpush3.bf16.msra.mxu1 %v9260_v4  ;;  %v7787_v4 = vld [vmem:[%s9375_s14 + $0x24] sm:$0x1]  ;;  %v2818_v51 = vshrl.u32 %v7239_v28, 16 }
 0x154   : > { %8511 = vmatprep.subr.bf16.mxu1 %v9262_v5  ;;  %v2762_v8 = vrot.slane %v2761_v59, 4  ;;  %v2788_v9 = vor.u32 %v2787_v62, %v2784_v61  ;;  %v5940_v21 = vshll.u32 %v7787_v4, 16 }
 0x155   : > { %v2820_v62 = vrot.slane %v2818_v51, 5 }
 0x156   : > { %8798 = vmatpush3.bf16.msra.mxu0 %v9261_v3  ;;  %8504 = vmatmul.mubr.bf16.gmra.mrb[4].mxu1 %v7223_v35  ;;  %v7786_v3 = vld [vmem:[%s9375_s14 + $0x20] sm:$0xf]  ;;  %v2771_v17 = vsel %vm9699_vm14, %v2762_v8, %v2770_v1  ;;  %v2789_v22 = vsel %vm9699_vm14, %v2780_v12, %v2788_v9  ;;  %v5942_v38 = vrot.slane %v5940_v21, 5  ;;  %v2816_v9 = vrot.slane %v2815_v2, 4  ;;  %v7244_v2 = vld [vmem:[%s9375_s14 + $0x38] sm:$0xe] }
 0x157   : > { %8799 = vmatprep.subr.bf16.mxu0 %v9263_v6  ;;  %8512 = vmatpush3.bf16.msra.mxu1 %v9262_v5  ;;  %v5917_v5 = vshrl.u32 %v7784_v63, 16  ;;  %v5931_v11 = vshrl.u32 %v7786_v3, 16  ;;  %v7264_v60 = vcombine.low %v2771_v17, %v2789_v22  ;;  %v9278_v17 = vld [vmem:[%s10729_s1 + $0x2c8] sm:$0xff]  }
 0x158   : > { %8513 = vmatprep.subr.bf16.mxu1 %v9264_v19 }
 0x159   : > { %8792 = vmatmul.mubr.bf16.gmra.mrb[4].mxu0 %v9273_v29  ;;  %v5919_v13 = vrot.slane %v5917_v5, 4  ;;  %v2794_v29 = vshll.u32 %v7236_v50, 16  ;;  %8523 = vmatprep.mubr.bf16.mxu1 %v7264_v60  ;;  %v5948_v5 = vshll.u32 %v7788_v37, 16  ;;  %v7240_v60 = vld [vmem:[%s9375_s14 + $0x28] sm:$0xe] }
 0x15a   : > { %8800 = vmatpush3.bf16.msra.mxu0 %v9263_v6  ;;  %v5920_v6 = vshll.u32 %v7784_v63, 16  ;;  %v5945_v63 = vshrl.u32 %v7788_v37, 16 }
 0x15b   : > { %8801 = vmatprep.subr.bf16.mxu0 %v9265_v16  ;;  %8514 = vmatpush3.bf16.msra.mxu1 %v9264_v19  ;;  %v5933_v19 = vrot.slane %v5931_v11, 4  ;;  %v2796_v46 = vrot.slane %v2794_v29, 6  ;;  %v5962_v11 = vshll.u32 %v7790_v53, 16  ;;  %v5950_v12 = vrot.slane %v5948_v5, 5  ;;  %v7242_v29 = vld [vmem:[%s9375_s14 + $0x30] sm:$0xe] }
 0x15c   : > { %8515 = vmatprep.subr.bf16.mxu1 %v9266_v31  ;;  %v5922_v14 = vrot.slane %v5920_v6, 5  ;;  %v5947_v4 = vrot.slane %v5945_v63, 4  ;;  %v5954_v6 = vshll.u32 %v7789_v43, 16  ;;  %v2848_v43 = vshll.u32 %v7242_v29, 16 }
 0x15e   : > { %8802 = vmatpush3.bf16.msra.mxu0 %v9265_v16  ;;  %v5934_v16 = vshll.u32 %v7786_v3, 16  ;;  %v2823_v3 = vrot.slane %v2821_v30, 6  ;;  %v5956_v21 = vrot.slane %v5954_v6, 5  ;;  %v2850_v57 = vrot.slane %v2848_v43, 6  ;;  %v7245_v6 = vld [vmem:[%s9375_s14 + $0x3c] sm:$0x3] }
 0x15f   : > { %8803 = vmatprep.subr.bf16.mxu0 %v9267_v23  ;;  %8516 = vmatpush3.bf16.msra.mxu1 %v9266_v31  ;;  %v2800_v31 = vshrl.u32 %v7237_v25, 16  ;;  %v9280_v25 = vld [vmem:[%s10729_s1 + $0x2d0] sm:$0xff]  }
 0x160   : > { %8517 = vmatprep.subr.bf16.mxu1 %v9268_v45  ;;  %v5936_v24 = vrot.slane %v5934_v16, 5  ;;  %v2824_v10 = vor.u32 %v2823_v3, %v2820_v62  ;;  %v7798_v43 = vld [vmem:[%s9375_s14 + $0x50] sm:$0xf] }
 0x161   : > { %v2802_v39 = vrot.slane %v2800_v31, 5  ;;  %v7243_v31 = vld [vmem:[%s9375_s14 + $0x34] sm:$0x3] }
 0x162   : > { %8804 = vmatpush3.bf16.msra.mxu0 %v9267_v23  ;;  %v5923_v23 = vor.u32 %v5922_v14, %v5919_v13  ;;  %v5937_v35 = vor.u32 %v5936_v24, %v5933_v19  ;;  %v5968_v14 = vshll.u32 %v7791_v58, 16  ;;  %v2825_v16 = vsel %vm9699_vm14, %v2816_v9, %v2824_v10  ;;  %v7795_v58 = vld [vmem:[%s9375_s14 + $0x44] sm:$0x1] }
 0x163   : > { %8805 = vmatprep.subr.bf16.mxu0 %v9269_v33  ;;  %8518 = vmatpush3.bf16.msra.mxu1 %v9268_v45  ;;  %v9276_v45 = vld [vmem:[%s10729_s1 + $0x2c0] sm:$0xff]   ;;  %v2806_v61 = vor.u32 %v2805_v52, %v2802_v39  ;;  %v5951_v19 = vor.u32 %v5950_v12, %v5947_v4  ;;  %v7792_v39 = vld [vmem:[%s9375_s14 + $0x38] sm:$0xf] }
 0x164   : > { %8519 = vmatprep.subr.bf16.mxu1 %v9270_v7  ;;  %v5938_v47 = vrot.slane %v5937_v35, 4  ;;  %v5970_v50 = vrot.slane %v5968_v14, 5  ;;  %v7246_v12 = vld [vmem:[%s9375_s14 + $0x40] sm:$0xe] }
 0x166   : > { %8806 = vmatpush3.bf16.msra.mxu0 %v9269_v33  ;;  %v5924_v33 = vrot.slane %v5923_v23, 4  ;;  %v5943_v59 = vsel %vm9503_vm8, %v5938_v47, %v5942_v38  ;;  %v5952_v23 = vrot.slane %v5951_v19, 4  ;;  %v7241_v38 = vld [vmem:[%s9375_s14 + $0x2c] sm:$0x3]  ;;  %v7793_v47 = vld [vmem:[%s9375_s14 + $0x3c] sm:$0x1] }
 0x167   : > { %8807 = vmatprep.subr.bf16.mxu0 %v9272_v55  ;;  %8520 = vmatpush3.bf16.msra.mxu1 %v9270_v7  ;;  %v5959_v7 = vshrl.u32 %v7790_v53, 16  ;;  %v2836_v36 = vshrl.u32 %v7241_v38, 16  ;;  %v2839_v37 = vshll.u32 %v7241_v38, 16 }
 0x168   : > { %v5929_v44 = vsel %vm9503_vm8, %v5924_v33, %v5928_v18  ;;  %8521 = vmatprep.subr.bf16.mxu1 %v9274_v32  ;;  %v5957_v26 = vsel %vm9503_vm8, %v5952_v23, %v5956_v21  ;;  %v2830_v33 = vshll.u32 %v7240_v60, 16 }
 0x169   : > { %v7816_v0 = vcombine.low %v5929_v44, %v5943_v59  ;;  %v5961_v13 = vrot.slane %v5959_v7, 4  ;;  %v2854_v44 = vshrl.u32 %v7243_v31, 16  ;;  %v2838_v52 = vrot.slane %v2836_v36, 5  ;;  %v9284_v7 = vld [vmem:[%s10729_s1 + $0x2e0] sm:$0xff]   ;;  %v7797_v36 = vld [vmem:[%s9375_s14 + $0x4c] sm:$0x1] }
 0x16a   : > { %8808 = vmatpush3.bf16.msra.mxu0 %v9272_v55  ;;  %v2797_v55 = vor.u32 %v2796_v46, %v2793_v34  ;;  %v9282_v34 = vld [vmem:[%s10729_s1 + $0x2d8] sm:$0xff]   ;;  %v2845_v46 = vshrl.u32 %v7242_v29, 16  ;;  %v2832_v41 = vrot.slane %v2830_v33, 6  ;;  %v2841_v51 = vrot.slane %v2839_v37, 6  ;;  %v9285_v37 = vld [vmem:[%s10729_s1 + $0x5e0] sm:$0xff]  }
 0x16b   : > { %8809 = vmatprep.subr.bf16.mxu0 %v9275_v15  ;;  %8522 = vmatpush3.bf16.msra.mxu1 %v9274_v32  ;;  %v2827_v32 = vshrl.u32 %v7240_v60, 16  ;;  %v2856_v30 = vrot.slane %v2854_v44, 5  ;;  %v5973_v59 = vshrl.u32 %v7792_v39, 16 }
 0x16c   : > { %v2798_v1 = vrot.slane %v2797_v55, 4  ;;  %8811 = vmatprep.mubr.bf16.mxu0 %v7816_v0  ;;  %8531 = vmatprep.subr.bf16.mxu1 %v9276_v45  ;;  %v2847_v53 = vrot.slane %v2845_v46, 5  ;;  %v7794_v55 = vld [vmem:[%s9375_s14 + $0x40] sm:$0xf]  ;;  %v2842_v62 = vor.u32 %v2841_v51, %v2838_v52  ;;  %v5976_v0 = vshll.u32 %v7792_v39, 16 }
 0x16d   : > { %v2829_v40 = vrot.slane %v2827_v32, 5  ;;  %v5975_v4 = vrot.slane %v5973_v59, 4  ;;  %v5987_v5 = vshrl.u32 %v7794_v55, 16 }
 0x16e   : > { %8810 = vmatpush3.bf16.msra.mxu0 %v9275_v15  ;;  %v2807_v8 = vsel %vm9699_vm14, %v2798_v1, %v2806_v61  ;;  %v5964_v15 = vrot.slane %v5962_v11, 5  ;;  %v9281_v61 = vld [vmem:[%s10729_s1 + $0x5d0] sm:$0xff]   ;;  %v5982_v1 = vshll.u32 %v7793_v47, 16  ;;  %v5978_v9 = vrot.slane %v5976_v0, 5 }
 0x16f   : > { %8819 = vmatprep.subr.bf16.mxu0 %v10487_v48  ;;  %v7265_v18 = vcombine.low %v2807_v8, %v2825_v16  ;;  %v2833_v56 = vor.u32 %v2832_v41, %v2829_v40  ;;  %v5990_v11 = vshll.u32 %v7794_v55, 16  ;;  %v5989_v16 = vrot.slane %v5987_v5, 4 }
 0x170   : > { %v5965_v22 = vor.u32 %v5964_v15, %v5961_v13  ;;  %v5984_v10 = vrot.slane %v5982_v1, 5  ;;  %v5996_v15 = vshll.u32 %v7795_v58, 16  ;;  %v5979_v19 = vor.u32 %v5978_v9, %v5975_v4  ;;  %v9287_v58 = vld [vmem:[%s10729_s1 + $0x5e8] sm:$0xff]  }
 0x171   : > { %8524 = vmatmul.mubr.bf16.vlgmr.msra.gmra.mrb[0].mxu1 %v7265_v18  ;;  %v2834_v3 = vrot.slane %v2833_v56, 4  ;;  %v9283_v18 = vld [vmem:[%s10729_s1 + $0x5d8] sm:$0xff]   ;;  %v5992_v21 = vrot.slane %v5990_v11, 5  ;;  %v2884_v40 = vshll.u32 %v7246_v12, 16 }
 0x172   : > { %8532 = vmatpush3.bf16.msra.mxu1 %v9276_v45  ;;  %v5966_v24 = vrot.slane %v5965_v22, 4  ;;  %v2857_v45 = vshll.u32 %v7243_v31, 16  ;;  %v2866_v22 = vshll.u32 %v7244_v2, 16  ;;  %v5980_v38 = vrot.slane %v5979_v19, 4  ;;  %v7796_v31 = vld [vmem:[%s9375_s14 + $0x48] sm:$0xf] }
 0x173   : > { %8533 = vmatprep.subr.bf16.mxu1 %v9278_v17  ;;  %v2843_v13 = vsel %vm9699_vm14, %v2834_v3, %v2842_v62  ;;  %v2886_v55 = vrot.slane %v2884_v40, 6  ;;  %v6015_v3 = vshrl.u32 %v7798_v43, 16 }
 0x174   : > { %v5971_v28 = vsel %vm9503_vm8, %v5966_v24, %v5970_v50  ;;  %v2859_v63 = vrot.slane %v2857_v45, 6  ;;  %v2863_v50 = vshrl.u32 %v7244_v2, 16  ;;  %v5998_v24 = vrot.slane %v5996_v15, 5  ;;  %v7278_v15 = vld [vmem:[%s9375_s14 + $0x10] sm:$0xc] }
 0x175   : > { %v7817_v35 = vcombine.low %v5957_v26, %v5971_v28  ;;  %v2875_v26 = vshll.u32 %v7245_v6, 16  ;;  %v5993_v28 = vor.u32 %v5992_v21, %v5989_v16  ;;  %v2868_v32 = vrot.slane %v2866_v22, 6 }
 0x176   : > { %8534 = vmatpush3.bf16.msra.mxu1 %v9278_v17  ;;  %v2860_v8 = vor.u32 %v2859_v63, %v2856_v30  ;;  %v7247_v17 = vld [vmem:[%s9375_s14 + $0x44] sm:$0x3]  ;;  %v2865_v29 = vrot.slane %v2863_v50, 5  ;;  %v5985_v46 = vsel %vm9503_vm8, %v5980_v38, %v5984_v10  ;;  %v6001_v30 = vshrl.u32 %v7796_v31, 16  ;;  %v9289_v50 = vld [vmem:[%s10729_s1 + $0x5f0] sm:$0xff]  }
 0x177   : > { %8812 = vmatmul.mubr.bf16.vlgmr.msra.gmra.mrb[0].mxu0 %v7817_v35  ;;  %8535 = vmatprep.subr.bf16.mxu1 %v9280_v25  ;;  %v2877_v35 = vrot.slane %v2875_v26, 6  ;;  %v5994_v39 = vrot.slane %v5993_v28, 4  ;;  %v2890_v41 = vshrl.u32 %v7247_v17, 16  ;;  %v2893_v51 = vshll.u32 %v7247_v17, 16  ;;  %v7279_v17 = vld [vmem:[%s9375_s14 + $0x14] sm:$0x3] }
 0x178   : > { %8820 = vmatpush3.bf16.msra.mxu0 %v10487_v48  ;;  %v2851_v48 = vor.u32 %v2850_v57, %v2847_v53  ;;  %v2869_v44 = vor.u32 %v2868_v32, %v2865_v29  ;;  %v7799_v53 = vld [vmem:[%s9375_s14 + $0x54] sm:$0x1]  ;;  %v6004_v63 = vshll.u32 %v7796_v31, 16  ;;  %v6003_v1 = vrot.slane %v6001_v30, 4  ;;  %v7829_v38 = vld [vmem:[%s9375_s14 + $0x1c] sm:$0x1] }
 0x179   : > { %8821 = vmatprep.subr.bf16.mxu0 %v9279_v27  ;;  %v5999_v45 = vsel %vm9503_vm8, %v5994_v39, %v5998_v24  ;;  %v2892_v56 = vrot.slane %v2890_v41, 5  ;;  %v9288_v57 = vld [vmem:[%s10729_s1 + $0x2f0] sm:$0xff]   ;;  %v2895_v62 = vrot.slane %v2893_v51, 6  ;;  %v6010_v2 = vshll.u32 %v7797_v36, 16  ;;  %v7828_v24 = vld [vmem:[%s9375_s14 + $0x18] sm:$0xe] }
 0x17a   : > { %8536 = vmatpush3.bf16.msra.mxu1 %v9280_v25  ;;  %v2852_v14 = vrot.slane %v2851_v48, 4  ;;  %v2872_v25 = vshrl.u32 %v7245_v6, 16  ;;  %v7818_v59 = vcombine.low %v5985_v46, %v5999_v45  ;;  %v9290_v48 = vld [vmem:[%s10729_s1 + $0x2f8] sm:$0xff]   ;;  %v6006_v6 = vrot.slane %v6004_v63, 5  ;;  %v7830_v28 = vld [vmem:[%s9375_s14 + $0x20] sm:$0xe] }
 0x17b   : > { %8537 = vmatprep.subr.bf16.mxu1 %v9282_v34  ;;  %v2896_v5 = vor.u32 %v2895_v62, %v2892_v56  ;;  %v6012_v10 = vrot.slane %v6010_v2, 5  ;;  %v6017_v11 = vrot.slane %v6015_v3, 4  ;;  %v9291_v29 = vld [vmem:[%s10729_s1 + $0x5f8] sm:$0xff]   ;;  %v7831_v32 = vld [vmem:[%s9375_s14 + $0x24] sm:$0x1] }
 0x17c   : > { %8822 = vmatpush3.bf16.msra.mxu0 %v9279_v27  ;;  %v2861_v23 = vsel %vm9699_vm14, %v2852_v14, %v2860_v8  ;;  %v9286_v27 = vld [vmem:[%s10729_s1 + $0x2e8] sm:$0xff]   ;;  %v2874_v33 = vrot.slane %v2872_v25, 5  ;;  %8815 = vmatprep.mubr.bf16.mxu0 %v7818_v59  ;;  %v6007_v14 = vor.u32 %v6006_v6, %v6003_v1  ;;  %v10589_v36 = vld [vmem:[%s10729_s1 + $0x600] sm:$0xff]   ;;  %v6236_v40 = vrot.slane %v7831_v32, 5  ;;  %v7280_v41 = vld [vmem:[%s9375_s14 + $0x18] sm:$0xc] }
 0x17d   : > { %8823 = vmatprep.subr.bf16.mxu0 %v9281_v61  ;;  %v7266_v60 = vcombine.low %v2843_v13, %v2861_v23  ;;  %v7276_v8 = vld [vmem:[%s9375_s14 + $0x8] sm:$0xc]  ;;  %v7277_v13 = vld [vmem:[%s9375_s14 + $0xc] sm:$0x3]  ;;  %v7293_v23 = vrot.slane %v7278_v15, 10 }
 0x17e   : > { %8538 = vmatpush3.bf16.msra.mxu1 %v9282_v34  ;;  %v2881_v34 = vshrl.u32 %v7246_v12, 16  ;;  %v2878_v47 = vor.u32 %v2877_v35, %v2874_v33  ;;  %v6024_v12 = vshll.u32 %v7799_v53, 16  ;;  %v3102_v22 = vrot.slane %v7277_v13, 6  ;;  %v7283_v51 = vld [vmem:[%s9375_s14 + $0x24] sm:$0x3] }
 0x17f   : > { %8539 = vmatprep.subr.bf16.mxu1 %v9284_v7  ;;  %8527 = vmatprep.mubr.bf16.mxu1 %v7266_v60  ;;  %v6008_v26 = vrot.slane %v6007_v14, 4  ;;  %v3106_v60 = vrot.slane %v7279_v17, 6  ;;  %v7844_v33 = vrot.slane %v7828_v24, 9  ;;  %v6232_v35 = vrot.slane %v7829_v38, 5  ;;  %v7833_v59 = vld [vmem:[%s9375_s14 + $0x2c] sm:$0x1] }
 0x180   : > { %8824 = vmatpush3.bf16.msra.mxu0 %v9281_v61  ;;  %v2883_v52 = vrot.slane %v2881_v34, 5  ;;  %v2870_v61 = vrot.slane %v2869_v44, 4  ;;  %v6026_v21 = vrot.slane %v6024_v12, 5  ;;  %v7845_v34 = vrot.slane %v7830_v28, 9  ;;  %v7835_v1 = vld [vmem:[%s9375_s14 + $0x34] sm:$0x1] }
 0x181   : > { %8825 = vmatprep.subr.bf16.mxu0 %v9283_v18  ;;  %v3107_v39 = vsel %vm9819_vm1, %v7293_v23, %v3106_v60  ;;  %v7294_v53 = vrot.slane %v7280_v41, 10  ;;  %v3114_v30 = vrot.slane %v7283_v51, 6  ;;  %v6240_v3 = vrot.slane %v7833_v59, 5  ;;  %v7287_v12 = vld [vmem:[%s9375_s14 + $0x34] sm:$0x3] }
 0x182   : > { %8540 = vmatpush3.bf16.msra.mxu1 %v9284_v7  ;;  %v2887_v0 = vor.u32 %v2886_v55, %v2883_v52  ;;  %v2879_v4 = vsel %vm9699_vm14, %v2870_v61, %v2878_v47  ;;  %v6018_v7 = vshll.u32 %v7798_v43, 16  ;;  %v7281_v43 = vld [vmem:[%s9375_s14 + $0x1c] sm:$0x3]  ;;  %v6233_v47 = vsel %vm9602_vm11, %v7844_v33, %v6232_v35  ;;  %v7282_v52 = vld [vmem:[%s9375_s14 + $0x20] sm:$0xc]  ;;  %v9294_v28 = vld [vmem:[%s10729_s1 + $0x610] sm:$0xff]  }
 0x183   : > { %8541 = vmatprep.subr.bf16.mxu1 %v9286_v27  ;;  %v3110_v45 = vrot.slane %v7281_v43, 6  ;;  %v6237_v56 = vsel %vm9602_vm11, %v7845_v34, %v6236_v40  ;;  %v3122_v15 = vrot.slane %v7287_v12, 6  ;;  %v7836_v17 = vld [vmem:[%s9375_s14 + $0x38] sm:$0xe]  ;;  %v7289_v38 = vld [vmem:[%s9375_s14 + $0x3c] sm:$0x3] }
 0x184   : > { %8826 = vmatpush3.bf16.msra.mxu0 %v9283_v18  ;;  %v2888_v9 = vrot.slane %v2887_v0, 4  ;;  %v6020_v16 = vrot.slane %v6018_v7, 5  ;;  %v7292_v18 = vrot.slane %v7276_v8, 10  ;;  %v7868_v62 = vcombine.low %v6233_v47, %v6237_v56  ;;  %v7834_v0 = vld [vmem:[%s9375_s14 + $0x30] sm:$0xe] }
 0x185   : > { %8827 = vmatprep.subr.bf16.mxu0 %v9285_v37  ;;  %v3111_v63 = vsel %vm9819_vm1, %v7294_v53, %v3110_v45  ;;  %v7848_v23 = vrot.slane %v7836_v17, 9  ;;  %v7288_v60 = vld [vmem:[%s9375_s14 + $0x38] sm:$0xc]  ;;  %v7290_v32 = vld [vmem:[%s9375_s14 + $0x40] sm:$0xc]  ;;  %v3126_v34 = vrot.slane %v7289_v38, 6 }
 0x186   : > { %8542 = vmatpush3.bf16.msra.mxu1 %v9286_v27  ;;  %v2897_v19 = vsel %vm9699_vm14, %v2888_v9, %v2896_v5  ;;  %v6021_v27 = vor.u32 %v6020_v16, %v6017_v11  ;;  %v3103_v31 = vsel %vm9819_vm1, %v7292_v18, %v3102_v22  ;;  %v10617_v5 = vld [vmem:[%s10729_s1 + $0x608] sm:$0xff]   ;;  %v7286_v11 = vld [vmem:[%s9375_s14 + $0x30] sm:$0xc]  ;;  %v7837_v18 = vld [vmem:[%s9375_s14 + $0x3c] sm:$0x1]  ;;  %v7298_v35 = vrot.slane %v7288_v60, 10 }
 0x187   : > { %8543 = vmatprep.subr.bf16.mxu1 %v9288_v57  ;;  %v7267_v25 = vcombine.low %v2879_v4, %v2897_v19  ;;  %v7316_v44 = vcombine.low %v3103_v31, %v3107_v39  ;;  %v6244_v4 = vrot.slane %v7835_v1, 5  ;;  %v7284_v9 = vld [vmem:[%s9375_s14 + $0x28] sm:$0xc]  ;;  %v7297_v16 = vrot.slane %v7286_v11, 10  ;;  %v7839_v22 = vld [vmem:[%s9375_s14 + $0x44] sm:$0x1] }
 0x188   : > { %8828 = vmatpush3.bf16.msra.mxu0 %v9285_v37  ;;  %v6013_v37 = vsel %vm9503_vm8, %v6008_v26, %v6012_v10  ;;  %v6022_v46 = vrot.slane %v6021_v27, 4  ;;  %v7285_v10 = vld [vmem:[%s9375_s14 + $0x2c] sm:$0x3]  ;;  %v7296_v13 = vrot.slane %v7284_v9, 10  ;;  %v6248_v24 = vrot.slane %v7837_v18, 5  ;;  %v9295_v45 = vld [vmem:[%s10729_s1 + $0x618] sm:$0xff]  }
 0x189   : > { %8829 = vmatprep.subr.bf16.mxu0 %v9287_v58  ;;  %8528 = vmatmul.mubr.bf16.gmra.mrb[4].mxu1 %v7267_v25  ;;  %v3118_v14 = vrot.slane %v7285_v10, 6  ;;  %v3123_v25 = vsel %vm9819_vm1, %v7297_v16, %v3122_v15  ;;  %v6252_v27 = vrot.slane %v7839_v22, 5  ;;  %v7291_v33 = vld [vmem:[%s9375_s14 + $0x44] sm:$0x3]  ;;  %v7840_v40 = vld [vmem:[%s9375_s14 + $0x48] sm:$0xe] }
 0x18a   : > { %8544 = vmatpush3.bf16.msra.mxu1 %v9288_v57  ;;  %v6027_v55 = vsel %vm9503_vm8, %v6022_v46, %v6026_v21  ;;  %v7295_v57 = vrot.slane %v7282_v52, 10  ;;  %8547 = vmatprep.mubr.bf16.mxu1 %v7316_v44  ;;  %v6249_v31 = vsel %vm9602_vm11, %v7848_v23, %v6248_v24  ;;  %v7299_v46 = vrot.slane %v7290_v32, 10  ;;  %v7841_v41 = vld [vmem:[%s9375_s14 + $0x4c] sm:$0x1]  ;;  %v7842_v47 = vld [vmem:[%s9375_s14 + $0x50] sm:$0xe] }
 0x18b   : > { %8545 = vmatprep.subr.bf16.mxu1 %v9290_v48  ;;  %v7819_v61 = vcombine.low %v6013_v37, %v6027_v55  ;;  %v3119_v21 = vsel %vm9819_vm1, %v7296_v13, %v3118_v14  ;;  %v3130_v39 = vrot.slane %v7291_v33, 6  ;;  %v3127_v44 = vsel %vm9819_vm1, %v7298_v35, %v3126_v34  ;;  %v7843_v52 = vld [vmem:[%s9375_s14 + $0x54] sm:$0x1]  ;;  %v7889_v9 = vld [vmem:[%s9375_s14 + $0x3c] sm:$0x3]  ;;  %v9297_v14 = vld [vmem:[%s10729_s1 + $0x628] sm:$0xff]  }
 0x18c   : > { %8830 = vmatpush3.bf16.msra.mxu0 %v9287_v58  ;;  %v7832_v58 = vld [vmem:[%s9375_s14 + $0x28] sm:$0xe]  ;;  %v3115_v2 = vsel %vm9819_vm1, %v7295_v57, %v3114_v30  ;;  %v7850_v51 = vrot.slane %v7840_v40, 9  ;;  %v6256_v53 = vrot.slane %v7841_v41, 5  ;;  %v7851_v56 = vrot.slane %v7842_v47, 9  ;;  %v9298_v32 = vld [vmem:[%s10729_s1 + $0x630] sm:$0xff]  }
 0x18d   : > { %8831 = vmatprep.subr.bf16.mxu0 %v9289_v50  ;;  %v7846_v49 = vrot.slane %v7832_v58, 9  ;;  %8816 = vmatmul.mubr.bf16.gmra.mrb[4].mxu0 %v7819_v61  ;;  %v7317_v6 = vcombine.low %v3111_v63, %v3115_v2  ;;  %v3131_v55 = vsel %vm9819_vm1, %v7299_v46, %v3130_v39  ;;  %v6260_v57 = vrot.slane %v7843_v52, 5  ;;  %v7880_v61 = vld [vmem:[%s9375_s14 + $0x18] sm:$0xe]  ;;  %v7882_v63 = vld [vmem:[%s9375_s14 + $0x20] sm:$0xe] }
 0x18e   : > { %8546 = vmatpush3.bf16.msra.mxu1 %v9290_v48  ;;  %v7847_v48 = vrot.slane %v7834_v0, 9  ;;  %8835 = vmatprep.mubr.bf16.mxu0 %v7868_v62  ;;  %v7319_v30 = vcombine.low %v3127_v44, %v3131_v55  ;;  %v6257_v58 = vsel %vm9602_vm11, %v7850_v51, %v6256_v53  ;;  %v7881_v62 = vld [vmem:[%s9375_s14 + $0x1c] sm:$0x3]  ;;  %v6449_v0 = vshrl.u32 %v7880_v61, 16  ;;  %v7890_v18 = vld [vmem:[%s9375_s14 + $0x40] sm:$0xe] }
 0x18f   : > { %8867 = vmatprep.subr.bf16.mxu1 %v10589_v36  ;;  %v6241_v7 = vsel %vm9602_vm11, %v7846_v49, %v6240_v3  ;;  %v6452_v1 = vshll.u32 %v7880_v61, 16  ;;  %v6458_v49 = vshrl.u32 %v7881_v62, 16  ;;  %v6461_v2 = vshll.u32 %v7881_v62, 16  ;;  %v7891_v22 = vld [vmem:[%s9375_s14 + $0x44] sm:$0x3] }
 0x190   : > { %8832 = vmatpush3.bf16.msra.mxu0 %v9289_v50  ;;  %v6245_v8 = vsel %vm9602_vm11, %v7847_v48, %v6244_v4  ;;  %v7838_v50 = vld [vmem:[%s9375_s14 + $0x40] sm:$0xe]  ;;  %v6467_v3 = vshrl.u32 %v7882_v63, 16  ;;  %v6470_v48 = vshll.u32 %v7882_v63, 16  ;;  %v7888_v4 = vld [vmem:[%s9375_s14 + $0x38] sm:$0xe] }
 0x191   : > { %8833 = vmatprep.subr.bf16.mxu0 %v9291_v29  ;;  %8548 = vmatmul.mubr.bf16.vlgmr.msra.gmra.mrb[0].mxu1 %v7317_v6  ;;  %v7869_v19 = vcombine.low %v6241_v7, %v6245_v8  ;;  %v7849_v26 = vrot.slane %v7838_v50, 9  ;;  %v6451_v6 = vrot.slane %v6449_v0, 5  ;;  %v6454_v7 = vrot.slane %v6452_v1, 6  ;;  %v7884_v46 = vld [vmem:[%s9375_s14 + $0x28] sm:$0xe] }
 0x192   : > { %8875 = vmatpush3.bf16.msra.mxu1 %v10589_v36  ;;  %v6479_v8 = vshll.u32 %v7883_v54, 16  ;;  %v6460_v10 = vrot.slane %v6458_v49, 5  ;;  %v6463_v11 = vrot.slane %v6461_v2, 6  ;;  %v6469_v12 = vrot.slane %v6467_v3, 5  ;;  %v7885_v44 = vld [vmem:[%s9375_s14 + $0x2c] sm:$0x3] }
 0x193   : > { %8868 = vmatprep.subr.bf16.mxu1 %v10617_v5  ;;  %v6253_v37 = vsel %vm9602_vm11, %v7849_v26, %v6252_v27  ;;  %v6472_v13 = vrot.slane %v6470_v48, 6  ;;  %v6455_v16 = vor.u32 %v6454_v7, %v6451_v6  ;;  %v6524_v23 = vshll.u32 %v7888_v4, 16  ;;  %v7886_v47 = vld [vmem:[%s9375_s14 + $0x30] sm:$0xe]  ;;  %v7892_v49 = vld [vmem:[%s9375_s14 + $0x48] sm:$0xe] }
 0x194   : > { %8834 = vmatpush3.bf16.msra.mxu0 %v9291_v29  ;;  %v7318_v29 = vcombine.low %v3119_v21, %v3123_v25  ;;  %v7870_v43 = vcombine.low %v6249_v31, %v6253_v37  ;;  %v6481_v17 = vrot.slane %v6479_v8, 6  ;;  %v6464_v21 = vor.u32 %v6463_v11, %v6460_v10 }
 0x195   : > { %8843 = vmatprep.subr.bf16.mxu0 %v10589_v36  ;;  %v6473_v50 = vor.u32 %v6472_v13, %v6469_v12  ;;  %v6530_v24 = vshrl.u32 %v7889_v9, 16  ;;  %v6456_v25 = vrot.slane %v6455_v16, 4  ;;  %v6533_v60 = vshll.u32 %v7889_v9, 16  ;;  %v7893_v9 = vld [vmem:[%s9375_s14 + $0x4c] sm:$0x3] }
 0x196   : > { %8876 = vmatpush3.bf16.msra.mxu1 %v10617_v5  ;;  %8551 = vmatprep.mubr.bf16.mxu1 %v7318_v29  ;;  %v6539_v31 = vshrl.u32 %v7890_v18, 16  ;;  %v6542_v34 = vshll.u32 %v7890_v18, 16  ;;  %v6548_v37 = vshrl.u32 %v7891_v22, 16  ;;  %v6494_v61 = vshrl.u32 %v7885_v44, 16  ;;  %v7894_v12 = vld [vmem:[%s9375_s14 + $0x50] sm:$0xe] }
 0x197   : > { %8836 = vmatmul.mubr.bf16.vlgmr.msra.gmra.mrb[0].mxu0 %v7869_v19  ;;  %8869 = vmatprep.subr.bf16.mxu1 %v9294_v28  ;;  %v6521_v19 = vshrl.u32 %v7888_v4, 16  ;;  %v6474_v38 = vrot.slane %v6473_v50, 4  ;;  %v6532_v29 = vrot.slane %v6530_v24, 5  ;;  %v6465_v33 = vsel %vm9699_vm14, %v6456_v25, %v6464_v21  ;;  %v7895_v21 = vld [vmem:[%s9375_s14 + $0x54] sm:$0x3] }
 0x198   : > { %8844 = vmatpush3.bf16.msra.mxu0 %v10589_v36  ;;  %8839 = vmatprep.mubr.bf16.mxu0 %v7870_v43  ;;  %v6261_v36 = vsel %vm9602_vm11, %v7851_v56, %v6260_v57  ;;  %v6535_v35 = vrot.slane %v6533_v60, 6  ;;  %v6541_v41 = vrot.slane %v6539_v31, 5  ;;  %v6551_v43 = vshll.u32 %v7891_v22, 16 }
 0x199   : > { %8845 = vmatprep.subr.bf16.mxu0 %v10617_v5  ;;  %8552 = vmatmul.mubr.bf16.gmra.mrb[4].mxu1 %v7319_v30  ;;  %v7871_v59 = vcombine.low %v6257_v58, %v6261_v36  ;;  %v6523_v27 = vrot.slane %v6521_v19, 5  ;;  %v6544_v53 = vrot.slane %v6542_v34, 6  ;;  %v6485_v57 = vshrl.u32 %v7884_v46, 16  ;;  %v9299_v58 = vld [vmem:[%s10729_s1 + $0x638] sm:$0xff]  }
 0x19a   : > { %8877 = vmatpush3.bf16.msra.mxu1 %v9294_v28  ;;  %v6536_v51 = vor.u32 %v6535_v35, %v6532_v29  ;;  %v6553_v56 = vrot.slane %v6551_v43, 6  ;;  %v6488_v30 = vshll.u32 %v7884_v46, 16  ;;  %v6497_v62 = vshll.u32 %v7885_v44, 16 }
 0x19b   : > { %8870 = vmatprep.subr.bf16.mxu1 %v9295_v45  ;;  %v6545_v36 = vor.u32 %v6544_v53, %v6541_v41  ;;  %v6503_v63 = vshrl.u32 %v7886_v47, 16  ;;  %v6487_v0 = vrot.slane %v6485_v57, 5  ;;  %v6496_v3 = vrot.slane %v6494_v61, 5 }
 0x19c   : > { %8846 = vmatpush3.bf16.msra.mxu0 %v10617_v5  ;;  %v6476_v5 = vshrl.u32 %v7883_v54, 16  ;;  %v6490_v1 = vrot.slane %v6488_v30, 6  ;;  %v6499_v48 = vrot.slane %v6497_v62, 6  ;;  %v6506_v7 = vshll.u32 %v7886_v47, 16 }
 0x19d   : > { %8847 = vmatprep.subr.bf16.mxu0 %v9294_v28  ;;  %v6546_v2 = vrot.slane %v6545_v36, 4  ;;  %v6505_v4 = vrot.slane %v6503_v63, 5  ;;  %v6557_v13 = vshrl.u32 %v7892_v49, 16  ;;  %v6560_v16 = vshll.u32 %v7892_v49, 16 }
 0x19e   : > { %8878 = vmatpush3.bf16.msra.mxu1 %v9295_v45  ;;  %v6478_v15 = vrot.slane %v6476_v5, 5  ;;  %v6491_v6 = vor.u32 %v6490_v1, %v6487_v0  ;;  %v6500_v11 = vor.u32 %v6499_v48, %v6496_v3  ;;  %v6508_v18 = vrot.slane %v6506_v7, 6  ;;  %v7924_v48 = vld [vmem:[%s10730_s2] ss:$0 sm:$0xff] }
 0x19f   : > { %8840 = vmatmul.mubr.bf16.gmra.mrb[4].mxu0 %v7871_v59  ;;  %8871 = vmatprep.subr.bf16.mxu1 %v10670_v42  ;;  %v7887_v59 = vld [vmem:[%s9375_s14 + $0x34] sm:$0x3]  ;;  %v6559_v50 = vrot.slane %v6557_v13, 5  ;;  %v6562_v22 = vrot.slane %v6560_v16, 6  ;;  %v6578_v29 = vshll.u32 %v7894_v12, 16  ;;  %v6584_v34 = vshrl.u32 %v7895_v21, 16 }
 0x1a0   : > { %8848 = vmatpush3.bf16.msra.mxu0 %v9294_v28  ;;  %v6482_v26 = vor.u32 %v6481_v17, %v6478_v15  ;;  %v6526_v28 = vrot.slane %v6524_v23, 6  ;;  %v6512_v5 = vshrl.u32 %v7887_v59, 16  ;;  %v6515_v8 = vshll.u32 %v7887_v59, 16 }
 0x1a1   : > { %8849 = vmatprep.subr.bf16.mxu0 %v9295_v45  ;;  %v6492_v17 = vrot.slane %v6491_v6, 4  ;;  %v6566_v23 = vshrl.u32 %v7893_v9, 16  ;;  %v6509_v25 = vor.u32 %v6508_v18, %v6505_v4  ;;  %v6580_v46 = vrot.slane %v6578_v29, 6 }
 0x1a2   : > { %8879 = vmatpush3.bf16.msra.mxu1 %v10670_v42  ;;  %v6483_v39 = vsel %vm9699_vm14, %v6474_v38, %v6482_v26  ;;  %v6527_v40 = vor.u32 %v6526_v28, %v6523_v27  ;;  %v6517_v19 = vrot.slane %v6515_v8, 6  ;;  %v6569_v26 = vshll.u32 %v7893_v9, 16 }
 0x1a3   : > { %8872 = vmatprep.subr.bf16.mxu1 %v9297_v14  ;;  %v7912_v52 = vcombine.low %v6465_v33, %v6483_v39  ;;  %v6501_v24 = vsel %vm9699_vm14, %v6492_v17, %v6500_v11  ;;  %v6575_v27 = vshrl.u32 %v7894_v12, 16  ;;  %v6563_v38 = vor.u32 %v6562_v22, %v6559_v50 }
 0x1a4   : > { %8850 = vmatpush3.bf16.msra.mxu0 %v9295_v45  ;;  %v6550_v45 = vrot.slane %v6548_v37, 5  ;;  %v6528_v55 = vrot.slane %v6527_v40, 4  ;;  %v6568_v28 = vrot.slane %v6566_v23, 5  ;;  %v6510_v31 = vrot.slane %v6509_v25, 4 }
 0x1a5   : > { %8851 = vmatprep.subr.bf16.mxu0 %v10670_v42  ;;  %8859 = vmatprep.mubr.bf16.mxu0 %v7912_v52  ;;  %v6571_v33 = vrot.slane %v6569_v26, 6  ;;  %v6577_v35 = vrot.slane %v6575_v27, 5  ;;  %v6564_v37 = vrot.slane %v6563_v38, 4  ;;  %v6586_v41 = vrot.slane %v6584_v34, 5 }
 0x1a6   : > { %8880 = vmatpush3.bf16.msra.mxu1 %v9297_v14  ;;  %v6554_v54 = vor.u32 %v6553_v56, %v6550_v45 }
 0x1a7   : > { %8873 = vmatprep.subr.bf16.mxu1 %v9298_v32  ;;  %v6572_v40 = vor.u32 %v6571_v33, %v6568_v28  ;;  %v6581_v44 = vor.u32 %v6580_v46, %v6577_v35 }
 0x1a8   : > { %8852 = vmatpush3.bf16.msra.mxu0 %v10670_v42  ;;  %v6537_v42 = vsel %vm9699_vm14, %v6528_v55, %v6536_v51  ;;  %v6555_v10 = vsel %vm9699_vm14, %v6546_v2, %v6554_v54 }
 0x1a9   : > { %8853 = vmatprep.subr.bf16.mxu0 %v9297_v14  ;;  %v7914_v15 = vcombine.low %v6537_v42, %v6555_v10  ;;  %v6573_v52 = vsel %vm9699_vm14, %v6564_v37, %v6572_v40  ;;  %v6582_v51 = vrot.slane %v6581_v44, 4 }
 0x1aa   : > { %8881 = vmatpush3.bf16.msra.mxu1 %v9298_v32 }
 0x1ab   : > { %8874 = vmatprep.subr.bf16.mxu1 %v9299_v58  ;;  %8863 = vmatprep.mubr.bf16.mxu1 %v7914_v15 }
 0x1ac   : > { %8854 = vmatpush3.bf16.msra.mxu0 %v9297_v14  ;;  %v6514_v14 = vrot.slane %v6512_v5, 5 }
 0x1ad   : > { %8855 = vmatprep.subr.bf16.mxu0 %v9298_v32 }
 0x1ae   : > { %8882 = vmatpush3.bf16.msra.mxu1 %v9299_v58  ;;  %v6518_v60 = vor.u32 %v6517_v19, %v6514_v14 }
 0x1b0   : > { %8856 = vmatpush3.bf16.msra.mxu0 %v9298_v32  ;;  %v6587_v32 = vshll.u32 %v7895_v21, 16  ;;  %v6519_v39 = vsel %vm9699_vm14, %v6510_v31, %v6518_v60 }
 0x1b1   : > { %8857 = vmatprep.subr.bf16.mxu0 %v9299_v58  ;;  %v7913_v43 = vcombine.low %v6501_v24, %v6519_v39 }
 0x1b2   : > { %v6589_v47 = vrot.slane %v6587_v32, 6 }
 0x1b4   : > { %8858 = vmatpush3.bf16.msra.mxu0 %v9299_v58  ;;  %v6590_v53 = vor.u32 %v6589_v47, %v6586_v41 }
 0x1b6   : > { %v6591_v45 = vsel %vm9699_vm14, %v6582_v51, %v6590_v53 }
 0x1b7   : > { %8860 = vmatmul.mubr.bf16.vlgmr.msra.gmra.mrb[0].mxu0 %v7913_v43  ;;  %v7915_v55 = vcombine.low %v6573_v52, %v6591_v45 }
 0x1b9   : > { %8864 = vmatmul.mubr.bf16.vlgmr.msra.gmra.mrb[8].mxu1 %v7915_v55 }
 0x264   : > { %v8549_v56 = vpop.f32.mrb[0].mxu1 }
 0x265   : > { %v3247_v57 = vpop.f32.mrb[1].mxu1 }
 0x266   : > { %v8550_v30 = vpop.f32.mrb[2].mxu1 }
 0x267   : > { %v3250_v58 = vpop.f32.mrb[3].mxu1 }
 0x26c   : > { %v8553_v36 = vpop.f32.mrb[4].mxu1 }
 0x26d   : > { %v3263_v59 = vpop.f32.mrb[5].mxu1 }
 0x26e   : > { %v8554_v61 = vpop.f32.mrb[6].mxu1 }
 0x26f   : > { %v3266_v62 = vpop.f32.mrb[7].mxu1 }
 0x272   : > { %v8841_v63 = vpop.f32.mrb[4].mxu0 }
 0x273   : > { %v8887_v42 = vadd.f32 %v8841_v63, %v8553_v36  ;;  %v6393_v54 = vpop.f32.mrb[5].mxu0 }
 0x274   : > { %v8889_v0 = vadd.f32 %v6393_v54, %v3263_v59  ;;  %v8842_v1 = vpop.f32.mrb[6].mxu0 }
 0x275   : > { %v8891_v49 = vadd.f32 %v8842_v1, %v8554_v61  ;;  %v6396_v2 = vpop.f32.mrb[7].mxu0 }
 0x276   : > { %v8893_v20 = vadd.f32 %v6396_v2, %v3266_v62 }
 0x28a   : > { %v8861_v3 = vpop.f32.mrb[0].mxu0 }
 0x28b   : > { %v8883_v4 = vadd.f32 %v8861_v3, %v8549_v56  ;;  %v6707_v6 = vpop.f32.mrb[1].mxu0 }
 0x28c   : > { %v8884_v7 = vadd.f32 %v6707_v6, %v3247_v57  ;;  %v8862_v5 = vpop.f32.mrb[2].mxu0  ;;  %v8865_v13 = vpop.f32.mrb[8].mxu1 }
 0x28d   : > { %v6779_v8 = vadd.f32 %v8883_v4, %v7924_v48  ;;  %v8885_v9 = vadd.f32 %v8862_v5, %v8550_v30  ;;  %v6710_v10 = vpop.f32.mrb[3].mxu0  ;;  %v8888_v15 = vadd.f32 %v8887_v42, %v8865_v13  ;;  %v6723_v17 = vpop.f32.mrb[9].mxu1 }
 0x28e   : > { %v6777_v11 = vadd.f32 %v8884_v7, %v7924_v48  ;;  %v8886_v12 = vadd.f32 %v6710_v10, %v3250_v58  ;;  %v8890_v19 = vadd.f32 %v8889_v0, %v6723_v17  ;;  %v8866_v50 = vpop.f32.mrb[10].mxu1 }
 0x28f   : > { %v6780_v16 = vadd.f32 %v8885_v9, %v7924_v48  ;;  %v6787_v14 = vmax.f32 %v6779_v8, 0.0  ;;  %v6783_v22 = vadd.f32 %v8888_v15, %v7924_v48  ;;  %v8892_v24 = vadd.f32 %v8891_v49, %v8866_v50  ;;  %v6726_v26 = vpop.f32.mrb[11].mxu1 }
 0x290   : > { %v6778_v18 = vadd.f32 %v8886_v12, %v7924_v48  ;;  %v6785_v23 = vmax.f32 %v6777_v11, 0.0  ;;  %v6781_v27 = vadd.f32 %v8890_v19, %v7924_v48  ;;  %v8894_v38 = vadd.f32 %v8893_v20, %v6726_v26 }
 0x291   : > { %v6788_v21 = vmax.f32 %v6780_v16, 0.0  ;;  %v6784_v28 = vadd.f32 %v8892_v24, %v7924_v48  ;;  %v6791_v33 = vmax.f32 %v6783_v22, 0.0 }
 0x292   : > { %v6786_v25 = vmax.f32 %v6778_v18, 0.0  ;;  %v6782_v31 = vadd.f32 %v8894_v38, %v7924_v48  ;;  %v6789_v34 = vmax.f32 %v6781_v27, 0.0 }
 0x293   : > { %v7952_v60 = vpack.c.bf16 %v6788_v21, %v6787_v14  ;;  %v6792_v35 = vmax.f32 %v6784_v28, 0.0 }
 0x294   : > { %v7947_v29 = vpack.c.bf16 %v6786_v25, %v6785_v23  ;;  %v6790_v37 = vmax.f32 %v6782_v31, 0.0 }
 0x295   : > { %7964 = vst [vmem:[%s170_s10 + $0x8] sm:$0xff] %v7952_v60   ;;  %v7962_v46 = vpack.c.bf16 %v6792_v35, %v6791_v33 }
 0x296   : > { %7948 = vst [vmem:[%s170_s10] sm:$0xff] %v7947_v29   ;;  %v7957_v32 = vpack.c.bf16 %v6790_v37, %v6789_v34 }
 0x297   : > { %7966 = vst [vmem:[%s170_s10 + $0x18] sm:$0xff] %v7962_v46  }
 0x298   : > { %7965 = vst [vmem:[%s170_s10 + $0x10] sm:$0xff] %v7957_v32  }
 0x299 PF: > { %s13_s12 = sadd.s32 1, %s9306_s12  }
 0x29a   : > { %p10_p4 = scmp.ge.s32.totalorder %s13_s12, 4  }
 0x29c   :  { %12 = sbr.rel (!%p10_p4) target bundleno = 1 (0x1), region = 89 }

</bundles_post_ra>
